<compile_context>
chip_gen: v5e
topology: v5e:2x2
jax: 0.10.0
libtpu: 0.0.40
codegen_flags: <defaults>
</compile_context>

<pallas_src>
import functools

import jax
import jax.numpy as jnp
from jax import lax
from jax.experimental import pallas as pl
from jax.experimental.pallas import tpu as pltpu

_BN_EPS = 1e-5
_LEAKY_SLOPE = 0.01                      # nn.LeakyReLU default negative_slope
_VMEM_LIMIT_BYTES = 56 * 1024 * 1024     # <= v7x 64 MiB physical, ~8 MiB headroom


# ------------------------------ Pallas kernel ------------------------------- #

def _resblock_body(x_ref, w1_ref, b1_ref, w2_ref, wsc_ref, b_ref, o_ref, h_ref,
                   *, ho, wo, stride, neg_slope):
    """Fused ResidualBlock forward for one image.

    x_ref:   (1, H+2, W+2, Cin)    spatially padded input, bf16
    w1_ref:  (9*Cin, Coutp)        conv1 taps (dy,dx,c order), BN1 scale folded, bf16
    b1_ref:  (1, Coutp)            folded BN1 bias, f32
    w2_ref:  (9*Coutp, Coutp)      conv2 taps, BN2 scale folded, bf16
    wsc_ref: (Cin, Coutp) | None   1x1-conv shortcut weights (BNsc folded), bf16
    b_ref:   (1, Coutp)            b2 (+ bsc), f32
    o_ref:   (1, Ho, Wo, Coutp)    output
    h_ref:   (Ho+2, Wo+2, Coutp)   VMEM scratch: zero-haloed conv1 output, bf16
    """
    cin = x_ref.shape[-1]
    coutp = o_ref.shape[-1]
    m = ho * wo

    # ---- conv1 (3x3, stride) + BN1 + LeakyReLU: ONE K=9*Cin MXU matmul --------------
    taps = []
    for dy in range(3):
        for dx in range(3):
            if stride == 1:
                t = x_ref[0, pl.ds(dy, ho), pl.ds(dx, wo), :]
            else:
                t = x_ref[0, pl.ds(dy, ho, stride), pl.ds(dx, wo, stride), :]
            taps.append(t.reshape(m, cin))
    cols1 = jnp.concatenate(taps, axis=-1)                       # (M, 9*Cin) bf16
    h = jnp.dot(cols1, w1_ref[...], preferred_element_type=jnp.float32)
    h = h + b1_ref[...]                                          # folded BN1 bias
    h = jnp.where(h > 0, h, neg_slope * h)                       # LeakyReLU, f32 VPU

    # Zero-haloed intermediate stays in VMEM (no HBM round trip between the convs).
    # The redundant interior zero-fill is a handful of VMEM stores, not HBM traffic.
    h_ref[...] = jnp.zeros(h_ref.shape, h_ref.dtype)
    h_ref[1:ho + 1, 1:wo + 1, :] = h.reshape(ho, wo, coutp).astype(h_ref.dtype)

    # ---- conv2 (3x3, stride 1) + BN2: ONE K=9*Coutp MXU matmul ----------------------
    taps2 = [h_ref[pl.ds(dy, ho), pl.ds(dx, wo), :].reshape(m, coutp)
             for dy in range(3) for dx in range(3)]
    cols2 = jnp.concatenate(taps2, axis=-1)                      # (M, 9*Coutp) bf16
    acc = jnp.dot(cols2, w2_ref[...], preferred_element_type=jnp.float32)

    # ---- shortcut: read from the already-resident input block (no extra HBM input) --
    if stride == 1:
        xs = x_ref[0, pl.ds(1, ho), pl.ds(1, wo), :]
    else:
        xs = x_ref[0, pl.ds(1, ho, stride), pl.ds(1, wo, stride), :]
    xs = xs.reshape(m, cin)
    if wsc_ref is not None:
        # 1x1-conv shortcut (BNsc folded) accumulates straight into the main acc.
        acc = acc + jnp.dot(xs, wsc_ref[...], preferred_element_type=jnp.float32)
    else:
        # identity shortcut: plain f32 add (no x @ I matmul); pad channels to Coutp.
        xs = xs.astype(jnp.float32)
        if coutp > cin:
            xs = jnp.concatenate(
                [xs, jnp.zeros((m, coutp - cin), jnp.float32)], axis=-1)
        acc = acc + xs

    out = jnp.maximum(acc + b_ref[...], 0.0)                     # +bias, ReLU (f32)
    o_ref[...] = out.reshape(1, ho, wo, coutp).astype(o_ref.dtype)


def _resblock_kernel_convsc(x_ref, w1_ref, b1_ref, w2_ref, wsc_ref, b_ref, o_ref,
                            h_ref, **kw):
    _resblock_body(x_ref, w1_ref, b1_ref, w2_ref, wsc_ref, b_ref, o_ref, h_ref, **kw)


def _resblock_kernel_idsc(x_ref, w1_ref, b1_ref, w2_ref, b_ref, o_ref, h_ref, **kw):
    _resblock_body(x_ref, w1_ref, b1_ref, w2_ref, None, b_ref, o_ref, h_ref, **kw)


# ----------------------------- kernel wrapper ------------------------------- #

def _resblock_call(x_pad, w1, b1, w2, b_out, wsc=None, *, ho, wo, stride, coutp,
                   out_dtype):
    n, hp, wp, cin = x_pad.shape
    static = dict(ho=ho, wo=wo, stride=stride, neg_slope=_LEAKY_SLOPE)

    x_spec = pl.BlockSpec((1, hp, wp, cin), lambda i: (i, 0, 0, 0))
    # Constant-index weight/bias blocks: fetched once, kept resident across the grid.
    w1_spec = pl.BlockSpec((9 * cin, coutp), lambda i: (0, 0))
    b1_spec = pl.BlockSpec((1, coutp), lambda i: (0, 0))
    w2_spec = pl.BlockSpec((9 * coutp, coutp), lambda i: (0, 0))
    b_spec = pl.BlockSpec((1, coutp), lambda i: (0, 0))

    if wsc is not None:
        kernel = functools.partial(_resblock_kernel_convsc, **static)
        wsc_spec = pl.BlockSpec((cin, coutp), lambda i: (0, 0))
        in_specs = [x_spec, w1_spec, b1_spec, w2_spec, wsc_spec, b_spec]
        args = (x_pad, w1, b1, w2, wsc, b_out)
    else:
        kernel = functools.partial(_resblock_kernel_idsc, **static)
        in_specs = [x_spec, w1_spec, b1_spec, w2_spec, b_spec]
        args = (x_pad, w1, b1, w2, b_out)

    return pl.pallas_call(
        kernel,
        out_shape=jax.ShapeDtypeStruct((n, ho, wo, coutp), out_dtype),
        grid=(n,),
        in_specs=in_specs,
        out_specs=pl.BlockSpec((1, ho, wo, coutp), lambda i: (i, 0, 0, 0)),
        scratch_shapes=[pltpu.VMEM((ho + 2, wo + 2, coutp), jnp.bfloat16)],
        compiler_params=pltpu.CompilerParams(
            dimension_semantics=("parallel",),          # batch shards across v7x TCs
            vmem_limit_bytes=_VMEM_LIMIT_BYTES),
    )(*args)


# ---------------------------------- glue ------------------------------------ #

def _round_up(x, m):
    return ((x + m - 1) // m) * m


def _bn_fold(gamma, beta, mean, var):
    scale = gamma / jnp.sqrt(var + _BN_EPS)
    return scale, beta - mean * scale


def _fold_w3x3(w_oihw, scale, kpad, coutp):
    """(Cout,Cin,3,3) -> (9*kpad, Coutp) bf16 with BN scale folded; tap order (dy,dx,c)."""
    cout, cin = w_oihw.shape[0], w_oihw.shape[1]
    w = jnp.transpose(w_oihw, (2, 3, 1, 0)) * scale.reshape(1, 1, 1, cout)   # (3,3,Cin,Cout)
    w = jnp.pad(w, ((0, 0), (0, 0), (0, kpad - cin), (0, coutp - cout)))
    return w.reshape(9 * kpad, coutp).astype(jnp.bfloat16)


def _pad_bias(b, coutp):
    return jnp.pad(b, (0, coutp - b.shape[0])).reshape(1, -1).astype(jnp.float32)


@functools.partial(jax.jit, static_argnames=("stride",))
def residual_block_forward(x_nchw, p, *, stride=1):
    """Pallas implementation of ResidualBlock.forward (BatchNorm in inference mode)."""
    n, cin, h, w = x_nchw.shape
    cout = p["w1"].shape[0]
    # Lane-dense outputs. TODO(synk): at tiny channel counts this 128-pad inflates
    # compute; for real layers keep 128 (prefer 256 multiples on v6e/v7x when cout>128).
    coutp = _round_up(cout, 128)
    ho = (h + 2 - 3) // stride + 1
    wo = (w + 2 - 3) // stride + 1

    # TODO(synk): keep the surrounding network NHWC (and bf16 if acceptable) to drop
    # both transposes and the final f32 writeback.
    x_nhwc = jnp.transpose(x_nchw, (0, 2, 3, 1))
    x_pad = jnp.pad(x_nhwc, ((0, 0), (1, 1), (1, 1), (0, 0))).astype(jnp.bfloat16)

    s1, b1 = _bn_fold(p["bn1_gamma"], p["bn1_beta"], p["bn1_mean"], p["bn1_var"])
    s2, b2 = _bn_fold(p["bn2_gamma"], p["bn2_beta"], p["bn2_mean"], p["bn2_var"])
    w1m = _fold_w3x3(p["w1"], s1, cin, coutp)
    w2m = _fold_w3x3(p["w2"], s2, coutp, coutp)

    if stride != 1 or cin != cout:
        ssc, bsc = _bn_fold(p["bnsc_gamma"], p["bnsc_beta"],
                            p["bnsc_mean"], p["bnsc_var"])
        wscm = p["wsc"][:, :, 0, 0].T * ssc.reshape(1, cout)          # (Cin, Cout)
        wscm = jnp.pad(wscm, ((0, 0), (0, coutp - cout))).astype(jnp.bfloat16)
        out = _resblock_call(x_pad, w1m, _pad_bias(b1, coutp), w2m,
                             _pad_bias(b2 + bsc, coutp), wscm,
                             ho=ho, wo=wo, stride=stride, coutp=coutp,
                             out_dtype=jnp.float32)
    else:
        out = _resblock_call(x_pad, w1m, _pad_bias(b1, coutp), w2m,
                             _pad_bias(b2, coutp), None,
                             ho=ho, wo=wo, stride=stride, coutp=coutp,
                             out_dtype=jnp.float32)

    out = out[..., :cout]                            # drop channel padding
    return jnp.transpose(out, (0, 3, 1, 2))          # back to NCHW


# --------------------------- params & reference ----------------------------- #

def init_params(key, cin, cout):
    # TODO(synk): BatchNorm uses inference-mode running stats (fresh-module defaults
    # mean=0, var=1); training-mode batch statistics are not computed.
    ks = jax.random.split(key, 9)
    return {
        "w1": 0.1 * jax.random.normal(ks[0], (cout, cin, 3, 3), jnp.float32),
        "w2": 0.1 * jax.random.normal(ks[1], (cout, cout, 3, 3), jnp.float32),
        "wsc": 0.1 * jax.random.normal(ks[2], (cout, cin, 1, 1), jnp.float32),
        "bn1_gamma": 1.0 + 0.1 * jax.random.normal(ks[3], (cout,), jnp.float32),
        "bn1_beta": 0.1 * jax.random.normal(ks[4], (cout,), jnp.float32),
        "bn1_mean": jnp.zeros((cout,), jnp.float32),
        "bn1_var": jnp.ones((cout,), jnp.float32),
        "bn2_gamma": 1.0 + 0.1 * jax.random.normal(ks[5], (cout,), jnp.float32),
        "bn2_beta": 0.1 * jax.random.normal(ks[6], (cout,), jnp.float32),
        "bn2_mean": jnp.zeros((cout,), jnp.float32),
        "bn2_var": jnp.ones((cout,), jnp.float32),
        "bnsc_gamma": 1.0 + 0.1 * jax.random.normal(ks[7], (cout,), jnp.float32),
        "bnsc_beta": 0.1 * jax.random.normal(ks[8], (cout,), jnp.float32),
        "bnsc_mean": jnp.zeros((cout,), jnp.float32),
        "bnsc_var": jnp.ones((cout,), jnp.float32),
    }


def residual_block_reference(x, p, *, stride=1):
    """Pure-JAX reference mirroring the PyTorch module (eval-mode BN)."""
    def conv(y, w, s, pad):
        return lax.conv_general_dilated(
            y, w, (s, s), ((pad, pad), (pad, pad)),
            dimension_numbers=("NCHW", "OIHW", "NCHW"))

    def bn(y, g, b, m, v):
        g = g[None, :, None, None]; b = b[None, :, None, None]
        m = m[None, :, None, None]; v = v[None, :, None, None]
        return (y - m) * g / jnp.sqrt(v + _BN_EPS) + b

    cin = x.shape[1]
    cout = p["w1"].shape[0]
    out = conv(x, p["w1"], stride, 1)
    out = bn(out, p["bn1_gamma"], p["bn1_beta"], p["bn1_mean"], p["bn1_var"])
    out = jnp.where(out > 0, out, _LEAKY_SLOPE * out)
    out = conv(out, p["w2"], 1, 1)
    out = bn(out, p["bn2_gamma"], p["bn2_beta"], p["bn2_mean"], p["bn2_var"])
    if stride != 1 or cin != cout:
        sc = conv(x, p["wsc"], stride, 0)
        sc = bn(sc, p["bnsc_gamma"], p["bnsc_beta"], p["bnsc_mean"], p["bnsc_var"])
    else:
        sc = x
    return jnp.maximum(out + sc, 0.0)


# ----------------------------------- main ----------------------------------- #

if __name__ == "__main__":
    key = jax.random.PRNGKey(0)
    kx, kp, kx2, kp2 = jax.random.split(key, 4)

    # Case 1: cin != cout -> 1x1-conv shortcut fused into the main kernel.
    n, cin, cout, hw, stride = 2, 4, 8, 16, 1
    x = jax.random.normal(kx, (n, cin, hw, hw), jnp.float32)
    params = init_params(kp, cin, cout)
    out = jax.block_until_ready(residual_block_forward(x, params, stride=stride))
    ref = jax.block_until_ready(residual_block_reference(x, params, stride=stride))
    assert out.shape == ref.shape == (n, cout, hw, hw), (out.shape, ref.shape)
    err1 = float(jnp.max(jnp.abs(out - ref)))
    assert err1 < 5e-2, f"conv-shortcut case: max abs error too large: {err1}"

    # Case 2: cin == cout, stride == 1 -> identity-shortcut kernel variant (plain add).
    cin2 = cout2 = 8
    x2 = jax.random.normal(kx2, (n, cin2, hw, hw), jnp.float32)
    params2 = init_params(kp2, cin2, cout2)
    out2 = jax.block_until_ready(residual_block_forward(x2, params2, stride=1))
    ref2 = jax.block_until_ready(residual_block_reference(x2, params2, stride=1))
    assert out2.shape == ref2.shape == (n, cout2, hw, hw), (out2.shape, ref2.shape)
    err2 = float(jnp.max(jnp.abs(out2 - ref2)))
    assert err2 < 5e-2, f"identity-shortcut case: max abs error too large: {err2}"

    print("KERNEL_OK")
</pallas_src>

<mosaic_0001>
module attributes {stable_mosaic.version = 11 : i64} {
  func.func @_resblock_kernel_convsc(%arg0: i32, %arg1: memref<1x18x18x4xbf16, #tpu.memory_space<vmem>>, %arg2: memref<36x128xbf16, #tpu.memory_space<vmem>>, %arg3: memref<1x128xf32, #tpu.memory_space<vmem>>, %arg4: memref<1152x128xbf16, #tpu.memory_space<vmem>>, %arg5: memref<4x128xbf16, #tpu.memory_space<vmem>>, %arg6: memref<1x128xf32, #tpu.memory_space<vmem>>, %arg7: memref<1x16x16x128xf32, #tpu.memory_space<vmem>>, %arg8: memref<18x18x128xbf16, #tpu.memory_space<vmem>>) attributes {dimension_semantics = [#tpu.dimension_semantics<parallel>], iteration_bounds = array<i64: 2>, scalar_prefetch = 0 : i64, scratch_operands = 1 : i64, tpu.core_type = #tpu.core_type<tc>, window_params = [{transform_indices = @transform_0, window_bounds = array<i64: 1, 18, 18, 4>}, {pipeline_mode = #tpu.pipeline_mode<synchronous>, transform_indices = @transform_1, window_bounds = array<i64: 36, 128>}, {pipeline_mode = #tpu.pipeline_mode<synchronous>, transform_indices = @transform_2, window_bounds = array<i64: 1, 128>}, {pipeline_mode = #tpu.pipeline_mode<synchronous>, transform_indices = @transform_3, window_bounds = array<i64: 1152, 128>}, {pipeline_mode = #tpu.pipeline_mode<synchronous>, transform_indices = @transform_4, window_bounds = array<i64: 4, 128>}, {pipeline_mode = #tpu.pipeline_mode<synchronous>, transform_indices = @transform_5, window_bounds = array<i64: 1, 128>}, {transform_indices = @transform_6, window_bounds = array<i64: 1, 16, 16, 128>}]} {
    %c0 = arith.constant 0 : index
    %c0_0 = arith.constant 0 : index
    %c0_1 = arith.constant 0 : index
    %c0_2 = arith.constant 0 : index
    %0 = vector.load %arg1[%c0, %c0_0, %c0_1, %c0_2] : memref<1x18x18x4xbf16, #tpu.memory_space<vmem>>, vector<1x16x16x4xbf16>
    %1 = vector.shape_cast %0 : vector<1x16x16x4xbf16> to vector<16x16x4xbf16>
    %2 = vector.shape_cast %1 : vector<16x16x4xbf16> to vector<256x4xbf16>
    %c0_3 = arith.constant 0 : index
    %c0_4 = arith.constant 0 : index
    %c1 = arith.constant 1 : index
    %c0_5 = arith.constant 0 : index
    %3 = vector.load %arg1[%c0_3, %c0_4, %c1, %c0_5] : memref<1x18x18x4xbf16, #tpu.memory_space<vmem>>, vector<1x16x16x4xbf16>
    %4 = vector.shape_cast %3 : vector<1x16x16x4xbf16> to vector<16x16x4xbf16>
    %5 = vector.shape_cast %4 : vector<16x16x4xbf16> to vector<256x4xbf16>
    %c0_6 = arith.constant 0 : index
    %c0_7 = arith.constant 0 : index
    %c2 = arith.constant 2 : index
    %c0_8 = arith.constant 0 : index
    %6 = vector.load %arg1[%c0_6, %c0_7, %c2, %c0_8] : memref<1x18x18x4xbf16, #tpu.memory_space<vmem>>, vector<1x16x16x4xbf16>
    %7 = vector.shape_cast %6 : vector<1x16x16x4xbf16> to vector<16x16x4xbf16>
    %8 = vector.shape_cast %7 : vector<16x16x4xbf16> to vector<256x4xbf16>
    %c0_9 = arith.constant 0 : index
    %c1_10 = arith.constant 1 : index
    %c0_11 = arith.constant 0 : index
    %c0_12 = arith.constant 0 : index
    %9 = vector.load %arg1[%c0_9, %c1_10, %c0_11, %c0_12] : memref<1x18x18x4xbf16, #tpu.memory_space<vmem>>, vector<1x16x16x4xbf16>
    %10 = vector.shape_cast %9 : vector<1x16x16x4xbf16> to vector<16x16x4xbf16>
    %11 = vector.shape_cast %10 : vector<16x16x4xbf16> to vector<256x4xbf16>
    %c0_13 = arith.constant 0 : index
    %c1_14 = arith.constant 1 : index
    %c1_15 = arith.constant 1 : index
    %c0_16 = arith.constant 0 : index
    %12 = vector.load %arg1[%c0_13, %c1_14, %c1_15, %c0_16] : memref<1x18x18x4xbf16, #tpu.memory_space<vmem>>, vector<1x16x16x4xbf16>
    %13 = vector.shape_cast %12 : vector<1x16x16x4xbf16> to vector<16x16x4xbf16>
    %14 = vector.shape_cast %13 : vector<16x16x4xbf16> to vector<256x4xbf16>
    %c0_17 = arith.constant 0 : index
    %c1_18 = arith.constant 1 : index
    %c2_19 = arith.constant 2 : index
    %c0_20 = arith.constant 0 : index
    %15 = vector.load %arg1[%c0_17, %c1_18, %c2_19, %c0_20] : memref<1x18x18x4xbf16, #tpu.memory_space<vmem>>, vector<1x16x16x4xbf16>
    %16 = vector.shape_cast %15 : vector<1x16x16x4xbf16> to vector<16x16x4xbf16>
    %17 = vector.shape_cast %16 : vector<16x16x4xbf16> to vector<256x4xbf16>
    %c0_21 = arith.constant 0 : index
    %c2_22 = arith.constant 2 : index
    %c0_23 = arith.constant 0 : index
    %c0_24 = arith.constant 0 : index
    %18 = vector.load %arg1[%c0_21, %c2_22, %c0_23, %c0_24] : memref<1x18x18x4xbf16, #tpu.memory_space<vmem>>, vector<1x16x16x4xbf16>
    %19 = vector.shape_cast %18 : vector<1x16x16x4xbf16> to vector<16x16x4xbf16>
    %20 = vector.shape_cast %19 : vector<16x16x4xbf16> to vector<256x4xbf16>
    %c0_25 = arith.constant 0 : index
    %c2_26 = arith.constant 2 : index
    %c1_27 = arith.constant 1 : index
    %c0_28 = arith.constant 0 : index
    %21 = vector.load %arg1[%c0_25, %c2_26, %c1_27, %c0_28] : memref<1x18x18x4xbf16, #tpu.memory_space<vmem>>, vector<1x16x16x4xbf16>
    %22 = vector.shape_cast %21 : vector<1x16x16x4xbf16> to vector<16x16x4xbf16>
    %23 = vector.shape_cast %22 : vector<16x16x4xbf16> to vector<256x4xbf16>
    %c0_29 = arith.constant 0 : index
    %c2_30 = arith.constant 2 : index
    %c2_31 = arith.constant 2 : index
    %c0_32 = arith.constant 0 : index
    %24 = vector.load %arg1[%c0_29, %c2_30, %c2_31, %c0_32] : memref<1x18x18x4xbf16, #tpu.memory_space<vmem>>, vector<1x16x16x4xbf16>
    %25 = vector.shape_cast %24 : vector<1x16x16x4xbf16> to vector<16x16x4xbf16>
    %26 = vector.shape_cast %25 : vector<16x16x4xbf16> to vector<256x4xbf16>
    %27 = tpu.concatenate %2, %5, %8, %11, %14, %17, %20, %23, %26 in 1 : vector<256x4xbf16>, vector<256x4xbf16>, vector<256x4xbf16>, vector<256x4xbf16>, vector<256x4xbf16>, vector<256x4xbf16>, vector<256x4xbf16>, vector<256x4xbf16>, vector<256x4xbf16> -> vector<256x36xbf16>
    %c0_33 = arith.constant 0 : index
    %c0_34 = arith.constant 0 : index
    %28 = vector.load %arg2[%c0_33, %c0_34] : memref<36x128xbf16, #tpu.memory_space<vmem>>, vector<36x128xbf16>
    %cst = arith.constant dense<0.000000e+00> : vector<256x128xf32>
    %29 = tpu.matmul %27, %28, %cst {dimension_numbers = #tpu.dot_dimension_numbers<[1], [0], [0], [1], [0, 0, 1, 1], [], []>} : vector<256x36xbf16>, vector<36x128xbf16>, vector<256x128xf32> -> vector<256x128xf32>
    %c0_35 = arith.constant 0 : index
    %c0_36 = arith.constant 0 : index
    %30 = vector.load %arg3[%c0_35, %c0_36] : memref<1x128xf32, #tpu.memory_space<vmem>>, vector<1x128xf32>
    %31 = vector.broadcast %30 : vector<1x128xf32> to vector<256x128xf32>
    %32 = arith.addf %29, %31 : vector<256x128xf32>
    %cst_37 = arith.constant 0.000000e+00 : f32
    %33 = vector.broadcast %cst_37 : f32 to vector<256x128xf32>
    %34 = arith.cmpf ogt, %32, %33 : vector<256x128xf32>
    %cst_38 = arith.constant 0.00999999977 : f32
    %35 = vector.broadcast %cst_38 : f32 to vector<256x128xf32>
    %36 = arith.mulf %35, %32 : vector<256x128xf32>
    %37 = arith.select %34, %32, %36 : vector<256x128xi1>, vector<256x128xf32>
    %cst_39 = arith.constant 0.000000e+00 : bf16
    %38 = vector.broadcast %cst_39 : bf16 to vector<18x18x128xbf16>
    %c0_40 = arith.constant 0 : index
    %c0_41 = arith.constant 0 : index
    %c0_42 = arith.constant 0 : index
    %39 = vector.load %arg8[%c0_40, %c0_41, %c0_42] : memref<18x18x128xbf16, #tpu.memory_space<vmem>>, vector<18x18x128xbf16>
    tpu.vector_store %arg8[%c0_40, %c0_41, %c0_42], %38 {strides = array<i32>} : memref<18x18x128xbf16, #tpu.memory_space<vmem>>, vector<18x18x128xbf16>,
    %40 = vector.shape_cast %37 : vector<256x128xf32> to vector<16x16x128xf32>
    %41 = arith.truncf %40 : vector<16x16x128xf32> to vector<16x16x128xbf16>
    %c1_43 = arith.constant 1 : index
    %c1_44 = arith.constant 1 : index
    %c0_45 = arith.constant 0 : index
    %42 = vector.load %arg8[%c1_43, %c1_44, %c0_45] : memref<18x18x128xbf16, #tpu.memory_space<vmem>>, vector<16x16x128xbf16>
    tpu.vector_store %arg8[%c1_43, %c1_44, %c0_45], %41 {strides = array<i32>} : memref<18x18x128xbf16, #tpu.memory_space<vmem>>, vector<16x16x128xbf16>,
    %c0_46 = arith.constant 0 : index
    %c0_47 = arith.constant 0 : index
    %c0_48 = arith.constant 0 : index
    %43 = vector.load %arg8[%c0_46, %c0_47, %c0_48] : memref<18x18x128xbf16, #tpu.memory_space<vmem>>, vector<16x16x128xbf16>
    %44 = vector.shape_cast %43 : vector<16x16x128xbf16> to vector<256x128xbf16>
    %c0_49 = arith.constant 0 : index
    %c1_50 = arith.constant 1 : index
    %c0_51 = arith.constant 0 : index
    %45 = vector.load %arg8[%c0_49, %c1_50, %c0_51] : memref<18x18x128xbf16, #tpu.memory_space<vmem>>, vector<16x16x128xbf16>
    %46 = vector.shape_cast %45 : vector<16x16x128xbf16> to vector<256x128xbf16>
    %c0_52 = arith.constant 0 : index
    %c2_53 = arith.constant 2 : index
    %c0_54 = arith.constant 0 : index
    %47 = vector.load %arg8[%c0_52, %c2_53, %c0_54] : memref<18x18x128xbf16, #tpu.memory_space<vmem>>, vector<16x16x128xbf16>
    %48 = vector.shape_cast %47 : vector<16x16x128xbf16> to vector<256x128xbf16>
    %c1_55 = arith.constant 1 : index
    %c0_56 = arith.constant 0 : index
    %c0_57 = arith.constant 0 : index
    %49 = vector.load %arg8[%c1_55, %c0_56, %c0_57] : memref<18x18x128xbf16, #tpu.memory_space<vmem>>, vector<16x16x128xbf16>
    %50 = vector.shape_cast %49 : vector<16x16x128xbf16> to vector<256x128xbf16>
    %c1_58 = arith.constant 1 : index
    %c1_59 = arith.constant 1 : index
    %c0_60 = arith.constant 0 : index
    %51 = vector.load %arg8[%c1_58, %c1_59, %c0_60] : memref<18x18x128xbf16, #tpu.memory_space<vmem>>, vector<16x16x128xbf16>
    %52 = vector.shape_cast %51 : vector<16x16x128xbf16> to vector<256x128xbf16>
    %c1_61 = arith.constant 1 : index
    %c2_62 = arith.constant 2 : index
    %c0_63 = arith.constant 0 : index
    %53 = vector.load %arg8[%c1_61, %c2_62, %c0_63] : memref<18x18x128xbf16, #tpu.memory_space<vmem>>, vector<16x16x128xbf16>
    %54 = vector.shape_cast %53 : vector<16x16x128xbf16> to vector<256x128xbf16>
    %c2_64 = arith.constant 2 : index
    %c0_65 = arith.constant 0 : index
    %c0_66 = arith.constant 0 : index
    %55 = vector.load %arg8[%c2_64, %c0_65, %c0_66] : memref<18x18x128xbf16, #tpu.memory_space<vmem>>, vector<16x16x128xbf16>
    %56 = vector.shape_cast %55 : vector<16x16x128xbf16> to vector<256x128xbf16>
    %c2_67 = arith.constant 2 : index
    %c1_68 = arith.constant 1 : index
    %c0_69 = arith.constant 0 : index
    %57 = vector.load %arg8[%c2_67, %c1_68, %c0_69] : memref<18x18x128xbf16, #tpu.memory_space<vmem>>, vector<16x16x128xbf16>
    %58 = vector.shape_cast %57 : vector<16x16x128xbf16> to vector<256x128xbf16>
    %c2_70 = arith.constant 2 : index
    %c2_71 = arith.constant 2 : index
    %c0_72 = arith.constant 0 : index
    %59 = vector.load %arg8[%c2_70, %c2_71, %c0_72] : memref<18x18x128xbf16, #tpu.memory_space<vmem>>, vector<16x16x128xbf16>
    %60 = vector.shape_cast %59 : vector<16x16x128xbf16> to vector<256x128xbf16>
    %61 = tpu.concatenate %44, %46, %48, %50, %52, %54, %56, %58, %60 in 1 : vector<256x128xbf16>, vector<256x128xbf16>, vector<256x128xbf16>, vector<256x128xbf16>, vector<256x128xbf16>, vector<256x128xbf16>, vector<256x128xbf16>, vector<256x128xbf16>, vector<256x128xbf16> -> vector<256x1152xbf16>
    %c0_73 = arith.constant 0 : index
    %c0_74 = arith.constant 0 : index
    %62 = vector.load %arg4[%c0_73, %c0_74] : memref<1152x128xbf16, #tpu.memory_space<vmem>>, vector<1152x128xbf16>
    %cst_75 = arith.constant dense<0.000000e+00> : vector<256x128xf32>
    %63 = tpu.matmul %61, %62, %cst_75 {dimension_numbers = #tpu.dot_dimension_numbers<[1], [0], [0], [1], [0, 0, 1, 1], [], []>} : vector<256x1152xbf16>, vector<1152x128xbf16>, vector<256x128xf32> -> vector<256x128xf32>
    %c0_76 = arith.constant 0 : index
    %c1_77 = arith.constant 1 : index
    %c1_78 = arith.constant 1 : index
    %c0_79 = arith.constant 0 : index
    %64 = vector.load %arg1[%c0_76, %c1_77, %c1_78, %c0_79] : memref<1x18x18x4xbf16, #tpu.memory_space<vmem>>, vector<1x16x16x4xbf16>
    %65 = vector.shape_cast %64 : vector<1x16x16x4xbf16> to vector<16x16x4xbf16>
    %66 = vector.shape_cast %65 : vector<16x16x4xbf16> to vector<256x4xbf16>
    %c0_80 = arith.constant 0 : index
    %c0_81 = arith.constant 0 : index
    %67 = vector.load %arg5[%c0_80, %c0_81] : memref<4x128xbf16, #tpu.memory_space<vmem>>, vector<4x128xbf16>
    %cst_82 = arith.constant dense<0.000000e+00> : vector<256x128xf32>
    %68 = tpu.matmul %66, %67, %cst_82 {dimension_numbers = #tpu.dot_dimension_numbers<[1], [0], [0], [1], [0, 0, 1, 1], [], []>} : vector<256x4xbf16>, vector<4x128xbf16>, vector<256x128xf32> -> vector<256x128xf32>
    %69 = arith.addf %63, %68 : vector<256x128xf32>
    %c0_83 = arith.constant 0 : index
    %c0_84 = arith.constant 0 : index
    %70 = vector.load %arg6[%c0_83, %c0_84] : memref<1x128xf32, #tpu.memory_space<vmem>>, vector<1x128xf32>
    %71 = vector.broadcast %70 : vector<1x128xf32> to vector<256x128xf32>
    %72 = arith.addf %69, %71 : vector<256x128xf32>
    %cst_85 = arith.constant 0.000000e+00 : f32
    %73 = vector.broadcast %cst_85 : f32 to vector<256x128xf32>
    %74 = arith.maximumf %72, %73 : vector<256x128xf32>
    %75 = vector.shape_cast %74 : vector<256x128xf32> to vector<1x16x16x128xf32>
    %c0_86 = arith.constant 0 : index
    %c0_87 = arith.constant 0 : index
    %c0_88 = arith.constant 0 : index
    %c0_89 = arith.constant 0 : index
    %76 = vector.load %arg7[%c0_86, %c0_87, %c0_88, %c0_89] : memref<1x16x16x128xf32, #tpu.memory_space<vmem>>, vector<1x16x16x128xf32>
    tpu.vector_store %arg7[%c0_86, %c0_87, %c0_88, %c0_89], %75 {strides = array<i32>} : memref<1x16x16x128xf32, #tpu.memory_space<vmem>>, vector<1x16x16x128xf32>,
    return
  }
  func.func @transform_0(%arg0: i32) -> (i32, i32, i32, i32) {
    %c0_i32 = arith.constant 0 : i32
    %c0_i32_0 = arith.constant 0 : i32
    %c0_i32_1 = arith.constant 0 : i32
    %c0_i32_2 = arith.constant 0 : i32
    return %arg0, %c0_i32, %c0_i32_0, %c0_i32_1 : i32, i32, i32, i32
  }
  func.func @transform_1(%arg0: i32) -> (i32, i32) {
    %c0_i32 = arith.constant 0 : i32
    %c0_i32_0 = arith.constant 0 : i32
    %c0_i32_1 = arith.constant 0 : i32
    return %c0_i32, %c0_i32_0 : i32, i32
  }
  func.func @transform_2(%arg0: i32) -> (i32, i32) {
    %c0_i32 = arith.constant 0 : i32
    %c0_i32_0 = arith.constant 0 : i32
    %c0_i32_1 = arith.constant 0 : i32
    return %c0_i32, %c0_i32_0 : i32, i32
  }
  func.func @transform_3(%arg0: i32) -> (i32, i32) {
    %c0_i32 = arith.constant 0 : i32
    %c0_i32_0 = arith.constant 0 : i32
    %c0_i32_1 = arith.constant 0 : i32
    return %c0_i32, %c0_i32_0 : i32, i32
  }
  func.func @transform_4(%arg0: i32) -> (i32, i32) {
    %c0_i32 = arith.constant 0 : i32
    %c0_i32_0 = arith.constant 0 : i32
    %c0_i32_1 = arith.constant 0 : i32
    return %c0_i32, %c0_i32_0 : i32, i32
  }
  func.func @transform_5(%arg0: i32) -> (i32, i32) {
    %c0_i32 = arith.constant 0 : i32
    %c0_i32_0 = arith.constant 0 : i32
    %c0_i32_1 = arith.constant 0 : i32
    return %c0_i32, %c0_i32_0 : i32, i32
  }
  func.func @transform_6(%arg0: i32) -> (i32, i32, i32, i32) {
    %c0_i32 = arith.constant 0 : i32
    %c0_i32_0 = arith.constant 0 : i32
    %c0_i32_1 = arith.constant 0 : i32
    %c0_i32_2 = arith.constant 0 : i32
    return %arg0, %c0_i32, %c0_i32_0, %c0_i32_1 : i32, i32, i32, i32
  }
}

</mosaic_0001>

<bundles_post_ra>
// kernel: residual_block_forward.1
= control target key start
LH: loop header
LB: loop body
LE: loop exit
PB: predicated region body
PF: predicated region fallthrough
CT: control target
= control target key end

     0   :  { %s9829_s21 = smov 0   ;;  %s13359_s0 = inlined_call_operand.vmem [shape: bf16[2,18,18,4], index: 0, kind: input, shape index: {}]   ;;  %s13360_s1 = inlined_call_operand.vmem [shape: bf16[36,128], index: 1, kind: input, shape index: {}]   ;;  %s13361_s2 = inlined_call_operand.vmem [shape: f32[1,128], index: 2, kind: input, shape index: {}]   ;;  %s13362_s3 = inlined_call_operand.vmem [shape: bf16[1152,128], index: 3, kind: input, shape index: {}]   ;;  %s13363_s4 = inlined_call_operand.vmem [shape: bf16[4,128], index: 4, kind: input, shape index: {}]   ;;  %s13364_s5 = inlined_call_operand.vmem [shape: f32[1,128], index: 5, kind: input, shape index: {}]   ;;  %s13365_s6 = inlined_call_operand.vmem [shape: f32[2,16,16,128], index: 6, kind: output, shape index: {}]  }
   0x1 LB: > { %s8476_s22 = sadd.s32 4294967295, %s9783_s21   ;;  %p8480_p0 = scmp.ge.s32.totalorder %s9783_s21, 1  ;;  %s9783_s21 = sphi %s9829_s21, %s16_s21  }
   0x2   : > { %p212_p1 = scmp.lt.s32.totalorder %s9783_s21, 3 }
   0x4   : > { %p213_p2 = pnand %p8480_p0, %p212_p1 }
   0x6   : > { %216 = sbr.rel (%p213_p2) target bundleno = 1396 (0x574), region = 44 }
   0xb   : > { %p242_p3 = scmp.lt.s32.totalorder %s8476_s22, 1  ;;  %vm752_vm0 = vcmask 1042432   ;;  %vm753_vm1 = vcmask 1046532   ;;  %vm301_vm2 = vsmask.f32 3328  ;;  %s9785_s27 = smov 12  }
   0xc   : > { %vm302_vm3 = vsmask.f32 7440  ;;  %vm9849_vm4 = vmor %vm752_vm0, %vm753_vm1  ;;  %s9786_s28 = smov 24   ;;  %s9787_s29 = smov 8   ;;  %vm3158_vm6 = vcmask 1041408   ;;  %vm2821_vm7 = vcmask 31744  }
   0xd   : > { %s13662_s22 = smov (!%p242_p3, %s8476_s22), 1  ;;  %vm9879_vm5 = vmor %vm301_vm2, %vm302_vm3  ;;  %s9788_s30 = smov 32   ;;  %vm2870_vm8 = vcmask 64512   ;;  %vm2903_vm9 = vcmask 97280   ;;  %vm2936_vm10 = vcmask 130048   ;;  %vm13366_vm11 = vcmask 162816  }
   0xe   : > { %s9661_s23 = smul.u32 216, %s13662_s22  ;;  %s9789_s7 = smov 4   ;;  %vm3002_vm12 = vcmask 195584   ;;  %vm3035_vm13 = vcmask 228352   ;;  %vm3068_vm14 = vcmask 261120   ;;  %vm3125_vm15 = vcmask 293888  }
   0xf   : > { %s9790_s8 = smov 16   ;;  %s9791_s9 = smov 28   ;;  %vm3757_vm1 = vcmask 1043456   ;;  %vm3758_vm2 = vsmask.f32 7938 }
  0x10   : > { %s9843_s26 = scalar_lea.vmem %s13359_s0, %s9661_s23  ;;  %s9792_s10 = smov 20   ;;  %vm10933_vm3 = vmand %vm3757_vm1, %vm3758_vm2  ;;  %vm3764_vm2 = vcmask 1040384  }
  0x11   : > { %v9487_v0 = vld [vmem:[%s9843_s26 + $0xc] sm:$0xff]  ;;  %v254_v1 = vld [vmem:[%s9843_s26 + $0x4] sm:$0xf]  ;;  %v285_v2 = vld [vmem:[%s9843_s26 + $0x8] sm:$0x1]  ;;  %s9470_s20 = sshll.u32 %s13662_s22, 8 }
  0x12   : > { %v324_v3 = vshll.u32 %v285_v2, 16  ;;  %v688_v4 = vld [vmem:[%s9843_s26] sm:$0xe]  ;;  %v757_v6 = vrot.slane %v254_v1, 5  ;;  %v760_v7 = vrot.slane %v285_v2, 5  ;;  %v318_v8 = vshrl.u32 %v254_v1, 16  ;;  %2373 = vrot.lane.b32.xlu1 %v9487_v0, %s9785_s27  ;;  %s13013_s22 = scalar_lea.vmem %s13365_s6, %s9470_s20 }
  0x13   : > { %v8484_v9 = vrot.slane %v688_v4, 9  ;;  %v9855_v10 = vld [vmem:[%s9843_s26 + $0x1c] sm:$0xf]  ;;  %v9858_v11 = vld [vmem:[%s9843_s26 + $0x20] sm:$0x1]  ;;  %v314_v12 = vshll.u32 %v254_v1, 16 }
  0x14   : > { %v759_v13 = vrot.slane %v757_v6, 4  ;;  %v8628_v14 = vld [vmem:[%s9843_s26 + $0x18] sm:$0xe]  ;;  %v1975_v15 = vrot.slane %v9855_v10, 5  ;;  %v1978_v16 = vrot.slane %v9858_v11, 5  ;;  %v320_v17 = vrot.slane %v318_v8, 4 }
  0x15   : > { %v758_v18 = vsel %vm9849_vm4, %v8484_v9, %v757_v6  ;;  %v8644_v19 = vrot.slane %v8628_v14, 9  ;;  %v253_v20 = vld [vmem:[%s9843_s26] sm:$0xf]  ;;  %v316_v21 = vrot.slane %v314_v12, 5  ;;  %v326_v22 = vrot.slane %v324_v3, 5  ;;  %v9503_v33 = vld [vmem:[%s9843_s26 + $0x18] sm:$0xff] }
  0x16   : > { %v761_v23 = vsel %vm9849_vm4, %v759_v13, %v760_v7  ;;  %v2229_v24 = vunpack.c.l.b16 %v758_v18  ;;  %v1977_v25 = vrot.slane %v1975_v15, 4  ;;  %v305_v26 = vshrl.u32 %v253_v20, 16  ;;  %v8500_v27 = vld [vmem:[%s9843_s26 + $0xc] sm:$0xf]  ;;  %v9872_v32 = vld [vmem:[%s9843_s26 + $0x10] sm:$0xf]  ;;  %2629 = vrot.lane.b32.xlu2 %v9503_v33, %s9786_s28 }
  0x17   : > { %v2230_v28 = vunpack.c.l.b16 %v761_v23  ;;  %v1976_v29 = vsel %vm9849_vm4, %v8644_v19, %v1975_v15  ;;  %v308_v30 = vshll.u32 %v253_v20, 16  ;;  %v321_v31 = vor.u32 %v320_v17, %v316_v21  ;;  %v9884_v38 = vld [vmem:[%s9843_s26 + $0x14] sm:$0x1]  ;;  %v8580_v48 = vld [vmem:[%s9843_s26 + $0x18] sm:$0xf] }
  0x18   : > { %v1979_v34 = vsel %vm9849_vm4, %v1977_v25, %v1978_v16  ;;  %v2741_v35 = vunpack.c.l.b16 %v1976_v29  ;;  %v307_v37 = vrot.slane %v305_v26, 4  ;;  %v917_v39 = vshrl.u32 %v8500_v27, 16  ;;  %v689_v1 = vld [vmem:[%s9843_s26 + $0xc] sm:$0xe]  ;;  %v9902_v7 = vld [vmem:[%s9843_s26 + $0x10] sm:$0xf] }
  0x19   : > { %v2261_v40 = vpack.c.b16 %v2230_v28, %v2229_v24  ;;  %v2742_v41 = vunpack.c.l.b16 %v1979_v34  ;;  %v310_v42 = vrot.slane %v308_v30, 5  ;;  %v322_v43 = vrot.slane %v321_v31, 4  ;;  %v9905_v14 = vld [vmem:[%s9843_s26 + $0x14] sm:$0x1]  ;;  %v8549_v18 = vld [vmem:[%s9843_s26 + $0x18] sm:$0xe] }
  0x1a   : > { %v919_v44 = vrot.slane %v917_v39, 4  ;;  %v920_v45 = vshll.u32 %v8500_v27, 16  ;;  %v926_v46 = vshll.u32 %v9872_v32, 16  ;;  %v930_v47 = vshrl.u32 %v9872_v32, 16  ;;  %v9914_v26 = vld [vmem:[%s9843_s26 + $0x1c] sm:$0xf] }
  0x1b   : > { %2277 = vrot.lane.b32.xlu0 %v2261_v40, %s9787_s29  ;;  %v2773_v49 = vpack.c.b16 %v2742_v41, %v2741_v35  ;;  %v311_v50 = vor.u32 %v310_v42, %v307_v37  ;;  %v327_v51 = vsel %vm9879_vm5, %v322_v43, %v326_v22  ;;  %v936_v52 = vshll.u32 %v9884_v38, 16  ;;  %v9917_v27 = vld [vmem:[%s9843_s26 + $0x20] sm:$0x1]  ;;  %v8548_v33 = vld [vmem:[%s9843_s26 + $0xc] sm:$0xe] }
  0x1c   : > { %v2150_v53 = vunpack.c.l.b16 %v327_v51  ;;  %v922_v54 = vrot.slane %v920_v45, 5  ;;  %v928_v55 = vrot.slane %v926_v46, 5  ;;  %v932_v56 = vrot.slane %v930_v47, 4 }
  0x1d   : > { %2789 = vrot.lane.b32.xlu1 %v2773_v49, %s9788_s30  ;;  %v312_v57 = vrot.slane %v311_v50, 4  ;;  %v938_v58 = vrot.slane %v936_v52, 5  ;;  %v1526_v59 = vshrl.u32 %v8580_v48, 16  ;;  %v1529_v60 = vshll.u32 %v8580_v48, 16  ;;  %v8629_v48 = vld [vmem:[%s9843_s26 + $0x24] sm:$0xe] }
  0x1e   : > { %v923_v61 = vor.u32 %v922_v54, %v919_v44  ;;  %v933_v62 = vor.u32 %v932_v56, %v928_v55  ;;  %v1535_v63 = vshll.u32 %v9855_v10, 16  ;;  %v1539_v0 = vshrl.u32 %v9855_v10, 16  ;;  %v9942_v54 = vld [vmem:[%s9843_s26 + $0x2c] sm:$0x1] }
  0x1f   : > { %v317_v2 = vsel %vm9879_vm5, %v312_v57, %v316_v21  ;;  %v1528_v3 = vrot.slane %v1526_v59, 4  ;;  %v1531_v4 = vrot.slane %v1529_v60, 5  ;;  %v1545_v6 = vshll.u32 %v9858_v11, 16  ;;  %v9948_v59 = vld [vmem:[%s9843_s26 + $0x1c] sm:$0xf] }
  0x20   : > { %v2149_v8 = vunpack.c.l.b16 %v317_v2  ;;  %v924_v9 = vrot.slane %v923_v61, 4  ;;  %v934_v12 = vrot.slane %v933_v62, 4  ;;  %v1537_v13 = vrot.slane %v1535_v63, 5  ;;  %v9488_v63 = vld [vmem:[%s9843_s26 + $0x18] sm:$0xff] }
  0x21   : > { %v1532_v10 = vor.u32 %v1531_v4, %v1528_v3  ;;  %v1541_v15 = vrot.slane %v1539_v0, 4  ;;  %v1547_v16 = vrot.slane %v1545_v6, 5  ;;  %v8485_v17 = vrot.slane %v689_v1, 9  ;;  %v9959_v6 = vld [vmem:[%s9843_s26 + $0x20] sm:$0x1] }
  0x22   : > { %v2181_v19 = vpack.c.b16 %v2150_v53, %v2149_v8  ;;  %v929_v11 = vsel %vm9879_vm5, %v924_v9, %v928_v55  ;;  %v939_v20 = vsel %vm9879_vm5, %v934_v12, %v938_v58  ;;  %v764_v21 = vrot.slane %v9902_v7, 5  ;;  %v9939_v53 = vld [vmem:[%s9843_s26 + $0x28] sm:$0xf]  ;;  %v257_v58 = vld [vmem:[%s9843_s26 + $0x18] sm:$0xf] }
  0x23   : > { %v2405_v22 = vunpack.c.l.b16 %v929_v11  ;;  %v2406_v23 = vunpack.c.l.b16 %v939_v20  ;;  %v1533_v24 = vrot.slane %v1532_v10, 4  ;;  %v1542_v25 = vor.u32 %v1541_v15, %v1537_v13 }
  0x24   : > { %2197 = vrot.lane.b32.xlu0 %v2181_v19, %s9789_s7  ;;  %v765_v28 = vsel %vm9849_vm4, %v8485_v17, %v764_v21  ;;  %v766_v29 = vrot.slane %v764_v21, 4  ;;  %v767_v30 = vrot.slane %v9905_v14, 5  ;;  %v8565_v31 = vrot.slane %v8549_v18, 9  ;;  %v255_v17 = vld [vmem:[%s9843_s26 + $0xc] sm:$0xf] }
  0x25   : > { %v2437_v34 = vpack.c.b16 %v2406_v23, %v2405_v22  ;;  %v1538_v35 = vsel %vm9879_vm5, %v1533_v24, %v1537_v13  ;;  %v1543_v37 = vrot.slane %v1542_v25, 4  ;;  %v2231_v39 = vunpack.c.l.b16 %v765_v28 }
  0x26   : > { %v2661_v40 = vunpack.c.l.b16 %v1538_v35  ;;  %v768_v41 = vsel %vm9849_vm4, %v766_v29, %v767_v30  ;;  %v1373_v42 = vrot.slane %v9914_v26, 5  ;;  %v1376_v43 = vrot.slane %v9917_v27, 5 }
  0x27   : > { %2453 = vrot.lane.b32.xlu1 %v2437_v34, %s9790_s8  ;;  %v1548_v44 = vsel %vm9879_vm5, %v1543_v37, %v1547_v16  ;;  %v2232_v45 = vunpack.c.l.b16 %v768_v41  ;;  %v8564_v46 = vrot.slane %v8548_v33, 9  ;;  %v1366_v47 = vrot.slane %v9872_v32, 5  ;;  %v8504_v37 = vld [vmem:[%s9843_s26 + $0x24] sm:$0xf] }
  0x28   : > { %v2662_v49 = vunpack.c.l.b16 %v1548_v44  ;;  %v1374_v50 = vsel %vm9849_vm4, %v8565_v31, %v1373_v42  ;;  %v1375_v51 = vrot.slane %v1373_v42, 4  ;;  %v1369_v52 = vrot.slane %v9884_v38, 5 }
  0x29   : > { %v2262_v55 = vpack.c.b16 %v2232_v45, %v2231_v39  ;;  %v2487_v56 = vunpack.c.l.b16 %v1374_v50  ;;  %v1367_v57 = vsel %vm9849_vm4, %v8564_v46, %v1366_v47  ;;  %v1368_v32 = vrot.slane %v1366_v47, 4  ;;  %v9987_v50 = vld [vmem:[%s9843_s26 + $0x2c] sm:$0x1] }
  0x2a   : > { %v2693_v60 = vpack.c.b16 %v2662_v49, %v2661_v40  ;;  %v1377_v61 = vsel %vm9849_vm4, %v1375_v51, %v1376_v43  ;;  %v2485_v62 = vunpack.c.l.b16 %v1367_v57  ;;  %v8645_v38 = vrot.slane %v8629_v48, 9  ;;  %v9504_v43 = vld [vmem:[%s9843_s26 + $0x24] sm:$0xff] }
  0x2b   : > { %v2488_v0 = vunpack.c.l.b16 %v1377_v61  ;;  %v1370_v1 = vsel %vm9849_vm4, %v1368_v32, %v1369_v52  ;;  %v1982_v2 = vrot.slane %v9939_v53, 5  ;;  %v1985_v3 = vrot.slane %v9942_v54, 5 }
  0x2c   : > { %2709 = vrot.lane.b32.xlu0 %v2693_v60, %s9791_s9  ;;  %v2486_v4 = vunpack.c.l.b16 %v1370_v1  ;;  %v353_v8 = vshrl.u32 %v257_v58, 16  ;;  %v356_v9 = vshll.u32 %v257_v58, 16  ;;  %v362_v12 = vshll.u32 %v9948_v59, 16  ;;  %v8502_v60 = vld [vmem:[%s9843_s26 + $0x18] sm:$0xf] }
  0x2d   : > { %v9962_v13 = vpack.c.b16 %v2488_v0, %v2487_v56  ;;  %v1983_v10 = vsel %vm9849_vm4, %v8645_v38, %v1982_v2  ;;  %v1984_v15 = vrot.slane %v1982_v2, 4  ;;  %v366_v16 = vshrl.u32 %v9948_v59, 16 }
  0x2e   : > { %v2517_v18 = vpack.c.b16 %v2486_v4, %v2485_v62  ;;  %v2743_v19 = vunpack.c.l.b16 %v1983_v10  ;;  %v355_v11 = vrot.slane %v353_v8, 4  ;;  %v358_v20 = vrot.slane %v356_v9, 5 }
  0x2f   : > { %2375 = vrot.lane.b32.xlu1 %v9488_v63, %s9785_s27  ;;  %v1986_v21 = vsel %vm9849_vm4, %v1984_v15, %v1985_v3  ;;  %v364_v22 = vrot.slane %v362_v12, 5  ;;  %v368_v23 = vrot.slane %v366_v16, 4  ;;  %v372_v24 = vshll.u32 %v9959_v6, 16  ;;  %v8584_v16 = vld [vmem:[%s9843_s26 + $0x30] sm:$0xf] }
  0x30   : > { %2533 = vrot.lane.b32.xlu2 %v2517_v18, %s9792_s10  ;;  %v2744_v25 = vunpack.c.l.b16 %v1986_v21  ;;  %v359_v28 = vor.u32 %v358_v20, %v355_v11  ;;  %v329_v29 = vshrl.u32 %v255_v17, 16  ;;  %v332_v30 = vshll.u32 %v255_v17, 16 }
  0x31   : > { %v369_v31 = vor.u32 %v368_v23, %v364_v22  ;;  %v374_v33 = vrot.slane %v372_v24, 5  ;;  %v338_v34 = vshll.u32 %v9902_v7, 16  ;;  %v342_v35 = vshrl.u32 %v9902_v7, 16  ;;  %v9984_v7 = vld [vmem:[%s9843_s26 + $0x28] sm:$0xf] }
  0x32   : > { %v9976_v39 = vpack.c.b16 %v2744_v25, %v2743_v19  ;;  %v360_v40 = vrot.slane %v359_v28, 4  ;;  %v331_v41 = vrot.slane %v329_v29, 4  ;;  %v334_v42 = vrot.slane %v332_v30, 5  ;;  %v10009_v29 = vld [vmem:[%s9843_s26 + $0x34] sm:$0xf] }
  0x33   : > { %v370_v44 = vrot.slane %v369_v31, 4  ;;  %v340_v45 = vrot.slane %v338_v34, 5  ;;  %v344_v46 = vrot.slane %v342_v35, 4  ;;  %v348_v47 = vshll.u32 %v9905_v14, 16 }
  0x34   : > { %2279 = vrot.lane.b32.xlu0 %v2262_v55, %s9787_s29  ;;  %v365_v48 = vsel %vm9879_vm5, %v360_v40, %v364_v22  ;;  %v335_v49 = vor.u32 %v334_v42, %v331_v41  ;;  %v965_v51 = vshrl.u32 %v8504_v37, 16  ;;  %v968_v52 = vshll.u32 %v8504_v37, 16  ;;  %v10012_v37 = vld [vmem:[%s9843_s26 + $0x38] sm:$0x1]  ;;  %v8582_v42 = vld [vmem:[%s9843_s26 + $0x24] sm:$0xf] }
  0x35   : > { %v375_v56 = vsel %vm9879_vm5, %v370_v44, %v374_v33  ;;  %v2153_v57 = vunpack.c.l.b16 %v365_v48  ;;  %v345_v32 = vor.u32 %v344_v46, %v340_v45  ;;  %v350_v58 = vrot.slane %v348_v47, 5 }
  0x36   : > { %v2154_v14 = vunpack.c.l.b16 %v375_v56  ;;  %v336_v61 = vrot.slane %v335_v49, 4  ;;  %v967_v55 = vrot.slane %v965_v51, 4  ;;  %v970_v62 = vrot.slane %v968_v52, 5 }
  0x37   : > { %2631 = vrot.lane.b32.xlu1 %v9504_v43, %s9786_s28  ;;  %v346_v38 = vrot.slane %v345_v32, 4  ;;  %v974_v63 = vshll.u32 %v9984_v7, 16  ;;  %v978_v0 = vshrl.u32 %v9984_v7, 16  ;;  %v984_v1 = vshll.u32 %v9987_v50, 16 }
  0x38   : > { %v2183_v2 = vpack.c.b16 %v2154_v14, %v2153_v57  ;;  %v341_v3 = vsel %vm9879_vm5, %v336_v61, %v340_v45  ;;  %v971_v4 = vor.u32 %v970_v62, %v967_v55  ;;  %v941_v8 = vshrl.u32 %v8502_v60, 16 }
  0x39   : > { %v351_v9 = vsel %vm9879_vm5, %v346_v38, %v350_v58  ;;  %v2151_v12 = vunpack.c.l.b16 %v341_v3  ;;  %v976_v10 = vrot.slane %v974_v63, 5  ;;  %v980_v15 = vrot.slane %v978_v0, 4  ;;  %v259_v63 = vld [vmem:[%s9843_s26 + $0x24] sm:$0xf] }
  0x3a   : > { %v2152_v17 = vunpack.c.l.b16 %v351_v9  ;;  %v972_v18 = vrot.slane %v971_v4, 4  ;;  %v986_v19 = vrot.slane %v984_v1, 5  ;;  %v943_v11 = vrot.slane %v941_v8, 4 }
  0x3b   : > { %v981_v20 = vor.u32 %v980_v15, %v976_v10  ;;  %v944_v21 = vshll.u32 %v8502_v60, 16  ;;  %v950_v22 = vshll.u32 %v9914_v26, 16  ;;  %v954_v23 = vshrl.u32 %v9914_v26, 16 }
  0x3c   : > { %2535 = vrot.lane.b32.xlu0 %v9962_v13, %s9792_s10  ;;  %v2182_v24 = vpack.c.b16 %v2152_v17, %v2151_v12  ;;  %v977_v25 = vsel %vm9879_vm5, %v972_v18, %v976_v10  ;;  %v960_v28 = vshll.u32 %v9917_v27, 16  ;;  %v1574_v30 = vshrl.u32 %v8584_v16, 16 }
  0x3d   : > { %v982_v31 = vrot.slane %v981_v20, 4  ;;  %v2409_v33 = vunpack.c.l.b16 %v977_v25  ;;  %v946_v34 = vrot.slane %v944_v21, 5  ;;  %v952_v35 = vrot.slane %v950_v22, 5  ;;  %v288_v21 = vld [vmem:[%s9843_s26 + $0x2c] sm:$0x1] }
  0x3e   : > { %2199 = vrot.lane.b32.xlu2 %v2182_v24, %s9789_s7  ;;  %v956_v26 = vrot.slane %v954_v23, 4  ;;  %v962_v13 = vrot.slane %v960_v28, 5  ;;  %v1576_v40 = vrot.slane %v1574_v30, 4  ;;  %v1577_v41 = vshll.u32 %v8584_v16, 16  ;;  %v260_v16 = vld [vmem:[%s9843_s26 + $0x28] sm:$0xf] }
  0x3f   : > { %2201 = vrot.lane.b32.xlu1 %v2183_v2, %s9789_s7  ;;  %v987_v27 = vsel %vm9879_vm5, %v982_v31, %v986_v19  ;;  %v947_v43 = vor.u32 %v946_v34, %v943_v11  ;;  %v1583_v44 = vshll.u32 %v10009_v29, 16  ;;  %v1587_v45 = vshrl.u32 %v10009_v29, 16  ;;  %v691_v22 = vld [vmem:[%s9843_s26 + $0x24] sm:$0xe] }
  0x40   : > { %v2410_v46 = vunpack.c.l.b16 %v987_v27  ;;  %v957_v47 = vor.u32 %v956_v26, %v952_v35  ;;  %v1579_v48 = vrot.slane %v1577_v41, 5  ;;  %v1593_v49 = vshll.u32 %v10012_v37, 16 }
  0x41   : > { %v948_v51 = vrot.slane %v947_v43, 4  ;;  %v1585_v52 = vrot.slane %v1583_v44, 5  ;;  %v1589_v56 = vrot.slane %v1587_v45, 4  ;;  %v1550_v57 = vshrl.u32 %v8582_v42, 16 }
  0x42   : > { %v2439_v32 = vpack.c.b16 %v2410_v46, %v2409_v33  ;;  %v958_v58 = vrot.slane %v957_v47, 4  ;;  %v1580_v60 = vor.u32 %v1579_v48, %v1576_v40  ;;  %v1595_v14 = vrot.slane %v1593_v49, 5  ;;  %v690_v40 = vld [vmem:[%s9843_s26 + $0x18] sm:$0xe] }
  0x43   : > { %v953_v61 = vsel %vm9879_vm5, %v948_v51, %v952_v35  ;;  %v1590_v55 = vor.u32 %v1589_v56, %v1585_v52  ;;  %v1552_v62 = vrot.slane %v1550_v57, 4  ;;  %v1553_v38 = vshll.u32 %v8582_v42, 16 }
  0x44   : > { %2791 = vrot.lane.b32.xlu0 %v9976_v39, %s9788_s30  ;;  %v963_v0 = vsel %vm9879_vm5, %v958_v58, %v962_v13  ;;  %v2407_v1 = vunpack.c.l.b16 %v953_v61  ;;  %v1581_v2 = vrot.slane %v1580_v60, 4  ;;  %v1559_v3 = vshll.u32 %v9939_v53, 16 }
  0x45   : > { %v2408_v4 = vunpack.c.l.b16 %v963_v0  ;;  %v1591_v8 = vrot.slane %v1590_v55, 4  ;;  %v1555_v9 = vrot.slane %v1553_v38, 5  ;;  %v1563_v12 = vshrl.u32 %v9939_v53, 16  ;;  %v9489_v53 = vld [vmem:[%s9843_s26 + $0x24] sm:$0xff] }
  0x46   : > { %v1586_v10 = vsel %vm9879_vm5, %v1581_v2, %v1585_v52  ;;  %v1561_v15 = vrot.slane %v1559_v3, 5  ;;  %v1569_v39 = vshll.u32 %v9942_v54, 16  ;;  %v377_v17 = vshrl.u32 %v259_v63, 16  ;;  %v8506_v2 = vld [vmem:[%s9843_s26 + $0x30] sm:$0xf] }
  0x47   : > { %2457 = vrot.lane.b32.xlu1 %v2439_v32, %s9790_s8  ;;  %v2438_v18 = vpack.c.b16 %v2408_v4, %v2407_v1  ;;  %v1596_v19 = vsel %vm9879_vm5, %v1591_v8, %v1595_v14  ;;  %v2665_v11 = vunpack.c.l.b16 %v1586_v10  ;;  %v1556_v20 = vor.u32 %v1555_v9, %v1552_v62  ;;  %v9505_v62 = vld [vmem:[%s9843_s26 + $0x30] sm:$0xff]  ;;  %v6899_v9 = vld [vmem:[%s13363_s4] sm:$0x3] }
  0x48   : > { %v2666_v23 = vunpack.c.l.b16 %v1596_v19  ;;  %v1565_v24 = vrot.slane %v1563_v12, 4  ;;  %v1571_v25 = vrot.slane %v1569_v39, 5  ;;  %v379_v28 = vrot.slane %v377_v17, 4  ;;  %v8507_v12 = vld [vmem:[%s9843_s26 + $0x34] sm:$0xf] }
  0x49   : > { %2455 = vrot.lane.b32.xlu2 %v2438_v18, %s9790_s8  ;;  %v1557_v54 = vrot.slane %v1556_v20, 4  ;;  %v380_v30 = vshll.u32 %v259_v63, 16  ;;  %v386_v31 = vshll.u32 %v260_v16, 16  ;;  %v390_v33 = vshrl.u32 %v260_v16, 16 }
  0x4a   : > { %v2695_v34 = vpack.c.b16 %v2666_v23, %v2665_v11  ;;  %v1566_v35 = vor.u32 %v1565_v24, %v1561_v15  ;;  %v396_v26 = vshll.u32 %v288_v21, 16  ;;  %v8487_v13 = vrot.slane %v691_v22, 9  ;;  %v8551_v11 = vld [vmem:[%s9843_s26 + $0x30] sm:$0xe] }
  0x4b   : > { %v1562_v41 = vsel %vm9879_vm5, %v1557_v54, %v1561_v15  ;;  %v382_v42 = vrot.slane %v380_v30, 5  ;;  %v388_v27 = vrot.slane %v386_v31, 5  ;;  %v392_v43 = vrot.slane %v390_v33, 4 }
  0x4c   : > { %2377 = vrot.lane.b32.xlu0 %v9489_v53, %s9785_s27  ;;  %v1567_v44 = vrot.slane %v1566_v35, 4  ;;  %v2663_v45 = vunpack.c.l.b16 %v1562_v41  ;;  %v398_v46 = vrot.slane %v396_v26, 5  ;;  %v778_v47 = vrot.slane %v260_v16, 5  ;;  %v8535_v16 = vld [vmem:[%s9843_s26 + $0x38] sm:$0x1] }
  0x4d   : > { %v383_v48 = vor.u32 %v382_v42, %v379_v28  ;;  %v393_v49 = vor.u32 %v392_v43, %v388_v27  ;;  %v781_v51 = vrot.slane %v288_v21, 5  ;;  %v8486_v52 = vrot.slane %v690_v40, 9  ;;  %v9116_v28 = vld [vmem:[%s9843_s26 + $0xc] sm:$0xf] }
  0x4e   : > { %v1572_v56 = vsel %vm9879_vm5, %v1567_v44, %v1571_v25  ;;  %v779_v57 = vsel %vm9849_vm4, %v8487_v13, %v778_v47  ;;  %v780_v32 = vrot.slane %v778_v47, 4  ;;  %v771_v58 = vrot.slane %v9948_v59, 5 }
  0x4f   : > { %2713 = vrot.lane.b32.xlu1 %v2695_v34, %s9791_s9  ;;  %v2664_v60 = vunpack.c.l.b16 %v1572_v56  ;;  %v384_v14 = vrot.slane %v383_v48, 4  ;;  %v394_v61 = vrot.slane %v393_v49, 4  ;;  %v2235_v55 = vunpack.c.l.b16 %v779_v57  ;;  %v9117_v34 = vld [vmem:[%s9843_s26 + $0x10] sm:$0xf]  ;;  %v8550_v49 = vld [vmem:[%s9843_s26 + $0x24] sm:$0xe] }
  0x50   : > { %v782_v38 = vsel %vm9849_vm4, %v780_v32, %v781_v51  ;;  %v772_v63 = vsel %vm9849_vm4, %v8486_v52, %v771_v58  ;;  %v773_v0 = vrot.slane %v771_v58, 4  ;;  %v774_v1 = vrot.slane %v9959_v6, 5 }
  0x51   : > { %v2694_v59 = vpack.c.b16 %v2664_v60, %v2663_v45  ;;  %v389_v3 = vsel %vm9879_vm5, %v384_v14, %v388_v27  ;;  %v399_v4 = vsel %vm9879_vm5, %v394_v61, %v398_v46  ;;  %v2236_v8 = vunpack.c.l.b16 %v782_v38  ;;  %v9118_v46 = vld [vmem:[%s9843_s26 + $0x14] sm:$0x1] }
  0x52   : > { %v2155_v10 = vunpack.c.l.b16 %v389_v3  ;;  %v2156_v15 = vunpack.c.l.b16 %v399_v4  ;;  %v775_v6 = vsel %vm9849_vm4, %v773_v0, %v774_v1  ;;  %v2233_v39 = vunpack.c.l.b16 %v772_v63  ;;  %v8586_v63 = vld [vmem:[%s9843_s26 + $0x3c] sm:$0xf] }
  0x53   : > { %2711 = vrot.lane.b32.xlu2 %v2694_v59, %s9791_s9  ;;  %v2264_v17 = vpack.c.b16 %v2236_v8, %v2235_v55  ;;  %v2234_v18 = vunpack.c.l.b16 %v775_v6  ;;  %v989_v19 = vshrl.u32 %v8506_v2, 16  ;;  %v10074_v20 = vsel %vm3158_vm6, %v6899_v9, 0 }
  0x54   : > { %2633 = vrot.lane.b32.xlu0 %v9505_v62, %s9786_s28  ;;  %v992_v21 = vshll.u32 %v8506_v2, 16  ;;  %v998_v22 = vshll.u32 %v8507_v12, 16  ;;  %v2184_v53 = vpack.c.b16 %v2156_v15, %v2155_v10  ;;  %7006 = vmatpush.bf16.msra.mxu1 %v10074_v20  ;;  %v1002_v24 = vshrl.u32 %v8507_v12, 16  ;;  %v8587_v15 = vld [vmem:[%s9843_s26 + $0x40] sm:$0xf] }
  0x55   : > { %v991_v23 = vrot.slane %v989_v19, 4  ;;  %v1008_v25 = vshll.u32 %v8535_v16, 16  ;;  %v8567_v31 = vrot.slane %v8551_v11, 9  ;;  %v1387_v33 = vrot.slane %v8507_v12, 5 }
  0x56   : > { %v994_v54 = vrot.slane %v992_v21, 5  ;;  %v1000_v30 = vrot.slane %v998_v22, 5  ;;  %v2263_v35 = vpack.c.b16 %v2234_v18, %v2233_v39  ;;  %v1004_v26 = vrot.slane %v1002_v24, 4 }
  0x57   : > { %2283 = vrot.lane.b32.xlu1 %v2264_v17, %s9787_s29  ;;  %v1010_v13 = vrot.slane %v1008_v25, 5  ;;  %v1390_v40 = vrot.slane %v8535_v16, 5  ;;  %v1388_v42 = vsel %vm9849_vm4, %v8567_v31, %v1387_v33  ;;  %v1389_v27 = vrot.slane %v1387_v33, 4 }
  0x58   : > { %v995_v41 = vor.u32 %v994_v54, %v991_v23  ;;  %v6516_v43 = vshrl.u32 %v9116_v28, 16  ;;  %v1005_v44 = vor.u32 %v1004_v26, %v1000_v30  ;;  %v2491_v45 = vunpack.c.l.b16 %v1388_v42  ;;  %v8631_v23 = vld [vmem:[%s9843_s26 + $0x3c] sm:$0xe] }
  0x59   : > { %v6519_v47 = vshll.u32 %v9116_v28, 16  ;;  %v6525_v48 = vshll.u32 %v9117_v34, 16  ;;  %v1391_v52 = vsel %vm9849_vm4, %v1389_v27, %v1390_v40  ;;  %v6529_v57 = vshrl.u32 %v9117_v34, 16  ;;  %v8630_v40 = vld [vmem:[%s9843_s26 + $0x30] sm:$0xe] }
  0x5a   : > { %v996_v51 = vrot.slane %v995_v41, 4  ;;  %v6518_v56 = vrot.slane %v6516_v43, 4  ;;  %v1006_v32 = vrot.slane %v1005_v44, 4  ;;  %v2492_v58 = vunpack.c.l.b16 %v1391_v52  ;;  %v10110_v44 = vld [vmem:[%s9843_s26 + $0x34] sm:$0xf] }
  0x5b   : > { %2281 = vrot.lane.b32.xlu2 %v2263_v35, %s9787_s29  ;;  %v6521_v60 = vrot.slane %v6519_v47, 5  ;;  %v6527_v14 = vrot.slane %v6525_v48, 5  ;;  %v6531_v55 = vrot.slane %v6529_v57, 4  ;;  %v6535_v62 = vshll.u32 %v9118_v46, 16 }
  0x5c   : > { %2203 = vrot.lane.b32.xlu0 %v2184_v53, %s9789_s7  ;;  %v1001_v61 = vsel %vm9879_vm5, %v996_v51, %v1000_v30  ;;  %v8566_v38 = vrot.slane %v8550_v49, 9  ;;  %v1011_v0 = vsel %vm9879_vm5, %v1006_v32, %v1010_v13  ;;  %v2520_v2 = vpack.c.b16 %v2492_v58, %v2491_v45  ;;  %v692_v49 = vld [vmem:[%s9843_s26 + $0x30] sm:$0xe]  ;;  %v10120_v32 = vld [vmem:[%s9843_s26 + $0x38] sm:$0x1] }
  0x5d   : > { %v2411_v1 = vunpack.c.l.b16 %v1001_v61  ;;  %v6522_v59 = vor.u32 %v6521_v60, %v6518_v56  ;;  %v2412_v3 = vunpack.c.l.b16 %v1011_v0  ;;  %v6532_v4 = vor.u32 %v6531_v55, %v6527_v14  ;;  %v9119_v58 = vld [vmem:[%s9843_s26 + $0x18] sm:$0xf] }
  0x5e   : > { %v6537_v8 = vrot.slane %v6535_v62, 5  ;;  %v1380_v9 = vrot.slane %v9984_v7, 5  ;;  %v1383_v10 = vrot.slane %v9987_v50, 5  ;;  %v1598_v6 = vshrl.u32 %v8586_v63, 16  ;;  %v8615_v7 = vld [vmem:[%s9843_s26 + $0x44] sm:$0x1] }
  0x5f   : > { %2539 = vrot.lane.b32.xlu1 %v2520_v2, %s9792_s10  ;;  %v6523_v12 = vrot.slane %v6522_v59, 4  ;;  %v1601_v39 = vshll.u32 %v8586_v63, 16  ;;  %v2440_v16 = vpack.c.b16 %v2412_v3, %v2411_v1  ;;  %v6533_v17 = vrot.slane %v6532_v4, 4  ;;  %v9120_v3 = vld [vmem:[%s9843_s26 + $0x1c] sm:$0xf] }
  0x60   : > { %v1381_v18 = vsel %vm9849_vm4, %v8566_v38, %v1380_v9  ;;  %v1382_v19 = vrot.slane %v1380_v9, 4  ;;  %v1600_v22 = vrot.slane %v1598_v6, 4  ;;  %v1607_v28 = vshll.u32 %v8587_v15, 16 }
  0x61   : > { %v6528_v11 = vsel %vm9879_vm5, %v6523_v12, %v6527_v14  ;;  %v2489_v21 = vunpack.c.l.b16 %v1381_v18  ;;  %v1603_v53 = vrot.slane %v1601_v39, 5  ;;  %v6538_v50 = vsel %vm9879_vm5, %v6533_v17, %v6537_v8  ;;  %v9121_v12 = vld [vmem:[%s9843_s26 + $0x20] sm:$0x1] }
  0x62   : > { %v6900_v24 = vunpack.c.l.b16 %v6528_v11  ;;  %v1384_v25 = vsel %vm9849_vm4, %v1382_v19, %v1383_v10  ;;  %v6901_v54 = vunpack.c.l.b16 %v6538_v50  ;;  %v1611_v33 = vshrl.u32 %v8587_v15, 16  ;;  %v10147_v50 = vld [vmem:[%s9843_s26 + $0x44] sm:$0x1] }
  0x63   : > { %v2490_v30 = vunpack.c.l.b16 %v1384_v25  ;;  %v1604_v31 = vor.u32 %v1603_v53, %v1600_v22  ;;  %v1609_v34 = vrot.slane %v1607_v28, 5  ;;  %v1617_v35 = vshll.u32 %v8615_v7, 16 }
  0x64   : > { %2459 = vrot.lane.b32.xlu0 %v2440_v16, %s9790_s8  ;;  %v8647_v26 = vrot.slane %v8631_v23, 9  ;;  %v1996_v13 = vrot.slane %v8587_v15, 5  ;;  %v6932_v41 = vpack.c.b16 %v6901_v54, %v6900_v24  ;;  %v1613_v43 = vrot.slane %v1611_v33, 4  ;;  %v10140_v16 = vld [vmem:[%s9843_s26 + $0x40] sm:$0xf] }
  0x65   : > { %v2519_v42 = vpack.c.b16 %v2490_v30, %v2489_v21  ;;  %v1605_v27 = vrot.slane %v1604_v31, 4  ;;  %v1619_v45 = vrot.slane %v1617_v35, 5  ;;  %v1999_v48 = vrot.slane %v8615_v7, 5  ;;  %v8552_v21 = vld [vmem:[%s9843_s26 + $0x3c] sm:$0xe] }
  0x66   : > { %v1997_v46 = vsel %vm9849_vm4, %v8647_v26, %v1996_v13  ;;  %v1998_v47 = vrot.slane %v1996_v13, 4  ;;  %9164 = vmatmul.msk.bf16.vlgmr.msra.gmra.mxu1 %vm2821_vm7, %v6932_v41  ;;  %v1614_v52 = vor.u32 %v1613_v43, %v1609_v34  ;;  %v8646_v57 = vrot.slane %v8630_v40, 9  ;;  %v8632_v24 = vld [vmem:[%s9843_s26 + $0x48] sm:$0xe]  ;;  %v10151_v31 = vld [vmem:[%s9843_s26 + $0x4c] sm:$0xf] }
  0x67   : > { %2537 = vrot.lane.b32.xlu2 %v2519_v42, %s9792_s10  ;;  %v1610_v51 = vsel %vm9879_vm5, %v1605_v27, %v1609_v34  ;;  %v2747_v56 = vunpack.c.l.b16 %v1997_v46  ;;  %v1989_v61 = vrot.slane %v10009_v29, 5  ;;  %v1992_v55 = vrot.slane %v10012_v37, 5  ;;  %v263_v33 = vld [vmem:[%s9843_s26 + $0x3c] sm:$0xf]  ;;  %v10157_v40 = vld [vmem:[%s9843_s26 + $0x50] sm:$0x1] }
  0x68   : > { %v2667_v60 = vunpack.c.l.b16 %v1610_v51  ;;  %v2000_v14 = vsel %vm9849_vm4, %v1998_v47, %v1999_v48  ;;  %v1615_v62 = vrot.slane %v1614_v52, 4  ;;  %v8488_v63 = vrot.slane %v692_v49, 9  ;;  %v9491_v42 = vld [vmem:[%s9843_s26 + $0x3c] sm:$0xff] }
  0x69   : > { %v2748_v38 = vunpack.c.l.b16 %v2000_v14  ;;  %v785_v0 = vrot.slane %v10110_v44, 5  ;;  %v1990_v1 = vsel %vm9849_vm4, %v8646_v57, %v1989_v61  ;;  %v1991_v2 = vrot.slane %v1989_v61, 4 }
  0x6a   : > { %v788_v59 = vrot.slane %v10120_v32, 5  ;;  %v6540_v4 = vshrl.u32 %v9119_v58, 16  ;;  %v1620_v29 = vsel %vm9879_vm5, %v1615_v62, %v1619_v45  ;;  %v2745_v37 = vunpack.c.l.b16 %v1990_v1  ;;  %v10178_v1 = vld [vmem:[%s9843_s26 + $0x44] sm:$0x1] }
  0x6b   : > { %v2776_v8 = vpack.c.b16 %v2748_v38, %v2747_v56  ;;  %v786_v9 = vsel %vm9849_vm4, %v8488_v63, %v785_v0  ;;  %v2668_v10 = vunpack.c.l.b16 %v1620_v29  ;;  %v1993_v15 = vsel %vm9849_vm4, %v1991_v2, %v1992_v55  ;;  %v10171_v55 = vld [vmem:[%s9843_s26 + $0x40] sm:$0xf]  ;;  %v9490_v38 = vld [vmem:[%s9843_s26 + $0x30] sm:$0xff] }
  0x6c   : > { %v787_v6 = vrot.slane %v785_v0, 4  ;;  %v2237_v39 = vunpack.c.l.b16 %v786_v9  ;;  %v2746_v17 = vunpack.c.l.b16 %v1993_v15  ;;  %v6542_v18 = vrot.slane %v6540_v4, 4  ;;  %v9123_v15 = vld [vmem:[%s9843_s26 + $0x28] sm:$0xf] }
  0x6d   : > { %2795 = vrot.lane.b32.xlu1 %v2776_v8, %s9788_s30  ;;  %v6543_v19 = vshll.u32 %v9119_v58, 16  ;;  %v6549_v11 = vshll.u32 %v9120_v3, 16  ;;  %v2696_v7 = vpack.c.b16 %v2668_v10, %v2667_v60  ;;  %v6553_v53 = vshrl.u32 %v9120_v3, 16 }
  0x6e   : > { %v789_v22 = vsel %vm9849_vm4, %v787_v6, %v788_v59  ;;  %v6559_v23 = vshll.u32 %v9121_v12, 16  ;;  %v2775_v25 = vpack.c.b16 %v2746_v17, %v2745_v37  ;;  %v8568_v26 = vrot.slane %v8552_v21, 9  ;;  %v9122_v59 = vld [vmem:[%s9843_s26 + $0x24] sm:$0xf]  ;;  %v9507_v21 = vld [vmem:[%s9843_s26 + $0x48] sm:$0xff] }
  0x6f   : > { %v2238_v28 = vunpack.c.l.b16 %v789_v22  ;;  %v6545_v54 = vrot.slane %v6543_v19, 5  ;;  %v6551_v30 = vrot.slane %v6549_v11, 5  ;;  %2715 = vrot.lane.b32.xlu0 %v2696_v7, %s9791_s9  ;;  %v6555_v34 = vrot.slane %v6553_v53, 4 }
  0x70   : > { %v6561_v35 = vrot.slane %v6559_v23, 5  ;;  %v1394_v13 = vrot.slane %v10140_v16, 5  ;;  %2793 = vrot.lane.b32.xlu2 %v2775_v25, %s9788_s30  ;;  %v1397_v43 = vrot.slane %v10147_v50, 5  ;;  %v8648_v45 = vrot.slane %v8632_v24, 9  ;;  %v261_v23 = vld [vmem:[%s9843_s26 + $0x30] sm:$0xf] }
  0x71   : > { %v2265_v41 = vpack.c.b16 %v2238_v28, %v2237_v39  ;;  %v6546_v27 = vor.u32 %v6545_v54, %v6542_v18  ;;  %v6556_v46 = vor.u32 %v6555_v34, %v6551_v30  ;;  %v2003_v49 = vrot.slane %v10151_v31, 5  ;;  %v9124_v18 = vld [vmem:[%s9843_s26 + $0x2c] sm:$0x1] }
  0x72   : > { %v1395_v47 = vsel %vm9849_vm4, %v8568_v26, %v1394_v13  ;;  %v1396_v48 = vrot.slane %v1394_v13, 4  ;;  %v2006_v56 = vrot.slane %v10157_v40, 5  ;;  %v425_v57 = vshrl.u32 %v263_v33, 16 }
  0x73   : > { %v6547_v51 = vrot.slane %v6546_v27, 4  ;;  %v2493_v52 = vunpack.c.l.b16 %v1395_v47  ;;  %v6557_v58 = vrot.slane %v6556_v46, 4  ;;  %v2004_v14 = vsel %vm9849_vm4, %v8648_v45, %v2003_v49  ;;  %v9506_v27 = vld [vmem:[%s9843_s26 + $0x3c] sm:$0xff] }
  0x74   : > { %v1398_v60 = vsel %vm9849_vm4, %v1396_v48, %v1397_v43  ;;  %v2005_v61 = vrot.slane %v2003_v49, 4  ;;  %v2749_v0 = vunpack.c.l.b16 %v2004_v14  ;;  %v427_v2 = vrot.slane %v425_v57, 4 }
  0x75   : > { %2381 = vrot.lane.b32.xlu1 %v9491_v42, %s9785_s27  ;;  %v6552_v62 = vsel %vm9879_vm5, %v6547_v51, %v6551_v30  ;;  %v2494_v63 = vunpack.c.l.b16 %v1398_v60  ;;  %v6562_v3 = vsel %vm9879_vm5, %v6557_v58, %v6561_v35  ;;  %v428_v8 = vshll.u32 %v263_v33, 16 }
  0x76   : > { %v6902_v4 = vunpack.c.l.b16 %v6552_v62  ;;  %v2007_v29 = vsel %vm9849_vm4, %v2005_v61, %v2006_v56  ;;  %v6903_v37 = vunpack.c.l.b16 %v6562_v3  ;;  %v434_v10 = vshll.u32 %v10171_v55, 16 }
  0x77   : > { %v2521_v9 = vpack.c.b16 %v2494_v63, %v2493_v52  ;;  %v2750_v12 = vunpack.c.l.b16 %v2007_v29  ;;  %2285 = vrot.lane.b32.xlu0 %v2265_v41, %s9787_s29  ;;  %v430_v6 = vrot.slane %v428_v8, 5  ;;  %v438_v39 = vshrl.u32 %v10171_v55, 16  ;;  %v8510_v63 = vld [vmem:[%s9843_s26 + $0x48] sm:$0xf] }
  0x78   : > { %v444_v17 = vshll.u32 %v10178_v1, 16  ;;  %v6564_v19 = vshrl.u32 %v9122_v59, 16  ;;  %v6933_v11 = vpack.c.b16 %v6903_v37, %v6902_v4  ;;  %2379 = vrot.lane.b32.xlu2 %v9490_v38, %s9785_s27  ;;  %v436_v22 = vrot.slane %v434_v10, 5  ;;  %v10212_v4 = vld [vmem:[%s9843_s26 + $0x4c] sm:$0xf] }
  0x79   : > { %v10193_v7 = vpack.c.b16 %v2750_v12, %v2749_v0  ;;  %v6567_v53 = vshll.u32 %v9122_v59, 16  ;;  %v431_v24 = vor.u32 %v430_v6, %v427_v2  ;;  %v440_v25 = vrot.slane %v438_v39, 4 }
  0x7a   : > { %v446_v28 = vrot.slane %v444_v17, 5  ;;  %v6566_v54 = vrot.slane %v6564_v19, 4  ;;  %9165 = vmatmul.msk.bf16.gmra.mxu1 %vm2821_vm7, %v6933_v11  ;;  %v6573_v33 = vshll.u32 %v9123_v15, 16  ;;  %v6577_v34 = vshrl.u32 %v9123_v15, 16  ;;  %v8508_v19 = vld [vmem:[%s9843_s26 + $0x3c] sm:$0xf] }
  0x7b   : > { %v6569_v30 = vrot.slane %v6567_v53, 5  ;;  %v6583_v35 = vshll.u32 %v9124_v18, 16  ;;  %v432_v26 = vrot.slane %v431_v24, 4  ;;  %v441_v13 = vor.u32 %v440_v25, %v436_v22 }
  0x7c   : > { %v401_v41 = vshrl.u32 %v261_v23, 16  ;;  %v404_v42 = vshll.u32 %v261_v23, 16  ;;  %v6575_v45 = vrot.slane %v6573_v33, 5  ;;  %v6579_v46 = vrot.slane %v6577_v34, 4 }
  0x7d   : > { %2637 = vrot.lane.b32.xlu1 %v9507_v21, %s9786_s28  ;;  %v6570_v43 = vor.u32 %v6569_v30, %v6566_v54  ;;  %v6585_v47 = vrot.slane %v6583_v35, 5  ;;  %v437_v48 = vsel %vm9879_vm5, %v432_v26, %v436_v22  ;;  %v442_v49 = vrot.slane %v441_v13, 4 }
  0x7e   : > { %v403_v51 = vrot.slane %v401_v41, 4  ;;  %v406_v52 = vrot.slane %v404_v42, 5  ;;  %v2159_v56 = vunpack.c.l.b16 %v437_v48  ;;  %v6580_v58 = vor.u32 %v6579_v46, %v6575_v45 }
  0x7f   : > { %v6571_v57 = vrot.slane %v6570_v43, 4  ;;  %v410_v60 = vshll.u32 %v10110_v44, 16  ;;  %2541 = vrot.lane.b32.xlu0 %v2521_v9, %s9792_s10  ;;  %v447_v14 = vsel %vm9879_vm5, %v442_v49, %v446_v28  ;;  %v414_v62 = vshrl.u32 %v10110_v44, 16 }
  0x80   : > { %v407_v61 = vor.u32 %v406_v52, %v403_v51  ;;  %v420_v38 = vshll.u32 %v10120_v32, 16  ;;  %2635 = vrot.lane.b32.xlu2 %v9506_v27, %s9786_s28  ;;  %v2160_v0 = vunpack.c.l.b16 %v447_v14  ;;  %v6581_v59 = vrot.slane %v6580_v58, 4  ;;  %v10217_v32 = vld [vmem:[%s9843_s26 + $0x50] sm:$0x1]  ;;  %v8590_v27 = vld [vmem:[%s9843_s26 + $0x54] sm:$0xf] }
  0x81   : > { %v6576_v2 = vsel %vm9879_vm5, %v6571_v57, %v6575_v45  ;;  %v412_v3 = vrot.slane %v410_v60, 5  ;;  %v416_v37 = vrot.slane %v414_v62, 4  ;;  %v1037_v10 = vshrl.u32 %v8510_v63, 16  ;;  %v10237_v52 = vld [vmem:[%s9843_s26 + $0x58] sm:$0xf]  ;;  %v9492_v60 = vld [vmem:[%s9843_s26 + $0x48] sm:$0xff] }
  0x82   : > { %v6904_v29 = vunpack.c.l.b16 %v6576_v2  ;;  %v408_v8 = vrot.slane %v407_v61, 4  ;;  %v422_v9 = vrot.slane %v420_v38, 5  ;;  %v2186_v12 = vpack.c.b16 %v2160_v0, %v2159_v56 }
  0x83   : > { %v6586_v44 = vsel %vm9879_vm5, %v6581_v59, %v6585_v47  ;;  %v1040_v15 = vshll.u32 %v8510_v63, 16  ;;  %v417_v17 = vor.u32 %v416_v37, %v412_v3  ;;  %v1046_v18 = vshll.u32 %v10212_v4, 16  ;;  %v10244_v63 = vld [vmem:[%s9843_s26 + $0x5c] sm:$0x1] }
  0x84   : > { %v6905_v6 = vunpack.c.l.b16 %v6586_v44  ;;  %v413_v39 = vsel %vm9879_vm5, %v408_v8, %v412_v3  ;;  %v1039_v21 = vrot.slane %v1037_v10, 4  ;;  %v1050_v53 = vshrl.u32 %v10212_v4, 16  ;;  %v10230_v26 = vpop.permute.xlu1 %2373 }
  0x85   : > { %2207 = vrot.lane.b32.xlu1 %v2186_v12, %s9789_s7  ;;  %v2157_v11 = vunpack.c.l.b16 %v413_v39  ;;  %v1042_v22 = vrot.slane %v1040_v15, 5  ;;  %v418_v24 = vrot.slane %v417_v17, 4  ;;  %v1048_v25 = vrot.slane %v1046_v18, 5  ;;  %v10255_v12 = vpop.permute.xlu2 %2629  ;;  %v9125_v17 = vld [vmem:[%s9843_s26 + $0x30] sm:$0xf] }
  0x86   : > { %v6934_v23 = vpack.c.b16 %v6905_v6, %v6904_v29  ;;  %v1056_v28 = vshll.u32 %v10217_v32, 16  ;;  %v1052_v30 = vrot.slane %v1050_v53, 4  ;;  %v1013_v33 = vshrl.u32 %v8508_v19, 16 }
  0x87   : > { %v1043_v54 = vor.u32 %v1042_v22, %v1039_v21  ;;  %v1016_v34 = vshll.u32 %v8508_v19, 16  ;;  %2797 = vrot.lane.b32.xlu0 %v10193_v7, %s9788_s30  ;;  %v423_v35 = vsel %vm9879_vm5, %v418_v24, %v422_v9  ;;  %v1022_v41 = vshll.u32 %v10140_v16, 16  ;;  %v9126_v22 = vld [vmem:[%s9843_s26 + $0x34] sm:$0xf] }
  0x88   : > { %v1058_v13 = vrot.slane %v1056_v28, 5  ;;  %v1026_v42 = vshrl.u32 %v10140_v16, 16  ;;  %v2158_v43 = vunpack.c.l.b16 %v423_v35  ;;  %v1053_v46 = vor.u32 %v1052_v30, %v1048_v25 }
  0x89   : > { %v1044_v45 = vrot.slane %v1043_v54, 4  ;;  %v1015_v47 = vrot.slane %v1013_v33, 4  ;;  %v1018_v48 = vrot.slane %v1016_v34, 5  ;;  %v1024_v49 = vrot.slane %v1022_v41, 5  ;;  %v9127_v33 = vld [vmem:[%s9843_s26 + $0x38] sm:$0x1] }
  0x8a   : > { %v1028_v7 = vrot.slane %v1026_v42, 4  ;;  %v1032_v51 = vshll.u32 %v10147_v50, 16  ;;  %9166 = vmatmul.msk.bf16.gmra.mxu1 %vm2821_vm7, %v6934_v23  ;;  %v2185_v56 = vpack.c.b16 %v2158_v43, %v2157_v11  ;;  %v1054_v57 = vrot.slane %v1053_v46, 4  ;;  %v3105_v50 = vld [vmem:[%s13360_s1 + $0x10] sm:$0x3] }
  0x8b   : > { %v1049_v16 = vsel %vm9879_vm5, %v1044_v45, %v1048_v25  ;;  %v1646_v58 = vshrl.u32 %v8590_v27, 16  ;;  %v1019_v61 = vor.u32 %v1018_v48, %v1015_v47  ;;  %v1649_v3 = vshll.u32 %v8590_v27, 16  ;;  %v8588_v43 = vld [vmem:[%s9843_s26 + $0x48] sm:$0xf]  ;;  %v9508_v45 = vld [vmem:[%s9843_s26 + $0x54] sm:$0xff] }
  0x8c   : > { %v2415_v14 = vunpack.c.l.b16 %v1049_v16  ;;  %v1029_v62 = vor.u32 %v1028_v7, %v1024_v49  ;;  %v1034_v38 = vrot.slane %v1032_v51, 5  ;;  %2205 = vrot.lane.b32.xlu2 %v2185_v56, %s9789_s7  ;;  %v1059_v0 = vsel %vm9879_vm5, %v1054_v57, %v1058_v13  ;;  %v9520_v57 = vld [vmem:[%s13360_s1 + $0x8] sm:$0xff] }
  0x8d   : > { %v10252_v2 = vpop.permute.xlu0 %2277  ;;  %v1648_v59 = vrot.slane %v1646_v58, 4  ;;  %v1655_v29 = vshll.u32 %v10237_v52, 16  ;;  %v2416_v8 = vunpack.c.l.b16 %v1059_v0  ;;  %v1020_v37 = vrot.slane %v1019_v61, 4 }
  0x8e   : > { %v1030_v9 = vrot.slane %v1029_v62, 4  ;;  %v1659_v44 = vshrl.u32 %v10237_v52, 16  ;;  %v1651_v10 = vrot.slane %v1649_v3, 5  ;;  %v1665_v6 = vshll.u32 %v10244_v63, 16 }
  0x8f   : > { %v1657_v15 = vrot.slane %v1655_v29, 5  ;;  %v3119_v39 = vunpack.c.l.b16 %v3105_v50  ;;  %2383 = vrot.lane.b32.xlu0 %v9492_v60, %s9785_s27  ;;  %v2442_v18 = vpack.c.b16 %v2416_v8, %v2415_v14  ;;  %v1025_v19 = vsel %vm9879_vm5, %v1020_v37, %v1024_v49  ;;  %v10267_v28 = vpop.permute.xlu1 %2789 }
  0x90   : > { %v1035_v11 = vsel %vm9879_vm5, %v1030_v9, %v1034_v38  ;;  %v1661_v21 = vrot.slane %v1659_v44, 4  ;;  %v2413_v53 = vunpack.c.l.b16 %v1025_v19  ;;  %v1652_v24 = vor.u32 %v1651_v10, %v1648_v59  ;;  %v9471_v9 = vld [vmem:[%s9843_s26] sm:$0xff]  ;;  %v2534_v44 = vpop.permute.xlu2 %2533 }
  0x91   : > { %v2414_v23 = vunpack.c.l.b16 %v1035_v11  ;;  %v1667_v25 = vrot.slane %v1665_v6, 5  ;;  %2463 = vrot.lane.b32.xlu1 %v2442_v18, %s9790_s8  ;;  %v3122_v30 = vpack.c.b16 %v3119_v39, %v3119_v39  ;;  %v6588_v34 = vshrl.u32 %v9125_v17, 16 }
  0x92   : > { %v1662_v54 = vor.u32 %v1661_v21, %v1657_v15  ;;  %v6591_v35 = vshll.u32 %v9125_v17, 16  ;;  %v1653_v41 = vrot.slane %v1652_v24, 4  ;;  %v6597_v42 = vshll.u32 %v9126_v22, 16  ;;  %v9519_v17 = vld [vmem:[%s13360_s1] sm:$0xff] }
  0x93   : > { %v2441_v13 = vpack.c.b16 %v2414_v23, %v2413_v53  ;;  %v6601_v27 = vshrl.u32 %v9126_v22, 16  ;;  %v3160_v47 = vsel %vm3158_vm6, %v3122_v30, 0  ;;  %v6590_v48 = vrot.slane %v6588_v34, 4  ;;  %v265_v53 = vld [vmem:[%s9843_s26 + $0x48] sm:$0xf] }
  0x94   : > { %v1663_v46 = vrot.slane %v1662_v54, 4  ;;  %v6593_v49 = vrot.slane %v6591_v35, 5  ;;  %v1658_v7 = vsel %vm9879_vm5, %v1653_v41, %v1657_v15  ;;  %3167 = vmatpush.bf16.msra.mxu0 %v3160_v47  ;;  %v6599_v51 = vrot.slane %v6597_v42, 5  ;;  %9641 = vmatpush.bf16.msra.mxu3 %v3160_v47  ;;  %v266_v30 = vld [vmem:[%s9843_s26 + $0x4c] sm:$0xf] }
  0x95   : > { %2461 = vrot.lane.b32.xlu2 %v2441_v13, %s9790_s8  ;;  %v6603_v56 = vrot.slane %v6601_v27, 4  ;;  %v6607_v16 = vshll.u32 %v9127_v33, 16  ;;  %v2671_v60 = vunpack.c.l.b16 %v1658_v7  ;;  %v1622_v61 = vshrl.u32 %v8588_v43, 16 }
  0x96   : > { %v1668_v58 = vsel %vm9879_vm5, %v1663_v46, %v1667_v25  ;;  %v6594_v14 = vor.u32 %v6593_v49, %v6590_v48  ;;  %v2198_v62 = vpop.permute.xlu0 %2197  ;;  %v1625_v59 = vshll.u32 %v8588_v43, 16  ;;  %v1631_v8 = vshll.u32 %v10151_v31, 16 }
  0x97   : > { %v2672_v38 = vunpack.c.l.b16 %v1668_v58  ;;  %v6604_v50 = vor.u32 %v6603_v56, %v6599_v51  ;;  %v6609_v0 = vrot.slane %v6607_v16, 5  ;;  %2639 = vrot.lane.b32.xlu0 %v9508_v45, %s9786_s28  ;;  %v1624_v29 = vrot.slane %v1622_v61, 4  ;;  %v291_v45 = vld [vmem:[%s9843_s26 + $0x50] sm:$0x1] }
  0x98   : > { %v6595_v3 = vrot.slane %v6594_v14, 4  ;;  %v1635_v37 = vshrl.u32 %v10151_v31, 16  ;;  %v1627_v6 = vrot.slane %v1625_v59, 5  ;;  %v1641_v39 = vshll.u32 %v10157_v40, 16  ;;  %3168 = vmatpush.bf16.msra.mxu0 %v9520_v57  ;;  %9642 = vmatpush.bf16.msra.mxu3 %v9520_v57 }
  0x99   : > { %v2698_v10 = vpack.c.b16 %v2672_v38, %v2671_v60  ;;  %v6605_v15 = vrot.slane %v6604_v50, 4  ;;  %v1633_v19 = vrot.slane %v1631_v8, 5  ;;  %v2824_v25 = vsel %vm2821_vm7, %v9471_v9, %v2198_v62  ;;  %v2454_v54 = vpop.permute.xlu1 %2453 }
  0x9a   : > { %v6600_v18 = vsel %vm9879_vm5, %v6595_v3, %v6599_v51  ;;  %v1637_v11 = vrot.slane %v1635_v37, 4  ;;  %v1628_v40 = vor.u32 %v1627_v6, %v1624_v29  ;;  %v1643_v22 = vrot.slane %v1641_v39, 5  ;;  %v693_v51 = vld [vmem:[%s9843_s26 + $0x3c] sm:$0xe] }
  0x9b   : > { %2719 = vrot.lane.b32.xlu1 %v2698_v10, %s9791_s9  ;;  %v6610_v31 = vsel %vm9879_vm5, %v6605_v15, %v6609_v0  ;;  %v6906_v21 = vunpack.c.l.b16 %v6600_v18  ;;  %v2872_v34 = vsel %vm2870_vm8, %v2824_v25, %v10252_v2  ;;  %v449_v42 = vshrl.u32 %v265_v53, 16  ;;  %v694_v2 = vld [vmem:[%s9843_s26 + $0x48] sm:$0xe] }
  0x9c   : > { %v6907_v23 = vunpack.c.l.b16 %v6610_v31  ;;  %v1638_v24 = vor.u32 %v1637_v11, %v1633_v19  ;;  %v1629_v33 = vrot.slane %v1628_v40, 4  ;;  %3169 = vmatpush.bf16.msra.mxu0 %v9519_v17  ;;  %v2905_v41 = vsel %vm2903_vm9, %v2872_v34, %v10230_v26  ;;  %9643 = vmatpush.bf16.msra.mxu3 %v9519_v17 }
  0x9d   : > { %v2938_v43 = vsel %vm2936_vm10, %v2905_v41, %v2454_v54  ;;  %v452_v46 = vshll.u32 %v265_v53, 16  ;;  %v458_v47 = vshll.u32 %v266_v30, 16  ;;  %v451_v7 = vrot.slane %v449_v42, 4  ;;  %v8512_v53 = vld [vmem:[%s9843_s26 + $0x54] sm:$0xf] }
  0x9e   : > { %v6935_v35 = vpack.c.b16 %v6907_v23, %v6906_v21  ;;  %v1639_v13 = vrot.slane %v1638_v24, 4  ;;  %v1634_v27 = vsel %vm9879_vm5, %v1629_v33, %v1633_v19  ;;  %v2971_v26 = vsel %vm13366_vm11, %v2938_v43, %v2534_v44  ;;  %v2710_v56 = vpop.permute.xlu0 %2709  ;;  %v9472_v19 = vld [vmem:[%s9843_s26 + $0xc] sm:$0xff]  ;;  %v8538_v33 = vld [vmem:[%s9843_s26 + $0x5c] sm:$0x1] }
  0x9f   : > { %v2669_v49 = vunpack.c.l.b16 %v1634_v27  ;;  %v454_v57 = vrot.slane %v452_v46, 5  ;;  %v460_v58 = vrot.slane %v458_v47, 5  ;;  %v462_v60 = vshrl.u32 %v266_v30, 16 }
  0xa0   : > { %9644 = vmatpush.bf16.msrb.mxu3 %v10074_v20  ;;  %9167 = vmatmul.msk.bf16.gmra.mxu1 %vm2821_vm7, %v6935_v35  ;;  %v1644_v48 = vsel %vm9879_vm5, %v1639_v13, %v1643_v22  ;;  %v468_v14 = vshll.u32 %v291_v45, 16  ;;  %v8490_v61 = vrot.slane %v694_v2, 9  ;;  %v799_v62 = vrot.slane %v266_v30, 5  ;;  %v2200_v20 = vpop.permute.xlu2 %2199  ;;  %v8513_v30 = vld [vmem:[%s9843_s26 + $0x58] sm:$0xf] }
  0xa1   : > { %v2670_v16 = vunpack.c.l.b16 %v1644_v48  ;;  %v802_v38 = vrot.slane %v291_v45, 5  ;;  %v455_v0 = vor.u32 %v454_v57, %v451_v7  ;;  %v464_v59 = vrot.slane %v462_v60, 4  ;;  %v8554_v13 = vld [vmem:[%s9843_s26 + $0x54] sm:$0xe]  ;;  %v10341_v45 = vpop.permute.xlu1 %2375 }
  0xa2   : > { %v8489_v3 = vrot.slane %v693_v51, 9  ;;  %v470_v29 = vrot.slane %v468_v14, 5  ;;  %v800_v8 = vsel %vm9849_vm4, %v8490_v61, %v799_v62  ;;  %v801_v37 = vrot.slane %v799_v62, 4 }
  0xa3   : > { %v2697_v50 = vpack.c.b16 %v2670_v16, %v2669_v49  ;;  %v792_v9 = vrot.slane %v10171_v55, 5  ;;  %v456_v44 = vrot.slane %v455_v0, 4  ;;  %v465_v10 = vor.u32 %v464_v59, %v460_v58  ;;  %v9128_v49 = vld [vmem:[%s9843_s26 + $0x3c] sm:$0xf]  ;;  %v9129_v16 = vld [vmem:[%s9843_s26 + $0x40] sm:$0xf] }
  0xa4   : > { %v2241_v15 = vunpack.c.l.b16 %v800_v8  ;;  %v795_v6 = vrot.slane %v10178_v1, 5  ;;  %v803_v39 = vsel %vm9849_vm4, %v801_v37, %v802_v38  ;;  %v3004_v22 = vsel %vm3002_vm12, %v2971_v26, %v10255_v12  ;;  %v9130_v59 = vld [vmem:[%s9843_s26 + $0x44] sm:$0x1]  ;;  %v8553_v8 = vld [vmem:[%s9843_s26 + $0x48] sm:$0xe] }
  0xa5   : > { %2717 = vrot.lane.b32.xlu2 %v2697_v50, %s9791_s9  ;;  %v793_v17 = vsel %vm9849_vm4, %v8489_v3, %v792_v9  ;;  %v794_v18 = vrot.slane %v792_v9, 4  ;;  %v461_v55 = vsel %vm9879_vm5, %v456_v44, %v460_v58  ;;  %v466_v11 = vrot.slane %v465_v10, 4 }
  0xa6   : > { %v2242_v31 = vunpack.c.l.b16 %v803_v39  ;;  %v2239_v21 = vunpack.c.l.b16 %v793_v17  ;;  %v2161_v40 = vunpack.c.l.b16 %v461_v55  ;;  %v3037_v54 = vsel %vm3035_vm13, %v3004_v22, %v2710_v56  ;;  %v2280_v12 = vpop.permute.xlu0 %2279 }
  0xa7   : > { %v796_v1 = vsel %vm9849_vm4, %v794_v18, %v795_v6  ;;  %v471_v23 = vsel %vm9879_vm5, %v466_v11, %v470_v29  ;;  %v10335_v35 = vsel %vm2821_vm7, %v9472_v19, %v2200_v20  ;;  %v3070_v42 = vsel %vm3068_vm14, %v3037_v54, %v10267_v28 }
  0xa8   : > { %v2267_v24 = vpack.c.b16 %v2242_v31, %v2241_v15  ;;  %v2240_v25 = vunpack.c.l.b16 %v796_v1  ;;  %v2162_v34 = vunpack.c.l.b16 %v471_v23  ;;  %v1061_v27 = vshrl.u32 %v8512_v53, 16  ;;  %8860 = vmatmul.msk.bf16.vlgmr.msra.gmra.mxu0 %vm3125_vm15, %v3070_v42  ;;  %v10345_v26 = vpop.permute.xlu2 %2455  ;;  %v8592_v31 = vld [vmem:[%s9843_s26 + $0x60] sm:$0xf] }
  0xa9   : > { %v1064_v43 = vshll.u32 %v8512_v53, 16  ;;  %v1070_v47 = vshll.u32 %v8513_v30, 16  ;;  %v1074_v2 = vshrl.u32 %v8513_v30, 16  ;;  %v1080_v48 = vshll.u32 %v8538_v33, 16 }
  0xaa   : > { %2289 = vrot.lane.b32.xlu1 %v2267_v24, %s9787_s29  ;;  %v2266_v41 = vpack.c.b16 %v2240_v25, %v2239_v21  ;;  %v2187_v46 = vpack.c.b16 %v2162_v34, %v2161_v40  ;;  %v1063_v7 = vrot.slane %v1061_v27, 4  ;;  %v8570_v28 = vrot.slane %v8554_v13, 9 }
  0xab   : > { %v1066_v51 = vrot.slane %v1064_v43, 5  ;;  %v1408_v56 = vrot.slane %v8513_v30, 5  ;;  %v1072_v57 = vrot.slane %v1070_v47, 5  ;;  %v1076_v58 = vrot.slane %v1074_v2, 4  ;;  %v2632_v30 = vpop.permute.xlu1 %2631 }
  0xac   : > { %2209 = vrot.lane.b32.xlu0 %v2187_v46, %s9789_s7  ;;  %v1082_v60 = vrot.slane %v1080_v48, 5  ;;  %v1411_v14 = vrot.slane %v8538_v33, 5  ;;  %v6612_v20 = vshrl.u32 %v9128_v49, 16  ;;  %v6615_v3 = vshll.u32 %v9128_v49, 16 }
  0xad   : > { %2287 = vrot.lane.b32.xlu2 %v2266_v41, %s9787_s29  ;;  %v1067_v61 = vor.u32 %v1066_v51, %v1063_v7  ;;  %v1409_v62 = vsel %vm9849_vm4, %v8570_v28, %v1408_v56  ;;  %v1410_v38 = vrot.slane %v1408_v56, 4  ;;  %v1077_v50 = vor.u32 %v1076_v58, %v1072_v57 }
  0xae   : > { %v2497_v0 = vunpack.c.l.b16 %v1409_v62  ;;  %v6621_v29 = vshll.u32 %v9129_v16, 16  ;;  %v6614_v44 = vrot.slane %v6612_v20, 4  ;;  %v6625_v10 = vshrl.u32 %v9129_v16, 16  ;;  %v2536_v53 = vpop.permute.xlu0 %2535 }
  0xaf   : > { %v1068_v37 = vrot.slane %v1067_v61, 4  ;;  %v1412_v9 = vsel %vm9849_vm4, %v1410_v38, %v1411_v14  ;;  %v1078_v15 = vrot.slane %v1077_v50, 4  ;;  %v6617_v39 = vrot.slane %v6615_v3, 5  ;;  %v8633_v38 = vld [vmem:[%s9843_s26 + $0x54] sm:$0xe] }
  0xb0   : > { %v2498_v6 = vunpack.c.l.b16 %v1412_v9  ;;  %v6623_v17 = vrot.slane %v6621_v29, 5  ;;  %v6627_v19 = vrot.slane %v6625_v10, 4  ;;  %v6631_v55 = vshll.u32 %v9130_v59, 16  ;;  %v2712_v42 = vpop.permute.xlu2 %2711 }
  0xb1   : > { %v1073_v18 = vsel %vm9879_vm5, %v1068_v37, %v1072_v57  ;;  %v8569_v11 = vrot.slane %v8553_v8, 9  ;;  %v1083_v21 = vsel %vm9879_vm5, %v1078_v15, %v1082_v60  ;;  %v6618_v22 = vor.u32 %v6617_v39, %v6614_v44  ;;  %v695_v37 = vld [vmem:[%s9843_s26 + $0x54] sm:$0xe] }
  0xb2   : > { %v2417_v40 = vunpack.c.l.b16 %v1073_v18  ;;  %v2523_v1 = vpack.c.b16 %v2498_v6, %v2497_v0  ;;  %v2418_v23 = vunpack.c.l.b16 %v1083_v21  ;;  %v6628_v24 = vor.u32 %v6627_v19, %v6623_v17 }
  0xb3   : > { %v6633_v25 = vrot.slane %v6631_v55, 5  ;;  %v1401_v54 = vrot.slane %v10212_v4, 5  ;;  %v6619_v33 = vrot.slane %v6618_v22, 4  ;;  %v1404_v34 = vrot.slane %v10217_v32, 5  ;;  %v8593_v4 = vld [vmem:[%s9843_s26 + $0x64] sm:$0xf] }
  0xb4   : > { %2545 = vrot.lane.b32.xlu1 %v2523_v1, %s9792_s10  ;;  %v2874_v13 = vsel %vm2870_vm8, %v10335_v35, %v2280_v12  ;;  %v1670_v41 = vshrl.u32 %v8592_v31, 16  ;;  %v2443_v27 = vpack.c.b16 %v2418_v23, %v2417_v40  ;;  %v6629_v43 = vrot.slane %v6628_v24, 4  ;;  %v8618_v32 = vld [vmem:[%s9843_s26 + $0x68] sm:$0x1]  ;;  %v8634_v35 = vld [vmem:[%s9843_s26 + $0x60] sm:$0xe] }
  0xb5   : > { %v1402_v46 = vsel %vm9849_vm4, %v8569_v11, %v1401_v54  ;;  %v1403_v47 = vrot.slane %v1401_v54, 4  ;;  %v6624_v2 = vsel %vm9879_vm5, %v6619_v33, %v6623_v17  ;;  %v2907_v49 = vsel %vm2903_vm9, %v2874_v13, %v10341_v45  ;;  %v10392_v55 = vld [vmem:[%s9843_s26 + $0x58] sm:$0xf]  ;;  %v2202_v11 = vpop.permute.xlu1 %2201  ;;  %v10403_v33 = vld [vmem:[%s9843_s26 + $0x5c] sm:$0x1] }
  0xb6   : > { %v2495_v48 = vunpack.c.l.b16 %v1402_v46  ;;  %v1672_v7 = vrot.slane %v1670_v41, 4  ;;  %2465 = vrot.lane.b32.xlu0 %v2443_v27, %s9790_s8  ;;  %v6634_v12 = vsel %vm9879_vm5, %v6629_v43, %v6633_v25  ;;  %v6908_v51 = vunpack.c.l.b16 %v6624_v2  ;;  %v2792_v6 = vpop.permute.xlu0 %2791  ;;  %v9132_v46 = vld [vmem:[%s9843_s26 + $0x4c] sm:$0xf] }
  0xb7   : > { %v1405_v28 = vsel %vm9849_vm4, %v1403_v47, %v1404_v34  ;;  %v2940_v56 = vsel %vm2936_vm10, %v2907_v49, %v10345_v26  ;;  %v6909_v16 = vunpack.c.l.b16 %v6634_v12  ;;  %v1673_v45 = vshll.u32 %v8592_v31, 16  ;;  %v9131_v34 = vld [vmem:[%s9843_s26 + $0x48] sm:$0xf]  ;;  %v9473_v49 = vld [vmem:[%s9843_s26 + $0x18] sm:$0xff] }
  0xb8   : > { %v2496_v57 = vunpack.c.l.b16 %v1405_v28  ;;  %v1679_v58 = vshll.u32 %v8593_v4, 16  ;;  %v1683_v60 = vshrl.u32 %v8593_v4, 16  ;;  %v1689_v14 = vshll.u32 %v8618_v32, 16  ;;  %v2282_v22 = vpop.permute.xlu2 %2281 }
  0xb9   : > { %v8650_v61 = vrot.slane %v8634_v35, 9  ;;  %v2017_v62 = vrot.slane %v8593_v4, 5  ;;  %v6936_v20 = vpack.c.b16 %v6909_v16, %v6908_v51  ;;  %v1675_v0 = vrot.slane %v1673_v45, 5 }
  0xba   : > { %v2522_v50 = vpack.c.b16 %v2496_v57, %v2495_v48  ;;  %v1681_v59 = vrot.slane %v1679_v58, 5  ;;  %v1685_v3 = vrot.slane %v1683_v60, 4  ;;  %v1691_v29 = vrot.slane %v1689_v14, 5  ;;  %v9133_v48 = vld [vmem:[%s9843_s26 + $0x50] sm:$0x1] }
  0xbb   : > { %v2018_v26 = vsel %vm9849_vm4, %v8650_v61, %v2017_v62  ;;  %v2019_v8 = vrot.slane %v2017_v62, 4  ;;  %9168 = vmatmul.msk.bf16.gmra.mxu1 %vm2821_vm7, %v6936_v20  ;;  %v1676_v9 = vor.u32 %v1675_v0, %v1672_v7  ;;  %v2020_v44 = vrot.slane %v8618_v32, 5  ;;  %v10419_v57 = vld [vmem:[%s9843_s26 + $0x64] sm:$0xf]  ;;  %v8555_v61 = vld [vmem:[%s9843_s26 + $0x60] sm:$0xe] }
  0xbc   : > { %2543 = vrot.lane.b32.xlu2 %v2522_v50, %s9792_s10  ;;  %v2753_v10 = vunpack.c.l.b16 %v2018_v26  ;;  %v8649_v15 = vrot.slane %v8633_v38, 9  ;;  %v1686_v39 = vor.u32 %v1685_v3, %v1681_v59  ;;  %v2010_v17 = vrot.slane %v10237_v52, 5  ;;  %v10428_v0 = vld [vmem:[%s9843_s26 + $0x68] sm:$0x1]  ;;  %v8635_v3 = vld [vmem:[%s9843_s26 + $0x6c] sm:$0xe] }
  0xbd   : > { %v2013_v18 = vrot.slane %v10244_v63, 5  ;;  %v2973_v19 = vsel %vm13366_vm11, %v2940_v56, %v2536_v53  ;;  %v1677_v31 = vrot.slane %v1676_v9, 4  ;;  %v2021_v21 = vsel %vm9849_vm4, %v2019_v8, %v2020_v44  ;;  %v2458_v44 = vpop.permute.xlu1 %2457 }
  0xbe   : > { %v3006_v40 = vsel %vm3002_vm12, %v2973_v19, %v2632_v30  ;;  %v8491_v1 = vrot.slane %v695_v37, 9  ;;  %v1687_v23 = vrot.slane %v1686_v39, 4  ;;  %v2754_v52 = vunpack.c.l.b16 %v2021_v21  ;;  %v10437_v19 = vld [vmem:[%s9843_s26 + $0x70] sm:$0xf] }
  0xbf   : > { %v2011_v63 = vsel %vm9849_vm4, %v8649_v15, %v2010_v17  ;;  %v2012_v24 = vrot.slane %v2010_v17, 4  ;;  %v1682_v53 = vsel %vm9879_vm5, %v1677_v31, %v1681_v59  ;;  %v3039_v54 = vsel %vm3035_vm13, %v3006_v40, %v2712_v42  ;;  %v2378_v59 = vpop.permute.xlu0 %2377  ;;  %v10442_v40 = vld [vmem:[%s9843_s26 + $0x74] sm:$0x1] }
  0xc0   : > { %v2751_v25 = vunpack.c.l.b16 %v2011_v63  ;;  %v806_v30 = vrot.slane %v10392_v55, 5  ;;  %v1692_v13 = vsel %vm9879_vm5, %v1687_v23, %v1691_v29  ;;  %v2673_v41 = vunpack.c.l.b16 %v1682_v53  ;;  %v9494_v29 = vld [vmem:[%s9843_s26 + $0x60] sm:$0xff] }
  0xc1   : > { %v2779_v27 = vpack.c.b16 %v2754_v52, %v2753_v10  ;;  %v2014_v43 = vsel %vm9849_vm4, %v2012_v24, %v2013_v18  ;;  %v2674_v47 = vunpack.c.l.b16 %v1692_v13  ;;  %v809_v32 = vrot.slane %v10403_v33, 5  ;;  %v2538_v18 = vpop.permute.xlu2 %2537 }
  0xc2   : > { %v2752_v4 = vunpack.c.l.b16 %v2014_v43  ;;  %v807_v42 = vsel %vm9849_vm4, %v8491_v1, %v806_v30  ;;  %v808_v2 = vrot.slane %v806_v30, 4  ;;  %v6636_v35 = vshrl.u32 %v9131_v34, 16  ;;  %v269_v30 = vld [vmem:[%s9843_s26 + $0x60] sm:$0xf] }
  0xc3   : > { %2801 = vrot.lane.b32.xlu1 %v2779_v27, %s9788_s30  ;;  %v2243_v7 = vunpack.c.l.b16 %v807_v42  ;;  %v6639_v12 = vshll.u32 %v9131_v34, 16  ;;  %v2699_v51 = vpack.c.b16 %v2674_v47, %v2673_v41  ;;  %v6645_v56 = vshll.u32 %v9132_v46, 16  ;;  %v10457_v34 = vld [vmem:[%s9843_s26 + $0x64] sm:$0xf] }
  0xc4   : > { %v2778_v28 = vpack.c.b16 %v2752_v4, %v2751_v25  ;;  %v6649_v16 = vshrl.u32 %v9132_v46, 16  ;;  %v810_v45 = vsel %vm9849_vm4, %v808_v2, %v809_v32  ;;  %v6638_v58 = vrot.slane %v6636_v35, 4  ;;  %v9134_v2 = vld [vmem:[%s9843_s26 + $0x54] sm:$0xf] }
  0xc5   : > { %v6641_v60 = vrot.slane %v6639_v12, 5  ;;  %v6655_v14 = vshll.u32 %v9133_v48, 16  ;;  %2721 = vrot.lane.b32.xlu0 %v2699_v51, %s9791_s9  ;;  %v2244_v62 = vunpack.c.l.b16 %v810_v45  ;;  %v6647_v38 = vrot.slane %v6645_v56, 5  ;;  %v9135_v45 = vld [vmem:[%s9843_s26 + $0x58] sm:$0xf] }
  0xc6   : > { %2799 = vrot.lane.b32.xlu2 %v2778_v28, %s9788_s30  ;;  %v6651_v20 = vrot.slane %v6649_v16, 4  ;;  %v2830_v50 = vsel %vm2821_vm7, %v9473_v49, %v2202_v11  ;;  %v3072_v9 = vsel %vm3068_vm14, %v3039_v54, %v2792_v6  ;;  %v8571_v39 = vrot.slane %v8555_v61, 9  ;;  %v10470_v49 = vld [vmem:[%s9843_s26 + $0x68] sm:$0x1]  ;;  %v9510_v28 = vld [vmem:[%s9843_s26 + $0x6c] sm:$0xff] }
  0xc7   : > { %v6642_v26 = vor.u32 %v6641_v60, %v6638_v58  ;;  %v6657_v8 = vrot.slane %v6655_v14, 5  ;;  %v2876_v37 = vsel %vm2870_vm8, %v2830_v50, %v2282_v22  ;;  %v2268_v10 = vpack.c.b16 %v2244_v62, %v2243_v7  ;;  %8861 = vmatmul.msk.bf16.gmra.mxu0 %vm3125_vm15, %v3072_v9  ;;  %v9493_v22 = vld [vmem:[%s9843_s26 + $0x54] sm:$0xff] }
  0xc8   : > { %v6652_v15 = vor.u32 %v6651_v20, %v6647_v38  ;;  %v1415_v17 = vrot.slane %v10419_v57, 5  ;;  %v1418_v31 = vrot.slane %v10428_v0, 5  ;;  %v2909_v21 = vsel %vm2903_vm9, %v2876_v37, %v2378_v59  ;;  %v9136_v20 = vld [vmem:[%s9843_s26 + $0x5c] sm:$0x1]  ;;  %v267_v9 = vld [vmem:[%s9843_s26 + $0x54] sm:$0xf] }
  0xc9   : > { %v6643_v11 = vrot.slane %v6642_v26, 4  ;;  %v8651_v6 = vrot.slane %v8635_v3, 9  ;;  %v2942_v63 = vsel %vm2936_vm10, %v2909_v21, %v2458_v44  ;;  %v2024_v54 = vrot.slane %v10437_v19, 5  ;;  %v9509_v3 = vld [vmem:[%s9843_s26 + $0x60] sm:$0xff] }
  0xca   : > { %v6653_v1 = vrot.slane %v6652_v15, 4  ;;  %v1416_v23 = vsel %vm9849_vm4, %v8571_v39, %v1415_v17  ;;  %v1417_v52 = vrot.slane %v1415_v17, 4  ;;  %v10452_v25 = vsel %vm13366_vm11, %v2942_v63, %v2538_v18 }
  0xcb   : > { %2387 = vrot.lane.b32.xlu1 %v9494_v29, %s9785_s27  ;;  %v6648_v24 = vsel %vm9879_vm5, %v6643_v11, %v6647_v38  ;;  %v2499_v53 = vunpack.c.l.b16 %v1416_v23  ;;  %v2027_v43 = vrot.slane %v10442_v40, 5  ;;  %v2025_v4 = vsel %vm9849_vm4, %v8651_v6, %v2024_v54 }
  0xcc   : > { %v6658_v13 = vsel %vm9879_vm5, %v6653_v1, %v6657_v8  ;;  %v6910_v41 = vunpack.c.l.b16 %v6648_v24  ;;  %v1419_v27 = vsel %vm9849_vm4, %v1417_v52, %v1418_v31  ;;  %v2026_v42 = vrot.slane %v2024_v54, 4 }
  0xcd   : > { %v6911_v46 = vunpack.c.l.b16 %v6658_v13  ;;  %v2500_v47 = vunpack.c.l.b16 %v1419_v27  ;;  %2291 = vrot.lane.b32.xlu0 %v2268_v10, %s9787_s29  ;;  %v2755_v48 = vunpack.c.l.b16 %v2025_v4  ;;  %v497_v32 = vshrl.u32 %v269_v30, 16  ;;  %v2714_v4 = vpop.permute.xlu1 %2713 }
  0xce   : > { %2385 = vrot.lane.b32.xlu2 %v9493_v22, %s9785_s27  ;;  %v500_v7 = vshll.u32 %v269_v30, 16  ;;  %v506_v35 = vshll.u32 %v10457_v34, 16  ;;  %v2028_v56 = vsel %vm9849_vm4, %v2026_v42, %v2027_v43  ;;  %v510_v16 = vshrl.u32 %v10457_v34, 16 }
  0xcf   : > { %v6937_v12 = vpack.c.b16 %v6911_v46, %v6910_v41  ;;  %v2524_v51 = vpack.c.b16 %v2500_v47, %v2499_v53  ;;  %v2756_v58 = vunpack.c.l.b16 %v2028_v56  ;;  %v499_v60 = vrot.slane %v497_v32, 4  ;;  %v2634_v53 = vpop.permute.xlu0 %2633 }
  0xd0   : > { %v502_v14 = vrot.slane %v500_v7, 5  ;;  %v508_v61 = vrot.slane %v506_v35, 5  ;;  %v512_v62 = vrot.slane %v510_v16, 4  ;;  %v516_v38 = vshll.u32 %v10470_v49, 16  ;;  %v2794_v7 = vpop.permute.xlu2 %2793  ;;  %v8516_v35 = vld [vmem:[%s9843_s26 + $0x6c] sm:$0xf] }
  0xd1   : > { %9169 = vmatmul.msk.bf16.gmra.mxu1 %vm2821_vm7, %v6937_v12  ;;  %v6660_v50 = vshrl.u32 %v9134_v2, 16  ;;  %v6663_v59 = vshll.u32 %v9134_v2, 16  ;;  %v2780_v29 = vpack.c.b16 %v2756_v58, %v2755_v48  ;;  %v6669_v8 = vshll.u32 %v9135_v45, 16  ;;  %v10501_v16 = vld [vmem:[%s9843_s26 + $0x70] sm:$0xf] }
  0xd2   : > { %v503_v26 = vor.u32 %v502_v14, %v499_v60  ;;  %v6673_v37 = vshrl.u32 %v9135_v45, 16  ;;  %v513_v44 = vor.u32 %v512_v62, %v508_v61  ;;  %v518_v10 = vrot.slane %v516_v38, 5 }
  0xd3   : > { %2643 = vrot.lane.b32.xlu1 %v9510_v28, %s9786_s28  ;;  %v6662_v15 = vrot.slane %v6660_v50, 4  ;;  %v6665_v39 = vrot.slane %v6663_v59, 5  ;;  %v6671_v18 = vrot.slane %v6669_v8, 5  ;;  %v6679_v31 = vshll.u32 %v9136_v20, 16 }
  0xd4   : > { %v504_v17 = vrot.slane %v503_v26, 4  ;;  %v6675_v11 = vrot.slane %v6673_v37, 4  ;;  %v514_v21 = vrot.slane %v513_v44, 4  ;;  %v473_v1 = vshrl.u32 %v267_v9, 16 }
  0xd5   : > { %v6666_v6 = vor.u32 %v6665_v39, %v6662_v15  ;;  %v476_v22 = vshll.u32 %v267_v9, 16  ;;  %2547 = vrot.lane.b32.xlu0 %v2524_v51, %s9792_s10  ;;  %v6681_v63 = vrot.slane %v6679_v31, 5  ;;  %v482_v24 = vshll.u32 %v10392_v55, 16 }
  0xd6   : > { %2641 = vrot.lane.b32.xlu2 %v9509_v3, %s9786_s28  ;;  %v509_v23 = vsel %vm9879_vm5, %v504_v17, %v508_v61  ;;  %v6676_v52 = vor.u32 %v6675_v11, %v6671_v18  ;;  %v519_v54 = vsel %vm9879_vm5, %v514_v21, %v518_v10  ;;  %v475_v41 = vrot.slane %v473_v1, 4  ;;  %v8514_v3 = vld [vmem:[%s9843_s26 + $0x60] sm:$0xf]  ;;  %v9474_v21 = vld [vmem:[%s9843_s26 + $0x24] sm:$0xff] }
  0xd7   : > { %v2165_v30 = vunpack.c.l.b16 %v509_v23  ;;  %v6667_v13 = vrot.slane %v6666_v6, 4  ;;  %v2166_v27 = vunpack.c.l.b16 %v519_v54  ;;  %v478_v46 = vrot.slane %v476_v22, 5  ;;  %v2204_v23 = vpop.permute.xlu0 %2203 }
  0xd8   : > { %v6677_v43 = vrot.slane %v6676_v52, 4  ;;  %v484_v47 = vrot.slane %v482_v24, 5  ;;  %v486_v2 = vshrl.u32 %v10392_v55, 16  ;;  %v492_v48 = vshll.u32 %v10403_v33, 16  ;;  %v10505_v33 = vld [vmem:[%s9843_s26 + $0x74] sm:$0x1] }
  0xd9   : > { %v6672_v42 = vsel %vm9879_vm5, %v6667_v13, %v6671_v18  ;;  %v3008_v32 = vsel %vm3002_vm12, %v10452_v25, %v2634_v53  ;;  %v2189_v12 = vpack.c.b16 %v2166_v27, %v2165_v30  ;;  %v479_v56 = vor.u32 %v478_v46, %v475_v41  ;;  %v8596_v46 = vld [vmem:[%s9843_s26 + $0x78] sm:$0xf] }
  0xda   : > { %v6682_v51 = vsel %vm9879_vm5, %v6677_v43, %v6681_v63  ;;  %v6912_v28 = vunpack.c.l.b16 %v6672_v42  ;;  %v488_v58 = vrot.slane %v486_v2, 4  ;;  %v494_v60 = vrot.slane %v492_v48, 5  ;;  %v9495_v63 = vld [vmem:[%s9843_s26 + $0x6c] sm:$0xff]  ;;  %v2284_v43 = vpop.permute.xlu1 %2283  ;;  %v2380_v2 = vpop.permute.xlu2 %2379  ;;  %v10530_v48 = vld [vmem:[%s9843_s26 + $0x7c] sm:$0xf] }
  0xdb   : > { %v6913_v45 = vunpack.c.l.b16 %v6682_v51  ;;  %v3041_v55 = vsel %vm3035_vm13, %v3008_v32, %v2714_v4  ;;  %2213 = vrot.lane.b32.xlu1 %v2189_v12, %s9789_s7  ;;  %v480_v25 = vrot.slane %v479_v56, 4  ;;  %v1109_v61 = vshrl.u32 %v8516_v35, 16 }
  0xdc   : > { %v3074_v14 = vsel %vm3068_vm14, %v3041_v55, %v2794_v7  ;;  %v1112_v62 = vshll.u32 %v8516_v35, 16  ;;  %v489_v20 = vor.u32 %v488_v58, %v484_v47  ;;  %v1118_v50 = vshll.u32 %v10501_v16, 16  ;;  %v10540_v55 = vld [vmem:[%s9843_s26 + $0x80] sm:$0x1] }
  0xdd   : > { %v6938_v38 = vpack.c.b16 %v6913_v45, %v6912_v28  ;;  %8862 = vmatmul.msk.bf16.gmra.mxu0 %vm3125_vm15, %v3074_v14  ;;  %v1122_v59 = vshrl.u32 %v10501_v16, 16  ;;  %2803 = vrot.lane.b32.xlu0 %v2780_v29, %s9788_s30  ;;  %v485_v26 = vsel %vm9879_vm5, %v480_v25, %v484_v47  ;;  %v1111_v8 = vrot.slane %v1109_v61, 4  ;;  %v9137_v45 = vld [vmem:[%s9843_s26 + $0x60] sm:$0xf] }
  0xde   : > { %v1114_v37 = vrot.slane %v1112_v62, 5  ;;  %v1128_v9 = vshll.u32 %v10505_v33, 16  ;;  %v490_v44 = vrot.slane %v489_v20, 4  ;;  %v2163_v10 = vunpack.c.l.b16 %v485_v26 }
  0xdf   : > { %v1120_v15 = vrot.slane %v1118_v50, 5  ;;  %v1124_v39 = vrot.slane %v1122_v59, 4  ;;  %v1085_v11 = vshrl.u32 %v8514_v3, 16  ;;  %v1088_v31 = vshll.u32 %v8514_v3, 16  ;;  %v9138_v50 = vld [vmem:[%s9843_s26 + $0x64] sm:$0xf] }
  0xe0   : > { %v1115_v17 = vor.u32 %v1114_v37, %v1111_v8  ;;  %v1130_v18 = vrot.slane %v1128_v9, 5  ;;  %v495_v29 = vsel %vm9879_vm5, %v490_v44, %v494_v60  ;;  %v1094_v1 = vshll.u32 %v10419_v57, 16  ;;  %v9511_v9 = vld [vmem:[%s9843_s26 + $0x78] sm:$0xff] }
  0xe1   : > { %9170 = vmatmul.msk.bf16.gmra.mxu1 %vm2821_vm7, %v6938_v38  ;;  %v1125_v6 = vor.u32 %v1124_v39, %v1120_v15  ;;  %v1098_v22 = vshrl.u32 %v10419_v57, 16  ;;  %v2164_v52 = vunpack.c.l.b16 %v495_v29  ;;  %v1087_v53 = vrot.slane %v1085_v11, 4  ;;  %v8594_v39 = vld [vmem:[%s9843_s26 + $0x6c] sm:$0xf] }
  0xe2   : > { %v1116_v24 = vrot.slane %v1115_v17, 4  ;;  %v1090_v54 = vrot.slane %v1088_v31, 5  ;;  %v1096_v13 = vrot.slane %v1094_v1, 5  ;;  %v1104_v27 = vshll.u32 %v10428_v0, 16 }
  0xe3   : > { %v1126_v30 = vrot.slane %v1125_v6, 4  ;;  %v1100_v41 = vrot.slane %v1098_v22, 4  ;;  %v2188_v47 = vpack.c.b16 %v2164_v52, %v2163_v10  ;;  %v2833_v42 = vsel %vm2821_vm7, %v9474_v21, %v2204_v23  ;;  %v2460_v23 = vpop.permute.xlu0 %2459 }
  0xe4   : > { %v1121_v4 = vsel %vm9879_vm5, %v1116_v24, %v1120_v15  ;;  %v1091_v57 = vor.u32 %v1090_v54, %v1087_v53  ;;  %v1106_v0 = vrot.slane %v1104_v27, 5  ;;  %v2878_v28 = vsel %vm2870_vm8, %v2833_v42, %v2284_v43  ;;  %v2540_v54 = vpop.permute.xlu1 %2539  ;;  %v2636_v43 = vpop.permute.xlu2 %2635 }
  0xe5   : > { %v1131_v32 = vsel %vm9879_vm5, %v1126_v30, %v1130_v18  ;;  %v2421_v7 = vunpack.c.l.b16 %v1121_v4  ;;  %v1101_v35 = vor.u32 %v1100_v41, %v1096_v13  ;;  %2211 = vrot.lane.b32.xlu2 %v2188_v47, %s9789_s7  ;;  %2389 = vrot.lane.b32.xlu0 %v9495_v63, %s9785_s27  ;;  %v1718_v56 = vshrl.u32 %v8596_v46, 16  ;;  %v9139_v18 = vld [vmem:[%s9843_s26 + $0x68] sm:$0x1] }
  0xe6   : > { %v2422_v12 = vunpack.c.l.b16 %v1131_v32  ;;  %v1092_v51 = vrot.slane %v1091_v57, 4  ;;  %v2911_v60 = vsel %vm2903_vm9, %v2878_v28, %v2380_v2  ;;  %v1721_v25 = vshll.u32 %v8596_v46, 16 }
  0xe7   : > { %v1102_v58 = vrot.slane %v1101_v35, 4  ;;  %v1727_v14 = vshll.u32 %v10530_v48, 16  ;;  %v1720_v38 = vrot.slane %v1718_v56, 4  ;;  %v1731_v20 = vshrl.u32 %v10530_v48, 16 }
  0xe8   : > { %v2445_v61 = vpack.c.b16 %v2422_v12, %v2421_v7  ;;  %v1097_v62 = vsel %vm9879_vm5, %v1092_v51, %v1096_v13  ;;  %v1723_v26 = vrot.slane %v1721_v25, 5  ;;  %v1737_v10 = vshll.u32 %v10540_v55, 16  ;;  %v271_v25 = vld [vmem:[%s9843_s26 + $0x6c] sm:$0xf] }
  0xe9   : > { %v1107_v59 = vsel %vm9879_vm5, %v1102_v58, %v1106_v0  ;;  %v2419_v3 = vunpack.c.l.b16 %v1097_v62  ;;  %v1729_v8 = vrot.slane %v1727_v14, 5  ;;  %v1733_v44 = vrot.slane %v1731_v20, 4  ;;  %v272_v20 = vld [vmem:[%s9843_s26 + $0x70] sm:$0xf] }
  0xea   : > { %2469 = vrot.lane.b32.xlu1 %v2445_v61, %s9790_s8  ;;  %v2420_v37 = vunpack.c.l.b16 %v1107_v59  ;;  %v6684_v15 = vshrl.u32 %v9137_v45, 16  ;;  %v1724_v17 = vor.u32 %v1723_v26, %v1720_v38  ;;  %v6687_v11 = vshll.u32 %v9137_v45, 16  ;;  %v294_v26 = vld [vmem:[%s9843_s26 + $0x74] sm:$0x1] }
  0xeb   : > { %v6693_v31 = vshll.u32 %v9138_v50, 16  ;;  %v6697_v21 = vshrl.u32 %v9138_v50, 16  ;;  %v1734_v6 = vor.u32 %v1733_v44, %v1729_v8  ;;  %v1739_v1 = vrot.slane %v1737_v10, 5 }
  0xec   : > { %v2444_v29 = vpack.c.b16 %v2420_v37, %v2419_v3  ;;  %v6686_v22 = vrot.slane %v6684_v15, 4  ;;  %v1725_v52 = vrot.slane %v1724_v17, 4  ;;  %v6689_v63 = vrot.slane %v6687_v11, 5  ;;  %v2716_v17 = vpop.permute.xlu0 %2715 }
  0xed   : > { %v6695_v24 = vrot.slane %v6693_v31, 5  ;;  %v6699_v53 = vrot.slane %v6697_v21, 4  ;;  %2645 = vrot.lane.b32.xlu0 %v9511_v9, %s9786_s28  ;;  %v1735_v30 = vrot.slane %v1734_v6, 4  ;;  %v6703_v13 = vshll.u32 %v9139_v18, 16  ;;  %v2796_v6 = vpop.permute.xlu1 %2795 }
  0xee   : > { %2467 = vrot.lane.b32.xlu2 %v2444_v29, %s9790_s8  ;;  %v1694_v41 = vshrl.u32 %v8594_v39, 16  ;;  %v1697_v27 = vshll.u32 %v8594_v39, 16  ;;  %v1730_v46 = vsel %vm9879_vm5, %v1725_v52, %v1729_v8  ;;  %v6690_v47 = vor.u32 %v6689_v63, %v6686_v22  ;;  %v697_v39 = vld [vmem:[%s9843_s26 + $0x6c] sm:$0xe]  ;;  %v696_v29 = vld [vmem:[%s9843_s26 + $0x60] sm:$0xe]  ;;  %v2206_v63 = vpop.permute.xlu2 %2205 }
  0xef   : > { %v6700_v4 = vor.u32 %v6699_v53, %v6695_v24  ;;  %v1703_v57 = vshll.u32 %v10437_v19, 16  ;;  %v1740_v42 = vsel %vm9879_vm5, %v1735_v30, %v1739_v1  ;;  %v2677_v2 = vunpack.c.l.b16 %v1730_v46 }
  0xf0   : > { %v6705_v32 = vrot.slane %v6703_v13, 5  ;;  %v1696_v7 = vrot.slane %v1694_v41, 4  ;;  %v2678_v35 = vunpack.c.l.b16 %v1740_v42  ;;  %v6691_v0 = vrot.slane %v6690_v47, 4  ;;  %v9475_v42 = vld [vmem:[%s9843_s26 + $0x30] sm:$0xff] }
  0xf1   : > { %v6701_v12 = vrot.slane %v6700_v4, 4  ;;  %v1699_v51 = vrot.slane %v1697_v27, 5  ;;  %v1705_v28 = vrot.slane %v1703_v57, 5  ;;  %v1707_v56 = vshrl.u32 %v10437_v19, 16 }
  0xf2   : > { %v1713_v45 = vshll.u32 %v10442_v40, 16  ;;  %v2944_v58 = vsel %vm2936_vm10, %v2911_v60, %v2460_v23  ;;  %v2701_v14 = vpack.c.b16 %v2678_v35, %v2677_v2  ;;  %v6696_v61 = vsel %vm9879_vm5, %v6691_v0, %v6695_v24 }
  0xf3   : > { %v6706_v62 = vsel %vm9879_vm5, %v6701_v12, %v6705_v32  ;;  %v1700_v38 = vor.u32 %v1699_v51, %v1696_v7  ;;  %v6914_v50 = vunpack.c.l.b16 %v6696_v61  ;;  %v1709_v3 = vrot.slane %v1707_v56, 4  ;;  %v8518_v56 = vld [vmem:[%s9843_s26 + $0x78] sm:$0xf] }
  0xf4   : > { %v6915_v59 = vunpack.c.l.b16 %v6706_v62  ;;  %v1715_v19 = vrot.slane %v1713_v45, 5  ;;  %2725 = vrot.lane.b32.xlu1 %v2701_v14, %s9791_s9  ;;  %v2977_v60 = vsel %vm13366_vm11, %v2944_v58, %v2540_v54  ;;  %v521_v8 = vshrl.u32 %v271_v25, 16  ;;  %v8519_v14 = vld [vmem:[%s9843_s26 + $0x7c] sm:$0xf] }
  0xf5   : > { %v1701_v40 = vrot.slane %v1700_v38, 4  ;;  %v524_v37 = vshll.u32 %v271_v25, 16  ;;  %v1710_v44 = vor.u32 %v1709_v3, %v1705_v28  ;;  %v3010_v10 = vsel %vm3002_vm12, %v2977_v60, %v2636_v43  ;;  %v2286_v60 = vpop.permute.xlu0 %2285 }
  0xf6   : > { %v6939_v9 = vpack.c.b16 %v6915_v59, %v6914_v50  ;;  %v530_v15 = vshll.u32 %v272_v20, 16  ;;  %v523_v11 = vrot.slane %v521_v8, 4  ;;  %v534_v21 = vshrl.u32 %v272_v20, 16 }
  0xf7   : > { %v1706_v18 = vsel %vm9879_vm5, %v1701_v40, %v1705_v28  ;;  %v526_v31 = vrot.slane %v524_v37, 5  ;;  %v1711_v1 = vrot.slane %v1710_v44, 4  ;;  %v540_v52 = vshll.u32 %v294_v26, 16  ;;  %v8557_v40 = vld [vmem:[%s9843_s26 + $0x78] sm:$0xe] }
  0xf8   : > { %9171 = vmatmul.msk.bf16.gmra.mxu1 %vm2821_vm7, %v6939_v9  ;;  %v2675_v22 = vunpack.c.l.b16 %v1706_v18  ;;  %v532_v23 = vrot.slane %v530_v15, 5  ;;  %v536_v53 = vrot.slane %v534_v21, 4  ;;  %v8493_v54 = vrot.slane %v697_v39, 9  ;;  %v9140_v44 = vld [vmem:[%s9843_s26 + $0x6c] sm:$0xf] }
  0xf9   : > { %v527_v24 = vor.u32 %v526_v31, %v523_v11  ;;  %v820_v30 = vrot.slane %v272_v20, 5  ;;  %v1716_v13 = vsel %vm9879_vm5, %v1711_v1, %v1715_v19  ;;  %v542_v41 = vrot.slane %v540_v52, 5  ;;  %v8541_v20 = vld [vmem:[%s9843_s26 + $0x80] sm:$0x1]  ;;  %v9141_v11 = vld [vmem:[%s9843_s26 + $0x70] sm:$0xf]  ;;  %v10609_v31 = vpop.permute.xlu2 %2461 }
  0xfa   : > { %v823_v27 = vrot.slane %v294_v26, 5  ;;  %v8492_v43 = vrot.slane %v696_v29, 9  ;;  %v2676_v46 = vunpack.c.l.b16 %v1716_v13  ;;  %v537_v4 = vor.u32 %v536_v53, %v532_v23 }
  0xfb   : > { %v528_v47 = vrot.slane %v527_v24, 4  ;;  %v821_v57 = vsel %vm9849_vm4, %v8493_v54, %v820_v30  ;;  %v822_v2 = vrot.slane %v820_v30, 4  ;;  %v813_v7 = vrot.slane %v10457_v34, 5 }
  0xfc   : > { %v2247_v32 = vunpack.c.l.b16 %v821_v57  ;;  %v816_v35 = vrot.slane %v10470_v49, 5  ;;  %v2700_v0 = vpack.c.b16 %v2676_v46, %v2675_v22  ;;  %v538_v51 = vrot.slane %v537_v4, 4 }
  0xfd   : > { %v533_v12 = vsel %vm9879_vm5, %v528_v47, %v532_v23  ;;  %v3043_v28 = vsel %vm3035_vm13, %v3010_v10, %v2716_v17  ;;  %v824_v58 = vsel %vm9849_vm4, %v822_v2, %v823_v27  ;;  %v814_v25 = vsel %vm9849_vm4, %v8492_v43, %v813_v7  ;;  %v2382_v10 = vpop.permute.xlu1 %2381  ;;  %v9142_v43 = vld [vmem:[%s9843_s26 + $0x74] sm:$0x1]  ;;  %v8556_v2 = vld [vmem:[%s9843_s26 + $0x6c] sm:$0xe] }
  0xfe   : > { %v2167_v45 = vunpack.c.l.b16 %v533_v12  ;;  %v815_v34 = vrot.slane %v813_v7, 4  ;;  %2723 = vrot.lane.b32.xlu2 %v2700_v0, %s9791_s9  ;;  %v543_v49 = vsel %vm9879_vm5, %v538_v51, %v542_v41  ;;  %v2248_v61 = vunpack.c.l.b16 %v824_v58 }
  0xff   : > { %v2245_v62 = vunpack.c.l.b16 %v814_v25  ;;  %v10599_v38 = vsel %vm2821_vm7, %v9475_v42, %v2206_v63  ;;  %v2168_v50 = vunpack.c.l.b16 %v543_v49  ;;  %v3076_v3 = vsel %vm3068_vm14, %v3043_v28, %v2796_v6  ;;  %v2542_v49 = vpop.permute.xlu0 %2541 }
 0x100   : > { %v817_v59 = vsel %vm9849_vm4, %v815_v34, %v816_v35  ;;  %v1133_v19 = vshrl.u32 %v8518_v56, 16  ;;  %v2270_v26 = vpack.c.b16 %v2248_v61, %v2247_v32  ;;  %8863 = vmatmul.msk.bf16.gmra.mxu0 %vm3125_vm15, %v3076_v3  ;;  %v1136_v37 = vshll.u32 %v8518_v56, 16 }
 0x101   : > { %v2246_v8 = vunpack.c.l.b16 %v817_v59  ;;  %v1142_v9 = vshll.u32 %v8519_v14, 16  ;;  %v2190_v15 = vpack.c.b16 %v2168_v50, %v2167_v45  ;;  %v1146_v17 = vshrl.u32 %v8519_v14, 16 }
 0x102   : > { %v1135_v39 = vrot.slane %v1133_v19, 4  ;;  %v1152_v18 = vshll.u32 %v8541_v20, 16  ;;  %2295 = vrot.lane.b32.xlu1 %v2270_v26, %s9787_s29  ;;  %v1138_v29 = vrot.slane %v1136_v37, 5  ;;  %v8573_v1 = vrot.slane %v8557_v40, 9 }
 0x103   : > { %v2269_v21 = vpack.c.b16 %v2246_v8, %v2245_v62  ;;  %v1144_v6 = vrot.slane %v1142_v9, 5  ;;  %2215 = vrot.lane.b32.xlu0 %v2190_v15, %s9789_s7  ;;  %v1148_v22 = vrot.slane %v1146_v17, 4  ;;  %v1429_v52 = vrot.slane %v8519_v14, 5  ;;  %v8598_v14 = vld [vmem:[%s9843_s26 + $0x84] sm:$0xf]  ;;  %v2718_v8 = vpop.permute.xlu2 %2717 }
 0x104   : > { %v1154_v23 = vrot.slane %v1152_v18, 5  ;;  %v1432_v63 = vrot.slane %v8541_v20, 5  ;;  %v1139_v24 = vor.u32 %v1138_v29, %v1135_v39  ;;  %v6708_v53 = vshrl.u32 %v9140_v44, 16  ;;  %v8599_v15 = vld [vmem:[%s9843_s26 + $0x88] sm:$0xf] }
 0x105   : > { %v6711_v54 = vshll.u32 %v9140_v44, 16  ;;  %v6717_v30 = vshll.u32 %v9141_v11, 16  ;;  %v1149_v13 = vor.u32 %v1148_v22, %v1144_v6  ;;  %v1430_v41 = vsel %vm9849_vm4, %v8573_v1, %v1429_v52  ;;  %v2638_v59 = vpop.permute.xlu1 %2637  ;;  %v8637_v18 = vld [vmem:[%s9843_s26 + $0x84] sm:$0xe] }
 0x106   : > { %v1431_v27 = vrot.slane %v1429_v52, 4  ;;  %v6721_v46 = vshrl.u32 %v9141_v11, 16  ;;  %2293 = vrot.lane.b32.xlu2 %v2269_v21, %s9787_s29  ;;  %v1140_v47 = vrot.slane %v1139_v24, 4  ;;  %v2503_v4 = vunpack.c.l.b16 %v1430_v41  ;;  %v8636_v52 = vld [vmem:[%s9843_s26 + $0x78] sm:$0xe] }
 0x107   : > { %v6710_v57 = vrot.slane %v6708_v53, 4  ;;  %v6713_v42 = vrot.slane %v6711_v54, 5  ;;  %v1150_v32 = vrot.slane %v1149_v13, 4  ;;  %v6719_v35 = vrot.slane %v6717_v30, 5 }
 0x108   : > { %v1433_v7 = vsel %vm9849_vm4, %v1431_v27, %v1432_v63  ;;  %v6723_v0 = vrot.slane %v6721_v46, 4  ;;  %v1145_v12 = vsel %vm9879_vm5, %v1140_v47, %v1144_v6  ;;  %v6727_v56 = vshll.u32 %v9142_v43, 16 }
 0x109   : > { %v2504_v51 = vunpack.c.l.b16 %v1433_v7  ;;  %v6714_v28 = vor.u32 %v6713_v42, %v6710_v57  ;;  %v1155_v45 = vsel %vm9879_vm5, %v1150_v32, %v1154_v23  ;;  %v2423_v58 = vunpack.c.l.b16 %v1145_v12  ;;  %v2798_v32 = vpop.permute.xlu0 %2797 }
 0x10a   : > { %v6724_v25 = vor.u32 %v6723_v0, %v6719_v35  ;;  %v8572_v34 = vrot.slane %v8556_v2, 9  ;;  %v2424_v61 = vunpack.c.l.b16 %v1155_v45  ;;  %v6729_v50 = vrot.slane %v6727_v56, 5 }
 0x10b   : > { %v2526_v62 = vpack.c.b16 %v2504_v51, %v2503_v4  ;;  %v6715_v20 = vrot.slane %v6714_v28, 4  ;;  %v1422_v19 = vrot.slane %v10501_v16, 5  ;;  %v1425_v40 = vrot.slane %v10505_v33, 5  ;;  %v698_v51 = vld [vmem:[%s9843_s26 + $0x78] sm:$0xe] }
 0x10c   : > { %v6725_v3 = vrot.slane %v6724_v25, 4  ;;  %v2880_v26 = vsel %vm2870_vm8, %v10599_v38, %v2286_v60  ;;  %v2446_v37 = vpack.c.b16 %v2424_v61, %v2423_v58  ;;  %v1742_v39 = vshrl.u32 %v8598_v14, 16  ;;  %v8621_v60 = vld [vmem:[%s9843_s26 + $0x8c] sm:$0x1] }
 0x10d   : > { %2551 = vrot.lane.b32.xlu1 %v2526_v62, %s9792_s10  ;;  %v6720_v9 = vsel %vm9879_vm5, %v6715_v20, %v6719_v35  ;;  %v2913_v44 = vsel %vm2903_vm9, %v2880_v26, %v2382_v10  ;;  %v1423_v33 = vsel %vm9849_vm4, %v8572_v34, %v1422_v19  ;;  %v1424_v38 = vrot.slane %v1422_v19, 4  ;;  %v2208_v28 = vpop.permute.xlu1 %2207  ;;  %v9143_v34 = vld [vmem:[%s9843_s26 + $0x78] sm:$0xf]  ;;  %v10665_v20 = vld [vmem:[%s9843_s26 + $0x80] sm:$0x1] }
 0x10e   : > { %v6730_v16 = vsel %vm9879_vm5, %v6725_v3, %v6729_v50  ;;  %v6916_v17 = vunpack.c.l.b16 %v6720_v9  ;;  %2471 = vrot.lane.b32.xlu0 %v2446_v37, %s9790_s8  ;;  %v2501_v21 = vunpack.c.l.b16 %v1423_v33  ;;  %v2946_v10 = vsel %vm2936_vm10, %v2913_v44, %v10609_v31 }
 0x10f   : > { %v6917_v11 = vunpack.c.l.b16 %v6730_v16  ;;  %v1744_v29 = vrot.slane %v1742_v39, 4  ;;  %v1426_v6 = vsel %vm9849_vm4, %v1424_v38, %v1425_v40  ;;  %v1745_v1 = vshll.u32 %v8598_v14, 16  ;;  %v2288_v14 = vpop.permute.xlu2 %2287  ;;  %v9144_v40 = vld [vmem:[%s9843_s26 + $0x7c] sm:$0xf]  ;;  %v9145_v38 = vld [vmem:[%s9843_s26 + $0x80] sm:$0x1] }
 0x110   : > { %v1751_v22 = vshll.u32 %v8599_v15, 16  ;;  %v1755_v23 = vshrl.u32 %v8599_v15, 16  ;;  %v2502_v24 = vunpack.c.l.b16 %v1426_v6  ;;  %v1761_v53 = vshll.u32 %v8621_v60, 16 }
 0x111   : > { %v6940_v63 = vpack.c.b16 %v6917_v11, %v6916_v17  ;;  %v8653_v54 = vrot.slane %v8637_v18, 9  ;;  %v1747_v30 = vrot.slane %v1745_v1, 5  ;;  %v2038_v27 = vrot.slane %v8599_v15, 5  ;;  %v9476_v17 = vld [vmem:[%s9843_s26 + $0x3c] sm:$0xff]  ;;  %v10682_v1 = vld [vmem:[%s9843_s26 + $0x88] sm:$0xf] }
 0x112   : > { %v1753_v13 = vrot.slane %v1751_v22, 5  ;;  %v1757_v41 = vrot.slane %v1755_v23, 4  ;;  %v2525_v31 = vpack.c.b16 %v2502_v24, %v2501_v21  ;;  %v1763_v43 = vrot.slane %v1761_v53, 5  ;;  %v10685_v22 = vld [vmem:[%s9843_s26 + $0x8c] sm:$0x1] }
 0x113   : > { %9172 = vmatmul.msk.bf16.gmra.mxu1 %vm2821_vm7, %v6940_v63  ;;  %v2041_v46 = vrot.slane %v8621_v60, 5  ;;  %v8652_v47 = vrot.slane %v8636_v52, 9  ;;  %v1748_v4 = vor.u32 %v1747_v30, %v1744_v29  ;;  %v2039_v42 = vsel %vm9849_vm4, %v8653_v54, %v2038_v27  ;;  %v8558_v53 = vld [vmem:[%s9843_s26 + $0x84] sm:$0xe] }
 0x114   : > { %v1758_v57 = vor.u32 %v1757_v41, %v1753_v13  ;;  %v2040_v2 = vrot.slane %v2038_v27, 4  ;;  %2549 = vrot.lane.b32.xlu2 %v2525_v31, %s9792_s10  ;;  %v2759_v7 = vunpack.c.l.b16 %v2039_v42  ;;  %v2031_v35 = vrot.slane %v10530_v48, 5  ;;  %v2384_v27 = vpop.permute.xlu0 %2383  ;;  %v8638_v42 = vld [vmem:[%s9843_s26 + $0x90] sm:$0xe] }
 0x115   : > { %v2034_v0 = vrot.slane %v10540_v55, 5  ;;  %v2979_v12 = vsel %vm13366_vm11, %v2946_v10, %v2542_v49  ;;  %v1749_v56 = vrot.slane %v1748_v4, 4  ;;  %v10662_v49 = vld [vmem:[%s9843_s26 + $0x7c] sm:$0xf]  ;;  %v8494_v19 = vrot.slane %v698_v51, 9 }
 0x116   : > { %v1759_v45 = vrot.slane %v1758_v57, 4  ;;  %v2042_v58 = vsel %vm9849_vm4, %v2040_v2, %v2041_v46  ;;  %v3012_v25 = vsel %vm3002_vm12, %v2979_v12, %v2638_v59  ;;  %v2032_v48 = vsel %vm9849_vm4, %v8652_v47, %v2031_v35  ;;  %v2464_v57 = vpop.permute.xlu1 %2463 }
 0x117   : > { %v2760_v61 = vunpack.c.l.b16 %v2042_v58  ;;  %v2033_v62 = vrot.slane %v2031_v35, 4  ;;  %v3045_v55 = vsel %vm3035_vm13, %v3012_v25, %v2718_v8  ;;  %v1754_v50 = vsel %vm9879_vm5, %v1749_v56, %v1753_v13  ;;  %v9496_v56 = vld [vmem:[%s9843_s26 + $0x78] sm:$0xff]  ;;  %v10703_v58 = vld [vmem:[%s9843_s26 + $0x94] sm:$0xf] }
 0x118   : > { %v1764_v59 = vsel %vm9879_vm5, %v1759_v45, %v1763_v43  ;;  %v2757_v3 = vunpack.c.l.b16 %v2032_v48  ;;  %v2679_v26 = vunpack.c.l.b16 %v1754_v50  ;;  %v827_v15 = vrot.slane %v10662_v49, 5  ;;  %v9497_v43 = vld [vmem:[%s9843_s26 + $0x84] sm:$0xff] }
 0x119   : > { %v2680_v37 = vunpack.c.l.b16 %v1764_v59  ;;  %v2782_v9 = vpack.c.b16 %v2760_v61, %v2759_v7  ;;  %v2035_v8 = vsel %vm9849_vm4, %v2033_v62, %v2034_v0  ;;  %v830_v39 = vrot.slane %v10665_v20, 5  ;;  %v2544_v0 = vpop.permute.xlu2 %2543  ;;  %v10709_v61 = vld [vmem:[%s9843_s26 + $0x98] sm:$0x1]  ;;  %v275_v62 = vld [vmem:[%s9843_s26 + $0x84] sm:$0xf] }
 0x11a   : > { %v2758_v44 = vunpack.c.l.b16 %v2035_v8  ;;  %v6732_v16 = vshrl.u32 %v9143_v34, 16  ;;  %v6735_v60 = vshll.u32 %v9143_v34, 16  ;;  %v6741_v18 = vshll.u32 %v9144_v40, 16 }
 0x11b   : > { %v2702_v33 = vpack.c.b16 %v2680_v37, %v2679_v26  ;;  %2807 = vrot.lane.b32.xlu1 %v2782_v9, %s9788_s30  ;;  %v6745_v11 = vshrl.u32 %v9144_v40, 16  ;;  %v828_v10 = vsel %vm9849_vm4, %v8494_v19, %v827_v15  ;;  %v829_v29 = vrot.slane %v827_v15, 4  ;;  %v10721_v19 = vld [vmem:[%s9843_s26 + $0x88] sm:$0xf]  ;;  %v10729_v15 = vld [vmem:[%s9843_s26 + $0x8c] sm:$0x1] }
 0x11c   : > { %v2781_v21 = vpack.c.b16 %v2758_v44, %v2757_v3  ;;  %v6734_v6 = vrot.slane %v6732_v16, 4  ;;  %v2249_v23 = vunpack.c.l.b16 %v828_v10  ;;  %v6737_v52 = vrot.slane %v6735_v60, 5  ;;  %v9513_v10 = vld [vmem:[%s9843_s26 + $0x90] sm:$0xff] }
 0x11d   : > { %2727 = vrot.lane.b32.xlu0 %v2702_v33, %s9791_s9  ;;  %v6743_v63 = vrot.slane %v6741_v18, 5  ;;  %v6747_v24 = vrot.slane %v6745_v11, 4  ;;  %v831_v54 = vsel %vm9849_vm4, %v829_v29, %v830_v39  ;;  %v6751_v30 = vshll.u32 %v9145_v38, 16  ;;  %v9146_v18 = vld [vmem:[%s9843_s26 + $0x84] sm:$0xf]  ;;  %v9576_v11 = vld [vmem:[%s13362_s3 + $0x38] sm:$0xff] }
 0x11e   : > { %2805 = vrot.lane.b32.xlu2 %v2781_v21, %s9788_s30  ;;  %v2839_v13 = vsel %vm2821_vm7, %v9476_v17, %v2208_v28  ;;  %v3078_v41 = vsel %vm3068_vm14, %v3045_v55, %v2798_v32  ;;  %v2250_v31 = vunpack.c.l.b16 %v831_v54  ;;  %v6738_v46 = vor.u32 %v6737_v52, %v6734_v6  ;;  %v9147_v52 = vld [vmem:[%s9843_s26 + $0x88] sm:$0xf]  ;;  %7520 = vmatpush.bf16.msra.mxu2 %v9576_v11 }
 0x11f   : > { %v6748_v47 = vor.u32 %v6747_v24, %v6743_v63  ;;  %v2882_v4 = vsel %vm2870_vm8, %v2839_v13, %v2288_v14  ;;  %8864 = vmatmul.msk.bf16.gmra.mxu0 %vm3125_vm15, %v3078_v41  ;;  %v6753_v2 = vrot.slane %v6751_v30, 5  ;;  %v8574_v7 = vrot.slane %v8558_v53, 9  ;;  %v9575_v30 = vld [vmem:[%s13362_s3 + $0x30] sm:$0xff] }
 0x120   : > { %v1436_v35 = vrot.slane %v10682_v1, 5  ;;  %v1439_v32 = vrot.slane %v10685_v22, 5  ;;  %v2271_v12 = vpack.c.b16 %v2250_v31, %v2249_v23  ;;  %v6739_v51 = vrot.slane %v6738_v46, 4  ;;  %v273_v46 = vld [vmem:[%s9843_s26 + $0x78] sm:$0xf] }
 0x121   : > { %v6749_v28 = vrot.slane %v6748_v47, 4  ;;  %v2915_v45 = vsel %vm2903_vm9, %v2882_v4, %v2384_v27  ;;  %v8654_v48 = vrot.slane %v8638_v42, 9  ;;  %v2045_v9 = vrot.slane %v10703_v58, 5  ;;  %v9148_v27 = vld [vmem:[%s9843_s26 + $0x8c] sm:$0x1]  ;;  %v9512_v47 = vld [vmem:[%s9843_s26 + $0x84] sm:$0xff] }
 0x122   : > { %v1437_v25 = vsel %vm9849_vm4, %v8574_v7, %v1436_v35  ;;  %v1438_v34 = vrot.slane %v1436_v35, 4  ;;  %v2948_v14 = vsel %vm2936_vm10, %v2915_v45, %v2464_v57  ;;  %v6744_v55 = vsel %vm9879_vm5, %v6739_v51, %v6743_v63  ;;  %7521 = vmatpush.bf16.msra.mxu2 %v9575_v30  ;;  %v10774_v30 = vld [vmem:[%s9843_s26 + $0x98] sm:$0x1] }
 0x123   : > { %2393 = vrot.lane.b32.xlu1 %v9497_v43, %s9785_s27  ;;  %v6754_v50 = vsel %vm9879_vm5, %v6749_v28, %v6753_v2  ;;  %v2505_v59 = vunpack.c.l.b16 %v1437_v25  ;;  %v10718_v3 = vsel %vm13366_vm11, %v2948_v14, %v2544_v0  ;;  %v6918_v40 = vunpack.c.l.b16 %v6744_v55 }
 0x124   : > { %v6919_v26 = vunpack.c.l.b16 %v6754_v50  ;;  %v1440_v37 = vsel %vm9849_vm4, %v1438_v34, %v1439_v32  ;;  %v2048_v44 = vrot.slane %v10709_v61, 5  ;;  %v569_v39 = vshrl.u32 %v275_v62, 16 }
 0x125   : > { %2297 = vrot.lane.b32.xlu0 %v2271_v12, %s9787_s29  ;;  %v2506_v8 = vunpack.c.l.b16 %v1440_v37  ;;  %v572_v16 = vshll.u32 %v275_v62, 16  ;;  %v2046_v33 = vsel %vm9849_vm4, %v8654_v48, %v2045_v9  ;;  %v2047_v38 = vrot.slane %v2045_v9, 4 }
 0x126   : > { %v6941_v17 = vpack.c.b16 %v6919_v26, %v6918_v40  ;;  %2391 = vrot.lane.b32.xlu2 %v9496_v56, %s9785_s27  ;;  %v578_v60 = vshll.u32 %v10721_v19, 16  ;;  %v2761_v29 = vunpack.c.l.b16 %v2046_v33  ;;  %v571_v6 = vrot.slane %v569_v39, 4  ;;  %v2800_v33 = vpop.permute.xlu2 %2799 }
 0x127   : > { %v2527_v21 = vpack.c.b16 %v2506_v8, %v2505_v59  ;;  %v574_v23 = vrot.slane %v572_v16, 5  ;;  %v2049_v63 = vsel %vm9849_vm4, %v2047_v38, %v2048_v44  ;;  %v582_v53 = vshrl.u32 %v10721_v19, 16  ;;  %v2640_v59 = vpop.permute.xlu0 %2639  ;;  %v2720_v8 = vpop.permute.xlu1 %2719 }
 0x128   : > { %9173 = vmatmul.msk.bf16.gmra.mxu1 %vm2821_vm7, %v6941_v17  ;;  %v580_v24 = vrot.slane %v578_v60, 5  ;;  %v588_v54 = vshll.u32 %v10729_v15, 16  ;;  %v2762_v13 = vunpack.c.l.b16 %v2049_v63  ;;  %v6756_v31 = vshrl.u32 %v9146_v18, 16 }
 0x129   : > { %v575_v41 = vor.u32 %v574_v23, %v571_v6  ;;  %v6759_v43 = vshll.u32 %v9146_v18, 16  ;;  %v584_v4 = vrot.slane %v582_v53, 4  ;;  %v6765_v42 = vshll.u32 %v9147_v52, 16 }
 0x12a   : > { %v590_v57 = vrot.slane %v588_v54, 5  ;;  %v6769_v2 = vshrl.u32 %v9147_v52, 16  ;;  %v2783_v7 = vpack.c.b16 %v2762_v13, %v2761_v29  ;;  %v6758_v32 = vrot.slane %v6756_v31, 4  ;;  %v10768_v52 = vld [vmem:[%s9843_s26 + $0x94] sm:$0xf] }
 0x12b   : > { %2649 = vrot.lane.b32.xlu1 %v9513_v10, %s9786_s28  ;;  %v576_v35 = vrot.slane %v575_v41, 4  ;;  %v6761_v0 = vrot.slane %v6759_v43, 5  ;;  %v585_v12 = vor.u32 %v584_v4, %v580_v24  ;;  %v6767_v51 = vrot.slane %v6765_v42, 5  ;;  %v9574_v4 = vld [vmem:[%s13362_s3 + $0x28] sm:$0xff] }
 0x12c   : > { %v6771_v28 = vrot.slane %v6769_v2, 4  ;;  %v6775_v56 = vshll.u32 %v9148_v27, 16  ;;  %v545_v34 = vshrl.u32 %v273_v46, 16  ;;  %v548_v14 = vshll.u32 %v273_v46, 16  ;;  %v8520_v27 = vld [vmem:[%s9843_s26 + $0x84] sm:$0xf]  ;;  %7522 = vmatpush.bf16.msra.mxu2 %v9574_v4 }
 0x12d   : > { %2553 = vrot.lane.b32.xlu0 %v2527_v21, %s9792_s10  ;;  %v581_v45 = vsel %vm9879_vm5, %v576_v35, %v580_v24  ;;  %v6762_v25 = vor.u32 %v6761_v0, %v6758_v32  ;;  %v586_v48 = vrot.slane %v585_v12, 4  ;;  %v554_v9 = vshll.u32 %v10662_v49, 16  ;;  %v8522_v21 = vld [vmem:[%s9843_s26 + $0x90] sm:$0xf]  ;;  %v9477_v35 = vld [vmem:[%s9843_s26 + $0x48] sm:$0xff] }
 0x12e   : > { %2647 = vrot.lane.b32.xlu2 %v9512_v47, %s9786_s28  ;;  %v2171_v62 = vunpack.c.l.b16 %v581_v45  ;;  %v6772_v55 = vor.u32 %v6771_v28, %v6767_v51  ;;  %v6777_v50 = vrot.slane %v6775_v56, 5  ;;  %v547_v26 = vrot.slane %v545_v34, 4  ;;  %v9592_v47 = vld [vmem:[%s13362_s3 + $0xb8] sm:$0xff]  ;;  %v9591_v28 = vld [vmem:[%s13362_s3 + $0xb0] sm:$0xff]  ;;  %v9573_v56 = vld [vmem:[%s13362_s3 + $0x20] sm:$0xff] }
 0x12f   : > { %v6763_v40 = vrot.slane %v6762_v25, 4  ;;  %v550_v37 = vrot.slane %v548_v14, 5  ;;  %v591_v44 = vsel %vm9879_vm5, %v586_v48, %v590_v57  ;;  %v558_v16 = vshrl.u32 %v10662_v49, 16  ;;  %7698 = vmatpush.bf16.msrb.mxu1 %v9592_v47  ;;  %v2210_v48 = vpop.permute.xlu0 %2209 }
 0x130   : > { %v6773_v39 = vrot.slane %v6772_v55, 4  ;;  %v564_v17 = vshll.u32 %v10665_v20, 16  ;;  %v2172_v38 = vunpack.c.l.b16 %v591_v44  ;;  %v556_v11 = vrot.slane %v554_v9, 5  ;;  %v9498_v55 = vld [vmem:[%s9843_s26 + $0x90] sm:$0xff]  ;;  %7523 = vmatpush.bf16.msra.mxu2 %v9573_v56 }
 0x131   : > { %v6768_v60 = vsel %vm9879_vm5, %v6763_v40, %v6767_v51  ;;  %v551_v18 = vor.u32 %v550_v37, %v547_v26  ;;  %v560_v6 = vrot.slane %v558_v16, 4  ;;  %v3014_v24 = vsel %vm3002_vm12, %v10718_v3, %v2640_v59  ;;  %v2290_v26 = vpop.permute.xlu1 %2289 }
 0x132   : > { %v6778_v10 = vsel %vm9879_vm5, %v6773_v39, %v6777_v50  ;;  %v6920_v29 = vunpack.c.l.b16 %v6768_v60  ;;  %v566_v23 = vrot.slane %v564_v17, 5  ;;  %v2192_v49 = vpack.c.b16 %v2172_v38, %v2171_v62  ;;  %v2386_v39 = vpop.permute.xlu2 %2385  ;;  %v8602_v60 = vld [vmem:[%s9843_s26 + $0x9c] sm:$0xf] }
 0x133   : > { %v6921_v20 = vunpack.c.l.b16 %v6778_v10  ;;  %v552_v63 = vrot.slane %v551_v18, 4  ;;  %v561_v53 = vor.u32 %v560_v6, %v556_v11  ;;  %v3047_v54 = vsel %vm3035_vm13, %v3014_v24, %v2720_v8  ;;  %7699 = vmatpush.bf16.msrb.mxu1 %v9591_v28  ;;  %v9571_v28 = vld [vmem:[%s13362_s3 + $0x10] sm:$0xff] }
 0x134   : > { %v1181_v13 = vshrl.u32 %v8522_v21, 16  ;;  %v1184_v41 = vshll.u32 %v8522_v21, 16  ;;  %2219 = vrot.lane.b32.xlu1 %v2192_v49, %s9789_s7  ;;  %v3080_v46 = vsel %vm3068_vm14, %v3047_v54, %v2800_v33  ;;  %v1190_v3 = vshll.u32 %v10768_v52, 16 }
 0x135   : > { %2809 = vrot.lane.b32.xlu0 %v2783_v7, %s9788_s30  ;;  %v6942_v31 = vpack.c.b16 %v6921_v20, %v6920_v29  ;;  %v557_v43 = vsel %vm9879_vm5, %v552_v63, %v556_v11  ;;  %v562_v57 = vrot.slane %v561_v53, 4  ;;  %8865 = vmatmul.msk.bf16.gmra.mxu0 %vm3125_vm15, %v3080_v46  ;;  %v1194_v0 = vshrl.u32 %v10768_v52, 16  ;;  %v10812_v29 = vld [vmem:[%s9843_s26 + $0xa0] sm:$0xf]  ;;  %v9590_v20 = vld [vmem:[%s13362_s3 + $0xa8] sm:$0xff] }
 0x136   : > { %v2169_v42 = vunpack.c.l.b16 %v557_v43  ;;  %v1183_v2 = vrot.slane %v1181_v13, 4  ;;  %v1186_v7 = vrot.slane %v1184_v41, 5  ;;  %v1192_v32 = vrot.slane %v1190_v3, 5  ;;  %v9572_v13 = vld [vmem:[%s13362_s3 + $0x18] sm:$0xff]  ;;  %v9149_v46 = vld [vmem:[%s9843_s26 + $0x90] sm:$0xf] }
 0x137   : > { %v1200_v12 = vshll.u32 %v10774_v30, 16  ;;  %v1157_v51 = vshrl.u32 %v8520_v27, 16  ;;  %v567_v45 = vsel %vm9879_vm5, %v562_v57, %v566_v23  ;;  %v1160_v34 = vshll.u32 %v8520_v27, 16  ;;  %7700 = vmatpush.bf16.msrb.mxu1 %v9590_v20  ;;  %7524 = vmatpush.bf16.msra.mxu2 %v9572_v13 }
 0x138   : > { %9174 = vmatmul.msk.bf16.gmra.mxu1 %vm2821_vm7, %v6942_v31  ;;  %v1187_v25 = vor.u32 %v1186_v7, %v1183_v2  ;;  %v1166_v14 = vshll.u32 %v10682_v1, 16  ;;  %v2170_v62 = vunpack.c.l.b16 %v567_v45  ;;  %v1196_v50 = vrot.slane %v1194_v0, 4  ;;  %v9151_v2 = vld [vmem:[%s9843_s26 + $0x98] sm:$0x1] }
 0x139   : > { %v1202_v59 = vrot.slane %v1200_v12, 5  ;;  %v1159_v40 = vrot.slane %v1157_v51, 4  ;;  %v1162_v9 = vrot.slane %v1160_v34, 5  ;;  %v1170_v44 = vshrl.u32 %v10682_v1, 16  ;;  %v10815_v1 = vld [vmem:[%s9843_s26 + $0xa4] sm:$0x1]  ;;  %v2546_v13 = vpop.permute.xlu1 %2545 }
 0x13a   : > { %v1188_v37 = vrot.slane %v1187_v25, 4  ;;  %v1168_v8 = vrot.slane %v1166_v14, 5  ;;  %v2191_v16 = vpack.c.b16 %v2170_v62, %v2169_v42  ;;  %v1197_v17 = vor.u32 %v1196_v50, %v1192_v32  ;;  %v9150_v42 = vld [vmem:[%s9843_s26 + $0x94] sm:$0xf]  ;;  %v9589_v51 = vld [vmem:[%s13362_s3 + $0xa0] sm:$0xff] }
 0x13b   : > { %v1176_v33 = vshll.u32 %v10685_v22, 16  ;;  %v2842_v38 = vsel %vm2821_vm7, %v9477_v35, %v2210_v48  ;;  %v1163_v11 = vor.u32 %v1162_v9, %v1159_v40  ;;  %v1172_v21 = vrot.slane %v1170_v44, 4  ;;  %v9514_v35 = vld [vmem:[%s9843_s26 + $0x9c] sm:$0xff]  ;;  %v8600_v50 = vld [vmem:[%s9843_s26 + $0x90] sm:$0xf]  ;;  %7701 = vmatpush.bf16.msrb.mxu1 %v9589_v51  ;;  %7525 = vmatpush.bf16.msra.mxu2 %v9571_v28 }
 0x13c   : > { %v1193_v18 = vsel %vm9879_vm5, %v1188_v37, %v1192_v32  ;;  %v2884_v10 = vsel %vm2870_vm8, %v2842_v38, %v2290_v26  ;;  %2217 = vrot.lane.b32.xlu2 %v2191_v16, %s9789_s7  ;;  %v1198_v22 = vrot.slane %v1197_v17, 4  ;;  %v1790_v53 = vshrl.u32 %v8602_v60, 16 }
 0x13d   : > { %2395 = vrot.lane.b32.xlu0 %v9498_v55, %s9785_s27  ;;  %v2427_v6 = vunpack.c.l.b16 %v1193_v18  ;;  %v1178_v23 = vrot.slane %v1176_v33, 5  ;;  %v10820_v49 = vsel %vm2903_vm9, %v2884_v10, %v2386_v39  ;;  %v1164_v63 = vrot.slane %v1163_v11, 4  ;;  %v2466_v10 = vpop.permute.xlu0 %2465 }
 0x13e   : > { %v1173_v24 = vor.u32 %v1172_v21, %v1168_v8  ;;  %v1793_v54 = vshll.u32 %v8602_v60, 16  ;;  %v1203_v41 = vsel %vm9879_vm5, %v1198_v22, %v1202_v59  ;;  %v1799_v27 = vshll.u32 %v10812_v29, 16 }
 0x13f   : > { %v1803_v31 = vshrl.u32 %v10812_v29, 16  ;;  %v1809_v43 = vshll.u32 %v10815_v1, 16  ;;  %v2428_v3 = vunpack.c.l.b16 %v1203_v41  ;;  %v1169_v47 = vsel %vm9879_vm5, %v1164_v63, %v1168_v8 }
 0x140   : > { %v1174_v4 = vrot.slane %v1173_v24, 4  ;;  %v1792_v57 = vrot.slane %v1790_v53, 4  ;;  %v2425_v7 = vunpack.c.l.b16 %v1169_v47  ;;  %v1795_v32 = vrot.slane %v1793_v54, 5 }
 0x141   : > { %v1801_v0 = vrot.slane %v1799_v27, 5  ;;  %v1805_v12 = vrot.slane %v1803_v31, 4  ;;  %v2448_v56 = vpack.c.b16 %v2428_v3, %v2427_v6  ;;  %v1811_v25 = vrot.slane %v1809_v43, 5 }
 0x142   : > { %v1179_v45 = vsel %vm9879_vm5, %v1174_v4, %v1178_v23  ;;  %v6780_v34 = vshrl.u32 %v9149_v46, 16  ;;  %v1796_v48 = vor.u32 %v1795_v32, %v1792_v57  ;;  %v6783_v55 = vshll.u32 %v9149_v46, 16  ;;  %v2642_v46 = vpop.permute.xlu2 %2641 }
 0x143   : > { %v2426_v14 = vunpack.c.l.b16 %v1179_v45  ;;  %v1806_v62 = vor.u32 %v1805_v12, %v1801_v0  ;;  %2475 = vrot.lane.b32.xlu1 %v2448_v56, %s9790_s8  ;;  %v6789_v40 = vshll.u32 %v9150_v42, 16  ;;  %v6793_v26 = vshrl.u32 %v9150_v42, 16  ;;  %v277_v42 = vld [vmem:[%s9843_s26 + $0x90] sm:$0xf] }
 0x144   : > { %v6782_v59 = vrot.slane %v6780_v34, 4  ;;  %v6799_v37 = vshll.u32 %v9151_v2, 16  ;;  %v1797_v8 = vrot.slane %v1796_v48, 4  ;;  %v6785_v39 = vrot.slane %v6783_v55, 5  ;;  %v278_v2 = vld [vmem:[%s9843_s26 + $0x94] sm:$0xf] }
 0x145   : > { %v2447_v9 = vpack.c.b16 %v2426_v14, %v2425_v7  ;;  %2651 = vrot.lane.b32.xlu0 %v9514_v35, %s9786_s28  ;;  %v1807_v44 = vrot.slane %v1806_v62, 4  ;;  %v6791_v16 = vrot.slane %v6789_v40, 5  ;;  %v6795_v17 = vrot.slane %v6793_v26, 4  ;;  %v700_v34 = vld [vmem:[%s9843_s26 + $0x90] sm:$0xe] }
 0x146   : > { %v6801_v33 = vrot.slane %v6799_v37, 5  ;;  %v1766_v38 = vshrl.u32 %v8600_v50, 16  ;;  %v1802_v60 = vsel %vm9879_vm5, %v1797_v8, %v1801_v0  ;;  %v6786_v11 = vor.u32 %v6785_v39, %v6782_v59  ;;  %v699_v37 = vld [vmem:[%s9843_s26 + $0x84] sm:$0xe] }
 0x147   : > { %2473 = vrot.lane.b32.xlu2 %v2447_v9, %s9790_s8  ;;  %v1812_v18 = vsel %vm9879_vm5, %v1807_v44, %v1811_v25  ;;  %v1769_v21 = vshll.u32 %v8600_v50, 16  ;;  %v2683_v22 = vunpack.c.l.b16 %v1802_v60  ;;  %v6796_v23 = vor.u32 %v6795_v17, %v6791_v16  ;;  %v10882_v60 = vld [vmem:[%s13361_s2] ss:$0 sm:$0xff] }
 0x148   : > { %v2684_v6 = vunpack.c.l.b16 %v1812_v18  ;;  %v1768_v20 = vrot.slane %v1766_v38, 4  ;;  %v6787_v63 = vrot.slane %v6786_v11, 4  ;;  %v1775_v53 = vshll.u32 %v10703_v58, 16 }
 0x149   : > { %v1771_v24 = vrot.slane %v1769_v21, 5  ;;  %v1779_v54 = vshrl.u32 %v10703_v58, 16  ;;  %v6797_v27 = vrot.slane %v6796_v23, 4  ;;  %v1785_v31 = vshll.u32 %v10709_v61, 16 }
 0x14a   : > { %v2704_v41 = vpack.c.b16 %v2684_v6, %v2683_v22  ;;  %v2950_v43 = vsel %vm2936_vm10, %v10820_v49, %v2466_v10  ;;  %v6792_v3 = vsel %vm9879_vm5, %v6787_v63, %v6791_v16  ;;  %v1777_v4 = vrot.slane %v1775_v53, 5  ;;  %v297_v49 = vld [vmem:[%s9843_s26 + $0x98] sm:$0x1]  ;;  %v3171_v22 = vpop.f32.mrf.mxu0 }
 0x14b   : > { %v1772_v47 = vor.u32 %v1771_v24, %v1768_v20  ;;  %v1781_v57 = vrot.slane %v1779_v54, 4  ;;  %v6802_v58 = vsel %vm9879_vm5, %v6797_v27, %v6801_v33  ;;  %v6922_v7 = vunpack.c.l.b16 %v6792_v3 }
 0x14c   : > { %2731 = vrot.lane.b32.xlu1 %v2704_v41, %s9791_s9  ;;  %v1787_v61 = vrot.slane %v1785_v31, 5  ;;  %v2983_v35 = vsel %vm13366_vm11, %v2950_v43, %v2546_v13  ;;  %v6923_v32 = vunpack.c.l.b16 %v6802_v58  ;;  %v593_v28 = vshrl.u32 %v277_v42, 16 }
 0x14d   : > { %v1773_v0 = vrot.slane %v1772_v47, 4  ;;  %v1782_v12 = vor.u32 %v1781_v57, %v1777_v4  ;;  %v10870_v51 = vsel %vm3002_vm12, %v2983_v35, %v2642_v46  ;;  %v596_v56 = vshll.u32 %v277_v42, 16  ;;  %v2722_v47 = vpop.permute.xlu0 %2721  ;;  %v8524_v57 = vld [vmem:[%s9843_s26 + $0x9c] sm:$0xf]  ;;  %v8525_v35 = vld [vmem:[%s9843_s26 + $0xa0] sm:$0xf] }
 0x14e   : > { %v602_v45 = vshll.u32 %v278_v2, 16  ;;  %v606_v25 = vshrl.u32 %v278_v2, 16  ;;  %v6943_v14 = vpack.c.b16 %v6923_v32, %v6922_v7  ;;  %v612_v55 = vshll.u32 %v297_v49, 16  ;;  %v2802_v7 = vpop.permute.xlu1 %2801  ;;  %v10904_v32 = vld [vmem:[%s9843_s26 + $0xa4] sm:$0x1] }
 0x14f   : > { %v1778_v48 = vsel %vm9879_vm5, %v1773_v0, %v1777_v4  ;;  %v1783_v62 = vrot.slane %v1782_v12, 4  ;;  %v595_v59 = vrot.slane %v593_v28, 4  ;;  %v598_v40 = vrot.slane %v596_v56, 5  ;;  %v9478_v4 = vld [vmem:[%s9843_s26 + $0x54] sm:$0xff] }
 0x150   : > { %v2681_v50 = vunpack.c.l.b16 %v1778_v48  ;;  %v604_v26 = vrot.slane %v602_v45, 5  ;;  %9175 = vmatmul.msk.bf16.gmra.mxu1 %vm2821_vm7, %v6943_v14  ;;  %v608_v8 = vrot.slane %v606_v25, 4  ;;  %v614_v44 = vrot.slane %v612_v55, 5  ;;  %v8560_v25 = vld [vmem:[%s9843_s26 + $0x9c] sm:$0xe] }
 0x151   : > { %v1788_v9 = vsel %vm9879_vm5, %v1783_v62, %v1787_v61  ;;  %v8496_v39 = vrot.slane %v700_v34, 9  ;;  %v599_v17 = vor.u32 %v598_v40, %v595_v59  ;;  %v841_v33 = vrot.slane %v278_v2, 5  ;;  %v2212_v61 = vpop.permute.xlu2 %2211  ;;  %v9152_v34 = vld [vmem:[%s9843_s26 + $0x9c] sm:$0xf] }
 0x152   : > { %v2682_v16 = vunpack.c.l.b16 %v1788_v9  ;;  %v844_v38 = vrot.slane %v297_v49, 5  ;;  %v609_v18 = vor.u32 %v608_v8, %v604_v26  ;;  %v8495_v11 = vrot.slane %v699_v37, 9 }
 0x153   : > { %v834_v21 = vrot.slane %v10721_v19, 5  ;;  %v837_v10 = vrot.slane %v10729_v15, 5  ;;  %v600_v23 = vrot.slane %v599_v17, 4  ;;  %v842_v20 = vsel %vm9849_vm4, %v8496_v39, %v841_v33 }
 0x154   : > { %v2703_v6 = vpack.c.b16 %v2682_v16, %v2681_v50  ;;  %v843_v63 = vrot.slane %v841_v33, 4  ;;  %v610_v24 = vrot.slane %v609_v18, 4  ;;  %v2253_v53 = vunpack.c.l.b16 %v842_v20  ;;  %v10918_v50 = vld [vmem:[%s9843_s26 + $0xa0] sm:$0xf] }
 0x155   : > { %v835_v54 = vsel %vm9849_vm4, %v8495_v11, %v834_v21  ;;  %v836_v13 = vrot.slane %v834_v21, 4  ;;  %v605_v19 = vsel %vm9879_vm5, %v600_v23, %v604_v26  ;;  %v3172_v27 = vadd.f32 %v10882_v60, %v3171_v22  ;;  %v9154_v23 = vld [vmem:[%s9843_s26 + $0xa4] sm:$0x1] }
 0x156   : > { %2729 = vrot.lane.b32.xlu2 %v2703_v6, %s9791_s9  ;;  %v845_v15 = vsel %vm9849_vm4, %v843_v63, %v844_v38  ;;  %v2251_v41 = vunpack.c.l.b16 %v835_v54  ;;  %v615_v31 = vsel %vm9879_vm5, %v610_v24, %v614_v44  ;;  %v2173_v43 = vunpack.c.l.b16 %v605_v19 }
 0x157   : > { %v2254_v46 = vunpack.c.l.b16 %v845_v15  ;;  %v838_v3 = vsel %vm9849_vm4, %v836_v13, %v837_v10  ;;  %v2174_v42 = vunpack.c.l.b16 %v615_v31  ;;  %vm3251_vm0 = vcmp.gt.f32.partialorder %v3172_v27, 0.0  ;;  %v8559_v15 = vld [vmem:[%s9843_s26 + $0x90] sm:$0xe] }
 0x158   : > { %v2252_v2 = vunpack.c.l.b16 %v838_v3  ;;  %v3283_v58 = vmul.f32 0.01, %v3172_v27  ;;  %v9793_v56 = vmov 0   ;;  %v3049_v45 = vsel %vm3035_vm13, %v10870_v51, %v2722_v47 }
 0x159   : > { %v2273_v49 = vpack.c.b16 %v2254_v46, %v2253_v53  ;;  %v2193_v0 = vpack.c.b16 %v2174_v42, %v2173_v43  ;;  %3350 = vst [vmem:[#allocation2 + $0xc] sm:$0xf] %v9793_v56  ;;  %v10914_v48 = vsel %vm2821_vm7, %v9478_v4, %v2212_v61  ;;  %v3082_v62 = vsel %vm3068_vm14, %v3049_v45, %v2802_v7  ;;  %v9588_v46 = vld [vmem:[%s13362_s3 + $0x98] sm:$0xff]  ;;  %v2292_v42 = vpop.permute.xlu0 %2291  ;;  %v3173_v45 = vpop.f32.mrf.mxu0 }
 0x15a   : > { %v2272_v12 = vpack.c.b16 %v2252_v2, %v2251_v41  ;;  %v3315_v28 = vsel %vm3251_vm0, %v3172_v27, %v3283_v58  ;;  %3347 = vst [vmem:[#allocation2] sm:$0xf] %v9793_v56  ;;  %v1205_v55 = vshrl.u32 %v8524_v57, 16  ;;  %8866 = vmatmul.msk.bf16.gmra.mxu0 %vm3125_vm15, %v3082_v62  ;;  %v1208_v51 = vshll.u32 %v8524_v57, 16  ;;  %v9570_v2 = vld [vmem:[%s13362_s3 + $0x8] sm:$0xff]  ;;  %7702 = vmatpush.bf16.msrb.mxu1 %v9588_v46 }
 0x15b   : > { %2301 = vrot.lane.b32.xlu1 %v2273_v49, %s9787_s29  ;;  %v3401_v14 = vpack.c.bf16 %v3315_v28, %v3315_v28  ;;  %2221 = vrot.lane.b32.xlu0 %v2193_v0, %s9789_s7  ;;  %3348 = vst [vmem:[#allocation2 + $0x4] sm:$0xf] %v9793_v56  ;;  %v1214_v59 = vshll.u32 %v8525_v35, 16  ;;  %v1218_v40 = vshrl.u32 %v8525_v35, 16  ;;  %v1224_v26 = vshll.u32 %v10904_v32, 16  ;;  %v2388_v49 = vpop.permute.xlu1 %2387 }
 0x15c   : > { %3349 = vst [vmem:[#allocation2 + $0x8] sm:$0x1] %v9793_v56  ;;  %v1207_v8 = vrot.slane %v1205_v55, 4  ;;  %v8576_v44 = vrot.slane %v8560_v25, 9  ;;  %v1210_v39 = vrot.slane %v1208_v51, 5  ;;  %v1450_v18 = vrot.slane %v8525_v35, 5  ;;  %7526 = vmatpush.bf16.msra.mxu2 %v9570_v2  ;;  %v2468_v25 = vpop.permute.xlu2 %2467 }
 0x15d   : > { %v3437_v37 = vshrl.u32 %v3401_v14, 16  ;;  %v3440_v9 = vshll.u32 %v3401_v14, 16  ;;  %3351 = vst [vmem:[#allocation2 + $0x10] sm:$0xf] %v9793_v56  ;;  %v1216_v16 = vrot.slane %v1214_v59, 5  ;;  %v1220_v17 = vrot.slane %v1218_v40, 4 }
 0x15e   : > { %2299 = vrot.lane.b32.xlu2 %v2272_v12, %s9787_s29  ;;  %v1226_v33 = vrot.slane %v1224_v26, 5  ;;  %3352 = vst [vmem:[#allocation2 + $0x14] sm:$0x1] %v9793_v56  ;;  %v1453_v11 = vrot.slane %v10904_v32, 5  ;;  %v6804_v21 = vshrl.u32 %v9152_v34, 16  ;;  %v1211_v22 = vor.u32 %v1210_v39, %v1207_v8  ;;  %v9587_v51 = vld [vmem:[%s13362_s3 + $0x90] sm:$0xff] }
 0x15f   : > { %v10927_v38 = vrot.slane %v3437_v37, 7  ;;  %3353 = vst [vmem:[#allocation2 + $0x18] sm:$0xf] %v9793_v56  ;;  %v1221_v6 = vor.u32 %v1220_v17, %v1216_v16  ;;  %v6807_v20 = vshll.u32 %v9152_v34, 16  ;;  %v6813_v63 = vshll.u32 %v10918_v50, 16  ;;  %v10964_v34 = vpop.f32.mrf.mxu1  ;;  %v9569_v8 = vld [vmem:[%s13362_s3] sm:$0xff]  ;;  %7703 = vmatpush.bf16.msrb.mxu1 %v9587_v51 }
 0x160   : > { %v3760_v54 = vld [vmem:[#allocation2 + $0xc] sm:$0xf]  ;;  %3354 = vst [vmem:[#allocation2 + $0x1c] sm:$0xf] %v9793_v56  ;;  %v1451_v13 = vsel %vm9849_vm4, %v8576_v44, %v1450_v18  ;;  %v1452_v19 = vrot.slane %v1450_v18, 4  ;;  %v1212_v41 = vrot.slane %v1211_v22, 4  ;;  %7527 = vmatpush.bf16.msra.mxu2 %v9569_v8 }
 0x161   : > { %v3442_v24 = vor.u32 %v3440_v9, %v10927_v38  ;;  %v3443_v53 = vrot.slane %v10927_v38, 4  ;;  %3355 = vst [vmem:[#allocation2 + $0x20] sm:$0x1] %v9793_v56  ;;  %v1222_v27 = vrot.slane %v1221_v6, 4  ;;  %v2509_v31 = vunpack.c.l.b16 %v1451_v13  ;;  %v8604_v59 = vld [vmem:[%s9843_s26 + $0xa8] sm:$0xf] }
 0x162   : > { %v6806_v43 = vrot.slane %v6804_v21, 4  ;;  %3356 = vst [vmem:[#allocation2 + $0x24] sm:$0xf] %v9793_v56  ;;  %v1454_v47 = vsel %vm9849_vm4, %v1452_v19, %v1453_v11  ;;  %v6809_v4 = vrot.slane %v6807_v20, 5  ;;  %v6815_v57 = vrot.slane %v6813_v63, 5  ;;  %v9521_v22 = vld [vmem:[#allocation2] sm:$0xff] }
 0x163   : > { %v3761_v3 = vsel %vm10933_vm3, %v3442_v24, %v3760_v54  ;;  %v1217_v58 = vsel %vm9879_vm5, %v1212_v41, %v1216_v16  ;;  %v1227_v7 = vsel %vm9879_vm5, %v1222_v27, %v1226_v33  ;;  %v2510_v61 = vunpack.c.l.b16 %v1454_v47  ;;  %3357 = vst [vmem:[#allocation2 + $0x28] sm:$0xf] %v9793_v56  ;;  %v10983_v17 = vld [vmem:[%s9843_s26 + $0xac] sm:$0xf]  ;;  %v2548_v54 = vpop.permute.xlu0 %2547  ;;  %v11003_v27 = vpop.permute.xlu1 %2643  ;;  %v8640_v47 = vld [vmem:[%s9843_s26 + $0xa8] sm:$0xe]  ;;  %7528 = vmatmul.bf16.vlgmr.msra.gmra.mxu2 %v9521_v22 }
 0x164   : > { %3762 = vst [vmem:[#allocation2 + $0xc] sm:$0xf] %v3761_v3  ;;  %v6817_v35 = vshrl.u32 %v10918_v50, 16  ;;  %v2429_v32 = vunpack.c.l.b16 %v1217_v58  ;;  %v2430_v0 = vunpack.c.l.b16 %v1227_v7  ;;  %v6810_v12 = vor.u32 %v6809_v4, %v6806_v43  ;;  %v9586_v6 = vld [vmem:[%s13362_s3 + $0x88] sm:$0xff]  ;;  %v8624_v3 = vld [vmem:[%s9843_s26 + $0xb0] sm:$0x1]  ;;  %v11010_v4 = vpop.permute.xlu2 %2723  ;;  %v3176_v22 = vpop.f32.mrf.mxu0 }
 0x165   : > { %v6823_v28 = vshll.u32 %v9154_v23, 16  ;;  %3358 = vst [vmem:[#allocation2 + $0x2c] sm:$0x1] %v9793_v56  ;;  %v2529_v14 = vpack.c.b16 %v2510_v61, %v2509_v31  ;;  %v8575_v55 = vrot.slane %v8559_v15, 9  ;;  %v1443_v50 = vrot.slane %v10768_v52, 5  ;;  %7704 = vmatpush.bf16.msrb.mxu1 %v9586_v6  ;;  %v9585_v58 = vld [vmem:[%s13362_s3 + $0x80] sm:$0xff] }
 0x166   : > { %v6819_v62 = vrot.slane %v6817_v35, 4  ;;  %3359 = vst [vmem:[#allocation2 + $0x30] sm:$0xf] %v9793_v56  ;;  %v2449_v40 = vpack.c.b16 %v2430_v0, %v2429_v32  ;;  %v6811_v26 = vrot.slane %v6810_v12, 4  ;;  %v1446_v9 = vrot.slane %v10774_v30, 5 }
 0x167   : > { %v6825_v37 = vrot.slane %v6823_v28, 5  ;;  %3360 = vst [vmem:[#allocation2 + $0x34] sm:$0xf] %v9793_v56  ;;  %2557 = vrot.lane.b32.xlu1 %v2529_v14, %s9792_s10  ;;  %v1444_v44 = vsel %vm9849_vm4, %v8575_v55, %v1443_v50  ;;  %v1445_v39 = vrot.slane %v1443_v50, 4  ;;  %v3174_v16 = vadd.f32 %v10882_v60, %v3173_v45  ;;  %v11021_v0 = vpop.f32.mrf.mxu1  ;;  %v3766_v8 = vld [vmem:[#allocation2 + $0x14] sm:$0x1] }
 0x168   : > { %v6820_v52 = vor.u32 %v6819_v62, %v6815_v57  ;;  %3361 = vst [vmem:[#allocation2 + $0x38] sm:$0x1] %v9793_v56  ;;  %2477 = vrot.lane.b32.xlu0 %v2449_v40, %s9790_s8  ;;  %v6816_v30 = vsel %vm9879_vm5, %v6811_v26, %v6815_v57  ;;  %v2507_v33 = vunpack.c.l.b16 %v1444_v44  ;;  %vm3433_vm6 = vsmask.f32 256 }
 0x169   : > { %vm3434_vm0 = vsmask.f32 4368  ;;  %3362 = vst [vmem:[#allocation2 + $0x3c] sm:$0xf] %v9793_v56  ;;  %v6924_v11 = vunpack.c.l.b16 %v6816_v30  ;;  %v1447_v21 = vsel %vm9849_vm4, %v1445_v39, %v1446_v9  ;;  %vm3252_vm1 = vcmp.gt.f32.partialorder %v3174_v16, 0.0  ;;  %7705 = vmatpush.bf16.msrb.mxu1 %v9585_v58 }
 0x16a   : > { %v6821_v18 = vrot.slane %v6820_v52, 4  ;;  %3363 = vst [vmem:[#allocation2 + $0x40] sm:$0xf] %v9793_v56  ;;  %v2508_v23 = vunpack.c.l.b16 %v1447_v21  ;;  %v3284_v20 = vmul.f32 0.01, %v3174_v16  ;;  %v2886_v63 = vsel %vm2870_vm8, %v10914_v48, %v2292_v42 }
 0x16b   : > { %v1814_v24 = vshrl.u32 %v8604_v59, 16  ;;  %3364 = vst [vmem:[#allocation2 + $0x44] sm:$0x1] %v9793_v56  ;;  %v2919_v19 = vsel %vm2903_vm9, %v2886_v63, %v2388_v49  ;;  %v1817_v15 = vshll.u32 %v8604_v59, 16  ;;  %v1823_v41 = vshll.u32 %v10983_v17, 16  ;;  %v11053_v6 = vpop.permute.xlu0 %2803 }
 0x16c   : > { %v6826_v13 = vsel %vm9879_vm5, %v6821_v18, %v6825_v37  ;;  %3365 = vst [vmem:[#allocation2 + $0x48] sm:$0xf] %v9793_v56  ;;  %v2528_v43 = vpack.c.b16 %v2508_v23, %v2507_v33  ;;  %v3316_v48 = vsel %vm3252_vm1, %v3174_v16, %v3284_v20  ;;  %v2952_v46 = vsel %vm2936_vm10, %v2919_v19, %v2468_v25  ;;  %v8639_v49 = vld [vmem:[%s9843_s26 + $0x9c] sm:$0xe]  ;;  %vm11030_vm1 = vmor %vm3433_vm6, %vm3434_vm0  ;;  %v11051_v21 = vld [vmem:[%s9843_s26 + $0xa4] sm:$0x1] }
 0x16d   : > { %v6925_v31 = vunpack.c.l.b16 %v6826_v13  ;;  %3366 = vst [vmem:[#allocation2 + $0x4c] sm:$0xf] %v9793_v56  ;;  %v3402_v57 = vpack.c.bf16 %v3316_v48, %v3316_v48  ;;  %v1816_v42 = vrot.slane %v1814_v24, 4  ;;  %v1819_v2 = vrot.slane %v1817_v15, 5  ;;  %v701_v24 = vld [vmem:[%s9843_s26 + $0x9c] sm:$0xe] }
 0x16e   : > { %3367 = vst [vmem:[#allocation2 + $0x50] sm:$0x1] %v9793_v56  ;;  %2555 = vrot.lane.b32.xlu2 %v2528_v43, %s9792_s10  ;;  %v1825_v61 = vrot.slane %v1823_v41, 5  ;;  %v1827_v35 = vshrl.u32 %v10983_v17, 16  ;;  %v2985_v32 = vsel %vm13366_vm11, %v2952_v46, %v2548_v54  ;;  %v1833_v25 = vshll.u32 %v8624_v3, 16  ;;  %vm11037_vm11 = vmand %vm3764_vm2, %vm3433_vm6  ;;  %v2214_v54 = vpop.permute.xlu1 %2213 }
 0x16f   : > { %v6944_v7 = vpack.c.b16 %v6925_v31, %v6924_v11  ;;  %13374 = vst [vmem:[#allocation3_spill] sm:$0xff] %v11021_v0  ;;  %v3445_v12 = vshrl.u32 %v3402_v57, 16  ;;  %v3448_v28 = vshll.u32 %v3402_v57, 16  ;;  %v1820_v45 = vor.u32 %v1819_v2, %v1816_v42  ;;  %v11048_v11 = vld [vmem:[%s9843_s26 + $0xa0] sm:$0xf] }
 0x170   : > { %3368 = vst [vmem:[#allocation2 + $0x54] sm:$0xf] %v9793_v56  ;;  %v1829_v14 = vrot.slane %v1827_v35, 4  ;;  %v8656_v62 = vrot.slane %v8640_v47, 9  ;;  %v2059_v55 = vrot.slane %v10983_v17, 5  ;;  %v2062_v50 = vrot.slane %v8624_v3, 5  ;;  %v2294_v3 = vpop.permute.xlu2 %2293 }
 0x171   : > { %3369 = vst [vmem:[#allocation2 + $0x58] sm:$0xf] %v9793_v56  ;;  %9176 = vmatmul.msk.bf16.gmra.mxu1 %vm2821_vm7, %v6944_v7  ;;  %v3447_v59 = vrot.slane %v3445_v12, 7  ;;  %v1821_v40 = vrot.slane %v1820_v45, 4  ;;  %v1835_v26 = vrot.slane %v1833_v25, 5  ;;  %v8655_v37 = vrot.slane %v8639_v49, 9  ;;  %v11088_v49 = vpop.f32.mrf.mxu1 }
 0x172   : > { %3370 = vst [vmem:[#allocation2 + $0x5c] sm:$0x1] %v9793_v56  ;;  %v1830_v52 = vor.u32 %v1829_v14, %v1825_v61  ;;  %v2060_v44 = vsel %vm9849_vm4, %v8656_v62, %v2059_v55  ;;  %v2061_v39 = vrot.slane %v2059_v55, 4  ;;  %v2052_v16 = vrot.slane %v10812_v29, 5  ;;  %v3875_v31 = vld [vmem:[#allocation2 + $0x4] sm:$0xf] }
 0x173   : > { %3371 = vst [vmem:[#allocation2 + $0x60] sm:$0xf] %v9793_v56  ;;  %v3450_v17 = vor.u32 %v3448_v28, %v3447_v59  ;;  %v3452_v30 = vrot.slane %v3447_v59, 4  ;;  %v1826_v33 = vsel %vm9879_vm5, %v1821_v40, %v1825_v61  ;;  %v2765_v18 = vunpack.c.l.b16 %v2060_v44  ;;  %v4306_v46 = vld [vmem:[#allocation2] sm:$0xe] }
 0x174   : > { %3372 = vst [vmem:[#allocation2 + $0x64] sm:$0xf] %v9793_v56  ;;  %v1831_v23 = vrot.slane %v1830_v52, 4  ;;  %v2685_v20 = vunpack.c.l.b16 %v1826_v33  ;;  %v2063_v29 = vsel %vm9849_vm4, %v2061_v39, %v2062_v50  ;;  %v2053_v63 = vsel %vm9849_vm4, %v8655_v37, %v2052_v16  ;;  %v3906_v58 = vld [vmem:[#allocation2 + $0x8] sm:$0x1]  ;;  %v9479_v35 = vld [vmem:[%s9843_s26 + $0x60] sm:$0xff] }
 0x175   : > { %3373 = vst [vmem:[#allocation2 + $0x68] sm:$0x1] %v9793_v56  ;;  %v11066_v13 = vsel %vm11030_vm1, %v3443_v53, %v3450_v17  ;;  %v11070_v19 = vsel %vm11037_vm11, %v3452_v30, %v3766_v8  ;;  %v2766_v15 = vunpack.c.l.b16 %v2063_v29  ;;  %v2054_v41 = vrot.slane %v2052_v16, 4  ;;  %v11093_v45 = vld [vmem:[%s9843_s26 + $0xac] sm:$0xf] }
 0x176   : > { %3374 = vst [vmem:[#allocation2 + $0x6c] sm:$0xf] %v9793_v56  ;;  %v1836_v43 = vsel %vm9879_vm5, %v1831_v23, %v1835_v26  ;;  %v2055_v48 = vrot.slane %v10815_v1, 5  ;;  %v2763_v38 = vunpack.c.l.b16 %v2053_v63  ;;  %v3018_v53 = vsel %vm3002_vm12, %v2985_v32, %v11003_v27  ;;  %v8561_v26 = vld [vmem:[%s9843_s26 + $0xa8] sm:$0xe]  ;;  %v2390_v23 = vpop.permute.xlu0 %2389 }
 0x177   : > { %3375 = vst [vmem:[#allocation2 + $0x70] sm:$0xf] %v9793_v56  ;;  %v2686_v47 = vunpack.c.l.b16 %v1836_v43  ;;  %v2785_v57 = vpack.c.b16 %v2766_v15, %v2765_v18  ;;  %v3051_v42 = vsel %vm3035_vm13, %v3018_v53, %v11010_v4  ;;  %v8497_v2 = vrot.slane %v701_v24, 9  ;;  %v9500_v16 = vld [vmem:[%s9843_s26 + $0xa8] sm:$0xff]  ;;  %v11113_v18 = vld [vmem:[%s9843_s26 + $0xb0] sm:$0x1] }
 0x178   : > { %3376 = vst [vmem:[#allocation2 + $0x74] sm:$0x1] %v9793_v56  ;;  %v2056_v1 = vsel %vm9849_vm4, %v2054_v41, %v2055_v48  ;;  %v848_v7 = vrot.slane %v11048_v11, 5  ;;  %v851_v27 = vrot.slane %v11051_v21, 5  ;;  %v3177_v61 = vadd.f32 %v10882_v60, %v3176_v22  ;;  %v3178_v22 = vpop.f32.mrf.mxu0  ;;  %v11123_v43 = vld [vmem:[%s9843_s26 + $0xb8] sm:$0xf] }
 0x179   : > { %3377 = vst [vmem:[#allocation2 + $0x78] sm:$0xf] %v9793_v56  ;;  %v2705_v4 = vpack.c.b16 %v2686_v47, %v2685_v20  ;;  %2813 = vrot.lane.b32.xlu1 %v2785_v57, %s9788_s30  ;;  %v2764_v32 = vunpack.c.l.b16 %v2056_v1  ;;  %v8876_v12 = vrot.slane %v4306_v46, 9  ;;  %v4372_v28 = vrot.slane %v3875_v31, 5  ;;  %v11126_v48 = vld [vmem:[%s9843_s26 + $0xbc] sm:$0x1]  ;;  %v2550_v57 = vpop.permute.xlu2 %2549 }
 0x17a   : > { %3378 = vst [vmem:[#allocation2 + $0x7c] sm:$0xf] %v9793_v56  ;;  %v849_v25 = vsel %vm9849_vm4, %v8497_v2, %v848_v7  ;;  %v850_v14 = vrot.slane %v848_v7, 4  ;;  %vm3253_vm6 = vcmp.gt.f32.partialorder %v3177_v61, 0.0  ;;  %v3285_v62 = vmul.f32 0.01, %v3177_v61 }
 0x17b   : > { %3379 = vst [vmem:[#allocation2 + $0x80] sm:$0x1] %v9793_v56  ;;  %2733 = vrot.lane.b32.xlu0 %v2705_v4, %s9791_s9  ;;  %v2784_v55 = vpack.c.b16 %v2764_v32, %v2763_v38  ;;  %v2255_v50 = vunpack.c.l.b16 %v849_v25  ;;  %v4373_v59 = vsel %vm9849_vm4, %v8876_v12, %v4372_v28  ;;  %v4374_v40 = vrot.slane %v4372_v28, 4  ;;  %v11129_v38 = vld [vmem:[#allocation2 + $0x18] sm:$0xf]  ;;  %v9499_v1 = vld [vmem:[%s9843_s26 + $0x9c] sm:$0xff]  ;;  %v11147_v12 = vpop.f32.mrf.mxu1 }
 0x17c   : > { %3380 = vst [vmem:[#allocation2 + $0x84] sm:$0xf] %v9793_v56  ;;  %v852_v37 = vsel %vm9849_vm4, %v850_v14, %v851_v27  ;;  %v3317_v8 = vsel %vm3253_vm6, %v3177_v61, %v3285_v62  ;;  %v4375_v52 = vrot.slane %v3906_v58, 5  ;;  %v5843_v44 = vunpack.c.l.b16 %v4373_v59  ;;  %v281_v61 = vld [vmem:[%s9843_s26 + $0xa8] sm:$0xf] }
 0x17d   : > { %3381 = vst [vmem:[#allocation2 + $0x88] sm:$0xf] %v9793_v56  ;;  %2811 = vrot.lane.b32.xlu2 %v2784_v55, %s9788_s30  ;;  %v2256_v39 = vunpack.c.l.b16 %v852_v37  ;;  %v3403_v17 = vpack.c.bf16 %v3317_v8, %v3317_v8  ;;  %v2848_v30 = vsel %vm2821_vm7, %v9479_v35, %v2214_v54  ;;  %v3084_v33 = vsel %vm3068_vm14, %v3051_v42, %v11053_v6  ;;  %v2470_v6 = vpop.permute.xlu1 %2469  ;;  %v8641_v42 = vld [vmem:[%s9843_s26 + $0xb4] sm:$0xe]  ;;  %v11159_v55 = vld [vmem:[%s9843_s26 + $0xac] sm:$0xf] }
 0x17e   : > { %3382 = vst [vmem:[#allocation2 + $0x8c] sm:$0x1] %v9793_v56  ;;  %v4376_v20 = vsel %vm9849_vm4, %v4374_v40, %v4375_v52  ;;  %v2888_v29 = vsel %vm2870_vm8, %v2848_v30, %v2294_v3  ;;  %8867 = vmatmul.msk.bf16.gmra.mxu0 %vm3125_vm15, %v3084_v33  ;;  %v8577_v63 = vrot.slane %v8561_v26, 9  ;;  %v1457_v24 = vrot.slane %v11093_v45, 5  ;;  %v11165_v37 = vld [vmem:[%s9843_s26 + $0xb0] sm:$0x1] }
 0x17f   : > { %3383 = vst [vmem:[#allocation2 + $0x90] sm:$0xf] %v9793_v56  ;;  %v2274_v54 = vpack.c.b16 %v2256_v39, %v2255_v50  ;;  %v3454_v15 = vshrl.u32 %v3403_v17, 16  ;;  %v3457_v41 = vshll.u32 %v3403_v17, 16  ;;  %v5844_v31 = vunpack.c.l.b16 %v4376_v20  ;;  %v279_v17 = vld [vmem:[%s9843_s26 + $0x9c] sm:$0xf] }
 0x180   : > { %3384 = vst [vmem:[#allocation2 + $0x94] sm:$0xf] %v9793_v56  ;;  %v1458_v53 = vsel %vm9849_vm4, %v8577_v63, %v1457_v24  ;;  %v1459_v46 = vrot.slane %v1457_v24, 4  ;;  %v1460_v3 = vrot.slane %v11113_v18, 5  ;;  %v3179_v47 = vadd.f32 %v10882_v60, %v3178_v22 }
 0x181   : > { %3385 = vst [vmem:[#allocation2 + $0x98] sm:$0x1] %v9793_v56  ;;  %2399 = vrot.lane.b32.xlu1 %v9500_v16, %s9785_s27  ;;  %v11138_v2 = vrot.slane %v3454_v15, 7  ;;  %v5875_v58 = vpack.c.b16 %v5844_v31, %v5843_v44  ;;  %v2511_v7 = vunpack.c.l.b16 %v1458_v53  ;;  %v2921_v27 = vsel %vm2903_vm9, %v2888_v29, %v2390_v23  ;;  %v9516_v44 = vld [vmem:[%s9843_s26 + $0xb4] sm:$0xff] }
 0x182   : > { %3386 = vst [vmem:[#allocation2 + $0x9c] sm:$0xf] %v9793_v56  ;;  %v1461_v35 = vsel %vm9849_vm4, %v1459_v46, %v1460_v3  ;;  %vm3254_vm0 = vcmp.gt.f32.partialorder %v3179_v47, 0.0  ;;  %v3286_v4 = vmul.f32 0.01, %v3179_v47  ;;  %v2954_v32 = vsel %vm2936_vm10, %v2921_v27, %v2470_v6  ;;  %v2646_v6 = vpop.permute.xlu0 %2645 }
 0x183   : > { %3387 = vst [vmem:[#allocation2 + $0xa0] sm:$0xf] %v9793_v56  ;;  %2303 = vrot.lane.b32.xlu0 %v2274_v54, %s9787_s29  ;;  %v11152_v28 = vor.u32 %v3457_v41, %v11138_v2  ;;  %v3460_v25 = vrot.slane %v11138_v2, 4  ;;  %7706 = vmatmul.bf16.vlgmr.msrb.gmra.mxu1 %v5875_v58  ;;  %v2512_v14 = vunpack.c.l.b16 %v1461_v35  ;;  %vm13380_vm2 = vcmask 162816   ;;  %v3773_v54 = vld [vmem:[#allocation2 + $0x20] sm:$0x1]  ;;  %v2806_v35 = vpop.permute.xlu2 %2805 }
 0x184   : > { %13379 = vst [vmem:[#allocation4_spill] sm:$0xff] %v11147_v12  ;;  %v11156_v62 = vsel %vm13380_vm2, %v2954_v32, %v2550_v57  ;;  %v3318_v50 = vsel %vm3254_vm0, %v3179_v47, %v3286_v4  ;;  %v8657_v59 = vrot.slane %v8641_v42, 9  ;;  %v2066_v40 = vrot.slane %v11123_v43, 5  ;;  %v9515_v47 = vld [vmem:[%s9843_s26 + $0xa8] sm:$0xff] }
 0x185   : > { %3388 = vst [vmem:[#allocation2 + $0xa4] sm:$0x1] %v9793_v56  ;;  %v2069_v26 = vrot.slane %v11126_v48, 5  ;;  %v3770_v8 = vsel %vm10933_vm3, %v11152_v28, %v11129_v38  ;;  %2397 = vrot.lane.b32.xlu2 %v9499_v1, %s9785_s27  ;;  %v2530_v52 = vpack.c.b16 %v2512_v14, %v2511_v7  ;;  %v3404_v39 = vpack.c.bf16 %v3318_v50, %v3318_v50  ;;  %v2726_v46 = vpop.permute.xlu1 %2725  ;;  %v8526_v38 = vld [vmem:[%s9843_s26 + $0xa8] sm:$0xf] }
 0x186   : > { %3389 = vst [vmem:[#allocation2 + $0xa8] sm:$0xf] %v9793_v56  ;;  %v641_v16 = vshrl.u32 %v281_v61, 16  ;;  %v2067_v30 = vsel %vm9849_vm4, %v8657_v59, %v2066_v40  ;;  %v2068_v33 = vrot.slane %v2066_v40, 4  ;;  %v644_v22 = vshll.u32 %v281_v61, 16 }
 0x187   : > { %3390 = vst [vmem:[#allocation2 + $0xac] sm:$0xf] %v9793_v56  ;;  %v650_v23 = vshll.u32 %v11159_v55, 16  ;;  %v3462_v20 = vshrl.u32 %v3404_v39, 16  ;;  %v3465_v29 = vshll.u32 %v3404_v39, 16  ;;  %v2767_v63 = vunpack.c.l.b16 %v2067_v30 }
 0x188   : > { %3391 = vst [vmem:[#allocation2 + $0xb0] sm:$0x1] %v9793_v56  ;;  %v643_v24 = vrot.slane %v641_v16, 4  ;;  %v2070_v15 = vsel %vm9849_vm4, %v2068_v33, %v2069_v26  ;;  %v646_v41 = vrot.slane %v644_v22, 5  ;;  %v654_v53 = vshrl.u32 %v11159_v55, 16 }
 0x189   : > { %3392 = vst [vmem:[#allocation2 + $0xb4] sm:$0xf] %v9793_v56  ;;  %v652_v31 = vrot.slane %v650_v23, 5  ;;  %2655 = vrot.lane.b32.xlu1 %v9516_v44, %s9786_s28  ;;  %v3464_v3 = vrot.slane %v3462_v20, 7  ;;  %v2768_v57 = vunpack.c.l.b16 %v2070_v15  ;;  %v660_v42 = vshll.u32 %v11165_v37, 16 }
 0x18a   : > { %3393 = vst [vmem:[#allocation2 + $0xb8] sm:$0xf] %v9793_v56  ;;  %v617_v58 = vshrl.u32 %v279_v17, 16  ;;  %v647_v1 = vor.u32 %v646_v41, %v643_v24  ;;  %v656_v7 = vrot.slane %v654_v53, 4  ;;  %v620_v27 = vshll.u32 %v279_v17, 16 }
 0x18b   : > { %3394 = vst [vmem:[#allocation2 + $0xbc] sm:$0x1] %v9793_v56  ;;  %v626_v61 = vshll.u32 %v11048_v11, 16  ;;  %2559 = vrot.lane.b32.xlu0 %v2530_v52, %s9792_s10  ;;  %v3467_v4 = vor.u32 %v3465_v29, %v3464_v3  ;;  %v3469_v32 = vrot.slane %v3464_v3, 4  ;;  %v2786_v14 = vpack.c.b16 %v2768_v57, %v2767_v63  ;;  %v11192_v59 = vld [vmem:[#allocation2 + $0xc] sm:$0xe] }
 0x18c   : > { %3395 = vst [vmem:[#allocation2 + $0xc0] sm:$0xf] %v9793_v56  ;;  %v662_v50 = vrot.slane %v660_v42, 5  ;;  %v648_v40 = vrot.slane %v647_v1, 4  ;;  %v657_v26 = vor.u32 %v656_v7, %v652_v31  ;;  %v619_v44 = vrot.slane %v617_v58, 4 }
 0x18d   : > { %3396 = vst [vmem:[#allocation2 + $0xc4] sm:$0xf] %v9793_v56  ;;  %v622_v39 = vrot.slane %v620_v27, 5  ;;  %v3468_v52 = vsel %vm11030_vm1, %v3460_v25, %v3467_v4  ;;  %v3774_v16 = vsel %vm11037_vm11, %v3469_v32, %v3773_v54  ;;  %2653 = vrot.lane.b32.xlu2 %v9515_v47, %s9786_s28  ;;  %v628_v17 = vrot.slane %v626_v61, 5  ;;  %v3181_v25 = vpop.f32.mrf.mxu0  ;;  %v8528_v20 = vld [vmem:[%s9843_s26 + $0xb4] sm:$0xf]  ;;  %v11236_v58 = vpop.permute.xlu1 %2295 }
 0x18e   : > { %3397 = vst [vmem:[#allocation2 + $0xc8] sm:$0x1] %v9793_v56  ;;  %v630_v30 = vshrl.u32 %v11048_v11, 16  ;;  %v653_v33 = vsel %vm9879_vm5, %v648_v40, %v652_v31  ;;  %v658_v22 = vrot.slane %v657_v26, 4  ;;  %v636_v23 = vshll.u32 %v11051_v21, 16  ;;  %v11241_v4 = vpop.permute.xlu2 %2391  ;;  %v11243_v32 = vpop.f32.mrf.mxu1 }
 0x18f   : > { %3398 = vst [vmem:[#allocation2 + $0xcc] sm:$0xf] %v9793_v56  ;;  %v623_v2 = vor.u32 %v622_v39, %v619_v44  ;;  %v2177_v29 = vunpack.c.l.b16 %v653_v33  ;;  %v8877_v24 = vrot.slane %v11192_v59, 9  ;;  %v3020_v11 = vsel %vm3002_vm12, %v11156_v62, %v2646_v6  ;;  %v11214_v54 = vld [vmem:[%s9843_s26 + $0xb8] sm:$0xf] }
 0x190   : > { %3399 = vst [vmem:[#allocation2 + $0xd0] sm:$0xf] %v9793_v56  ;;  %v632_v63 = vrot.slane %v630_v30, 4  ;;  %v663_v15 = vsel %vm9879_vm5, %v658_v22, %v662_v50  ;;  %v638_v41 = vrot.slane %v636_v23, 5  ;;  %v3053_v31 = vsel %vm3035_vm13, %v3020_v11, %v2726_v46  ;;  %v11225_v6 = vld [vmem:[%s9843_s26 + $0xbc] sm:$0x1] }
 0x191   : > { %3400 = vst [vmem:[#allocation2 + $0xd4] sm:$0x1] %v9793_v56  ;;  %v624_v21 = vrot.slane %v623_v2, 4  ;;  %v9480_v56 = vld [vmem:[%s9843_s26 + $0x6c] sm:$0xff]  ;;  %v2178_v53 = vunpack.c.l.b16 %v663_v15  ;;  %v3182_v47 = vadd.f32 %v10882_v60, %v3181_v25  ;;  %v3086_v62 = vsel %vm3068_vm14, %v3053_v31, %v2806_v35  ;;  %v3776_v59 = vld [vmem:[#allocation2 + $0x24] sm:$0xf] }
 0x192   : > { %3763 = vst [vmem:[#allocation2 + $0x10] sm:$0xf] %v11066_v13  ;;  %v633_v3 = vor.u32 %v632_v63, %v628_v17  ;;  %v2216_v13 = vpop.permute.xlu0 %2215  ;;  %8868 = vmatmul.msk.bf16.gmra.mxu0 %vm3125_vm15, %v3086_v62  ;;  %v1256_v57 = vshll.u32 %v8528_v20, 16  ;;  %v1262_v42 = vshll.u32 %v11214_v54, 16  ;;  %v1266_v40 = vshrl.u32 %v11214_v54, 16 }
 0x193   : > { %3768 = vst [vmem:[#allocation2 + $0x14] sm:$0x1] %v11070_v19  ;;  %v629_v46 = vsel %vm9879_vm5, %v624_v21, %v628_v17  ;;  %v1253_v19 = vshrl.u32 %v8528_v20, 16  ;;  %2815 = vrot.lane.b32.xlu0 %v2786_v14, %s9788_s30  ;;  %v2195_v1 = vpack.c.b16 %v2178_v53, %v2177_v29  ;;  %vm3255_vm6 = vcmp.gt.f32.partialorder %v3182_v47, 0.0 }
 0x194   : > { %3771 = vst [vmem:[#allocation2 + $0x18] sm:$0xf] %v3770_v8  ;;  %v634_v7 = vrot.slane %v633_v3, 4  ;;  %v2175_v27 = vunpack.c.l.b16 %v629_v46  ;;  %v3287_v28 = vmul.f32 0.01, %v3182_v47  ;;  %v1258_v61 = vrot.slane %v1256_v57, 5 }
 0x195   : > { %3772 = vst [vmem:[#allocation2 + $0x1c] sm:$0xf] %v3468_v52  ;;  %v1255_v8 = vrot.slane %v1253_v19, 4  ;;  %v2851_v35 = vsel %vm2821_vm7, %v9480_v56, %v2216_v13  ;;  %2225 = vrot.lane.b32.xlu1 %v2195_v1, %s9789_s7  ;;  %v1264_v50 = vrot.slane %v1262_v42, 5  ;;  %v1272_v26 = vshll.u32 %v11225_v6, 16  ;;  %v9501_v52 = vld [vmem:[%s9843_s26 + $0xb4] sm:$0xff] }
 0x196   : > { %3775 = vst [vmem:[#allocation2 + $0x20] sm:$0x1] %v3774_v16  ;;  %v639_v14 = vsel %vm9879_vm5, %v634_v7, %v638_v41  ;;  %v3319_v39 = vsel %vm3255_vm6, %v3182_v47, %v3287_v28  ;;  %v1229_v17 = vshrl.u32 %v8526_v38, 16  ;;  %v1268_v2 = vrot.slane %v1266_v40, 4 }
 0x197   : > { %v2176_v44 = vunpack.c.l.b16 %v639_v14  ;;  %v1259_v16 = vor.u32 %v1258_v61, %v1255_v8  ;;  %v3405_v22 = vpack.c.bf16 %v3319_v39, %v3319_v39  ;;  %v1274_v23 = vrot.slane %v1272_v26, 5  ;;  %v8608_v39 = vld [vmem:[%s9843_s26 + $0xc0] sm:$0xf] }
 0x198   : > { %v1232_v25 = vshll.u32 %v8526_v38, 16  ;;  %v1231_v15 = vrot.slane %v1229_v17, 4  ;;  %v1269_v56 = vor.u32 %v1268_v2, %v1264_v50  ;;  %v1242_v7 = vshrl.u32 %v11093_v45, 16  ;;  %v11267_v38 = vpop.permute.xlu1 %2551  ;;  %v9517_v2 = vld [vmem:[%s9843_s26 + $0xc0] sm:$0xff] }
 0x199   : > { %v9522_v30 = vld [vmem:[#allocation2 + $0xc] sm:$0xff]  ;;  %v2194_v20 = vpack.c.b16 %v2176_v44, %v2175_v27  ;;  %v1260_v11 = vrot.slane %v1259_v16, 4  ;;  %v3471_v41 = vshrl.u32 %v3405_v22, 16  ;;  %v3474_v31 = vshll.u32 %v3405_v22, 16  ;;  %v11276_v16 = vpop.f32.mrf.mxu1 }
 0x19a   : > { %v3877_v33 = vld [vmem:[#allocation2 + $0x10] sm:$0xf]  ;;  %v3907_v29 = vld [vmem:[#allocation2 + $0x14] sm:$0x1]  ;;  %7533 = vmatmul.bf16.gmra.mxu2 %v9522_v30  ;;  %v1234_v62 = vrot.slane %v1232_v25, 5  ;;  %v1270_v19 = vrot.slane %v1269_v56, 4  ;;  %v11265_v27 = vpop.permute.xlu0 %2471  ;;  %v2890_v22 = vsel %vm2870_vm8, %v2851_v35, %v11236_v58 }
 0x19b   : > { %v4379_v63 = vrot.slane %v3877_v33, 5  ;;  %v4382_v21 = vrot.slane %v3907_v29, 5  ;;  %2223 = vrot.lane.b32.xlu2 %v2194_v20, %s9789_s7  ;;  %v1265_v47 = vsel %vm9879_vm5, %v1260_v11, %v1264_v50  ;;  %v11258_v46 = vrot.slane %v3471_v41, 7  ;;  %2401 = vrot.lane.b32.xlu0 %v9501_v52, %s9785_s27  ;;  %v3183_v50 = vpop.f32.mrf.mxu0  ;;  %v11274_v52 = vpop.permute.xlu2 %2647  ;;  %13381 = vst [vmem:[#allocation5_spill] sm:$0xff] %v11276_v16  ;;  %v11291_v11 = vld [vmem:[%s9843_s26 + $0xc8] sm:$0x1] }
 0x19c   : > { %v2433_v57 = vunpack.c.l.b16 %v1265_v47  ;;  %v1235_v1 = vor.u32 %v1234_v62, %v1231_v15  ;;  %v1275_v14 = vsel %vm9879_vm5, %v1270_v19, %v1274_v23  ;;  %v1248_v33 = vshll.u32 %v11113_v18, 16  ;;  %v8606_v35 = vld [vmem:[%s9843_s26 + $0xb4] sm:$0xf]  ;;  %v9582_v16 = vld [vmem:[%s13362_s3 + $0x68] sm:$0xff] }
 0x19d   : > { %v4380_v53 = vsel %vm9849_vm4, %v8877_v24, %v4379_v63  ;;  %v4381_v3 = vrot.slane %v4379_v63, 4  ;;  %v1238_v24 = vshll.u32 %v11093_v45, 16  ;;  %v3476_v8 = vor.u32 %v3474_v31, %v11258_v46  ;;  %v11288_v63 = vld [vmem:[%s9843_s26 + $0xc4] sm:$0xf] }
 0x19e   : > { %v5845_v13 = vunpack.c.l.b16 %v4380_v53  ;;  %v3477_v61 = vrot.slane %v11258_v46, 4  ;;  %v2434_v40 = vunpack.c.l.b16 %v1275_v14  ;;  %v1236_v26 = vrot.slane %v1235_v1, 4 }
 0x19f   : > { %v4383_v42 = vsel %vm9849_vm4, %v4381_v3, %v4382_v21  ;;  %v1240_v44 = vrot.slane %v1238_v24, 5  ;;  %v1244_v45 = vrot.slane %v1242_v7, 4  ;;  %v3777_v30 = vsel %vm10933_vm3, %v3476_v8, %v3776_v59  ;;  %v9523_v24 = vld [vmem:[#allocation2 + $0x18] sm:$0xff] }
 0x1a0   : > { %v5846_v28 = vunpack.c.l.b16 %v4383_v42  ;;  %3778 = vst [vmem:[#allocation2 + $0x24] sm:$0xf] %v3777_v30  ;;  %v2451_v23 = vpack.c.b16 %v2434_v40, %v2433_v57  ;;  %v3184_v29 = vadd.f32 %v10882_v60, %v3183_v50  ;;  %v1250_v15 = vrot.slane %v1248_v33, 5  ;;  %v11303_v40 = vpop.permute.xlu1 %2807 }
 0x1a1   : > { %v1241_v25 = vsel %vm9879_vm5, %v1236_v26, %v1240_v44  ;;  %v1245_v20 = vor.u32 %v1244_v45, %v1240_v44  ;;  %v2923_v18 = vsel %vm2903_vm9, %v2890_v22, %v11241_v4  ;;  %v1862_v58 = vshrl.u32 %v8608_v39, 16 }
 0x1a2   : > { %v5876_v17 = vpack.c.b16 %v5846_v28, %v5845_v13  ;;  %v2431_v21 = vunpack.c.l.b16 %v1241_v25  ;;  %2481 = vrot.lane.b32.xlu1 %v2451_v23, %s9790_s8  ;;  %vm3256_vm0 = vcmp.gt.f32.partialorder %v3184_v29, 0.0  ;;  %v3288_v31 = vmul.f32 0.01, %v3184_v29  ;;  %v2728_v50 = vpop.permute.xlu0 %2727  ;;  %v11309_v23 = vpop.f32.mrf.mxu1 }
 0x1a3   : > { %v1246_v41 = vrot.slane %v1245_v20, 4  ;;  %v1865_v56 = vshll.u32 %v8608_v39, 16  ;;  %2657 = vrot.lane.b32.xlu0 %v9517_v2, %s9786_s28  ;;  %v1864_v60 = vrot.slane %v1862_v58, 4  ;;  %v1871_v53 = vshll.u32 %v11288_v63, 16  ;;  %v11307_v2 = vpop.permute.xlu2 %2217 }
 0x1a4   : > { %7711 = vmatmul.bf16.gmra.mxu1 %v5876_v17  ;;  %v1875_v3 = vshrl.u32 %v11288_v63, 16  ;;  %v1881_v47 = vshll.u32 %v11291_v11, 16  ;;  %v3320_v62 = vsel %vm3256_vm0, %v3184_v29, %v3288_v31  ;;  %v1838_v19 = vshrl.u32 %v8606_v35, 16  ;;  %v4308_v31 = vld [vmem:[#allocation2 + $0x18] sm:$0xe] }
 0x1a5   : > { %v1251_v4 = vsel %vm9879_vm5, %v1246_v41, %v1250_v15  ;;  %v1867_v13 = vrot.slane %v1865_v56, 5  ;;  %v3406_v42 = vpack.c.bf16 %v3320_v62, %v3320_v62  ;;  %v1873_v59 = vrot.slane %v1871_v53, 5 }
 0x1a6   : > { %v2432_v57 = vunpack.c.l.b16 %v1251_v4  ;;  %v1877_v1 = vrot.slane %v1875_v3, 4  ;;  %v1883_v28 = vrot.slane %v1881_v47, 5  ;;  %v1840_v8 = vrot.slane %v1838_v19, 4  ;;  %v3186_v47 = vpop.f32.mrf.mxu0  ;;  %v702_v19 = vld [vmem:[%s9843_s26 + $0xa8] sm:$0xe] }
 0x1a7   : > { %v1868_v7 = vor.u32 %v1867_v13, %v1864_v60  ;;  %v1841_v14 = vshll.u32 %v8606_v35, 16  ;;  %v3479_v44 = vshrl.u32 %v3406_v42, 16  ;;  %v3482_v45 = vshll.u32 %v3406_v42, 16  ;;  %v3908_v13 = vld [vmem:[#allocation2 + $0x20] sm:$0x1] }
 0x1a8   : > { %v2450_v26 = vpack.c.b16 %v2432_v57, %v2431_v21  ;;  %v1878_v39 = vor.u32 %v1877_v1, %v1873_v59  ;;  %v1847_v33 = vshll.u32 %v11123_v43, 16  ;;  %v1851_v22 = vshrl.u32 %v11123_v43, 16  ;;  %v3780_v21 = vld [vmem:[#allocation2 + $0x2c] sm:$0x1] }
 0x1a9   : > { %v1869_v17 = vrot.slane %v1868_v7, 4  ;;  %v1843_v30 = vrot.slane %v1841_v14, 5  ;;  %v3481_v25 = vrot.slane %v3479_v44, 7  ;;  %v1857_v29 = vshll.u32 %v11126_v48, 16  ;;  %v3879_v48 = vld [vmem:[#allocation2 + $0x1c] sm:$0xf] }
 0x1aa   : > { %2479 = vrot.lane.b32.xlu2 %v2450_v26, %s9790_s8  ;;  %v1879_v20 = vrot.slane %v1878_v39, 4  ;;  %7538 = vmatmul.bf16.gmra.mxu2 %v9523_v24  ;;  %v2956_v15 = vsel %vm2936_vm10, %v2923_v18, %v11265_v27  ;;  %v1849_v35 = vrot.slane %v1847_v33, 5  ;;  %v1853_v41 = vrot.slane %v1851_v22, 4 }
 0x1ab   : > { %v1874_v58 = vsel %vm9879_vm5, %v1869_v17, %v1873_v59  ;;  %v1844_v43 = vor.u32 %v1843_v30, %v1840_v8  ;;  %v3484_v56 = vor.u32 %v3482_v45, %v3481_v25  ;;  %v3486_v60 = vrot.slane %v3481_v25, 4  ;;  %v11343_v17 = vpop.permute.xlu0 %2297  ;;  %v11345_v30 = vpop.permute.xlu1 %2393 }
 0x1ac   : > { %v1884_v53 = vsel %vm9879_vm5, %v1879_v20, %v1883_v28  ;;  %v2689_v3 = vunpack.c.l.b16 %v1874_v58  ;;  %v1854_v27 = vor.u32 %v1853_v41, %v1849_v35  ;;  %v1859_v18 = vrot.slane %v1857_v29, 5  ;;  %v11354_v58 = vpop.permute.xlu2 %2473 }
 0x1ad   : > { %v2690_v4 = vunpack.c.l.b16 %v1884_v53  ;;  %v1845_v62 = vrot.slane %v1844_v43, 4  ;;  %v3485_v57 = vsel %vm11030_vm1, %v3477_v61, %v3484_v56  ;;  %v3781_v42 = vsel %vm11037_vm11, %v3486_v60, %v3780_v21  ;;  %v284_v21 = vld [vmem:[%s9843_s26 + $0xb8] sm:$0xf]  ;;  %v11356_v43 = vpop.f32.mrf.mxu1  ;;  %v300_v53 = vld [vmem:[%s9843_s26 + $0xbc] sm:$0x1] }
 0x1ae   : > { %v2989_v59 = vsel %vm13380_vm2, %v2956_v15, %v11267_v38  ;;  %v8878_v1 = vrot.slane %v4308_v31, 9  ;;  %3779 = vst [vmem:[#allocation2 + $0x28] sm:$0xf] %v3485_v57  ;;  %v1855_v28 = vrot.slane %v1854_v27, 4  ;;  %v4386_v61 = vrot.slane %v3879_v48, 5 }
 0x1af   : > { %v2707_v24 = vpack.c.b16 %v2690_v4, %v2689_v3  ;;  %v1850_v7 = vsel %vm9879_vm5, %v1845_v62, %v1849_v35  ;;  %v3022_v8 = vsel %vm3002_vm12, %v2989_v59, %v11274_v52  ;;  %3782 = vst [vmem:[#allocation2 + $0x2c] sm:$0x1] %v3781_v42  ;;  %v4389_v14 = vrot.slane %v3908_v13, 5  ;;  %v11340_v52 = vld [vmem:[%s13361_s2] ss:$0 sm:$0xff]  ;;  %v3188_v13 = vpop.f32.mrf.mxu0 }
 0x1b0   : > { %v2687_v46 = vunpack.c.l.b16 %v1850_v7  ;;  %v8498_v26 = vrot.slane %v702_v19, 9  ;;  %v1860_v38 = vsel %vm9879_vm5, %v1855_v28, %v1859_v18  ;;  %v855_v44 = vrot.slane %v11159_v55, 5  ;;  %13382 = vst [vmem:[#allocation6_spill] sm:$0xff] %v11356_v43  ;;  %v703_v18 = vld [vmem:[%s9843_s26 + $0xb4] sm:$0xe] }
 0x1b1   : > { %2737 = vrot.lane.b32.xlu1 %v2707_v24, %s9791_s9  ;;  %v858_v45 = vrot.slane %v11165_v37, 5  ;;  %v3187_v39 = vadd.f32 %v11340_v52, %v3186_v47  ;;  %v2688_v33 = vunpack.c.l.b16 %v1860_v38  ;;  %v4387_v22 = vsel %vm9849_vm4, %v8878_v1, %v4386_v61  ;;  %v283_v37 = vld [vmem:[%s9843_s26 + $0xb4] sm:$0xf]  ;;  %v9481_v24 = vld [vmem:[%s9843_s26 + $0x78] sm:$0xff] }
 0x1b2   : > { %v4388_v25 = vrot.slane %v4386_v61, 4  ;;  %v3055_v55 = vsel %vm3035_vm13, %v3022_v8, %v2728_v50  ;;  %v5847_v20 = vunpack.c.l.b16 %v4387_v22  ;;  %v856_v29 = vsel %vm9849_vm4, %v8498_v26, %v855_v44 }
 0x1b3   : > { %v857_v15 = vrot.slane %v855_v44, 4  ;;  %vm3257_vm6 = vcmp.gt.f32.partialorder %v3187_v39, 0.0  ;;  %v2706_v35 = vpack.c.b16 %v2688_v33, %v2687_v46  ;;  %v2257_v31 = vunpack.c.l.b16 %v856_v29  ;;  %v8562_v44 = vld [vmem:[%s9843_s26 + $0xb4] sm:$0xe] }
 0x1b4   : > { %v4390_v41 = vsel %vm9849_vm4, %v4388_v25, %v4389_v14  ;;  %v3289_v56 = vmul.f32 0.01, %v3187_v39  ;;  %v665_v3 = vshrl.u32 %v283_v37, 16  ;;  %v668_v48 = vshll.u32 %v283_v37, 16 }
 0x1b5   : > { %v5848_v50 = vunpack.c.l.b16 %v4390_v41  ;;  %v859_v60 = vsel %vm9849_vm4, %v857_v15, %v858_v45  ;;  %2735 = vrot.lane.b32.xlu2 %v2706_v35, %s9791_s9  ;;  %v674_v62 = vshll.u32 %v284_v21, 16  ;;  %v678_v27 = vshrl.u32 %v284_v21, 16  ;;  %v9524_v19 = vld [vmem:[#allocation2 + $0x24] sm:$0xff]  ;;  %v11373_v15 = vpop.permute.xlu0 %2553  ;;  %v11375_v35 = vpop.permute.xlu1 %2649  ;;  %v3783_v41 = vld [vmem:[#allocation2 + $0x30] sm:$0xf] }
 0x1b6   : > { %v2258_v47 = vunpack.c.l.b16 %v859_v60  ;;  %v3321_v4 = vsel %vm3257_vm6, %v3187_v39, %v3289_v56  ;;  %v667_v59 = vrot.slane %v665_v3, 4  ;;  %v670_v1 = vrot.slane %v668_v48, 5  ;;  %v11386_v3 = vpop.f32.mrf.mxu1 }
 0x1b7   : > { %v5877_v57 = vpack.c.b16 %v5848_v50, %v5847_v20  ;;  %v3407_v42 = vpack.c.bf16 %v3321_v4, %v3321_v4  ;;  %v676_v28 = vrot.slane %v674_v62, 5  ;;  %v680_v8 = vrot.slane %v678_v27, 4  ;;  %v11394_v27 = vpop.f32.mrf.mxu0 }
 0x1b8   : > { %v2275_v7 = vpack.c.b16 %v2258_v47, %v2257_v31  ;;  %v684_v46 = vshll.u32 %v300_v53, 16  ;;  %v671_v26 = vor.u32 %v670_v1, %v667_v59  ;;  %v8499_v38 = vrot.slane %v703_v18, 9  ;;  %v8530_v59 = vld [vmem:[%s9843_s26 + $0xc0] sm:$0xf] }
 0x1b9   : > { %7716 = vmatmul.bf16.gmra.mxu1 %v5877_v57  ;;  %v3488_v61 = vshrl.u32 %v3407_v42, 16  ;;  %v3491_v14 = vshll.u32 %v3407_v42, 16  ;;  %v681_v45 = vor.u32 %v680_v8, %v676_v28  ;;  %v862_v33 = vrot.slane %v284_v21, 5 }
 0x1ba   : > { %v686_v39 = vrot.slane %v684_v46, 5  ;;  %v865_v22 = vrot.slane %v300_v53, 5  ;;  %7543 = vmatmul.bf16.gmra.mxu2 %v9524_v19  ;;  %v672_v37 = vrot.slane %v671_v26, 4  ;;  %v2854_v20 = vsel %vm2821_vm7, %v9481_v24, %v11307_v2  ;;  %v11384_v53 = vpop.permute.xlu2 %2729  ;;  %v8547_v26 = vld [vmem:[%s9843_s26 + $0xc8] sm:$0x1] }
 0x1bb   : > { %v11367_v25 = vrot.slane %v3488_v61, 7  ;;  %v3088_v29 = vsel %vm3068_vm14, %v3055_v55, %v11303_v40  ;;  %v682_v31 = vrot.slane %v681_v45, 4  ;;  %v863_v21 = vsel %vm9849_vm4, %v8499_v38, %v862_v33 }
 0x1bc   : > { %v864_v56 = vrot.slane %v862_v33, 4  ;;  %8869 = vmatmul.msk.bf16.gmra.mxu0 %vm3125_vm15, %v3088_v29  ;;  %v8578_v50 = vrot.slane %v8562_v44, 9  ;;  %v677_v40 = vsel %vm9879_vm5, %v672_v37, %v676_v28  ;;  %v2259_v55 = vunpack.c.l.b16 %v863_v21  ;;  %v8531_v28 = vld [vmem:[%s9843_s26 + $0xc4] sm:$0xf] }
 0x1bd   : > { %v3493_v60 = vor.u32 %v3491_v14, %v11367_v25  ;;  %v3494_v2 = vrot.slane %v11367_v25, 4  ;;  %2305 = vrot.lane.b32.xlu2 %v2275_v7, %s9787_s29  ;;  %v687_v48 = vsel %vm9879_vm5, %v682_v31, %v686_v39  ;;  %v2179_v47 = vunpack.c.l.b16 %v677_v40 }
 0x1be   : > { %v866_v4 = vsel %vm9849_vm4, %v864_v56, %v865_v22  ;;  %v1464_v62 = vrot.slane %v11214_v54, 5  ;;  %v2180_v19 = vunpack.c.l.b16 %v687_v48  ;;  %v1467_v42 = vrot.slane %v11225_v6, 5  ;;  %v8563_v6 = vld [vmem:[%s9843_s26 + $0xc0] sm:$0xe] }
 0x1bf   : > { %v3784_v18 = vsel %vm10933_vm3, %v3493_v60, %v3783_v41  ;;  %v2260_v57 = vunpack.c.l.b16 %v866_v4  ;;  %v3189_v7 = vadd.f32 %v11340_v52, %v3188_v13  ;;  %v2892_v54 = vsel %vm2870_vm8, %v2854_v20, %v11343_v17  ;;  %v8642_v56 = vld [vmem:[%s9843_s26 + $0xc0] sm:$0xe]  ;;  %v11417_v60 = vpop.permute.xlu1 %2219 }
 0x1c0   : > { %3785 = vst [vmem:[#allocation2 + $0x30] sm:$0xf] %v3784_v18  ;;  %v1465_v1 = vsel %vm9849_vm4, %v8578_v50, %v1464_v62  ;;  %v1466_v24 = vrot.slane %v1464_v62, 4  ;;  %v2196_v8 = vpack.c.b16 %v2180_v19, %v2179_v47  ;;  %v2925_v14 = vsel %vm2903_vm9, %v2892_v54, %v11345_v30  ;;  %v11415_v50 = vpop.permute.xlu0 %2809 }
 0x1c1   : > { %v2276_v46 = vpack.c.b16 %v2260_v57, %v2259_v55  ;;  %v2513_v61 = vunpack.c.l.b16 %v1465_v1  ;;  %vm3258_vm0 = vcmp.gt.f32.partialorder %v3189_v7, 0.0  ;;  %v3290_v44 = vmul.f32 0.01, %v3189_v7 }
 0x1c2   : > { %v1468_v38 = vsel %vm9849_vm4, %v1466_v24, %v1467_v42  ;;  %v1277_v45 = vshrl.u32 %v8530_v59, 16  ;;  %2227 = vrot.lane.b32.xlu0 %v2196_v8, %s9789_s7  ;;  %v1280_v13 = vshll.u32 %v8530_v59, 16  ;;  %v1286_v39 = vshll.u32 %v8531_v28, 16  ;;  %v11419_v4 = vpop.permute.xlu2 %2299  ;;  %v11424_v42 = vpop.f32.mrf.mxu0 }
 0x1c3   : > { %2307 = vrot.lane.b32.xlu1 %v2276_v46, %s9787_s29  ;;  %v2514_v17 = vunpack.c.l.b16 %v1468_v38  ;;  %v1290_v33 = vshrl.u32 %v8531_v28, 16  ;;  %v3322_v22 = vsel %vm3258_vm0, %v3189_v7, %v3290_v44  ;;  %v1296_v30 = vshll.u32 %v8547_v26, 16  ;;  %v11426_v59 = vpop.f32.mrf.mxu1 }
 0x1c4   : > { %v1279_v37 = vrot.slane %v1277_v45, 4  ;;  %v8579_v20 = vrot.slane %v8563_v6, 9  ;;  %v3408_v41 = vpack.c.bf16 %v3322_v22, %v3322_v22  ;;  %v1282_v31 = vrot.slane %v1280_v13, 5  ;;  %13383 = vst [vmem:[#allocation7_spill] sm:$0xff] %v11426_v59 }
 0x1c5   : > { %v2531_v29 = vpack.c.b16 %v2514_v17, %v2513_v61  ;;  %v1288_v21 = vrot.slane %v1286_v39, 5  ;;  %v1292_v40 = vrot.slane %v1290_v33, 4  ;;  %v1298_v55 = vrot.slane %v1296_v30, 5  ;;  %v8610_v39 = vld [vmem:[%s9843_s26 + $0xcc] sm:$0xf] }
 0x1c6   : > { %v1471_v48 = vrot.slane %v8531_v28, 5  ;;  %v1474_v47 = vrot.slane %v8547_v26, 5  ;;  %v3496_v62 = vshrl.u32 %v3408_v41, 16  ;;  %v3499_v18 = vshll.u32 %v3408_v41, 16  ;;  %v3787_v26 = vld [vmem:[#allocation2 + $0x38] sm:$0x1] }
 0x1c7   : > { %2561 = vrot.lane.b32.xlu2 %v2531_v29, %s9792_s10  ;;  %v1283_v19 = vor.u32 %v1282_v31, %v1279_v37  ;;  %v2958_v57 = vsel %vm2936_vm10, %v2925_v14, %v11354_v58  ;;  %v1293_v1 = vor.u32 %v1292_v40, %v1288_v21  ;;  %v8658_v54 = vrot.slane %v8642_v56, 9  ;;  %v8627_v41 = vld [vmem:[%s9843_s26 + $0xd4] sm:$0x1]  ;;  %v3881_v31 = vld [vmem:[#allocation2 + $0x28] sm:$0xf]  ;;  %v11453_v40 = vpop.permute.xlu1 %2475 }
 0x1c8   : > { %v1472_v24 = vsel %vm9849_vm4, %v8579_v20, %v1471_v48  ;;  %v1473_v7 = vrot.slane %v1471_v48, 4  ;;  %v3498_v28 = vrot.slane %v3496_v62, 7  ;;  %v2073_v61 = vrot.slane %v11288_v63, 5  ;;  %v11451_v56 = vpop.permute.xlu0 %2395 }
 0x1c9   : > { %v1284_v8 = vrot.slane %v1283_v19, 4  ;;  %v2515_v46 = vunpack.c.l.b16 %v1472_v24  ;;  %v1294_v6 = vrot.slane %v1293_v1, 4  ;;  %v2076_v14 = vrot.slane %v11291_v11, 5  ;;  %v8611_v11 = vld [vmem:[%s9843_s26 + $0xd0] sm:$0xf] }
 0x1ca   : > { %v1475_v58 = vsel %vm9849_vm4, %v1473_v7, %v1474_v47  ;;  %v2991_v38 = vsel %vm13380_vm2, %v2958_v57, %v11373_v15  ;;  %v3501_v44 = vor.u32 %v3499_v18, %v3498_v28  ;;  %v3503_v45 = vrot.slane %v3498_v28, 4  ;;  %v3909_v47 = vld [vmem:[#allocation2 + $0x2c] sm:$0x1]  ;;  %v11459_v62 = vpop.permute.xlu2 %2555  ;;  %v8643_v24 = vld [vmem:[%s9843_s26 + $0xcc] sm:$0xe]  ;;  %v11463_v7 = vpop.f32.mrf.mxu0 }
 0x1cb   : > { %v1289_v17 = vsel %vm9879_vm5, %v1284_v8, %v1288_v21  ;;  %v2516_v13 = vunpack.c.l.b16 %v1475_v58  ;;  %v1299_v63 = vsel %vm9879_vm5, %v1294_v6, %v1298_v55  ;;  %v2074_v22 = vsel %vm9849_vm4, %v8658_v54, %v2073_v61  ;;  %v4309_v21 = vld [vmem:[#allocation2 + $0x24] sm:$0xe]  ;;  %v11466_v58 = vpop.f32.mrf.mxu1 }
 0x1cc   : > { %v2435_v33 = vunpack.c.l.b16 %v1289_v17  ;;  %v2075_v37 = vrot.slane %v2073_v61, 4  ;;  %v3502_v15 = vsel %vm11030_vm1, %v3494_v2, %v3501_v44  ;;  %v3788_v30 = vsel %vm11037_vm11, %v3503_v45, %v3787_v26  ;;  %v9600_v17 = vld [vmem:[%s13362_s3 + $0xf8] sm:$0xff] }
 0x1cd   : > { %v2436_v20 = vunpack.c.l.b16 %v1299_v63  ;;  %v2532_v29 = vpack.c.b16 %v2516_v13, %v2515_v46  ;;  %3786 = vst [vmem:[#allocation2 + $0x34] sm:$0xf] %v3502_v15  ;;  %v2769_v55 = vunpack.c.l.b16 %v2074_v22  ;;  %v3024_v2 = vsel %vm3002_vm12, %v2991_v38, %v11375_v35  ;;  %v9482_v22 = vld [vmem:[%s9843_s26 + $0x84] sm:$0xff]  ;;  %7787 = vmatpush.bf16.msrb.mxu0 %v9600_v17 }
 0x1ce   : > { %v2077_v25 = vsel %vm9849_vm4, %v2075_v37, %v2076_v14  ;;  %v1886_v48 = vshrl.u32 %v8610_v39, 16  ;;  %3789 = vst [vmem:[#allocation2 + $0x38] sm:$0x1] %v3788_v30  ;;  %v1889_v57 = vshll.u32 %v8610_v39, 16  ;;  %v1895_v1 = vshll.u32 %v8611_v11, 16 }
 0x1cf   : > { %v2452_v18 = vpack.c.b16 %v2436_v20, %v2435_v33  ;;  %2563 = vrot.lane.b32.xlu1 %v2532_v29, %s9792_s10  ;;  %v2770_v19 = vunpack.c.l.b16 %v2077_v25  ;;  %v1899_v28 = vshrl.u32 %v8611_v11, 16  ;;  %v1905_v8 = vshll.u32 %v8627_v41, 16 }
 0x1d0   : > { %v1888_v54 = vrot.slane %v1886_v48, 4  ;;  %v8879_v46 = vrot.slane %v4309_v21, 9  ;;  %v1891_v61 = vrot.slane %v1889_v57, 5  ;;  %v1897_v26 = vrot.slane %v1895_v1, 5  ;;  %v2652_v48 = vpop.permute.xlu0 %2651 }
 0x1d1   : > { %2483 = vrot.lane.b32.xlu0 %v2452_v18, %s9790_s8  ;;  %v2787_v35 = vpack.c.b16 %v2770_v19, %v2769_v55  ;;  %v4393_v6 = vrot.slane %v3881_v31, 5  ;;  %v1901_v14 = vrot.slane %v1899_v28, 4  ;;  %v1907_v38 = vrot.slane %v1905_v8, 5  ;;  %v4310_v28 = vld [vmem:[#allocation2 + $0x30] sm:$0xe] }
 0x1d2   : > { %v4396_v44 = vrot.slane %v3909_v47, 5  ;;  %v8659_v45 = vrot.slane %v8643_v24, 9  ;;  %v1892_v13 = vor.u32 %v1891_v61, %v1888_v54  ;;  %v2080_v33 = vrot.slane %v8611_v11, 5  ;;  %v2732_v11 = vpop.permute.xlu1 %2731  ;;  %v9502_v54 = vld [vmem:[%s9843_s26 + $0xc0] sm:$0xff]  ;;  %v11495_v8 = vpop.f32.mrf.mxu0 }
 0x1d3   : > { %2817 = vrot.lane.b32.xlu2 %v2787_v35, %s9788_s30  ;;  %v4394_v39 = vsel %vm9849_vm4, %v8879_v46, %v4393_v6  ;;  %v4395_v63 = vrot.slane %v4393_v6, 4  ;;  %v1902_v37 = vor.u32 %v1901_v14, %v1897_v26  ;;  %v2083_v30 = vrot.slane %v8627_v41, 5  ;;  %v9599_v41 = vld [vmem:[%s13362_s3 + $0xf0] sm:$0xff] }
 0x1d4   : > { %v5849_v15 = vunpack.c.l.b16 %v4394_v39  ;;  %v3057_v20 = vsel %vm3035_vm13, %v3024_v2, %v11384_v53  ;;  %v1893_v29 = vrot.slane %v1892_v13, 4  ;;  %v2081_v21 = vsel %vm9849_vm4, %v8659_v45, %v2080_v33  ;;  %v9525_v55 = vld [vmem:[#allocation2 + $0x30] sm:$0xff]  ;;  %7788 = vmatpush.bf16.msrb.mxu0 %v9599_v41 }
 0x1d5   : > { %v4397_v31 = vsel %vm9849_vm4, %v4395_v63, %v4396_v44  ;;  %v2082_v25 = vrot.slane %v2080_v33, 4  ;;  %v1903_v47 = vrot.slane %v1902_v37, 4  ;;  %v2771_v53 = vunpack.c.l.b16 %v2081_v21  ;;  %7548 = vmatmul.bf16.gmra.mxu2 %v9525_v55  ;;  %v9598_v44 = vld [vmem:[%s13362_s3 + $0xe8] sm:$0xff]  ;;  %v3910_v13 = vld [vmem:[#allocation2 + $0x38] sm:$0x1]  ;;  %v11512_v37 = vpop.f32.mrf.mxu1  ;;  %v9597_v55 = vld [vmem:[%s13362_s3 + $0xe0] sm:$0xff] }
 0x1d6   : > { %v5850_v18 = vunpack.c.l.b16 %v4397_v31  ;;  %v3192_v2 = vadd.f32 %v11340_v52, %v11394_v27  ;;  %v1898_v19 = vsel %vm9879_vm5, %v1893_v29, %v1897_v26  ;;  %v2857_v1 = vsel %vm2821_vm7, %v9482_v22, %v11417_v60  ;;  %v3883_v26 = vld [vmem:[#allocation2 + $0x34] sm:$0xf]  ;;  %13384 = vst [vmem:[#allocation8_spill] sm:$0xff] %v11512_v37 }
 0x1d7   : > { %v2084_v57 = vsel %vm9849_vm4, %v2082_v25, %v2083_v30  ;;  %v3090_v24 = vsel %vm3068_vm14, %v3057_v20, %v11415_v50  ;;  %v1908_v27 = vsel %vm9879_vm5, %v1903_v47, %v1907_v38  ;;  %v2691_v46 = vunpack.c.l.b16 %v1898_v19  ;;  %v2812_v6 = vpop.permute.xlu2 %2811  ;;  %v9483_v30 = vld [vmem:[%s9843_s26 + $0x90] sm:$0xff] }
 0x1d8   : > { %v5878_v35 = vpack.c.b16 %v5850_v18, %v5849_v15  ;;  %v2772_v61 = vunpack.c.l.b16 %v2084_v57  ;;  %8870 = vmatmul.msk.bf16.gmra.mxu0 %vm3125_vm15, %v3090_v24  ;;  %v2692_v14 = vunpack.c.l.b16 %v1908_v27  ;;  %vm3259_vm6 = vcmp.gt.f32.partialorder %v3192_v2, 0.0  ;;  %v2222_v21 = vpop.permute.xlu0 %2221  ;;  %v9518_v18 = vld [vmem:[%s9843_s26 + $0xcc] sm:$0xff]  ;;  %v3790_v24 = vld [vmem:[#allocation2 + $0x3c] sm:$0xf] }
 0x1d9   : > { %v3291_v60 = vmul.f32 0.01, %v3192_v2  ;;  %v2894_v50 = vsel %vm2870_vm8, %v2857_v1, %v11419_v4  ;;  %v3194_v45 = vadd.f32 %v11340_v52, %v11424_v42  ;;  %v8880_v39 = vrot.slane %v4310_v28, 9  ;;  %7789 = vmatpush.bf16.msrb.mxu0 %v9598_v44 }
 0x1da   : > { %7721 = vmatmul.bf16.gmra.mxu1 %v5878_v35  ;;  %v2788_v38 = vpack.c.b16 %v2772_v61, %v2771_v53  ;;  %v2927_v17 = vsel %vm2903_vm9, %v2894_v50, %v11451_v56  ;;  %v2708_v63 = vpack.c.b16 %v2692_v14, %v2691_v46  ;;  %v4400_v22 = vrot.slane %v3883_v26, 5  ;;  %v2302_v25 = vpop.permute.xlu1 %2301 }
 0x1db   : > { %v3323_v33 = vsel %vm3259_vm6, %v3192_v2, %v3291_v60  ;;  %2403 = vrot.lane.b32.xlu2 %v9502_v54, %s9785_s27  ;;  %v2960_v4 = vsel %vm2936_vm10, %v2927_v17, %v11453_v40  ;;  %vm3260_vm0 = vcmp.gt.f32.partialorder %v3194_v45, 0.0  ;;  %v3292_v42 = vmul.f32 0.01, %v3194_v45 }
 0x1dc   : > { %2819 = vrot.lane.b32.xlu1 %v2788_v38, %s9788_s30  ;;  %v3409_v15 = vpack.c.bf16 %v3323_v33, %v3323_v33  ;;  %v2993_v56 = vsel %vm13380_vm2, %v2960_v4, %v11459_v62  ;;  %2739 = vrot.lane.b32.xlu0 %v2708_v63, %s9791_s9  ;;  %v4401_v20 = vsel %vm9849_vm4, %v8880_v39, %v4400_v22  ;;  %v4402_v29 = vrot.slane %v4400_v22, 4 }
 0x1dd   : > { %v4403_v40 = vrot.slane %v3910_v13, 5  ;;  %v3026_v31 = vsel %vm3002_vm12, %v2993_v56, %v2652_v48  ;;  %v3324_v47 = vsel %vm3260_vm0, %v3194_v45, %v3292_v42  ;;  %v3197_v19 = vadd.f32 %v11340_v52, %v11463_v7  ;;  %v3201_v48 = vpop.f32.mrf.mxu0  ;;  %7790 = vmatpush.bf16.msrb.mxu0 %v9597_v55  ;;  %v3794_v13 = vld [vmem:[#allocation2 + $0x44] sm:$0x1] }
 0x1de   : > { %v3505_v41 = vshrl.u32 %v3409_v15, 16  ;;  %v3410_v62 = vpack.c.bf16 %v3324_v47, %v3324_v47  ;;  %v3059_v2 = vsel %vm3035_vm13, %v3026_v31, %v2732_v11  ;;  %v3508_v1 = vshll.u32 %v3409_v15, 16  ;;  %v9596_v11 = vld [vmem:[%s13362_s3 + $0xd8] sm:$0xff] }
 0x1df   : > { %v4404_v53 = vsel %vm9849_vm4, %v4402_v29, %v4403_v40  ;;  %v5851_v54 = vunpack.c.l.b16 %v4401_v20  ;;  %v2860_v28 = vsel %vm2821_vm7, %v9483_v30, %v2222_v21  ;;  %vm3261_vm6 = vcmp.gt.f32.partialorder %v3197_v19, 0.0  ;;  %v2398_v61 = vpop.permute.xlu2 %2397 }
 0x1e0   : > { %v3507_v57 = vrot.slane %v3505_v41, 7  ;;  %v3513_v27 = vshrl.u32 %v3410_v62, 16  ;;  %v5852_v46 = vunpack.c.l.b16 %v4404_v53  ;;  %v3293_v35 = vmul.f32 0.01, %v3197_v19  ;;  %v2478_v42 = vpop.permute.xlu0 %2477  ;;  %v3797_v53 = vld [vmem:[#allocation2 + $0x48] sm:$0xf] }
 0x1e1   : > { %v3516_v14 = vshll.u32 %v3410_v62, 16  ;;  %v3092_v7 = vsel %vm3068_vm14, %v3059_v2, %v2812_v6  ;;  %v2896_v60 = vsel %vm2870_vm8, %v2860_v28, %v2302_v25  ;;  %v3199_v45 = vadd.f32 %v11340_v52, %v11495_v8  ;;  %v9595_v6 = vld [vmem:[%s13362_s3 + $0xd0] sm:$0xff]  ;;  %7791 = vmatpush.bf16.msrb.mxu0 %v9596_v11  ;;  %v11547_v8 = vpop.f32.mrf.mxu1  ;;  %v9594_v2 = vld [vmem:[%s13362_s3 + $0xc8] sm:$0xff] }
 0x1e2   : > { %v3510_v26 = vor.u32 %v3508_v1, %v3507_v57  ;;  %v3511_v50 = vrot.slane %v3507_v57, 4  ;;  %v3515_v44 = vrot.slane %v3513_v27, 7  ;;  %v3325_v38 = vsel %vm3261_vm6, %v3197_v19, %v3293_v35  ;;  %v2558_v25 = vpop.permute.xlu1 %2557  ;;  %v3801_v11 = vld [vmem:[#allocation2 + $0x50] sm:$0x1] }
 0x1e3   : > { %2659 = vrot.lane.b32.xlu2 %v9518_v18, %s9786_s28  ;;  %v3411_v39 = vpack.c.bf16 %v3325_v38, %v3325_v38  ;;  %v2929_v63 = vsel %vm2903_vm9, %v2896_v60, %v2398_v61  ;;  %v3202_v33 = vadd.f32 %v11340_v52, %v3201_v48  ;;  %vm3262_vm0 = vcmp.gt.f32.partialorder %v3199_v45, 0.0 }
 0x1e4   : > { %v3791_v17 = vsel %vm10933_vm3, %v3510_v26, %v3790_v24  ;;  %v3518_v4 = vor.u32 %v3516_v14, %v3515_v44  ;;  %v3520_v22 = vrot.slane %v3515_v44, 4  ;;  %v3294_v15 = vmul.f32 0.01, %v3199_v45  ;;  %v9593_v14 = vld [vmem:[%s13362_s3 + $0xc0] sm:$0xff] }
 0x1e5   : > { %3792 = vst [vmem:[#allocation2 + $0x3c] sm:$0xf] %v3791_v17  ;;  %v5879_v56 = vpack.c.b16 %v5852_v46, %v5851_v54  ;;  %v3522_v30 = vshrl.u32 %v3411_v39, 16  ;;  %v3525_v20 = vshll.u32 %v3411_v39, 16  ;;  %v2962_v29 = vsel %vm2936_vm10, %v2929_v63, %v2478_v42  ;;  %v3203_v55 = vpop.f32.mrf.mxu0  ;;  %7792 = vmatpush.bf16.msrb.mxu0 %v9595_v6 }
 0x1e6   : > { %v3519_v40 = vsel %vm11030_vm1, %v3511_v50, %v3518_v4  ;;  %v3795_v31 = vsel %vm11037_vm11, %v3520_v22, %v3794_v13  ;;  %v3326_v21 = vsel %vm3262_vm0, %v3199_v45, %v3294_v15  ;;  %vm3263_vm2 = vcmp.gt.f32.partialorder %v3202_v33, 0.0 }
 0x1e7   : > { %3793 = vst [vmem:[#allocation2 + $0x40] sm:$0xf] %v3519_v40  ;;  %v3524_v41 = vrot.slane %v3522_v30, 7  ;;  %v3412_v47 = vpack.c.bf16 %v3326_v21, %v3326_v21  ;;  %v3295_v62 = vmul.f32 0.01, %v3202_v33  ;;  %v3204_v18 = vadd.f32 %v11340_v52, %v3203_v55  ;;  %v2654_v46 = vpop.permute.xlu2 %2653 }
 0x1e8   : > { %8871 = vmatmul.msk.bf16.gmra.mxu0 %vm3125_vm15, %v3092_v7  ;;  %3796 = vst [vmem:[#allocation2 + $0x44] sm:$0x1] %v3795_v31  ;;  %vm13385_vm6 = vcmask 162816   ;;  %v3804_v30 = vld [vmem:[#allocation2 + $0x54] sm:$0xf] }
 0x1e9   : > { %v3527_v19 = vor.u32 %v3525_v20, %v3524_v41  ;;  %v3530_v48 = vshrl.u32 %v3412_v47, 16  ;;  %v2995_v57 = vsel %vm13385_vm6, %v2962_v29, %v2558_v25  ;;  %v3327_v1 = vsel %vm3263_vm2, %v3202_v33, %v3295_v62  ;;  %7793 = vmatpush.bf16.msrb.mxu0 %v9594_v2 }
 0x1ea   : > { %7726 = vmatmul.bf16.gmra.mxu1 %v5879_v56  ;;  %vm3264_vm0 = vcmp.gt.f32.partialorder %v3204_v18, 0.0  ;;  %v3296_v24 = vmul.f32 0.01, %v3204_v18  ;;  %v3533_v27 = vshll.u32 %v3412_v47, 16  ;;  %v3413_v61 = vpack.c.bf16 %v3327_v1, %v3327_v1  ;;  %v11571_v56 = vpop.f32.mrf.mxu1 }
 0x1eb   : > { %v3798_v54 = vsel %vm10933_vm3, %v3527_v19, %v3797_v53  ;;  %v3532_v28 = vrot.slane %v3530_v48, 7  ;;  %v3528_v7 = vrot.slane %v3524_v41, 4  ;;  %v3028_v17 = vsel %vm3002_vm12, %v2995_v57, %v2654_v46  ;;  %13386 = vst [vmem:[#allocation9_spill] sm:$0xff] %v11571_v56  ;;  %v2814_v29 = vpop.permute.xlu1 %2813  ;;  %v3808_v19 = vld [vmem:[#allocation2 + $0x5c] sm:$0x1] }
 0x1ec   : > { %v4311_v35 = vld [vmem:[#allocation2 + $0x3c] sm:$0xe]  ;;  %3799 = vst [vmem:[#allocation2 + $0x48] sm:$0xf] %v3798_v54  ;;  %v3328_v26 = vsel %vm3264_vm0, %v3204_v18, %v3296_v24  ;;  %v3539_v44 = vshrl.u32 %v3413_v61, 16  ;;  %v3542_v63 = vshll.u32 %v3413_v61, 16 }
 0x1ed   : > { %v3535_v60 = vor.u32 %v3533_v27, %v3532_v28  ;;  %v3537_v50 = vrot.slane %v3532_v28, 4  ;;  %v2734_v38 = vpop.permute.xlu0 %2733  ;;  %v8881_v39 = vrot.slane %v4311_v35, 9  ;;  %v3414_v33 = vpack.c.bf16 %v3328_v26, %v3328_v26  ;;  %7794 = vmatpush.bf16.msrb.mxu0 %v9593_v14 }
 0x1ee   : > { %v9526_v45 = vld [vmem:[#allocation2 + $0x3c] sm:$0xff]  ;;  %v3541_v42 = vrot.slane %v3539_v44, 7  ;;  %v3061_v20 = vsel %vm3035_vm13, %v3028_v17, %v2734_v38  ;;  %vm13388_vm0 = vcmask 162816  }
 0x1ef   : > { %v3885_v13 = vld [vmem:[#allocation2 + $0x40] sm:$0xf]  ;;  %v3536_v6 = vsel %vm11030_vm1, %v3528_v7, %v3535_v60  ;;  %v3802_v4 = vsel %vm11037_vm11, %v3537_v50, %v3801_v11  ;;  %v3911_v22 = vld [vmem:[#allocation2 + $0x44] sm:$0x1]  ;;  %7553 = vmatmul.bf16.gmra.mxu2 %v9526_v45  ;;  %v3547_v40 = vshrl.u32 %v3414_v33, 16  ;;  %v3550_v47 = vshll.u32 %v3414_v33, 16 }
 0x1f0   : > { %v4407_v15 = vrot.slane %v3885_v13, 5  ;;  %3800 = vst [vmem:[#allocation2 + $0x4c] sm:$0xf] %v3536_v6  ;;  %v4410_v25 = vrot.slane %v3911_v22, 5  ;;  %v3544_v55 = vor.u32 %v3542_v63, %v3541_v42  ;;  %v3545_v18 = vrot.slane %v3541_v42, 4  ;;  %v9484_v17 = vld [vmem:[%s9843_s26 + $0x9c] sm:$0xff] }
 0x1f1   : > { %3803 = vst [vmem:[#allocation2 + $0x50] sm:$0x1] %v3802_v4  ;;  %v3549_v41 = vrot.slane %v3547_v40, 7  ;;  %v3094_v2 = vsel %vm3068_vm14, %v3061_v20, %v2814_v29 }
 0x1f2   : > { %v4408_v31 = vsel %vm9849_vm4, %v8881_v39, %v4407_v15  ;;  %v4409_v21 = vrot.slane %v4407_v15, 4  ;;  %v3805_v53 = vsel %vm10933_vm3, %v3544_v55, %v3804_v30  ;;  %v11586_v11 = vpop.f32.mrf.mxu1 }
 0x1f3   : > { %v5853_v48 = vunpack.c.l.b16 %v4408_v31  ;;  %3806 = vst [vmem:[#allocation2 + $0x54] sm:$0xf] %v3805_v53  ;;  %v3552_v1 = vor.u32 %v3550_v47, %v3549_v41  ;;  %v3554_v24 = vrot.slane %v3549_v41, 4  ;;  %v4312_v60 = vld [vmem:[#allocation2 + $0x48] sm:$0xe]  ;;  %v2400_v33 = vpop.permute.xlu1 %2399 }
 0x1f4   : > { %v4411_v62 = vsel %vm9849_vm4, %v4409_v21, %v4410_v25  ;;  %v8882_v13 = vrot.slane %v4312_v60, 9 }
 0x1f5   : > { %v5854_v57 = vunpack.c.l.b16 %v4411_v62  ;;  %v3553_v28 = vsel %vm11030_vm1, %v3545_v18, %v3552_v1  ;;  %v3809_v27 = vsel %vm11037_vm11, %v3554_v24, %v3808_v19  ;;  %v2304_v26 = vpop.permute.xlu0 %2303  ;;  %v2224_v7 = vpop.permute.xlu2 %2223  ;;  %v9537_v62 = vld [vmem:[#allocation2 + $0xc] sm:$0xff]  ;;  %v3811_v19 = vld [vmem:[#allocation2 + $0x60] sm:$0xf] }
 0x1f6   : > { %3807 = vst [vmem:[#allocation2 + $0x58] sm:$0xf] %v3553_v28  ;;  %v2863_v42 = vsel %vm2821_vm7, %v9484_v17, %v2224_v7 }
 0x1f7   : > { %v5880_v54 = vpack.c.b16 %v5854_v57, %v5853_v48  ;;  %v3887_v46 = vld [vmem:[#allocation2 + $0x4c] sm:$0xf]  ;;  %3810 = vst [vmem:[#allocation2 + $0x5c] sm:$0x1] %v3809_v27  ;;  %v2898_v30 = vsel %vm2870_vm8, %v2863_v42, %v2304_v26 }
 0x1f8   : > { %8872 = vmatmul.msk.bf16.gmra.mxu0 %vm3125_vm15, %v3094_v2  ;;  %v4414_v35 = vrot.slane %v3887_v46, 5  ;;  %v3912_v61 = vld [vmem:[#allocation2 + $0x50] sm:$0x1]  ;;  %v9527_v44 = vld [vmem:[#allocation2 + $0x48] sm:$0xff]  ;;  %v2931_v2 = vsel %vm2903_vm9, %v2898_v30, %v2400_v33 }
 0x1f9   : > { %v4417_v38 = vrot.slane %v3912_v61, 5 }
 0x1fa   : > { %7731 = vmatmul.bf16.gmra.mxu1 %v5880_v54  ;;  %v4416_v14 = vrot.slane %v4414_v35, 4  ;;  %v4415_v6 = vsel %vm9849_vm4, %v8882_v13, %v4414_v35  ;;  %v11596_v21 = vpop.f32.mrf.mxu1  ;;  %v4313_v7 = vld [vmem:[#allocation2 + $0x54] sm:$0xe] }
 0x1fb   : > { %v3206_v50 = vpop.f32.mrf.mxu0  ;;  %v5855_v20 = vunpack.c.l.b16 %v4415_v6  ;;  %13387 = vst [vmem:[#allocation10_spill] sm:$0xff] %v11596_v21  ;;  %v2656_v28 = vpop.permute.xlu1 %2655 }
 0x1fc   : > { %v3207_v45 = vadd.f32 %v11340_v52, %v3206_v50  ;;  %v4418_v39 = vsel %vm9849_vm4, %v4416_v14, %v4417_v38 }
 0x1fd   : > { %v5856_v22 = vunpack.c.l.b16 %v4418_v39  ;;  %v3889_v31 = vld [vmem:[#allocation2 + $0x58] sm:$0xf]  ;;  %v2560_v25 = vpop.permute.xlu0 %2559  ;;  %v3815_v39 = vld [vmem:[#allocation2 + $0x68] sm:$0x1] }
 0x1fe   : > { %vm3265_vm2 = vcmp.gt.f32.partialorder %v3207_v45, 0.0  ;;  %v3297_v63 = vmul.f32 0.01, %v3207_v45  ;;  %v4421_v57 = vrot.slane %v3889_v31, 5  ;;  %v3913_v35 = vld [vmem:[#allocation2 + $0x5c] sm:$0x1] }
 0x1ff   : > { %7558 = vmatmul.bf16.gmra.mxu2 %v9527_v44  ;;  %v5881_v47 = vpack.c.b16 %v5856_v22, %v5855_v20  ;;  %v9528_v60 = vld [vmem:[#allocation2 + $0x54] sm:$0xff]  ;;  %v4424_v50 = vrot.slane %v3913_v35, 5 }
 0x200   : > { %v3329_v4 = vsel %vm3265_vm2, %v3207_v45, %v3297_v63  ;;  %v4423_v26 = vrot.slane %v4421_v57, 4  ;;  %v8883_v63 = vrot.slane %v4313_v7, 9 }
 0x201   : > { %v3415_v15 = vpack.c.bf16 %v3329_v4, %v3329_v4 }
 0x202   : > { %v11605_v17 = vpop.f32.mrf.mxu1  ;;  %v4425_v33 = vsel %vm9849_vm4, %v4423_v26, %v4424_v50  ;;  %v4422_v20 = vsel %vm9849_vm4, %v8883_v63, %v4421_v57  ;;  %v9684_v50 = vld [vmem:[%s13362_s3 + $0x28] sm:$0xff] }
 0x203   : > { %v3556_v29 = vshrl.u32 %v3415_v15, 16  ;;  %v3208_v40 = vpop.f32.mrf.mxu0  ;;  %v3559_v53 = vshll.u32 %v3415_v15, 16 }
 0x204   : > { %v3209_v55 = vadd.f32 %v11340_v52, %v3208_v40  ;;  %v2480_v41 = vpop.permute.xlu2 %2479 }
 0x205   : > { %v3558_v18 = vrot.slane %v3556_v29, 7  ;;  %v2964_v54 = vsel %vm2936_vm10, %v2931_v2, %v2480_v41  ;;  %v2816_v13 = vpop.permute.xlu0 %2815  ;;  %v9538_v2 = vld [vmem:[#allocation2 + $0x18] sm:$0xff] }
 0x206   : > { %vm3266_vm6 = vcmp.gt.f32.partialorder %v3209_v55, 0.0  ;;  %v3298_v48 = vmul.f32 0.01, %v3209_v55  ;;  %v2997_v61 = vsel %vm13388_vm0, %v2964_v54, %v2560_v25 }
 0x207   : > { %v3561_v1 = vor.u32 %v3559_v53, %v3558_v18  ;;  %v3030_v44 = vsel %vm3002_vm12, %v2997_v61, %v2656_v28  ;;  %v3562_v4 = vrot.slane %v3558_v18, 4  ;;  %v9682_v18 = vld [vmem:[%s13362_s3 + $0x38] sm:$0xff]  ;;  %v9485_v28 = vld [vmem:[%s9843_s26 + $0xa8] sm:$0xff] }
 0x208   : > { %7795 = vmatmul.bf16.vlgmr.msrb.gmra.mxu0 %v9537_v62  ;;  %v3330_v24 = vsel %vm3266_vm6, %v3209_v55, %v3298_v48  ;;  %v5858_v55 = vunpack.c.l.b16 %v4425_v33  ;;  %v5857_v62 = vunpack.c.l.b16 %v4422_v20  ;;  %v3822_v20 = vld [vmem:[#allocation2 + $0x74] sm:$0x1] }
 0x209   : > { %v3812_v27 = vsel %vm10933_vm3, %v3561_v1, %v3811_v19  ;;  %v3416_v46 = vpack.c.bf16 %v3330_v24, %v3330_v24  ;;  %v9683_v24 = vld [vmem:[%s13362_s3 + $0x30] sm:$0xff] }
 0x20a   : > { %7736 = vmatmul.bf16.gmra.mxu1 %v5881_v47  ;;  %3813 = vst [vmem:[#allocation2 + $0x60] sm:$0xf] %v3812_v27  ;;  %v2226_v47 = vpop.permute.xlu1 %2225  ;;  %v5882_v19 = vpack.c.b16 %v5858_v55, %v5857_v62  ;;  %v11625_v54 = vpop.f32.mrf.mxu1 }
 0x20b   : > { %v3564_v14 = vshrl.u32 %v3416_v46, 16  ;;  %v3567_v45 = vshll.u32 %v3416_v46, 16  ;;  %13389 = vst [vmem:[#allocation11_spill] sm:$0xff] %v11625_v54 }
 0x20d   : > { %v3566_v38 = vrot.slane %v3564_v14, 7  ;;  %v2402_v26 = vpop.permute.xlu0 %2401  ;;  %v3818_v14 = vld [vmem:[#allocation2 + $0x6c] sm:$0xf] }
 0x20f   : > { %v2736_v6 = vpop.permute.xlu2 %2735  ;;  %v3569_v22 = vor.u32 %v3567_v45, %v3566_v38  ;;  %v3571_v15 = vrot.slane %v3566_v38, 4  ;;  %v3211_v42 = vpop.f32.mrf.mxu0  ;;  %7563 = vmatmul.bf16.gmra.mxu2 %v9528_v60 }
 0x210   : > { %v3063_v30 = vsel %vm3035_vm13, %v3030_v44, %v2736_v6  ;;  %v3212_v29 = vadd.f32 %v11340_v52, %v3211_v42  ;;  %v2866_v44 = vsel %vm2821_vm7, %v9485_v28, %v2226_v47  ;;  %v9685_v6 = vld [vmem:[%s13362_s3 + $0x20] sm:$0xff] }
 0x211   : > { %v3096_v40 = vsel %vm3068_vm14, %v3063_v30, %v2816_v13  ;;  %v3570_v31 = vsel %vm11030_vm1, %v3562_v4, %v3569_v22  ;;  %v3816_v25 = vsel %vm11037_vm11, %v3571_v15, %v3815_v39 }
 0x212   : > { %8873 = vmatmul.msk.bf16.vlgmr.msra.gmra.mxu3 %vm3125_vm15, %v3096_v40  ;;  %3814 = vst [vmem:[#allocation2 + $0x64] sm:$0xf] %v3570_v31  ;;  %vm3267_vm2 = vcmp.gt.f32.partialorder %v3212_v29, 0.0  ;;  %v3299_v41 = vmul.f32 0.01, %v3212_v29  ;;  %v11640_v42 = vpop.f32.mrf.mxu1 }
 0x213   : > { %3817 = vst [vmem:[#allocation2 + $0x68] sm:$0x1] %v3816_v25  ;;  %9645 = vmatpush.bf16.msra.mxu3 %v9682_v18 }
 0x214   : > { %v3331_v53 = vsel %vm3267_vm2, %v3212_v29, %v3299_v41  ;;  %v2482_v13 = vpop.permute.xlu1 %2481  ;;  %v4314_v29 = vld [vmem:[#allocation2 + $0x60] sm:$0xe]  ;;  %v9686_v41 = vld [vmem:[%s13362_s3 + $0x18] sm:$0xff] }
 0x215   : > { %v3417_v48 = vpack.c.bf16 %v3331_v53, %v3331_v53  ;;  %v2658_v47 = vpop.permute.xlu0 %2657 }
 0x217   : > { %v3573_v57 = vshrl.u32 %v3417_v48, 16  ;;  %v3213_v1 = vpop.f32.mrf.mxu0  ;;  %9646 = vmatpush.bf16.msra.mxu3 %v9683_v24  ;;  %v2306_v27 = vpop.permute.xlu2 %2305  ;;  %v3576_v61 = vshll.u32 %v3417_v48, 16  ;;  %v8884_v48 = vrot.slane %v4314_v29, 9 }
 0x218   : > { %7800 = vmatmul.bf16.gmra.mxu0 %v9538_v2  ;;  %v3214_v46 = vadd.f32 %v11340_v52, %v3213_v1  ;;  %v2900_v63 = vsel %vm2870_vm8, %v2866_v44, %v2306_v27  ;;  %v9688_v44 = vld [vmem:[%s13362_s3 + $0x8] sm:$0xff] }
 0x219   : > { %v3575_v35 = vrot.slane %v3573_v57, 7  ;;  %v9529_v45 = vld [vmem:[#allocation2 + $0x60] sm:$0xff]  ;;  %v2933_v4 = vsel %vm2903_vm9, %v2900_v63, %v2402_v26  ;;  %v9687_v26 = vld [vmem:[%s13362_s3 + $0x10] sm:$0xff] }
 0x21a   : > { %7741 = vmatmul.bf16.gmra.mxu1 %v5882_v19  ;;  %vm3268_vm6 = vcmp.gt.f32.partialorder %v3214_v46, 0.0  ;;  %v3300_v7 = vmul.f32 0.01, %v3214_v46  ;;  %v2966_v40 = vsel %vm2936_vm10, %v2933_v4, %v2482_v13  ;;  %v3891_v62 = vld [vmem:[#allocation2 + $0x64] sm:$0xf]  ;;  %v9540_v4 = vld [vmem:[#allocation2 + $0x30] sm:$0xff] }
 0x21b   : > { %v3578_v60 = vor.u32 %v3576_v61, %v3575_v35  ;;  %9647 = vmatpush.bf16.msra.mxu3 %v9684_v50  ;;  %v3579_v31 = vrot.slane %v3575_v35, 4  ;;  %v3914_v18 = vld [vmem:[#allocation2 + $0x68] sm:$0x1]  ;;  %v4428_v57 = vrot.slane %v3891_v62, 5  ;;  %v9608_v61 = vld [vmem:[%s13362_s3 + $0x138] sm:$0xff]  ;;  %v9689_v63 = vld [vmem:[%s13362_s3] sm:$0xff] }
 0x21c   : > { %v3332_v38 = vsel %vm3268_vm6, %v3214_v46, %v3300_v7  ;;  %v9539_v19 = vld [vmem:[#allocation2 + $0x24] sm:$0xff]  ;;  %v4431_v35 = vrot.slane %v3914_v18, 5  ;;  %7876 = vmatpush.bf16.msrb.mxu2 %v9608_v61 }
 0x21d   : > { %v3819_v52 = vsel %vm10933_vm3, %v3578_v60, %v3818_v14  ;;  %v3418_v39 = vpack.c.bf16 %v3332_v38, %v3332_v38  ;;  %v4429_v27 = vsel %vm9849_vm4, %v8884_v48, %v4428_v57  ;;  %v4430_v46 = vrot.slane %v4428_v57, 4  ;;  %v11666_v38 = vpop.f32.mrf.mxu1 }
 0x21e   : > { %3820 = vst [vmem:[#allocation2 + $0x6c] sm:$0xf] %v3819_v52  ;;  %v5859_v60 = vunpack.c.l.b16 %v4429_v27 }
 0x21f   : > { %v3581_v33 = vshrl.u32 %v3418_v39, 16  ;;  %9648 = vmatpush.bf16.msra.mxu3 %v9685_v6  ;;  %7568 = vmatmul.bf16.gmra.mxu2 %v9529_v45  ;;  %v3584_v15 = vshll.u32 %v3418_v39, 16  ;;  %v4432_v14 = vsel %vm9849_vm4, %v4430_v46, %v4431_v35  ;;  %13390 = vst [vmem:[#allocation12_spill] sm:$0xff] %v11666_v38  ;;  %v11670_v39 = vpop.f32.mrf.mxu2 }
 0x220   : > { %v5860_v50 = vunpack.c.l.b16 %v4432_v14 }
 0x221   : > { %v3583_v22 = vrot.slane %v3581_v33, 7  ;;  %v2562_v30 = vpop.permute.xlu2 %2561 }
 0x222   : > { %v2999_v1 = vsel %vm13388_vm0, %v2966_v40, %v2562_v30  ;;  %v5883_v13 = vpack.c.b16 %v5860_v50, %v5859_v60  ;;  %v9486_v40 = vld [vmem:[%s9843_s26 + $0xb4] sm:$0xff]  ;;  %v9155_v60 = vld [vmem:[%s9843_s26 + $0xa8] sm:$0xf] }
 0x223   : > { %v3586_v25 = vor.u32 %v3584_v15, %v3583_v22  ;;  %v3588_v55 = vrot.slane %v3583_v22, 4  ;;  %9649 = vmatpush.bf16.msra.mxu3 %v9686_v41  ;;  %v3032_v24 = vsel %vm3002_vm12, %v2999_v1, %v2658_v47  ;;  %v2738_v28 = vpop.permute.xlu1 %2737  ;;  %v11683_v41 = vld [vmem:[%s13361_s2] ss:$0 sm:$0xff] }
 0x224   : > { %v3065_v7 = vsel %vm3035_vm13, %v3032_v24, %v2738_v28 }
 0x225   : > { %v3587_v53 = vsel %vm11030_vm1, %v3579_v31, %v3586_v25  ;;  %v3823_v2 = vsel %vm11037_vm11, %v3588_v55, %v3822_v20  ;;  %v4315_v6 = vld [vmem:[#allocation2 + $0x6c] sm:$0xe]  ;;  %v11675_v22 = vpop.f32.mrf.mxu1 }
 0x226   : > { %3821 = vst [vmem:[#allocation2 + $0x70] sm:$0xf] %v3587_v53  ;;  %v8885_v20 = vrot.slane %v4315_v6, 9 }
 0x227   : > { %3824 = vst [vmem:[#allocation2 + $0x74] sm:$0x1] %v3823_v2  ;;  %9650 = vmatpush.bf16.msra.mxu3 %v9687_v26  ;;  %v11678_v25 = vpop.f32.mrf.mxu2 }
 0x228   : > { %7805 = vmatmul.bf16.gmra.mxu0 %v9539_v19  ;;  %13391 = vst [vmem:[#allocation13_spill] sm:$0xff] %v11678_v25 }
 0x22a   : > { %7746 = vmatmul.bf16.gmra.mxu1 %v5883_v13 }
 0x22b   : > { %9651 = vmatpush.bf16.msra.mxu3 %v9688_v44 }
 0x22d   : > { %v2818_v45 = vpop.permute.xlu2 %2817  ;;  %v9530_v33 = vld [vmem:[#allocation2 + $0x6c] sm:$0xff]  ;;  %v11692_v26 = vpop.f32.mrf.mxu1 }
 0x22e   : > { %v3098_v52 = vsel %vm3068_vm14, %v3065_v7, %v2818_v45  ;;  %v3893_v15 = vld [vmem:[#allocation2 + $0x70] sm:$0xf]  ;;  %v3915_v30 = vld [vmem:[#allocation2 + $0x74] sm:$0x1] }
 0x22f   : > { %8874 = vmatmul.msk.bf16.gmra.mxu3 %vm3125_vm15, %v3098_v52  ;;  %7573 = vmatmul.bf16.gmra.mxu2 %v9530_v33  ;;  %v4435_v29 = vrot.slane %v3893_v15, 5  ;;  %v4438_v53 = vrot.slane %v3915_v30, 5  ;;  %v3825_v52 = vld [vmem:[#allocation2 + $0x78] sm:$0xf]  ;;  %v11698_v33 = vpop.f32.mrf.mxu2  ;;  %v9607_v15 = vld [vmem:[%s13362_s3 + $0x130] sm:$0xff]  ;;  %v6828_v30 = vshrl.u32 %v9155_v60, 16 }
 0x230   : > { %9652 = vmatpush.bf16.msra.mxu3 %v9689_v63  ;;  %v9156_v63 = vld [vmem:[%s9843_s26 + $0xac] sm:$0xf]  ;;  %7877 = vmatpush.bf16.msrb.mxu2 %v9607_v15 }
 0x231   : > { %v4436_v62 = vsel %vm9849_vm4, %v8885_v20, %v4435_v29  ;;  %v4437_v18 = vrot.slane %v4435_v29, 4  ;;  %v6831_v20 = vshll.u32 %v9155_v60, 16 }
 0x232   : > { %v5861_v1 = vunpack.c.l.b16 %v4436_v62  ;;  %v6841_v62 = vshrl.u32 %v9156_v63, 16 }
 0x233   : > { %v4439_v48 = vsel %vm9849_vm4, %v4437_v18, %v4438_v53 }
 0x234   : > { %v2228_v2 = vpop.permute.xlu0 %2227  ;;  %v5862_v24 = vunpack.c.l.b16 %v4439_v48  ;;  %v6833_v48 = vrot.slane %v6831_v20, 5 }
 0x235   : > { %v2308_v55 = vpop.permute.xlu1 %2307  ;;  %v2869_v57 = vsel %vm2821_vm7, %v9486_v40, %v2228_v2  ;;  %v2404_v61 = vpop.permute.xlu2 %2403 }
 0x236   : > { %v5884_v46 = vpack.c.b16 %v5862_v24, %v5861_v1  ;;  %v2902_v35 = vsel %vm2870_vm8, %v2869_v57, %v2308_v55  ;;  %v9541_v55 = vld [vmem:[#allocation2 + $0x3c] sm:$0xff]  ;;  %vm13392_vm8 = vmmov %vm13388_vm0 }
 0x237   : > { %v2935_v44 = vsel %vm2903_vm9, %v2902_v35, %v2404_v61  ;;  %v9157_v61 = vld [vmem:[%s9843_s26 + $0xb0] sm:$0x1] }
 0x238   : > { %7810 = vmatmul.bf16.gmra.mxu0 %v9540_v4  ;;  %v6847_v15 = vshll.u32 %v9157_v61, 16 }
 0x239   : > { %v3216_v31 = vpop.f32.mrf.mxu0 }
 0x23a   : > { %v3217_v47 = vadd.f32 %v11683_v41, %v3216_v31  ;;  %7751 = vmatmul.bf16.gmra.mxu1 %v5884_v46 }
 0x23c   : > { %vm3269_vm2 = vcmp.gt.f32.partialorder %v3217_v47, 0.0  ;;  %v3301_v19 = vmul.f32 0.01, %v3217_v47 }
 0x23d   : > { %v2660_v24 = vpop.permute.xlu2 %2659 }
 0x23e   : > { %v3333_v28 = vsel %vm3269_vm2, %v3217_v47, %v3301_v19  ;;  %v6837_v47 = vshll.u32 %v9156_v63, 16  ;;  %v6830_v19 = vrot.slane %v6828_v30, 4  ;;  %v11711_v63 = vpop.f32.mrf.mxu2 }
 0x23f   : > { %v3419_v27 = vpack.c.bf16 %v3333_v28, %v3333_v28  ;;  %13394 = vst [vmem:[#allocation15_spill] sm:$0xff] %v11711_v63 }
 0x240   : > { %v6839_v28 = vrot.slane %v6837_v47, 5  ;;  %v6834_v60 = vor.u32 %v6833_v48, %v6830_v19 }
 0x241   : > { %v3590_v14 = vshrl.u32 %v3419_v27, 16  ;;  %v3218_v7 = vpop.f32.mrf.mxu0  ;;  %v3593_v13 = vshll.u32 %v3419_v27, 16  ;;  %v2564_v6 = vpop.permute.xlu1 %2563  ;;  %v6843_v27 = vrot.slane %v6841_v62, 4 }
 0x242   : > { %v3219_v50 = vadd.f32 %v11683_v41, %v3218_v7  ;;  %v3829_v7 = vld [vmem:[#allocation2 + $0x80] sm:$0x1]  ;;  %v6835_v47 = vrot.slane %v6834_v60, 4  ;;  %v9542_v60 = vld [vmem:[#allocation2 + $0x48] sm:$0xff] }
 0x243   : > { %v3592_v45 = vrot.slane %v3590_v14, 7  ;;  %v2484_v29 = vpop.permute.xlu0 %2483  ;;  %v11708_v14 = vpop.f32.mrf.mxu1 }
 0x244   : > { %vm3270_vm6 = vcmp.gt.f32.partialorder %v3219_v50, 0.0  ;;  %v3302_v4 = vmul.f32 0.01, %v3219_v50  ;;  %v2968_v18 = vsel %vm2936_vm10, %v2935_v44, %v2484_v29  ;;  %13393 = vst [vmem:[#allocation14_spill] sm:$0xff] %v11708_v14 }
 0x245   : > { %v3595_v40 = vor.u32 %v3593_v13, %v3592_v45  ;;  %v3001_v1 = vsel %vm13392_vm8, %v2968_v18, %v2564_v6  ;;  %v6849_v18 = vrot.slane %v6847_v15, 5 }
 0x246   : > { %v3334_v31 = vsel %vm3270_vm6, %v3219_v50, %v3302_v4  ;;  %v3596_v50 = vrot.slane %v3592_v45, 4  ;;  %v3034_v44 = vsel %vm3002_vm12, %v3001_v1, %v2660_v24  ;;  %v6844_v4 = vor.u32 %v6843_v27, %v6839_v28  ;;  %v9159_v45 = vld [vmem:[%s9843_s26 + $0xb8] sm:$0xf]  ;;  %v9606_v1 = vld [vmem:[%s13362_s3 + $0x128] sm:$0xff] }
 0x247   : > { %v3826_v53 = vsel %vm10933_vm3, %v3595_v40, %v3825_v52  ;;  %v3420_v2 = vpack.c.bf16 %v3334_v31, %v3334_v31  ;;  %v9158_v40 = vld [vmem:[%s9843_s26 + $0xb4] sm:$0xf]  ;;  %v6861_v19 = vshll.u32 %v9159_v45, 16  ;;  %v6865_v48 = vshrl.u32 %v9159_v45, 16  ;;  %7878 = vmatpush.bf16.msrb.mxu2 %v9606_v1 }
 0x248   : > { %3827 = vst [vmem:[#allocation2 + $0x78] sm:$0xf] %v3826_v53  ;;  %7815 = vmatmul.bf16.gmra.mxu0 %v9541_v55  ;;  %v6845_v62 = vrot.slane %v6844_v4, 4  ;;  %v6852_v53 = vshrl.u32 %v9158_v40, 16  ;;  %v6840_v27 = vsel %vm9879_vm5, %v6835_v47, %v6839_v28 }
 0x249   : > { %v3598_v57 = vshrl.u32 %v3420_v2, 16  ;;  %v3601_v35 = vshll.u32 %v3420_v2, 16  ;;  %v6855_v2 = vshll.u32 %v9158_v40, 16  ;;  %v11734_v4 = vrot.slane %v6861_v19, 5 }
 0x24a   : > { %v6867_v28 = vrot.slane %v6865_v48, 4 }
 0x24b   : > { %v3600_v46 = vrot.slane %v3598_v57, 7 }
 0x24c   : > { %v6868_v19 = vor.u32 %v6867_v28, %v11734_v4 }
 0x24d   : > { %v3603_v13 = vor.u32 %v3601_v35, %v3600_v46  ;;  %v3605_v52 = vrot.slane %v3600_v46, 4  ;;  %v11727_v46 = vpop.f32.mrf.mxu1  ;;  %v11729_v35 = vpop.f32.mrf.mxu2 }
 0x24e   : > { %v2820_v6 = vpop.permute.xlu1 %2819  ;;  %v2740_v30 = vpop.permute.xlu0 %2739  ;;  %13395 = vst [vmem:[#allocation16_spill] sm:$0xff] %v11727_v46  ;;  %v5094_v46 = vld [vmem:[#allocation2 + $0x28] sm:$0xf] }
 0x24f   : > { %v3604_v20 = vsel %vm11030_vm1, %v3596_v50, %v3603_v13  ;;  %v3830_v29 = vsel %vm11037_vm11, %v3605_v52, %v3829_v7  ;;  %v3067_v31 = vsel %vm3035_vm13, %v3034_v44, %v2740_v30  ;;  %v4316_v57 = vld [vmem:[#allocation2 + $0x78] sm:$0xe]  ;;  %v6850_v7 = vsel %vm9879_vm5, %v6845_v62, %v6849_v18  ;;  %v9160_v62 = vld [vmem:[%s9843_s26 + $0xbc] sm:$0x1] }
 0x250   : > { %3828 = vst [vmem:[#allocation2 + $0x7c] sm:$0xf] %v3604_v20  ;;  %v3100_v55 = vsel %vm3068_vm14, %v3067_v31, %v2820_v6  ;;  %v6854_v50 = vrot.slane %v6852_v53, 4  ;;  %v6857_v44 = vrot.slane %v6855_v2, 5  ;;  %v8886_v6 = vrot.slane %v4316_v57, 9 }
 0x251   : > { %3831 = vst [vmem:[#allocation2 + $0x80] sm:$0x1] %v3830_v29  ;;  %8875 = vmatmul.msk.bf16.gmra.mxu3 %vm3125_vm15, %v3100_v55  ;;  %v6926_v29 = vunpack.c.l.b16 %v6840_v27  ;;  %v6927_v40 = vunpack.c.l.b16 %v6850_v7  ;;  %v6871_v27 = vshll.u32 %v9160_v62, 16 }
 0x252   : > { %v6858_v2 = vor.u32 %v6857_v44, %v6854_v50  ;;  %v9604_v50 = vld [vmem:[%s13362_s3 + $0x118] sm:$0xff]  ;;  %v4483_v44 = vld [vmem:[#allocation2 + $0x10] sm:$0xf] }
 0x253   : > { %v6945_v7 = vpack.c.b16 %v6927_v40, %v6926_v29 }
 0x254   : > { %v6859_v40 = vrot.slane %v6858_v2, 4 }
 0x255   : > { %v3221_v24 = vpop.f32.mrf.mxu0  ;;  %v11751_v28 = vpop.f32.mrf.mxu1 }
 0x256   : > { %v3222_v61 = vadd.f32 %v11683_v41, %v3221_v24  ;;  %13396 = vst [vmem:[#allocation17_spill] sm:$0xff] %v11751_v28  ;;  %v5093_v28 = vld [vmem:[#allocation2 + $0x24] sm:$0xf] }
 0x257   : > { %v9531_v13 = vld [vmem:[#allocation2 + $0x78] sm:$0xff] }
 0x258   : > { %v3895_v52 = vld [vmem:[#allocation2 + $0x7c] sm:$0xf]  ;;  %vm3271_vm9 = vcmp.gt.f32.partialorder %v3222_v61, 0.0  ;;  %v3303_v15 = vmul.f32 0.01, %v3222_v61  ;;  %7820 = vmatmul.bf16.gmra.mxu0 %v9542_v60  ;;  %7578 = vmatmul.bf16.gmra.mxu2 %v9531_v13 }
 0x259   : > { %v3916_v30 = vld [vmem:[#allocation2 + $0x80] sm:$0x1]  ;;  %v4442_v20 = vrot.slane %v3895_v52, 5  ;;  %v4501_v25 = vld [vmem:[#allocation2 + $0x7c] sm:$0xf] }
 0x25a   : > { %v3335_v31 = vsel %vm3271_vm9, %v3222_v61, %v3303_v15  ;;  %v4445_v47 = vrot.slane %v3916_v30, 5  ;;  %v9605_v61 = vld [vmem:[%s13362_s3 + $0x120] sm:$0xff]  ;;  %v11753_v15 = vpop.f32.mrf.mxu2 }
 0x25b   : > { %v4443_v45 = vsel %vm9849_vm4, %v8886_v6, %v4442_v20  ;;  %v4444_v55 = vrot.slane %v4442_v20, 4  ;;  %v3421_v18 = vpack.c.bf16 %v3335_v31, %v3335_v31  ;;  %7879 = vmatpush.bf16.msrb.mxu2 %v9605_v61  ;;  %13397 = vst [vmem:[#allocation18_spill] sm:$0xff] %v11753_v15  ;;  %v3832_v30 = vld [vmem:[#allocation2 + $0x84] sm:$0xf]  ;;  %v6869_v31 = vrot.slane %v6868_v19, 4 }
 0x25c   : > { %v5863_v1 = vunpack.c.l.b16 %v4443_v45  ;;  %v6873_v45 = vrot.slane %v6871_v27, 5  ;;  %v4544_v19 = vshrl.u32 %v4483_v44, 16  ;;  %v6864_v61 = vsel %vm9879_vm5, %v6859_v40, %v11734_v4  ;;  %v3836_v40 = vld [vmem:[#allocation2 + $0x8c] sm:$0x1] }
 0x25d   : > { %v4446_v53 = vsel %vm9849_vm4, %v4444_v55, %v4445_v47  ;;  %v3607_v48 = vshrl.u32 %v3421_v18, 16  ;;  %v3223_v57 = vpop.f32.mrf.mxu0  ;;  %v3610_v52 = vshll.u32 %v3421_v18, 16  ;;  %v4482_v55 = vld [vmem:[#allocation2 + $0xc] sm:$0xf] }
 0x25e   : > { %v5864_v24 = vunpack.c.l.b16 %v4446_v53  ;;  %v3224_v60 = vadd.f32 %v11683_v41, %v3223_v57  ;;  %v9161_v53 = vld [vmem:[%s9843_s26 + $0xc0] sm:$0xf]  ;;  %v9603_v57 = vld [vmem:[%s13362_s3 + $0x110] sm:$0xff]  ;;  %v4531_v2 = vshrl.u32 %v4482_v55, 16 }
 0x25f   : > { %v11746_v13 = vrot.slane %v3607_v48, 7  ;;  %7880 = vmatpush.bf16.msrb.mxu2 %v9604_v50  ;;  %v9162_v48 = vld [vmem:[%s9843_s26 + $0xc4] sm:$0xf]  ;;  %v6876_v50 = vshrl.u32 %v9161_v53, 16 }
 0x260   : > { %v5885_v6 = vpack.c.b16 %v5864_v24, %v5863_v1  ;;  %vm3272_vm10 = vcmp.gt.f32.partialorder %v3224_v60, 0.0  ;;  %v3304_v20 = vmul.f32 0.01, %v3224_v60  ;;  %v4540_v1 = vshll.u32 %v4483_v44, 16  ;;  %v9602_v44 = vld [vmem:[%s13362_s3 + $0x108] sm:$0xff] }
 0x261   : > { %v3612_v29 = vor.u32 %v3610_v52, %v11746_v13  ;;  %9177 = vmatmul.msk.bf16.vlgmr.msrb.gmra.mxu3 %vm2821_vm7, %v6945_v7  ;;  %v6874_v7 = vsel %vm9879_vm5, %v6869_v31, %v6873_v45  ;;  %v6928_v45 = vunpack.c.l.b16 %v6864_v61  ;;  %v6878_v54 = vrot.slane %v6876_v50, 4 }
 0x262   : > { %7756 = vmatmul.bf16.gmra.mxu1 %v5885_v6  ;;  %v3336_v47 = vsel %vm3272_vm10, %v3224_v60, %v3304_v20  ;;  %v4534_v60 = vshll.u32 %v4482_v55, 16  ;;  %v9543_v6 = vld [vmem:[#allocation2 + $0x54] sm:$0xff]  ;;  %v6885_v20 = vshll.u32 %v9162_v48, 16  ;;  %v11773_v38 = vrot.slane %v4540_v1, 5  ;;  %v11775_v4 = vpop.f32.mrf.mxu2 }
 0x263   : > { %v3833_v62 = vsel %vm10933_vm3, %v3612_v29, %v3832_v30  ;;  %v3422_v18 = vpack.c.bf16 %v3336_v47, %v3336_v47  ;;  %v6879_v30 = vshll.u32 %v9161_v53, 16  ;;  %7881 = vmatpush.bf16.msrb.mxu2 %v9603_v57  ;;  %v4546_v55 = vrot.slane %v4544_v19, 4  ;;  %v9163_v19 = vld [vmem:[%s9843_s26 + $0xc8] sm:$0x1] }
 0x264   : > { %3834 = vst [vmem:[#allocation2 + $0x84] sm:$0xf] %v3833_v62  ;;  %v6889_v62 = vshrl.u32 %v9162_v48, 16  ;;  %v3613_v53 = vrot.slane %v11746_v13, 4  ;;  %v6929_v57 = vunpack.c.l.b16 %v6874_v7  ;;  %v11780_v21 = vrot.slane %v6885_v20, 5  ;;  %v9601_v13 = vld [vmem:[%s13362_s3 + $0x100] sm:$0xff] }
 0x265   : > { %v3615_v24 = vshrl.u32 %v3422_v18, 16  ;;  %v3226_v27 = vpop.f32.mrf.mxu0  ;;  %v3618_v47 = vshll.u32 %v3422_v18, 16  ;;  %v6881_v1 = vrot.slane %v6879_v30, 5  ;;  %v4514_v7 = vld [vmem:[#allocation2 + $0x14] sm:$0x1]  ;;  %v4533_v30 = vrot.slane %v4531_v2, 4 }
 0x266   : > { %v3227_v52 = vadd.f32 %v11683_v41, %v3226_v27  ;;  %v6891_v37 = vrot.slane %v6889_v62, 4  ;;  %v4536_v20 = vrot.slane %v4534_v60, 5 }
 0x267   : > { %v3617_v29 = vrot.slane %v3615_v24, 7  ;;  %v11778_v24 = vpop.f32.mrf.mxu1  ;;  %7882 = vmatpush.bf16.msrb.mxu2 %v9602_v44 }
 0x268   : > { %vm3273_vm12 = vcmp.gt.f32.partialorder %v3227_v52, 0.0  ;;  %v3305_v31 = vmul.f32 0.01, %v3227_v52  ;;  %7825 = vmatmul.bf16.gmra.mxu0 %v9543_v6  ;;  %13398 = vst [vmem:[#allocation19_spill] sm:$0xff] %v11778_v24  ;;  %v4537_v2 = vor.u32 %v4536_v20, %v4533_v30 }
 0x269   : > { %v3620_v18 = vor.u32 %v3618_v47, %v3617_v29  ;;  %v3622_v48 = vrot.slane %v3617_v29, 4  ;;  %v4547_v29 = vor.u32 %v4546_v55, %v11773_v38  ;;  %v6946_v47 = vpack.c.b16 %v6929_v57, %v6928_v45 }
 0x26a   : > { %v3337_v27 = vsel %vm3273_vm12, %v3227_v52, %v3305_v31  ;;  %v6895_v31 = vshll.u32 %v9163_v19, 16  ;;  %v11793_v59 = vpop.f32.mrf.mxu2 }
 0x26b   : > { %v3621_v56 = vsel %vm11030_vm1, %v3613_v53, %v3620_v18  ;;  %v3837_v61 = vsel %vm11037_vm11, %v3622_v48, %v3836_v40  ;;  %v3423_v6 = vpack.c.bf16 %v3337_v27, %v3337_v27  ;;  %v4550_v53 = vshll.u32 %v4514_v7, 16  ;;  %7883 = vmatpush.bf16.msrb.mxu2 %v9601_v13  ;;  %v3839_v27 = vld [vmem:[#allocation2 + $0x90] sm:$0xf]  ;;  %v4317_v24 = vld [vmem:[#allocation2 + $0x84] sm:$0xe]  ;;  %13399 = vst [vmem:[#allocation20_spill] sm:$0xff] %v11793_v59 }
 0x26c   : > { %3835 = vst [vmem:[#allocation2 + $0x88] sm:$0xf] %v3621_v56  ;;  %v6882_v18 = vor.u32 %v6881_v1, %v6878_v54  ;;  %v6892_v48 = vor.u32 %v6891_v37, %v11780_v21  ;;  %v4548_v60 = vrot.slane %v4547_v29, 4  ;;  %v6897_v55 = vrot.slane %v6895_v31, 5 }
 0x26d   : > { %3838 = vst [vmem:[#allocation2 + $0x8c] sm:$0x1] %v3837_v61  ;;  %v3624_v52 = vshrl.u32 %v3423_v6, 16  ;;  %v3228_v50 = vpop.f32.mrf.mxu0  ;;  %v3627_v44 = vshll.u32 %v3423_v6, 16  ;;  %v4552_v57 = vrot.slane %v4550_v53, 5 }
 0x26e   : > { %v3229_v40 = vadd.f32 %v11683_v41, %v3228_v50  ;;  %v6883_v6 = vrot.slane %v6882_v18, 4  ;;  %v6893_v19 = vrot.slane %v6892_v48, 4  ;;  %v8887_v50 = vrot.slane %v4317_v24, 9  ;;  %v9544_v48 = vld [vmem:[#allocation2 + $0x60] sm:$0xff] }
 0x26f   : > { %v3626_v62 = vrot.slane %v3624_v52, 7  ;;  %v11798_v7 = vpop.f32.mrf.mxu1 }
 0x270   : > { %vm3274_vm13 = vcmp.gt.f32.partialorder %v3229_v40, 0.0  ;;  %v3306_v56 = vmul.f32 0.01, %v3229_v40  ;;  %13400 = vst [vmem:[#allocation21_spill] sm:$0xff] %v11798_v7  ;;  %v6888_v24 = vsel %vm9879_vm5, %v6883_v6, %v11780_v21 }
 0x271   : > { %v3629_v61 = vor.u32 %v3627_v44, %v3626_v62  ;;  %9178 = vmatmul.msk.bf16.gmra.mxu3 %vm2821_vm7, %v6946_v47  ;;  %v4538_v47 = vrot.slane %v4537_v2, 4  ;;  %v4485_v2 = vld [vmem:[#allocation2 + $0x1c] sm:$0xf] }
 0x272   : > { %v3338_v45 = vsel %vm3274_vm13, %v3229_v40, %v3306_v56  ;;  %v4553_v40 = vsel %vm9879_vm5, %v4548_v60, %v4552_v57  ;;  %v3843_v60 = vld [vmem:[#allocation2 + $0x98] sm:$0x1] }
 0x273   : > { %v3840_v54 = vsel %vm10933_vm3, %v3629_v61, %v3839_v27  ;;  %v3424_v1 = vpack.c.bf16 %v3338_v45, %v3338_v45  ;;  %v9532_v37 = vld [vmem:[#allocation2 + $0x84] sm:$0xff]  ;;  %v6898_v61 = vsel %vm9879_vm5, %v6893_v19, %v6897_v55  ;;  %v3630_v45 = vrot.slane %v3626_v62, 4 }
 0x274   : > { %v3897_v13 = vld [vmem:[#allocation2 + $0x88] sm:$0xf]  ;;  %3841 = vst [vmem:[#allocation2 + $0x90] sm:$0xf] %v3840_v54  ;;  %v3917_v52 = vld [vmem:[#allocation2 + $0x8c] sm:$0x1]  ;;  %7583 = vmatmul.bf16.gmra.mxu2 %v9532_v37  ;;  %v6931_v21 = vunpack.c.l.b16 %v6898_v61  ;;  %v5988_v61 = vunpack.c.l.b16 %v4553_v40 }
 0x275   : > { %v4449_v30 = vrot.slane %v3897_v13, 5  ;;  %v3632_v20 = vshrl.u32 %v3424_v1, 16  ;;  %v3231_v29 = vpop.f32.mrf.mxu0  ;;  %v4452_v44 = vrot.slane %v3917_v52, 5  ;;  %v3635_v56 = vshll.u32 %v3424_v1, 16 }
 0x276   : > { %v3232_v18 = vadd.f32 %v11683_v41, %v3231_v29 }
 0x277   : > { %v4450_v31 = vsel %vm9849_vm4, %v8887_v50, %v4449_v30  ;;  %v4451_v53 = vrot.slane %v4449_v30, 4  ;;  %v3634_v27 = vrot.slane %v3632_v20, 7  ;;  %v11812_v50 = vpop.f32.mrf.mxu2  ;;  %v6930_v30 = vunpack.c.l.b16 %v6888_v24 }
 0x278   : > { %vm3275_vm14 = vcmp.gt.f32.partialorder %v3232_v18, 0.0  ;;  %v3307_v54 = vmul.f32 0.01, %v3232_v18  ;;  %7830 = vmatmul.bf16.gmra.mxu0 %v9544_v48  ;;  %v5865_v52 = vunpack.c.l.b16 %v4450_v31  ;;  %v4564_v20 = vshll.u32 %v4485_v2, 16 }
 0x279   : > { %v4453_v57 = vsel %vm9849_vm4, %v4451_v53, %v4452_v44  ;;  %v3637_v37 = vor.u32 %v3635_v56, %v3634_v27  ;;  %v3639_v13 = vrot.slane %v3634_v27, 4  ;;  %v4484_v53 = vld [vmem:[#allocation2 + $0x18] sm:$0xf]  ;;  %v4568_v44 = vshrl.u32 %v4485_v2, 16  ;;  %v11821_v27 = vpop.f32.mrf.mxu1  ;;  %v3846_v2 = vld [vmem:[#allocation2 + $0x9c] sm:$0xf] }
 0x27a   : > { %v5866_v1 = vunpack.c.l.b16 %v4453_v57  ;;  %v3339_v6 = vsel %vm3275_vm14, %v3232_v18, %v3307_v54  ;;  %v4543_v18 = vsel %vm9879_vm5, %v4538_v47, %v11773_v38  ;;  %13401 = vst [vmem:[#allocation22_spill] sm:$0xff] %v11821_v27  ;;  %v6947_v56 = vpack.c.b16 %v6931_v21, %v6930_v30  ;;  %v4520_v27 = vld [vmem:[#allocation2 + $0x5c] sm:$0x1] }
 0x27b   : > { %v3638_v62 = vsel %vm11030_vm1, %v3630_v45, %v3637_v37  ;;  %v3844_v55 = vsel %vm11037_vm11, %v3639_v13, %v3843_v60  ;;  %v3425_v29 = vpack.c.bf16 %v3339_v6, %v3339_v6  ;;  %v4555_v45 = vshrl.u32 %v4484_v53, 16 }
 0x27c   : > { %v5886_v19 = vpack.c.b16 %v5866_v1, %v5865_v52  ;;  %3842 = vst [vmem:[#allocation2 + $0x94] sm:$0xf] %v3638_v62  ;;  %v4558_v54 = vshll.u32 %v4484_v53, 16  ;;  %v11824_v37 = vrot.slane %v4564_v20, 5  ;;  %v5987_v52 = vunpack.c.l.b16 %v4543_v18  ;;  %v4318_v62 = vld [vmem:[#allocation2 + $0x90] sm:$0xe] }
 0x27d   : > { %3845 = vst [vmem:[#allocation2 + $0x98] sm:$0x1] %v3844_v55  ;;  %v3641_v31 = vshrl.u32 %v3425_v29, 16  ;;  %v3233_v48 = vpop.f32.mrf.mxu0  ;;  %v3644_v57 = vshll.u32 %v3425_v29, 16  ;;  %v4570_v1 = vrot.slane %v4568_v44, 4 }
 0x27e   : > { %7761 = vmatmul.bf16.gmra.mxu1 %v5886_v19  ;;  %v3234_v24 = vadd.f32 %v11683_v41, %v3233_v48  ;;  %v6019_v47 = vpack.c.b16 %v5988_v61, %v5987_v52  ;;  %v4515_v55 = vld [vmem:[#allocation2 + $0x20] sm:$0x1]  ;;  %v4557_v19 = vrot.slane %v4555_v45, 4  ;;  %v4560_v20 = vrot.slane %v4558_v54, 5  ;;  %v9545_v54 = vld [vmem:[#allocation2 + $0x6c] sm:$0xff] }
 0x27f   : > { %v3643_v60 = vrot.slane %v3641_v31, 7  ;;  %v11829_v29 = vpop.f32.mrf.mxu2  ;;  %v8888_v31 = vrot.slane %v4318_v62, 9  ;;  %v4571_v48 = vor.u32 %v4570_v1, %v11824_v37  ;;  %v3850_v62 = vld [vmem:[#allocation2 + $0xa4] sm:$0x1] }
 0x280   : > { %vm3276_vm15 = vcmp.gt.f32.partialorder %v3234_v24, 0.0  ;;  %v3308_v13 = vmul.f32 0.01, %v3234_v24  ;;  %13402 = vst [vmem:[#allocation23_spill] sm:$0xff] %v11829_v29 }
 0x281   : > { %v3646_v6 = vor.u32 %v3644_v57, %v3643_v60  ;;  %9179 = vmatmul.msk.bf16.gmra.mxu3 %vm2821_vm7, %v6947_v56  ;;  %v3647_v1 = vrot.slane %v3643_v60, 4 }
 0x282   : > { %v3340_v38 = vsel %vm3276_vm15, %v3234_v24, %v3308_v13  ;;  %v9584_v24 = vld [vmem:[%s13362_s3 + $0x78] sm:$0xff] }
 0x283   : > { %v3847_v40 = vsel %vm10933_vm3, %v3646_v6, %v3846_v2  ;;  %v3426_v30 = vpack.c.bf16 %v3340_v38, %v3340_v38  ;;  %v3899_v21 = vld [vmem:[#allocation2 + $0x94] sm:$0xf]  ;;  %v4574_v2 = vshll.u32 %v4515_v55, 16  ;;  %7609 = vmatpush.bf16.msrb.mxu3 %v9584_v24  ;;  %v11839_v6 = vpop.f32.mrf.mxu1 }
 0x284   : > { %3848 = vst [vmem:[#allocation2 + $0x9c] sm:$0xf] %v3847_v40  ;;  %v3918_v53 = vld [vmem:[#allocation2 + $0x98] sm:$0x1]  ;;  %v4456_v44 = vrot.slane %v3899_v21, 5  ;;  %7884 = vmatmul.bf16.vlgmr.msrb.gmra.mxu2 %v6019_v47  ;;  %v4561_v47 = vor.u32 %v4560_v20, %v4557_v19  ;;  %v4572_v40 = vrot.slane %v4571_v48, 4 }
 0x285   : > { %v3649_v18 = vshrl.u32 %v3426_v30, 16  ;;  %v11832_v56 = vpop.f32.mrf.mxu0  ;;  %v4459_v57 = vrot.slane %v3918_v53, 5  ;;  %v3652_v52 = vshll.u32 %v3426_v30, 16  ;;  %13404 = vst [vmem:[#allocation25_spill] sm:$0xff] %v11839_v6  ;;  %v4487_v53 = vld [vmem:[#allocation2 + $0x28] sm:$0xf] }
 0x286   : > { %13403 = vst [vmem:[#allocation24_spill] sm:$0xff] %v11832_v56  ;;  %v4457_v61 = vsel %vm9849_vm4, %v8888_v31, %v4456_v44  ;;  %v4458_v45 = vrot.slane %v4456_v44, 4  ;;  %v4576_v59 = vrot.slane %v4574_v2, 5  ;;  %v4588_v20 = vshll.u32 %v4487_v53, 16 }
 0x287   : > { %v3651_v13 = vrot.slane %v3649_v18, 7  ;;  %v5867_v31 = vunpack.c.l.b16 %v4457_v61  ;;  %v4486_v18 = vld [vmem:[#allocation2 + $0x24] sm:$0xf]  ;;  %v11847_v24 = vpop.f32.mrf.mxu2  ;;  %v4592_v48 = vshrl.u32 %v4487_v53, 16 }
 0x288   : > { %v4460_v38 = vsel %vm9849_vm4, %v4458_v45, %v4459_v57  ;;  %7835 = vmatmul.bf16.gmra.mxu0 %v9545_v54  ;;  %v4562_v45 = vrot.slane %v4561_v47, 4  ;;  %v4577_v19 = vsel %vm9879_vm5, %v4572_v40, %v4576_v59  ;;  %v9533_v57 = vld [vmem:[#allocation2 + $0x90] sm:$0xff]  ;;  %v4590_v59 = vrot.slane %v4588_v20, 5  ;;  %v9546_v20 = vld [vmem:[#allocation2 + $0x78] sm:$0xff] }
 0x289   : > { %v3654_v21 = vor.u32 %v3652_v52, %v3651_v13  ;;  %v3656_v29 = vrot.slane %v3651_v13, 4  ;;  %v5868_v44 = vunpack.c.l.b16 %v4460_v38  ;;  %v9583_v54 = vld [vmem:[%s13362_s3 + $0x70] sm:$0xff]  ;;  %v5990_v2 = vunpack.c.l.b16 %v4577_v19 }
 0x28a   : > { %v4579_v13 = vshrl.u32 %v4486_v18, 16  ;;  %v4582_v52 = vshll.u32 %v4486_v18, 16  ;;  %7610 = vmatpush.bf16.msrb.mxu3 %v9583_v54 }
 0x28b   : > { %v3655_v30 = vsel %vm11030_vm1, %v3647_v1, %v3654_v21  ;;  %v3851_v55 = vsel %vm11037_vm11, %v3656_v29, %v3850_v62  ;;  %v5887_v60 = vpack.c.b16 %v5868_v44, %v5867_v31  ;;  %v4567_v29 = vsel %vm9879_vm5, %v4562_v45, %v11824_v37  ;;  %v4319_v38 = vld [vmem:[#allocation2 + $0x9c] sm:$0xe]  ;;  %v11859_v47 = vpop.f32.mrf.mxu1  ;;  %v4516_v31 = vld [vmem:[#allocation2 + $0x2c] sm:$0x1] }
 0x28c   : > { %3849 = vst [vmem:[#allocation2 + $0xa0] sm:$0xf] %v3655_v30  ;;  %v4594_v1 = vrot.slane %v4592_v48, 4  ;;  %v5989_v62 = vunpack.c.l.b16 %v4567_v29  ;;  %v4581_v44 = vrot.slane %v4579_v13, 4  ;;  %v4584_v37 = vrot.slane %v4582_v52, 5 }
 0x28d   : > { %3852 = vst [vmem:[#allocation2 + $0xa4] sm:$0x1] %v3851_v55  ;;  %v11851_v61 = vpop.f32.mrf.mxu0  ;;  %v8889_v30 = vrot.slane %v4319_v38, 9  ;;  %v4598_v54 = vshll.u32 %v4516_v31, 16 }
 0x28e   : > { %7766 = vmatmul.bf16.gmra.mxu1 %v5887_v60  ;;  %13405 = vst [vmem:[#allocation26_spill] sm:$0xff] %v11851_v61  ;;  %v6020_v40 = vpack.c.b16 %v5990_v2, %v5989_v62  ;;  %v4595_v60 = vor.u32 %v4594_v1, %v4590_v59  ;;  %v4585_v13 = vor.u32 %v4584_v37, %v4581_v44  ;;  %v4488_v37 = vld [vmem:[#allocation2 + $0x30] sm:$0xf] }
 0x28f   : > { %13406 = vst [vmem:[#allocation27_spill] sm:$0xff] %v11859_v47  ;;  %v11863_v18 = vpop.f32.mrf.mxu2  ;;  %v4600_v43 = vrot.slane %v4598_v54, 5  ;;  %7611 = vmatpush.bf16.msrb.mxu3 %v9582_v16 }
 0x290   : > { %13408 = vst [vmem:[#allocation29_spill] sm:$0xff] %v11863_v18  ;;  %v4596_v1 = vrot.slane %v4595_v60, 4 }
 0x291   : > { %7588 = vmatmul.bf16.vlgmr.msra.gmra.mxu3 %v9533_v57 }
 0x292   : > { %v4601_v44 = vsel %vm9879_vm5, %v4596_v1, %v4600_v43 }
 0x293   : > { %v3901_v21 = vld [vmem:[#allocation2 + $0xa0] sm:$0xf]  ;;  %v11870_v18 = vpop.f32.mrf.mxu1 }
 0x294   : > { %v3919_v53 = vld [vmem:[#allocation2 + $0xa4] sm:$0x1]  ;;  %v4463_v55 = vrot.slane %v3901_v21, 5  ;;  %7889 = vmatmul.bf16.gmra.mxu2 %v6020_v40  ;;  %v4489_v21 = vld [vmem:[#allocation2 + $0x34] sm:$0xf]  ;;  %13409 = vst [vmem:[#allocation30_spill] sm:$0xff] %v11870_v18 }
 0x295   : > { %v11861_v45 = vpop.f32.mrf.mxu0  ;;  %v3236_v19 = vpop.f32.mrf.mxu3  ;;  %v4466_v29 = vrot.slane %v3919_v53, 5  ;;  %v4586_v53 = vrot.slane %v4585_v13, 4  ;;  %v5992_v13 = vunpack.c.l.b16 %v4601_v44 }
 0x296   : > { %13407 = vst [vmem:[#allocation28_spill] sm:$0xff] %v11861_v45  ;;  %v4464_v48 = vsel %vm9849_vm4, %v8889_v30, %v4463_v55  ;;  %v4465_v57 = vrot.slane %v4463_v55, 4  ;;  %v3237_v2 = vadd.f32 %v11683_v41, %v3236_v19  ;;  %v4612_v19 = vshll.u32 %v4489_v21, 16 }
 0x297   : > { %v5869_v38 = vunpack.c.l.b16 %v4464_v48  ;;  %v4591_v54 = vsel %vm9879_vm5, %v4586_v53, %v4590_v59  ;;  %v4517_v59 = vld [vmem:[#allocation2 + $0x38] sm:$0x1] }
 0x298   : > { %7840 = vmatmul.bf16.gmra.mxu0 %v9546_v20  ;;  %v4467_v52 = vsel %vm9849_vm4, %v4465_v57, %v4466_v29  ;;  %vm3277_vm7 = vcmp.gt.f32.partialorder %v3237_v2, 0.0  ;;  %v3309_v62 = vmul.f32 0.01, %v3237_v2  ;;  %v4616_v20 = vshrl.u32 %v4489_v21, 16  ;;  %v11876_v57 = vpop.f32.mrf.mxu2  ;;  %v9534_v29 = vld [vmem:[#allocation2 + $0x9c] sm:$0xff] }
 0x299   : > { %v5870_v40 = vunpack.c.l.b16 %v4467_v52  ;;  %v5991_v15 = vunpack.c.l.b16 %v4591_v54 }
 0x29a   : > { %v3341_v30 = vsel %vm3277_vm7, %v3237_v2, %v3309_v62  ;;  %v4603_v62 = vshrl.u32 %v4488_v37, 16  ;;  %v4618_v21 = vrot.slane %v4616_v20, 4 }
 0x29b   : > { %v5888_v55 = vpack.c.b16 %v5870_v40, %v5869_v38  ;;  %v3427_v31 = vpack.c.bf16 %v3341_v30, %v3341_v30  ;;  %v4606_v38 = vshll.u32 %v4488_v37, 16  ;;  %v11881_v40 = vrot.slane %v4612_v19, 5  ;;  %v3853_v30 = vld [vmem:[#allocation2 + $0xa8] sm:$0xf] }
 0x29c   : > { %v6021_v44 = vpack.c.b16 %v5992_v13, %v5991_v15  ;;  %v4605_v37 = vrot.slane %v4603_v62, 4 }
 0x29d   : > { %v11874_v60 = vpop.f32.mrf.mxu0  ;;  %v3658_v48 = vshrl.u32 %v3427_v31, 16  ;;  %v3238_v52 = vpop.f32.mrf.mxu3  ;;  %v3661_v1 = vshll.u32 %v3427_v31, 16 }
 0x29e   : > { %7771 = vmatmul.bf16.gmra.mxu1 %v5888_v55  ;;  %13410 = vst [vmem:[#allocation31_spill] sm:$0xff] %v11874_v60  ;;  %v3239_v2 = vadd.f32 %v11683_v41, %v3238_v52  ;;  %v11886_v31 = vpop.f32.mrf.mxu1  ;;  %v4619_v52 = vor.u32 %v4618_v21, %v11881_v40  ;;  %v9547_v60 = vld [vmem:[#allocation2 + $0x84] sm:$0xff] }
 0x29f   : > { %v3660_v43 = vrot.slane %v3658_v48, 7  ;;  %v4608_v48 = vrot.slane %v4606_v38, 5  ;;  %13411 = vst [vmem:[#allocation32_spill] sm:$0xff] %v11886_v31 }
 0x2a0   : > { %vm3278_vm0 = vcmp.gt.f32.partialorder %v3239_v2, 0.0  ;;  %v3310_v55 = vmul.f32 0.01, %v3239_v2  ;;  %v11893_v16 = vpop.f32.mrf.mxu2  ;;  %v4620_v38 = vrot.slane %v4619_v52, 4  ;;  %v9580_v52 = vld [vmem:[%s13362_s3 + $0x58] sm:$0xff] }
 0x2a1   : > { %v3663_v18 = vor.u32 %v3661_v1, %v3660_v43  ;;  %7593 = vmatmul.bf16.gmra.mxu3 %v9534_v29  ;;  %v4622_v1 = vshll.u32 %v4517_v59, 16  ;;  %v4609_v15 = vor.u32 %v4608_v48, %v4605_v37  ;;  %13413 = vst [vmem:[#allocation34_spill] sm:$0xff] %v11893_v16  ;;  %v9581_v59 = vld [vmem:[%s13362_s3 + $0x60] sm:$0xff]  ;;  %v9624_v37 = vld [vmem:[%s13362_s3 + $0x1b8] sm:$0xff] }
 0x2a2   : > { %v3342_v53 = vsel %vm3278_vm0, %v3239_v2, %v3310_v55  ;;  %v4491_v2 = vld [vmem:[#allocation2 + $0x40] sm:$0xf]  ;;  %v3857_v55 = vld [vmem:[#allocation2 + $0xb0] sm:$0x1]  ;;  %7612 = vmatpush.bf16.msrb.mxu3 %v9581_v59  ;;  %8054 = vmatpush.bf16.msra.mxu1 %v9624_v37 }
 0x2a3   : > { %v3854_v19 = vsel %vm10933_vm3, %v3663_v18, %v3853_v30  ;;  %v3428_v20 = vpack.c.bf16 %v3342_v53, %v3342_v53  ;;  %v4624_v18 = vrot.slane %v4622_v1, 5  ;;  %v4636_v30 = vshll.u32 %v4491_v2, 16 }
 0x2a4   : > { %3855 = vst [vmem:[#allocation2 + $0xa8] sm:$0xf] %v3854_v19  ;;  %7894 = vmatmul.bf16.gmra.mxu2 %v6021_v44  ;;  %v3664_v53 = vrot.slane %v3660_v43, 4  ;;  %v4640_v44 = vshrl.u32 %v4491_v2, 16  ;;  %v4610_v31 = vrot.slane %v4609_v15, 4 }
 0x2a5   : > { %v11891_v54 = vpop.f32.mrf.mxu0  ;;  %v3666_v29 = vshrl.u32 %v3428_v20, 16  ;;  %v3669_v62 = vshll.u32 %v3428_v20, 16  ;;  %v4625_v20 = vsel %vm9879_vm5, %v4620_v38, %v4624_v18  ;;  %v11915_v15 = vrot.slane %v4636_v30, 5  ;;  %v9579_v18 = vld [vmem:[%s13362_s3 + $0x50] sm:$0xff] }
 0x2a6   : > { %13412 = vst [vmem:[#allocation33_spill] sm:$0xff] %v11891_v54  ;;  %v4490_v54 = vld [vmem:[#allocation2 + $0x3c] sm:$0xf]  ;;  %v11901_v48 = vpop.f32.mrf.mxu1  ;;  %v4615_v1 = vsel %vm9879_vm5, %v4610_v31, %v11881_v40  ;;  %7613 = vmatpush.bf16.msrb.mxu3 %v9580_v52  ;;  %v4493_v52 = vld [vmem:[#allocation2 + $0x4c] sm:$0xf] }
 0x2a7   : > { %v3668_v13 = vrot.slane %v3666_v29, 7  ;;  %13414 = vst [vmem:[#allocation35_spill] sm:$0xff] %v11901_v48  ;;  %v4627_v29 = vshrl.u32 %v4490_v54, 16  ;;  %v4630_v2 = vshll.u32 %v4490_v54, 16 }
 0x2a8   : > { %7845 = vmatmul.bf16.gmra.mxu0 %v9547_v60  ;;  %v11919_v38 = vpop.f32.mrf.mxu2 }
 0x2a9   : > { %v3671_v21 = vor.u32 %v3669_v62, %v3668_v13  ;;  %v3673_v19 = vrot.slane %v3668_v13, 4  ;;  %v4642_v13 = vrot.slane %v4640_v44, 4  ;;  %v4632_v59 = vrot.slane %v4630_v2, 5 }
 0x2aa   : > { %7614 = vmatpush.bf16.msrb.mxu3 %v9579_v18  ;;  %v4492_v18 = vld [vmem:[#allocation2 + $0x48] sm:$0xf] }
 0x2ab   : > { %v3672_v60 = vsel %vm11030_vm1, %v3664_v53, %v3671_v21  ;;  %v3858_v43 = vsel %vm11037_vm11, %v3673_v19, %v3857_v55  ;;  %v5994_v55 = vunpack.c.l.b16 %v4625_v20  ;;  %v4518_v53 = vld [vmem:[#allocation2 + $0x44] sm:$0x1]  ;;  %v5993_v21 = vunpack.c.l.b16 %v4615_v1  ;;  %v4320_v40 = vld [vmem:[#allocation2 + $0xa8] sm:$0xe] }
 0x2ac   : > { %3856 = vst [vmem:[#allocation2 + $0xac] sm:$0xf] %v3672_v60  ;;  %v4629_v19 = vrot.slane %v4627_v29, 4  ;;  %v4643_v54 = vor.u32 %v4642_v13, %v11915_v15  ;;  %v4646_v37 = vshll.u32 %v4518_v53, 16  ;;  %v8890_v20 = vrot.slane %v4320_v40, 9  ;;  %v9548_v29 = vld [vmem:[#allocation2 + $0x90] sm:$0xff] }
 0x2ad   : > { %3859 = vst [vmem:[#allocation2 + $0xb0] sm:$0x1] %v3858_v43  ;;  %v11917_v62 = vpop.f32.mrf.mxu0  ;;  %v6022_v44 = vpack.c.b16 %v5994_v55, %v5993_v21  ;;  %v4660_v40 = vshll.u32 %v4493_v52, 16 }
 0x2ae   : > { %13415 = vst [vmem:[#allocation36_spill] sm:$0xff] %v11917_v62  ;;  %v11926_v62 = vpop.f32.mrf.mxu1  ;;  %v4633_v2 = vor.u32 %v4632_v59, %v4629_v19  ;;  %v4644_v13 = vrot.slane %v4643_v54, 4 }
 0x2af   : > { %13416 = vst [vmem:[#allocation37_spill] sm:$0xff] %v11926_v62 }
 0x2b0   : > { %v11934_v62 = vpop.f32.mrf.mxu2 }
 0x2b1   : > { %13418 = vst [vmem:[#allocation39_spill] sm:$0xff] %v11934_v62 }
 0x2b2   : > { %v3241_v31 = vpop.f32.mrf.mxu3 }
 0x2b3   : > { %v3242_v30 = vadd.f32 %v11683_v41, %v3241_v31  ;;  %v9535_v60 = vld [vmem:[#allocation2 + $0xa8] sm:$0xff] }
 0x2b4   : > { %v3903_v43 = vld [vmem:[#allocation2 + $0xac] sm:$0xf]  ;;  %7899 = vmatmul.bf16.gmra.mxu2 %v6022_v44  ;;  %v3920_v48 = vld [vmem:[#allocation2 + $0xb0] sm:$0x1]  ;;  %7598 = vmatmul.bf16.gmra.mxu3 %v9535_v60  ;;  %v4664_v60 = vshrl.u32 %v4493_v52, 16 }
 0x2b5   : > { %vm3279_vm2 = vcmp.gt.f32.partialorder %v3242_v30, 0.0  ;;  %v3311_v16 = vmul.f32 0.01, %v3242_v30  ;;  %v4470_v1 = vrot.slane %v3903_v43, 5  ;;  %v4473_v53 = vrot.slane %v3920_v48, 5  ;;  %v11930_v31 = vpop.f32.mrf.mxu0 }
 0x2b6   : > { %13417 = vst [vmem:[#allocation38_spill] sm:$0xff] %v11930_v31  ;;  %v4648_v43 = vrot.slane %v4646_v37, 5  ;;  %v4654_v37 = vshll.u32 %v4492_v18, 16  ;;  %v11946_v62 = vpop.f32.mrf.mxu1 }
 0x2b7   : > { %v3343_v47 = vsel %vm3279_vm2, %v3242_v30, %v3311_v16  ;;  %v4471_v41 = vsel %vm9849_vm4, %v8890_v20, %v4470_v1  ;;  %v4472_v55 = vrot.slane %v4470_v1, 4  ;;  %v4634_v30 = vrot.slane %v4633_v2, 4  ;;  %13419 = vst [vmem:[#allocation40_spill] sm:$0xff] %v11946_v62 }
 0x2b8   : > { %v3429_v21 = vpack.c.bf16 %v3343_v47, %v3343_v47  ;;  %7850 = vmatmul.bf16.gmra.mxu0 %v9548_v29  ;;  %v5871_v59 = vunpack.c.l.b16 %v4471_v41  ;;  %v11939_v47 = vld [vmem:[%s13361_s2] ss:$0 sm:$0xff]  ;;  %v4649_v20 = vsel %vm9879_vm5, %v4644_v13, %v4648_v43  ;;  %v4651_v1 = vshrl.u32 %v4492_v18, 16  ;;  %v3860_v41 = vld [vmem:[#allocation2 + $0xb4] sm:$0xf] }
 0x2b9   : > { %v4474_v44 = vsel %vm9849_vm4, %v4472_v55, %v4473_v53  ;;  %v11944_v53 = vrot.slane %v4660_v40, 5  ;;  %v5996_v43 = vunpack.c.l.b16 %v4649_v20  ;;  %v4519_v40 = vld [vmem:[#allocation2 + $0x50] sm:$0x1]  ;;  %v9578_v20 = vld [vmem:[%s13362_s3 + $0x48] sm:$0xff] }
 0x2ba   : > { %v3675_v19 = vshrl.u32 %v3429_v21, 16  ;;  %v3243_v16 = vpop.f32.mrf.mxu3  ;;  %v5872_v54 = vunpack.c.l.b16 %v4474_v44  ;;  %v3678_v29 = vshll.u32 %v3429_v21, 16  ;;  %v4666_v44 = vrot.slane %v4664_v60, 4  ;;  %7615 = vmatpush.bf16.msrb.mxu3 %v9578_v20  ;;  %v9549_v20 = vld [vmem:[#allocation2 + $0x9c] sm:$0xff] }
 0x2bb   : > { %v3244_v48 = vadd.f32 %v11939_v47, %v3243_v16  ;;  %v4639_v16 = vsel %vm9879_vm5, %v4634_v30, %v11915_v15  ;;  %v4670_v15 = vshll.u32 %v4519_v40, 16 }
 0x2bc   : > { %v3677_v52 = vrot.slane %v3675_v19, 7  ;;  %v5889_v55 = vpack.c.b16 %v5872_v54, %v5871_v59  ;;  %v5995_v19 = vunpack.c.l.b16 %v4639_v16  ;;  %v4653_v59 = vrot.slane %v4651_v1, 4  ;;  %v3864_v1 = vld [vmem:[#allocation2 + $0xbc] sm:$0x1] }
 0x2bd   : > { %vm3280_vm6 = vcmp.gt.f32.partialorder %v3244_v48, 0.0  ;;  %v3312_v2 = vmul.f32 0.01, %v3244_v48  ;;  %v4656_v54 = vrot.slane %v4654_v37, 5  ;;  %v4667_v60 = vor.u32 %v4666_v44, %v11944_v53 }
 0x2be   : > { %v3680_v31 = vor.u32 %v3678_v29, %v3677_v52  ;;  %7776 = vmatmul.bf16.gmra.mxu1 %v5889_v55  ;;  %v11954_v29 = vpop.f32.mrf.mxu2  ;;  %v11956_v55 = vpop.f32.mrf.mxu0  ;;  %v6023_v45 = vpack.c.b16 %v5996_v43, %v5995_v19  ;;  %v4495_v43 = vld [vmem:[#allocation2 + $0x58] sm:$0xf]  ;;  %v4494_v19 = vld [vmem:[#allocation2 + $0x54] sm:$0xf] }
 0x2bf   : > { %v3344_v13 = vsel %vm3280_vm6, %v3244_v48, %v3312_v2  ;;  %13420 = vst [vmem:[#allocation41_spill] sm:$0xff] %v11956_v55  ;;  %v4657_v37 = vor.u32 %v4656_v54, %v4653_v59  ;;  %v3681_v2 = vrot.slane %v3677_v52, 4  ;;  %v4684_v59 = vshll.u32 %v4495_v43, 16 }
 0x2c0   : > { %v3861_v21 = vsel %vm10933_vm3, %v3680_v31, %v3860_v41  ;;  %v3430_v18 = vpack.c.bf16 %v3344_v13, %v3344_v13  ;;  %v9623_v31 = vld [vmem:[%s13362_s3 + $0x1b0] sm:$0xff]  ;;  %v4668_v41 = vrot.slane %v4667_v60, 4  ;;  %v4672_v13 = vrot.slane %v4670_v15, 5 }
 0x2c1   : > { %3862 = vst [vmem:[#allocation2 + $0xb4] sm:$0xf] %v3861_v21  ;;  %8055 = vmatpush.bf16.msra.mxu1 %v9623_v31  ;;  %v11967_v21 = vpop.f32.mrf.mxu1  ;;  %v4658_v52 = vrot.slane %v4657_v37, 4  ;;  %v4688_v54 = vshrl.u32 %v4495_v43, 16  ;;  %v9692_v37 = vld [vmem:[#allocation2 + $0x4] sm:$0xf] }
 0x2c2   : > { %v3683_v62 = vshrl.u32 %v3430_v18, 16  ;;  %v3686_v48 = vshll.u32 %v3430_v18, 16  ;;  %13421 = vst [vmem:[#allocation42_spill] sm:$0xff] %v11967_v21  ;;  %v4673_v40 = vsel %vm9879_vm5, %v4668_v41, %v4672_v13  ;;  %v3932_v41 = vshll.u32 %v9692_v37, 16  ;;  %v9693_v13 = vld [vmem:[#allocation2 + $0x8] sm:$0x1] }
 0x2c3   : > { %v4663_v60 = vsel %vm9879_vm5, %v4658_v52, %v11944_v53  ;;  %v9577_v53 = vld [vmem:[%s13362_s3 + $0x40] sm:$0xff]  ;;  %v3942_v43 = vshll.u32 %v9693_v13, 16  ;;  %v9620_v52 = vld [vmem:[%s13362_s3 + $0x198] sm:$0xff] }
 0x2c4   : > { %v3685_v30 = vrot.slane %v3683_v62, 7  ;;  %7904 = vmatmul.bf16.gmra.mxu2 %v6023_v45  ;;  %v9622_v62 = vld [vmem:[%s13362_s3 + $0x1a8] sm:$0xff]  ;;  %7616 = vmatpush.bf16.msrb.mxu3 %v9577_v53 }
 0x2c5   : > { %8056 = vmatpush.bf16.msra.mxu1 %v9622_v62  ;;  %v5997_v62 = vunpack.c.l.b16 %v4663_v60  ;;  %v3944_v61 = vrot.slane %v3942_v43, 5 }
 0x2c6   : > { %v3688_v44 = vor.u32 %v3686_v48, %v3685_v30  ;;  %v3690_v16 = vrot.slane %v3685_v30, 4  ;;  %v11978_v15 = vpop.f32.mrf.mxu2  ;;  %v5998_v30 = vunpack.c.l.b16 %v4673_v40  ;;  %v4675_v48 = vshrl.u32 %v4494_v19, 16  ;;  %v11980_v31 = vpop.f32.mrf.mxu0  ;;  %v3874_v40 = vld [vmem:[#allocation2] sm:$0xf] }
 0x2c7   : > { %13422 = vst [vmem:[#allocation43_spill] sm:$0xff] %v11978_v15  ;;  %v9616_v15 = vld [vmem:[%s13362_s3 + $0x178] sm:$0xff] }
 0x2c8   : > { %v3689_v18 = vsel %vm11030_vm1, %v3681_v2, %v3688_v44  ;;  %v3865_v45 = vsel %vm11037_vm11, %v3690_v16, %v3864_v1  ;;  %13423 = vst [vmem:[#allocation44_spill] sm:$0xff] %v11980_v31  ;;  %v9621_v1 = vld [vmem:[%s13362_s3 + $0x1a0] sm:$0xff]  ;;  %v3936_v2 = vshrl.u32 %v9692_v37, 16  ;;  %v4678_v44 = vshll.u32 %v4494_v19, 16  ;;  %v4321_v16 = vld [vmem:[#allocation2 + $0xb4] sm:$0xe]  ;;  %7855 = vmatmul.bf16.gmra.mxu0 %v9549_v20  ;;  %7965 = vmatpush.bf16.msra.mxu3 %v9616_v15 }
 0x2c9   : > { %3863 = vst [vmem:[#allocation2 + $0xb8] sm:$0xf] %v3689_v18  ;;  %v11988_v18 = vrot.slane %v4684_v59, 5  ;;  %8057 = vmatpush.bf16.msra.mxu1 %v9621_v1  ;;  %v11993_v37 = vrot.slane %v3932_v41, 5  ;;  %v11998_v60 = vpop.f32.mrf.mxu1  ;;  %v3923_v20 = vshrl.u32 %v3874_v40, 16  ;;  %v3926_v1 = vshll.u32 %v3874_v40, 16 }
 0x2ca   : > { %3866 = vst [vmem:[#allocation2 + $0xbc] sm:$0x1] %v3865_v45  ;;  %v4690_v45 = vrot.slane %v4688_v54, 4  ;;  %v3938_v19 = vrot.slane %v3936_v2, 4  ;;  %v6024_v54 = vpack.c.b16 %v5998_v30, %v5997_v62  ;;  %v4677_v21 = vrot.slane %v4675_v48, 4  ;;  %v9619_v48 = vld [vmem:[%s13362_s3 + $0x190] sm:$0xff] }
 0x2cb   : > { %13424 = vst [vmem:[#allocation45_spill] sm:$0xff] %v11998_v60  ;;  %v8891_v55 = vrot.slane %v4321_v16, 9  ;;  %v4680_v2 = vrot.slane %v4678_v44, 5  ;;  %v3925_v12 = vrot.slane %v3923_v20, 4  ;;  %v3928_v6 = vrot.slane %v3926_v1, 5 }
 0x2cc   : > { %v3939_v41 = vor.u32 %v3938_v19, %v11993_v37  ;;  %v4691_v60 = vor.u32 %v4690_v45, %v11988_v18  ;;  %v3876_v40 = vld [vmem:[#allocation2 + $0xc] sm:$0xf]  ;;  %v9694_v19 = vld [vmem:[#allocation2 + $0x10] sm:$0xf] }
 0x2cd   : > { %8058 = vmatpush.bf16.msra.mxu1 %v9620_v52  ;;  %v3929_v44 = vor.u32 %v3928_v6, %v3925_v12  ;;  %v3956_v43 = vshll.u32 %v9694_v19, 16  ;;  %v9632_v52 = vld [vmem:[%s13362_s3 + $0x1f8] sm:$0xff] }
 0x2ce   : > { %v3940_v16 = vrot.slane %v3939_v41, 4  ;;  %v12007_v15 = vpop.f32.mrf.mxu2  ;;  %v12015_v6 = vpop.f32.mrf.mxu0  ;;  %8143 = vmatpush.bf16.msra.mxu0 %v9632_v52 }
 0x2cf   : > { %v3930_v12 = vrot.slane %v3929_v44, 4  ;;  %13425 = vst [vmem:[#allocation46_spill] sm:$0xff] %v12015_v6  ;;  %v4497_v44 = vld [vmem:[#allocation2 + $0x64] sm:$0xf] }
 0x2d0   : > { %v9536_v13 = vld [vmem:[#allocation2 + $0xb4] sm:$0xff]  ;;  %v3945_v41 = vsel %vm9879_vm5, %v3940_v16, %v3944_v61 }
 0x2d1   : > { %v3905_v59 = vld [vmem:[#allocation2 + $0xb8] sm:$0xf]  ;;  %v3921_v31 = vld [vmem:[#allocation2 + $0xbc] sm:$0x1]  ;;  %7603 = vmatmul.bf16.gmra.mxu3 %v9536_v13  ;;  %8059 = vmatpush.bf16.msra.mxu1 %v9619_v48  ;;  %v12027_v16 = vpop.f32.mrf.mxu1 }
 0x2d2   : > { %v4477_v63 = vrot.slane %v3905_v59, 5  ;;  %v4480_v62 = vrot.slane %v3921_v31, 5  ;;  %v3960_v31 = vshrl.u32 %v9694_v19, 16  ;;  %v12025_v19 = vrot.slane %v3956_v43, 5  ;;  %13426 = vst [vmem:[#allocation47_spill] sm:$0xff] %v12027_v16 }
 0x2d3   : > { %v4708_v43 = vshll.u32 %v4497_v44, 16 }
 0x2d4   : > { %v4478_v30 = vsel %vm9849_vm4, %v8891_v55, %v4477_v63  ;;  %v4479_v53 = vrot.slane %v4477_v63, 4  ;;  %v3246_v13 = vpop.f32.mrf.mxu3  ;;  %7909 = vmatmul.bf16.gmra.mxu2 %v6024_v54  ;;  %v4681_v55 = vor.u32 %v4680_v2, %v4677_v21  ;;  %v4694_v63 = vshll.u32 %v4520_v27, 16  ;;  %v9618_v27 = vld [vmem:[%s13362_s3 + $0x188] sm:$0xff] }
 0x2d5   : > { %v3247_v59 = vadd.f32 %v11939_v47, %v3246_v13  ;;  %v5873_v20 = vunpack.c.l.b16 %v4478_v30  ;;  %v4692_v21 = vrot.slane %v4691_v60, 4  ;;  %v3947_v54 = vshrl.u32 %v3876_v40, 16  ;;  %8060 = vmatpush.bf16.msra.mxu1 %v9618_v27 }
 0x2d6   : > { %v4481_v45 = vsel %vm9849_vm4, %v4479_v53, %v4480_v62  ;;  %v3950_v2 = vshll.u32 %v3876_v40, 16  ;;  %v3935_v30 = vsel %vm9879_vm5, %v3930_v12, %v11993_v37  ;;  %v4696_v48 = vrot.slane %v4694_v63, 5  ;;  %v4496_v63 = vld [vmem:[#allocation2 + $0x60] sm:$0xf] }
 0x2d7   : > { %v5874_v1 = vunpack.c.l.b16 %v4481_v45  ;;  %vm3281_vm8 = vcmp.gt.f32.partialorder %v3247_v59, 0.0  ;;  %v3313_v53 = vmul.f32 0.01, %v3247_v59  ;;  %v3962_v61 = vrot.slane %v3960_v31, 4 }
 0x2d8   : > { %v5779_v60 = vunpack.c.l.b16 %v3935_v30  ;;  %v5780_v45 = vunpack.c.l.b16 %v3945_v41  ;;  %v4682_v40 = vrot.slane %v4681_v55, 4  ;;  %v4697_v37 = vsel %vm9879_vm5, %v4692_v21, %v4696_v48  ;;  %v9550_v55 = vld [vmem:[#allocation2 + $0xa8] sm:$0xff]  ;;  %v9631_v21 = vld [vmem:[%s13362_s3 + $0x1f0] sm:$0xff] }
 0x2d9   : > { %v5890_v62 = vpack.c.b16 %v5874_v1, %v5873_v20  ;;  %v3345_v13 = vsel %vm3281_vm8, %v3247_v59, %v3313_v53  ;;  %v9617_v20 = vld [vmem:[%s13362_s3 + $0x180] sm:$0xff]  ;;  %v4712_v1 = vshrl.u32 %v4497_v44, 16  ;;  %v12034_v31 = vrot.slane %v3947_v54, 4  ;;  %v12046_v54 = vpop.f32.mrf.mxu2  ;;  %7860 = vmatmul.bf16.gmra.mxu0 %v9550_v55 }
 0x2da   : > { %v3431_v52 = vpack.c.bf16 %v3345_v13, %v3345_v13  ;;  %v12036_v12 = vrot.slane %v3950_v2, 5  ;;  %v4687_v27 = vsel %vm9879_vm5, %v4682_v40, %v11988_v18  ;;  %13427 = vst [vmem:[#allocation48_spill] sm:$0xff] %v12046_v54  ;;  %v5811_v2 = vpack.c.b16 %v5780_v45, %v5779_v60  ;;  %8061 = vmatpush.bf16.msra.mxu1 %v9617_v20  ;;  %v12056_v45 = vpop.f32.mrf.mxu0  ;;  %v12058_v20 = vpop.f32.mrf.mxu1  ;;  %v4521_v54 = vld [vmem:[#allocation2 + $0x68] sm:$0x1] }
 0x2db   : > { %7781 = vmatmul.bf16.gmra.mxu1 %v5890_v62  ;;  %v3963_v62 = vor.u32 %v3962_v61, %v12025_v19  ;;  %v6000_v44 = vunpack.c.l.b16 %v4697_v37  ;;  %v4699_v48 = vshrl.u32 %v4496_v63, 16  ;;  %v12050_v16 = vrot.slane %v4708_v43, 5  ;;  %v3867_v61 = vld [vmem:[#allocation2 + $0xc0] sm:$0xf]  ;;  %8144 = vmatpush.bf16.msra.mxu0 %v9631_v21  ;;  %13428 = vst [vmem:[#allocation49_spill] sm:$0xff] %v12056_v45 }
 0x2dc   : > { %v3692_v59 = vshrl.u32 %v3431_v52, 16  ;;  %v3695_v53 = vshll.u32 %v3431_v52, 16  ;;  %v3248_v41 = vpop.f32.mrf.mxu3  ;;  %v4702_v52 = vshll.u32 %v4496_v63, 16  ;;  %v4714_v18 = vrot.slane %v4712_v1, 4  ;;  %13429 = vst [vmem:[#allocation50_spill] sm:$0xff] %v12058_v20 }
 0x2dd   : > { %v3249_v30 = vadd.f32 %v11939_v47, %v3248_v41  ;;  %v9630_v47 = vld [vmem:[%s13362_s3 + $0x1e8] sm:$0xff]  ;;  %v5999_v37 = vunpack.c.l.b16 %v4687_v27  ;;  %v3964_v21 = vrot.slane %v3963_v62, 4  ;;  %v4701_v6 = vrot.slane %v4699_v48, 4  ;;  %v9615_v62 = vld [vmem:[%s13362_s3 + $0x170] sm:$0xff]  ;;  %v3878_v48 = vld [vmem:[#allocation2 + $0x18] sm:$0xf] }
 0x2de   : > { %v12048_v13 = vrot.slane %v3692_v59, 7  ;;  %v9695_v59 = vld [vmem:[#allocation2 + $0x14] sm:$0x1]  ;;  %v4704_v45 = vrot.slane %v4702_v52, 5  ;;  %v4715_v27 = vor.u32 %v4714_v18, %v12050_v16  ;;  %v9696_v52 = vld [vmem:[#allocation2 + $0x1c] sm:$0xf]  ;;  %7966 = vmatpush.bf16.msra.mxu3 %v9615_v62 }
 0x2df   : > { %vm3282_vm9 = vcmp.gt.f32.partialorder %v3249_v30, 0.0  ;;  %v3314_v40 = vmul.f32 0.01, %v3249_v30  ;;  %v3966_v41 = vshll.u32 %v9695_v59, 16  ;;  %v6025_v55 = vpack.c.b16 %v6000_v44, %v5999_v37  ;;  %8145 = vmatpush.bf16.msra.mxu0 %v9630_v47  ;;  %v3871_v37 = vld [vmem:[#allocation2 + $0xc8] sm:$0x1] }
 0x2e0   : > { %v3697_v60 = vor.u32 %v3695_v53, %v12048_v13  ;;  %v3953_v53 = vor.u32 %v12036_v12, %v12034_v31  ;;  %v9640_v31 = vld [vmem:[%s13362_s3 + $0x238] sm:$0xff]  ;;  %v4718_v44 = vshll.u32 %v4521_v54, 16  ;;  %v3980_v18 = vshll.u32 %v9696_v52, 16 }
 0x2e1   : > { %v3346_v63 = vsel %vm3282_vm9, %v3249_v30, %v3314_v40  ;;  %7617 = vmatmul.bf16.vlgmr.msrb.gmra.mxu3 %v5811_v2  ;;  %v3968_v10 = vrot.slane %v3966_v41, 5  ;;  %v9629_v2 = vld [vmem:[%s13362_s3 + $0x1e0] sm:$0xff]  ;;  %v12076_v12 = vpop.f32.mrf.mxu2  ;;  %8232 = vmatpush.bf16.msra.mxu2 %v9640_v31  ;;  %v9553_v41 = vld [vmem:[#allocation2 + $0x18] sm:$0xff]  ;;  %v3974_v31 = vshll.u32 %v3878_v48, 16 }
 0x2e2   : > { %v3868_v43 = vsel %vm10933_vm3, %v3697_v60, %v3867_v61  ;;  %v3432_v1 = vpack.c.bf16 %v3346_v63, %v3346_v63  ;;  %v3698_v61 = vrot.slane %v12048_v13, 4  ;;  %v3984_v60 = vshrl.u32 %v9696_v52, 16  ;;  %v9628_v54 = vld [vmem:[%s13362_s3 + $0x1d8] sm:$0xff] }
 0x2e3   : > { %3869 = vst [vmem:[#allocation2 + $0xc0] sm:$0xf] %v3868_v43  ;;  %v3969_v47 = vsel %vm9879_vm5, %v3964_v21, %v3968_v10  ;;  %v3954_v63 = vrot.slane %v3953_v53, 4  ;;  %v4705_v43 = vor.u32 %v4704_v45, %v4701_v6  ;;  %8146 = vmatpush.bf16.msra.mxu0 %v9629_v2  ;;  %v3971_v13 = vshrl.u32 %v3878_v48, 16  ;;  %v12091_v53 = vpop.f32.mrf.mxu0  ;;  %v12095_v2 = vpop.f32.mrf.mxu1 }
 0x2e4   : > { %v3700_v59 = vshrl.u32 %v3432_v1, 16  ;;  %v3703_v20 = vshll.u32 %v3432_v1, 16  ;;  %v12065_v30 = vpop.f32.mrf.mxu3  ;;  %7914 = vmatmul.bf16.gmra.mxu2 %v6025_v55  ;;  %v4716_v1 = vrot.slane %v4715_v27, 4  ;;  %v5782_v10 = vunpack.c.l.b16 %v3969_v47  ;;  %13430 = vst [vmem:[#allocation51_spill] sm:$0xff] %v12091_v53 }
 0x2e5   : > { %v3959_v21 = vsel %vm9879_vm5, %v3954_v63, %v12025_v19  ;;  %v4720_v62 = vrot.slane %v4718_v44, 5  ;;  %v3986_v27 = vrot.slane %v3984_v60, 4  ;;  %13431 = vst [vmem:[#allocation52_spill] sm:$0xff] %v12095_v2  ;;  %v4706_v52 = vrot.slane %v4705_v43, 4 }
 0x2e6   : > { %v3702_v40 = vrot.slane %v3700_v59, 7  ;;  %v4499_v59 = vld [vmem:[#allocation2 + $0x70] sm:$0xf]  ;;  %v5781_v9 = vunpack.c.l.b16 %v3959_v21  ;;  %v3973_v47 = vrot.slane %v3971_v13, 4  ;;  %v9626_v21 = vld [vmem:[%s13362_s3 + $0x1c8] sm:$0xff] }
 0x2e7   : > { %v4721_v19 = vsel %vm9879_vm5, %v4716_v1, %v4720_v62  ;;  %8147 = vmatpush.bf16.msra.mxu0 %v9628_v54  ;;  %v4732_v44 = vshll.u32 %v4499_v59, 16  ;;  %v4736_v48 = vshrl.u32 %v4499_v59, 16  ;;  %v9697_v13 = vld [vmem:[#allocation2 + $0x20] sm:$0x1]  ;;  %v3880_v62 = vld [vmem:[#allocation2 + $0x24] sm:$0xf] }
 0x2e8   : > { %v3705_v55 = vor.u32 %v3703_v20, %v3702_v40  ;;  %v3707_v56 = vrot.slane %v3702_v40, 4  ;;  %v12093_v20 = vrot.slane %v3980_v18, 5  ;;  %v9627_v18 = vld [vmem:[%s13362_s3 + $0x1d0] sm:$0xff]  ;;  %v4711_v40 = vsel %vm9879_vm5, %v4706_v52, %v12050_v16 }
 0x2e9   : > { %v5812_v60 = vpack.c.b16 %v5782_v10, %v5781_v9  ;;  %v12108_v43 = vpop.f32.mrf.mxu2  ;;  %v4738_v59 = vrot.slane %v4736_v48, 4  ;;  %v6001_v16 = vunpack.c.l.b16 %v4711_v40  ;;  %v3990_v10 = vshll.u32 %v9697_v13, 16 }
 0x2ea   : > { %v3706_v6 = vsel %vm11030_vm1, %v3698_v61, %v3705_v55  ;;  %v3872_v45 = vsel %vm11037_vm11, %v3707_v56, %v3871_v37  ;;  %v9551_v56 = vld [vmem:[#allocation2 + $0xb4] sm:$0xff]  ;;  %v4498_v61 = vld [vmem:[#allocation2 + $0x6c] sm:$0xf]  ;;  %v6002_v37 = vunpack.c.l.b16 %v4721_v19  ;;  %v3987_v63 = vor.u32 %v3986_v27, %v12093_v20 }
 0x2eb   : > { %8062 = vmatmul.bf16.vlgmr.msra.gmra.mxu1 %v9553_v41  ;;  %3870 = vst [vmem:[#allocation2 + $0xc4] sm:$0xf] %v3706_v6  ;;  %7865 = vmatmul.bf16.gmra.mxu0 %v9551_v56  ;;  %v3976_v41 = vrot.slane %v3974_v31, 5  ;;  %v4723_v1 = vshrl.u32 %v4498_v61, 16  ;;  %v4726_v54 = vshll.u32 %v4498_v61, 16  ;;  %v12110_v55 = vrot.slane %v4732_v44, 5  ;;  %v12115_v52 = vpop.f32.mrf.mxu1 }
 0x2ec   : > { %3873 = vst [vmem:[#allocation2 + $0xc8] sm:$0x1] %v3872_v45  ;;  %v12099_v51 = vpop.f32.mrf.mxu3  ;;  %8148 = vmatpush.bf16.msra.mxu0 %v9627_v18  ;;  %v5092_v31 = vld [vmem:[#allocation2 + $0x1c] sm:$0xf]  ;;  %v6026_v6 = vpack.c.b16 %v6002_v37, %v6001_v16  ;;  %v4522_v27 = vld [vmem:[#allocation2 + $0x74] sm:$0x1]  ;;  %v12120_v18 = vpop.f32.mrf.mxu0 }
 0x2ed   : > { %13432 = vst [vmem:[#allocation53_spill] sm:$0xff] %v12099_v51  ;;  %v3977_v45 = vor.u32 %v3976_v41, %v3973_v47  ;;  %v3988_v19 = vrot.slane %v3987_v63, 4  ;;  %v4725_v44 = vrot.slane %v4723_v1, 4  ;;  %v4728_v9 = vrot.slane %v4726_v54, 5  ;;  %v5091_v56 = vld [vmem:[#allocation2 + $0x18] sm:$0xf] }
 0x2ee   : > { %13433 = vst [vmem:[#allocation54_spill] sm:$0xff] %v12115_v52  ;;  %v4739_v48 = vor.u32 %v4738_v59, %v12110_v55  ;;  %v3995_v40 = vshrl.u32 %v3880_v62, 16  ;;  %v5149_v13 = vshll.u32 %v5092_v31, 16  ;;  %v5153_v37 = vshrl.u32 %v5092_v31, 16  ;;  %v9698_v16 = vld [vmem:[#allocation2 + $0x28] sm:$0xf] }
 0x2ef   : > { %13434 = vst [vmem:[#allocation55_spill] sm:$0xff] %v12120_v18  ;;  %v3992_v47 = vrot.slane %v3990_v10, 5  ;;  %v4742_v41 = vshll.u32 %v4522_v27, 16  ;;  %v4004_v52 = vshll.u32 %v9698_v16, 16  ;;  %v4008_v63 = vshrl.u32 %v9698_v16, 16  ;;  %v9625_v1 = vld [vmem:[%s13362_s3 + $0x1c0] sm:$0xff] }
 0x2f0   : > { %8149 = vmatpush.bf16.msra.mxu0 %v9626_v21  ;;  %v5140_v54 = vshrl.u32 %v5091_v56, 16  ;;  %v5143_v59 = vshll.u32 %v5091_v56, 16  ;;  %v9554_v21 = vld [vmem:[#allocation2 + $0x24] sm:$0xff]  ;;  %v3978_v18 = vrot.slane %v3977_v45, 4  ;;  %v4740_v31 = vrot.slane %v4739_v48, 4 }
 0x2f1   : > { %7622 = vmatmul.bf16.gmra.mxu3 %v5812_v60  ;;  %v3998_v60 = vshll.u32 %v3880_v62, 16  ;;  %v3993_v62 = vsel %vm9879_vm5, %v3988_v19, %v3992_v47  ;;  %v3997_v10 = vrot.slane %v3995_v40, 4  ;;  %v12129_v53 = vrot.slane %v5149_v13, 5  ;;  %v5123_v40 = vld [vmem:[#allocation2 + $0x20] sm:$0x1] }
 0x2f2   : > { %v5155_v16 = vrot.slane %v5153_v37, 4  ;;  %v3983_v56 = vsel %vm9879_vm5, %v3978_v18, %v12093_v20  ;;  %v4744_v0 = vrot.slane %v4742_v41, 5  ;;  %v12134_v7 = vrot.slane %v4004_v52, 5  ;;  %v4500_v52 = vld [vmem:[#allocation2 + $0x78] sm:$0xf] }
 0x2f3   : > { %v4000_v27 = vrot.slane %v3998_v60, 5  ;;  %v4010_v45 = vrot.slane %v4008_v63, 4  ;;  %v5784_v51 = vunpack.c.l.b16 %v3993_v62  ;;  %v5142_v19 = vrot.slane %v5140_v54, 4  ;;  %v12141_v18 = vpop.f32.mrf.mxu1 }
 0x2f4   : > { %v12118_v61 = vpop.f32.mrf.mxu3  ;;  %7919 = vmatmul.bf16.gmra.mxu2 %v6026_v6  ;;  %v4729_v6 = vor.u32 %v4728_v9, %v4725_v44  ;;  %8150 = vmatpush.bf16.msra.mxu0 %v9625_v1  ;;  %v5145_v44 = vrot.slane %v5143_v59, 5  ;;  %v4745_v48 = vsel %vm9879_vm5, %v4740_v31, %v4744_v0  ;;  %v4756_v60 = vshll.u32 %v4501_v25, 16  ;;  %v9552_v1 = vld [vmem:[#allocation2 + $0xc0] sm:$0xff]  ;;  %13436 = vst [vmem:[#allocation57_spill] sm:$0xff] %v12141_v18  ;;  %v9699_v0 = vld [vmem:[#allocation2 + $0x2c] sm:$0x1]  ;;  %v12147_v59 = vpop.f32.mrf.mxu0 }
 0x2f5   : > { %v4760_v13 = vshrl.u32 %v4501_v25, 16  ;;  %v5783_v47 = vunpack.c.l.b16 %v3983_v56  ;;  %v5156_v20 = vor.u32 %v5155_v16, %v12129_v53  ;;  %v4011_v63 = vor.u32 %v4010_v45, %v12134_v7  ;;  %13437 = vst [vmem:[#allocation58_spill] sm:$0xff] %v12147_v59 }
 0x2f6   : > { %v4730_v9 = vrot.slane %v4729_v6, 4  ;;  %v4014_v54 = vshll.u32 %v9699_v0, 16  ;;  %v6004_v62 = vunpack.c.l.b16 %v4745_v48  ;;  %v5146_v6 = vor.u32 %v5145_v44, %v5142_v19  ;;  %v9614_v19 = vld [vmem:[%s13362_s3 + $0x168] sm:$0xff]  ;;  %v9639_v44 = vld [vmem:[%s13362_s3 + $0x230] sm:$0xff] }
 0x2f7   : > { %v12125_v2 = vpop.f32.mrf.mxu2  ;;  %v5813_v25 = vpack.c.b16 %v5784_v51, %v5783_v47  ;;  %v5159_v31 = vshll.u32 %v5123_v40, 16  ;;  %v4750_v16 = vshll.u32 %v4500_v52, 16  ;;  %v12151_v56 = vrot.slane %v4756_v60, 5  ;;  %v3882_v51 = vld [vmem:[#allocation2 + $0x30] sm:$0xf]  ;;  %7967 = vmatpush.bf16.msra.mxu3 %v9614_v19  ;;  %8233 = vmatpush.bf16.msra.mxu2 %v9639_v44 }
 0x2f8   : > { %13435 = vst [vmem:[#allocation56_spill] sm:$0xff] %v12125_v2  ;;  %v4735_v41 = vsel %vm9879_vm5, %v4730_v9, %v12110_v55  ;;  %v4762_v18 = vrot.slane %v4760_v13, 4  ;;  %v5157_v45 = vrot.slane %v5156_v20, 4  ;;  %v4012_v0 = vrot.slane %v4011_v63, 4  ;;  %v4523_v60 = vld [vmem:[#allocation2 + $0x80] sm:$0x1] }
 0x2f9   : > { %v6003_v55 = vunpack.c.l.b16 %v4735_v41  ;;  %v4016_v59 = vrot.slane %v4014_v54, 5  ;;  %v5161_v40 = vrot.slane %v5159_v31, 5  ;;  %v5164_v13 = vshrl.u32 %v5093_v28, 16 }
 0x2fa   : > { %v5167_v47 = vshll.u32 %v5093_v28, 16  ;;  %v4752_v20 = vrot.slane %v4750_v16, 5  ;;  %v4019_v54 = vshrl.u32 %v3882_v51, 16  ;;  %v4022_v28 = vshll.u32 %v3882_v51, 16 }
 0x2fb   : > { %8067 = vmatmul.bf16.gmra.mxu1 %v9554_v21  ;;  %v4001_v21 = vor.u32 %v4000_v27, %v3997_v10  ;;  %7870 = vmatmul.bf16.gmra.mxu0 %v9552_v1  ;;  %v4747_v27 = vshrl.u32 %v4500_v52, 16  ;;  %v6027_v48 = vpack.c.b16 %v6004_v62, %v6003_v55  ;;  %v5147_v1 = vrot.slane %v5146_v6, 4  ;;  %v12164_v31 = vpop.f32.mrf.mxu1  ;;  %v9700_v6 = vld [vmem:[#allocation2 + $0x34] sm:$0xf] }
 0x2fc   : > { %v12138_v37 = vpop.f32.mrf.mxu3  ;;  %v4763_v52 = vor.u32 %v4762_v18, %v12151_v56  ;;  %v5162_v63 = vsel %vm9879_vm5, %v5157_v45, %v5161_v40  ;;  %v5177_v62 = vshrl.u32 %v5094_v46, 16  ;;  %13440 = vst [vmem:[#allocation61_spill] sm:$0xff] %v12164_v31  ;;  %v4766_v55 = vshll.u32 %v4523_v60, 16  ;;  %v12176_v31 = vpop.f32.mrf.mxu0 }
 0x2fd   : > { %v4002_v9 = vrot.slane %v4001_v21, 4  ;;  %v4749_v21 = vrot.slane %v4747_v27, 4  ;;  %v4028_v27 = vshll.u32 %v9700_v6, 16  ;;  %v4032_v16 = vshrl.u32 %v9700_v6, 16  ;;  %13442 = vst [vmem:[#allocation63_spill] sm:$0xff] %v12176_v31 }
 0x2fe   : > { %v4017_v19 = vsel %vm9879_vm5, %v4012_v0, %v4016_v59  ;;  %v5166_v44 = vrot.slane %v5164_v13, 4  ;;  %v4764_v51 = vrot.slane %v4763_v52, 4  ;;  %v5169_v60 = vrot.slane %v5167_v47, 5 }
 0x2ff   : > { %v12149_v10 = vpop.f32.mrf.mxu2  ;;  %v4007_v18 = vsel %vm9879_vm5, %v4002_v9, %v12134_v7  ;;  %v4753_v40 = vor.u32 %v4752_v20, %v4749_v21  ;;  %v6196_v6 = vunpack.c.l.b16 %v5162_v63  ;;  %v5179_v7 = vrot.slane %v5177_v62, 4  ;;  %v4503_v9 = vld [vmem:[#allocation2 + $0x88] sm:$0xf] }
 0x300   : > { %13438 = vst [vmem:[#allocation59_spill] sm:$0xff] %v12149_v10  ;;  %v4768_v59 = vrot.slane %v4766_v55, 5  ;;  %v4024_v0 = vrot.slane %v4022_v28, 5  ;;  %v12180_v13 = vrot.slane %v4028_v27, 5  ;;  %v5786_v2 = vunpack.c.l.b16 %v4017_v19  ;;  %v4502_v55 = vld [vmem:[#allocation2 + $0x84] sm:$0xf] }
 0x301   : > { %7627 = vmatmul.bf16.gmra.mxu3 %v5813_v25  ;;  %v5173_v25 = vshll.u32 %v5094_v46, 16  ;;  %v5152_v46 = vsel %vm9879_vm5, %v5147_v1, %v12129_v53  ;;  %v4754_v53 = vrot.slane %v4753_v40, 4  ;;  %v5124_v1 = vld [vmem:[#allocation2 + $0x2c] sm:$0x1]  ;;  %v4780_v21 = vshll.u32 %v4503_v9, 16 }
 0x302   : > { %v6195_v14 = vunpack.c.l.b16 %v5152_v46  ;;  %v4769_v47 = vsel %vm9879_vm5, %v4764_v51, %v4768_v59  ;;  %v4784_v20 = vshrl.u32 %v4503_v9, 16  ;;  %v5785_v63 = vunpack.c.l.b16 %v4007_v18  ;;  %v9701_v19 = vld [vmem:[#allocation2 + $0x38] sm:$0x1]  ;;  %v5096_v59 = vld [vmem:[#allocation2 + $0x34] sm:$0xf] }
 0x303   : > { %v12178_v10 = vrot.slane %v5173_v25, 5  ;;  %v5170_v25 = vor.u32 %v5169_v60, %v5166_v44  ;;  %v4759_v28 = vsel %vm9879_vm5, %v4754_v53, %v12151_v56  ;;  %v6006_v40 = vunpack.c.l.b16 %v4769_v47  ;;  %v12191_v9 = vpop.f32.mrf.mxu1  ;;  %v3884_v47 = vld [vmem:[#allocation2 + $0x3c] sm:$0xf] }
 0x304   : > { %v12160_v41 = vpop.f32.mrf.mxu3  ;;  %7924 = vmatmul.bf16.gmra.mxu2 %v6027_v48  ;;  %v9555_v48 = vld [vmem:[#allocation2 + $0x30] sm:$0xff]  ;;  %v5814_v46 = vpack.c.b16 %v5786_v2, %v5785_v63  ;;  %v5183_v51 = vshll.u32 %v5124_v1, 16  ;;  %13444 = vst [vmem:[#allocation65_spill] sm:$0xff] %v12191_v9  ;;  %v4771_v18 = vshrl.u32 %v4502_v55, 16  ;;  %v4774_v44 = vshll.u32 %v4502_v55, 16  ;;  %v12197_v1 = vpop.f32.mrf.mxu0 }
 0x305   : > { %13439 = vst [vmem:[#allocation60_spill] sm:$0xff] %v12160_v41  ;;  %v4021_v41 = vrot.slane %v4019_v54, 4  ;;  %v6227_v54 = vpack.c.b16 %v6196_v6, %v6195_v14  ;;  %v5180_v62 = vor.u32 %v5179_v7, %v12178_v10  ;;  %v12195_v60 = vrot.slane %v4780_v21, 5  ;;  %v5095_v7 = vld [vmem:[#allocation2 + $0x30] sm:$0xf] }
 0x306   : > { %v4786_v6 = vrot.slane %v4784_v20, 4  ;;  %v6005_v56 = vunpack.c.l.b16 %v4759_v28  ;;  %v5171_v53 = vrot.slane %v5170_v25, 4  ;;  %13446 = vst [vmem:[#allocation67_spill] sm:$0xff] %v12197_v1  ;;  %v5188_v9 = vshrl.u32 %v5095_v7, 16 }
 0x307   : > { %v12171_v45 = vpop.f32.mrf.mxu2  ;;  %v4025_v27 = vor.u32 %v4024_v0, %v4021_v41  ;;  %v5181_v41 = vrot.slane %v5180_v62, 4  ;;  %v5191_v55 = vshll.u32 %v5095_v7, 16  ;;  %v4773_v21 = vrot.slane %v4771_v18, 4 }
 0x308   : > { %13441 = vst [vmem:[#allocation62_spill] sm:$0xff] %v12171_v45  ;;  %v4034_v45 = vrot.slane %v4032_v16, 4  ;;  %v6028_v63 = vpack.c.b16 %v6006_v40, %v6005_v56  ;;  %v4776_v31 = vrot.slane %v4774_v44, 5  ;;  %v4787_v20 = vor.u32 %v4786_v6, %v12195_v60  ;;  %v9702_v44 = vld [vmem:[#allocation2 + $0x40] sm:$0xf] }
 0x309   : > { %v5197_v28 = vshll.u32 %v5096_v59, 16  ;;  %v4043_v25 = vshrl.u32 %v3884_v47, 16  ;;  %v5176_v18 = vsel %vm9879_vm5, %v5171_v53, %v12178_v10  ;;  %v4052_v6 = vshll.u32 %v9702_v44, 16 }
 0x30a   : > { %v4035_v16 = vor.u32 %v4034_v45, %v12180_v13  ;;  %v4026_v45 = vrot.slane %v4025_v27, 4  ;;  %v4056_v7 = vshrl.u32 %v9702_v44, 16  ;;  %v5190_v56 = vrot.slane %v5188_v9, 4 }
 0x30b   : > { %8072 = vmatmul.bf16.gmra.mxu1 %v9555_v48  ;;  %v4038_v48 = vshll.u32 %v9701_v19, 16  ;;  %8151 = vmatmul.bf16.vlgmr.msra.gmra.mxu0 %v6227_v54  ;;  %v5185_v54 = vrot.slane %v5183_v51, 5  ;;  %v4524_v19 = vld [vmem:[#allocation2 + $0x8c] sm:$0x1]  ;;  %v4045_v1 = vrot.slane %v4043_v25, 4  ;;  %v6197_v9 = vunpack.c.l.b16 %v5176_v18 }
 0x30c   : > { %v12184_v52 = vpop.f32.mrf.mxu3  ;;  %v4036_v0 = vrot.slane %v4035_v16, 4  ;;  %v4046_v16 = vshll.u32 %v3884_v47, 16  ;;  %v4790_v51 = vshll.u32 %v4524_v19, 16  ;;  %v9556_v47 = vld [vmem:[#allocation2 + $0x3c] sm:$0xff] }
 0x30d   : > { %13443 = vst [vmem:[#allocation64_spill] sm:$0xff] %v12184_v52  ;;  %v4040_v2 = vrot.slane %v4038_v48, 5  ;;  %v5186_v27 = vsel %vm9879_vm5, %v5181_v41, %v5185_v54  ;;  %v5201_v48 = vshrl.u32 %v5096_v59, 16  ;;  %v12212_v41 = vpop.f32.mrf.mxu1  ;;  %v4777_v54 = vor.u32 %v4776_v31, %v4773_v21 }
 0x30e   : > { %13448 = vst [vmem:[#allocation69_spill] sm:$0xff] %v12212_v41  ;;  %v4792_v53 = vrot.slane %v4790_v51, 5  ;;  %v12218_v52 = vrot.slane %v4052_v6, 5  ;;  %v4058_v41 = vrot.slane %v4056_v7, 4  ;;  %v9703_v51 = vld [vmem:[#allocation2 + $0x44] sm:$0x1] }
 0x30f   : > { %v12193_v14 = vpop.f32.mrf.mxu2  ;;  %v4041_v40 = vsel %vm9879_vm5, %v4036_v0, %v4040_v2  ;;  %v4048_v0 = vrot.slane %v4046_v16, 5  ;;  %v12216_v2 = vrot.slane %v5197_v28, 5  ;;  %v5203_v19 = vrot.slane %v5201_v48, 4 }
 0x310   : > { %13445 = vst [vmem:[#allocation66_spill] sm:$0xff] %v12193_v14  ;;  %v4505_v14 = vld [vmem:[#allocation2 + $0x94] sm:$0xf]  ;;  %v5788_v44 = vunpack.c.l.b16 %v4041_v40  ;;  %v4062_v18 = vshll.u32 %v9703_v51, 16 }
 0x311   : > { %7632 = vmatmul.bf16.gmra.mxu3 %v5814_v46  ;;  %v4031_v46 = vsel %vm9879_vm5, %v4026_v45, %v12180_v13  ;;  %v4788_v13 = vrot.slane %v4787_v20, 4  ;;  %v5193_v45 = vrot.slane %v5191_v55, 5  ;;  %v4804_v55 = vshll.u32 %v4505_v14, 16  ;;  %v12222_v20 = vpop.f32.mrf.mxu0 }
 0x312   : > { %v5787_v10 = vunpack.c.l.b16 %v4031_v46  ;;  %v4808_v21 = vshrl.u32 %v4505_v14, 16  ;;  %13450 = vst [vmem:[#allocation71_spill] sm:$0xff] %v12222_v20  ;;  %v4049_v25 = vor.u32 %v4048_v0, %v4045_v1  ;;  %v5204_v48 = vor.u32 %v5203_v19, %v12216_v2  ;;  %v4504_v46 = vld [vmem:[#allocation2 + $0x90] sm:$0xf] }
 0x313   : > { %v4793_v31 = vsel %vm9879_vm5, %v4788_v13, %v4792_v53  ;;  %v5194_v16 = vor.u32 %v5193_v45, %v5190_v56  ;;  %v4798_v1 = vshll.u32 %v4504_v46, 16  ;;  %v12233_v56 = vrot.slane %v4804_v55, 5  ;;  %v5097_v45 = vld [vmem:[#allocation2 + $0x3c] sm:$0xf] }
 0x314   : > { %v12200_v62 = vpop.f32.mrf.mxu3  ;;  %7929 = vmatmul.bf16.gmra.mxu2 %v6028_v63  ;;  %v6198_v63 = vunpack.c.l.b16 %v5186_v27  ;;  %v5815_v7 = vpack.c.b16 %v5788_v44, %v5787_v10  ;;  %v6008_v14 = vunpack.c.l.b16 %v4793_v31  ;;  %v4810_v13 = vrot.slane %v4808_v21, 4  ;;  %v3886_v44 = vld [vmem:[#allocation2 + $0x48] sm:$0xf] }
 0x315   : > { %13447 = vst [vmem:[#allocation68_spill] sm:$0xff] %v12200_v62  ;;  %v5125_v62 = vld [vmem:[#allocation2 + $0x38] sm:$0x1]  ;;  %v4050_v19 = vrot.slane %v4049_v25, 4  ;;  %v5195_v53 = vrot.slane %v5194_v16, 4  ;;  %v9638_v31 = vld [vmem:[%s13362_s3 + $0x228] sm:$0xff] }
 0x316   : > { %v6228_v27 = vpack.c.b16 %v6198_v63, %v6197_v9  ;;  %v5207_v6 = vshll.u32 %v5125_v62, 16  ;;  %v4795_v63 = vshrl.u32 %v4504_v46, 16  ;;  %v12235_v9 = vpop.f32.mrf.mxu1  ;;  %v4064_v62 = vrot.slane %v4062_v18, 5  ;;  %v9704_v25 = vld [vmem:[#allocation2 + $0x4c] sm:$0xf]  ;;  %8234 = vmatpush.bf16.msra.mxu2 %v9638_v31 }
 0x317   : > { %v12214_v59 = vpop.f32.mrf.mxu2  ;;  %13453 = vst [vmem:[#allocation74_spill] sm:$0xff] %v12235_v9  ;;  %v4076_v16 = vshll.u32 %v9704_v25, 16  ;;  %v4055_v46 = vsel %vm9879_vm5, %v4050_v19, %v12218_v52  ;;  %v4800_v51 = vrot.slane %v4798_v1, 5  ;;  %v4811_v18 = vor.u32 %v4810_v13, %v12233_v56  ;;  %v9557_v31 = vld [vmem:[#allocation2 + $0x48] sm:$0xff] }
 0x318   : > { %13449 = vst [vmem:[#allocation70_spill] sm:$0xff] %v12214_v59  ;;  %v4778_v59 = vrot.slane %v4777_v54, 4  ;;  %v5209_v10 = vrot.slane %v5207_v6, 5 }
 0x319   : > { %v12256_v13 = vrot.slane %v4076_v16, 5 }
 0x31a   : > { %v4783_v40 = vsel %vm9879_vm5, %v4778_v59, %v12195_v60  ;;  %v5205_v60 = vrot.slane %v5204_v48, 4  ;;  %v5098_v59 = vld [vmem:[#allocation2 + $0x40] sm:$0xf]  ;;  %v4080_v48 = vshrl.u32 %v9704_v25, 16 }
 0x31b   : > { %8077 = vmatmul.bf16.gmra.mxu1 %v9556_v47  ;;  %8156 = vmatmul.bf16.gmra.mxu0 %v6228_v27  ;;  %v4059_v47 = vor.u32 %v4058_v41, %v12218_v52  ;;  %v6007_v0 = vunpack.c.l.b16 %v4783_v40  ;;  %v9613_v41 = vld [vmem:[%s13362_s3 + $0x160] sm:$0xff]  ;;  %v4525_v27 = vld [vmem:[#allocation2 + $0x98] sm:$0x1]  ;;  %v4797_v40 = vrot.slane %v4795_v63, 4  ;;  %v5221_v9 = vshll.u32 %v5098_v59, 16  ;;  %v12252_v63 = vpop.f32.mrf.mxu0 }
 0x31c   : > { %v12224_v28 = vpop.f32.mrf.mxu3  ;;  %7968 = vmatpush.bf16.msra.mxu3 %v9613_v41  ;;  %v5225_v52 = vshrl.u32 %v5098_v59, 16  ;;  %13454 = vst [vmem:[#allocation75_spill] sm:$0xff] %v12252_v63  ;;  %v4082_v19 = vrot.slane %v4080_v48, 4  ;;  %v5215_v41 = vshll.u32 %v5097_v45, 16  ;;  %v4507_v63 = vld [vmem:[#allocation2 + $0xa0] sm:$0xf] }
 0x31d   : > { %13451 = vst [vmem:[#allocation72_spill] sm:$0xff] %v12224_v28  ;;  %v6029_v55 = vpack.c.b16 %v6008_v14, %v6007_v0  ;;  %v4060_v21 = vrot.slane %v4059_v47, 4  ;;  %v4067_v14 = vshrl.u32 %v3886_v44, 16  ;;  %v4070_v47 = vshll.u32 %v3886_v44, 16 }
 0x31e   : > { %v5212_v0 = vshrl.u32 %v5097_v45, 16  ;;  %v4814_v28 = vshll.u32 %v4525_v27, 16  ;;  %v4812_v44 = vrot.slane %v4811_v18, 4  ;;  %v12263_v20 = vpop.f32.mrf.mxu1  ;;  %v12265_v45 = vrot.slane %v5221_v9, 5  ;;  %v9705_v9 = vld [vmem:[#allocation2 + $0x50] sm:$0x1] }
 0x31f   : > { %v12231_v54 = vpop.f32.mrf.mxu2  ;;  %v4065_v1 = vsel %vm9879_vm5, %v4060_v21, %v4064_v62  ;;  %v4069_v27 = vrot.slane %v4067_v14, 4  ;;  %13456 = vst [vmem:[#allocation77_spill] sm:$0xff] %v12263_v20  ;;  %v5227_v16 = vrot.slane %v5225_v52, 4  ;;  %v4832_v18 = vshrl.u32 %v4507_v63, 16 }
 0x320   : > { %13452 = vst [vmem:[#allocation73_spill] sm:$0xff] %v12231_v54  ;;  %v5790_v62 = vunpack.c.l.b16 %v4065_v1  ;;  %v4816_v21 = vrot.slane %v4814_v28, 5  ;;  %v5214_v54 = vrot.slane %v5212_v0, 4  ;;  %v4086_v52 = vshll.u32 %v9705_v9, 16 }
 0x321   : > { %7637 = vmatmul.bf16.gmra.mxu3 %v5815_v7  ;;  %v5210_v7 = vsel %vm9879_vm5, %v5205_v60, %v5209_v10  ;;  %v4801_v10 = vor.u32 %v4800_v51, %v4797_v40  ;;  %v5126_v40 = vld [vmem:[#allocation2 + $0x44] sm:$0x1]  ;;  %v4828_v51 = vshll.u32 %v4507_v63, 16  ;;  %v5228_v0 = vor.u32 %v5227_v16, %v12265_v45 }
 0x322   : > { %v6200_v59 = vunpack.c.l.b16 %v5210_v7 }
 0x323   : > { %v5229_v16 = vrot.slane %v5228_v0, 4 }
 0x324   : > { %v7594_v6 = vpop.f32.mrf.mxu3  ;;  %7934 = vmatmul.bf16.gmra.mxu2 %v6029_v55  ;;  %v5789_v55 = vunpack.c.l.b16 %v4055_v46  ;;  %v4817_v46 = vsel %vm9879_vm5, %v4812_v44, %v4816_v21  ;;  %v4088_v21 = vrot.slane %v4086_v52, 5 }
 0x325   : > { %v12250_v25 = vadd.f32 %v7594_v6, %v12065_v30  ;;  %v5200_v30 = vsel %vm9879_vm5, %v5195_v53, %v12216_v2  ;;  %v4072_v6 = vrot.slane %v4070_v47, 5  ;;  %v5217_v2 = vrot.slane %v5215_v41, 5  ;;  %v4506_v47 = vld [vmem:[#allocation2 + $0x9c] sm:$0xf] }
 0x326   : > { %v6199_v48 = vunpack.c.l.b16 %v5200_v30  ;;  %v4802_v53 = vrot.slane %v4801_v10, 4  ;;  %v5816_v1 = vpack.c.b16 %v5790_v62, %v5789_v55  ;;  %v5231_v30 = vshll.u32 %v5126_v40, 16  ;;  %v5100_v40 = vld [vmem:[#allocation2 + $0x4c] sm:$0xf] }
 0x327   : > { %v12258_v60 = vpop.f32.mrf.mxu2  ;;  %v4073_v14 = vor.u32 %v4072_v6, %v4069_v27  ;;  %v4819_v63 = vshrl.u32 %v4506_v47, 16  ;;  %v4822_v44 = vshll.u32 %v4506_v47, 16  ;;  %v4834_v55 = vrot.slane %v4832_v18, 4  ;;  %v12278_v27 = vpop.f32.mrf.mxu0 }
 0x328   : > { %13455 = vst [vmem:[#allocation76_spill] sm:$0xff] %v12258_v60  ;;  %v4083_v60 = vor.u32 %v4082_v19, %v12256_v13  ;;  %v6229_v7 = vpack.c.b16 %v6200_v59, %v6199_v48  ;;  %v4807_v28 = vsel %vm9879_vm5, %v4802_v53, %v12233_v56  ;;  %v6010_v19 = vunpack.c.l.b16 %v4817_v46  ;;  %v3888_v48 = vld [vmem:[#allocation2 + $0x54] sm:$0xf]  ;;  %v4526_v46 = vld [vmem:[#allocation2 + $0xa4] sm:$0x1] }
 0x329   : > { %v12276_v59 = vrot.slane %v4828_v51, 5  ;;  %13458 = vst [vmem:[#allocation79_spill] sm:$0xff] %v12278_v27  ;;  %v6009_v56 = vunpack.c.l.b16 %v4807_v28  ;;  %v4074_v62 = vrot.slane %v4073_v14, 4  ;;  %v5233_v53 = vrot.slane %v5231_v30, 5  ;;  %v12285_v51 = vpop.f32.mrf.mxu1 }
 0x32a   : > { %v4084_v41 = vrot.slane %v4083_v60, 4  ;;  %13459 = vst [vmem:[#allocation80_spill] sm:$0xff] %v12285_v51  ;;  %v4824_v14 = vrot.slane %v4822_v44, 5  ;;  %v4094_v9 = vshll.u32 %v3888_v48, 16  ;;  %v4838_v0 = vshll.u32 %v4526_v46, 16 }
 0x32b   : > { %8082 = vmatmul.bf16.gmra.mxu1 %v9557_v31  ;;  %8161 = vmatmul.bf16.gmra.mxu0 %v6229_v7  ;;  %v5218_v31 = vor.u32 %v5217_v2, %v5214_v54  ;;  %v6030_v60 = vpack.c.b16 %v6010_v19, %v6009_v56  ;;  %v4079_v54 = vsel %vm9879_vm5, %v4074_v62, %v12256_v13  ;;  %v4821_v7 = vrot.slane %v4819_v63, 4  ;;  %v9558_v56 = vld [vmem:[#allocation2 + $0x54] sm:$0xff] }
 0x32c   : > { %v12280_v6 = vpop.f32.mrf.mxu3  ;;  %v4089_v18 = vsel %vm9879_vm5, %v4084_v41, %v4088_v21  ;;  %v4835_v47 = vor.u32 %v4834_v55, %v12276_v59  ;;  %v4091_v13 = vshrl.u32 %v3888_v48, 16  ;;  %v5234_v52 = vsel %vm9879_vm5, %v5229_v16, %v5233_v53 }
 0x32d   : > { %v5219_v2 = vrot.slane %v5218_v31, 4  ;;  %v5245_v19 = vshll.u32 %v5100_v40, 16  ;;  %v5249_v31 = vshrl.u32 %v5100_v40, 16  ;;  %v5791_v30 = vunpack.c.l.b16 %v4079_v54 }
 0x32e   : > { %v5792_v41 = vunpack.c.l.b16 %v4089_v18  ;;  %v4825_v62 = vor.u32 %v4824_v14, %v4821_v7  ;;  %v4836_v21 = vrot.slane %v4835_v47, 4  ;;  %v6202_v20 = vunpack.c.l.b16 %v5234_v52  ;;  %v4509_v18 = vld [vmem:[#allocation2 + $0xac] sm:$0xf] }
 0x32f   : > { %v12274_v10 = vpop.f32.mrf.mxu2  ;;  %v5224_v28 = vsel %vm9879_vm5, %v5219_v2, %v12265_v45  ;;  %v4093_v27 = vrot.slane %v4091_v13, 4  ;;  %v4096_v16 = vrot.slane %v4094_v9, 5  ;;  %v4840_v54 = vrot.slane %v4838_v0, 5  ;;  %v5127_v0 = vld [vmem:[#allocation2 + $0x50] sm:$0x1] }
 0x330   : > { %13457 = vst [vmem:[#allocation78_spill] sm:$0xff] %v12274_v10  ;;  %v6201_v48 = vunpack.c.l.b16 %v5224_v28  ;;  %v12300_v46 = vrot.slane %v5245_v19, 5  ;;  %v5251_v40 = vrot.slane %v5249_v31, 4  ;;  %v4852_v47 = vshll.u32 %v4509_v18, 16  ;;  %v4508_v19 = vld [vmem:[#allocation2 + $0xa8] sm:$0xf] }
 0x331   : > { %7642 = vmatmul.bf16.gmra.mxu3 %v5816_v1  ;;  %v5099_v1 = vld [vmem:[#allocation2 + $0x48] sm:$0xf]  ;;  %v4826_v28 = vrot.slane %v4825_v62, 4  ;;  %v4841_v13 = vsel %vm9879_vm5, %v4836_v21, %v4840_v54  ;;  %v5817_v31 = vpack.c.b16 %v5792_v41, %v5791_v30  ;;  %v4846_v30 = vshll.u32 %v4508_v19, 16 }
 0x332   : > { %v5236_v63 = vshrl.u32 %v5099_v1, 16  ;;  %v5239_v44 = vshll.u32 %v5099_v1, 16  ;;  %v12302_v1 = vpop.f32.mrf.mxu0  ;;  %v6230_v52 = vpack.c.b16 %v6202_v20, %v6201_v48  ;;  %v4843_v48 = vshrl.u32 %v4508_v19, 16 }
 0x333   : > { %13461 = vst [vmem:[#allocation82_spill] sm:$0xff] %v12302_v1  ;;  %v4848_v19 = vrot.slane %v4846_v30, 5 }
 0x334   : > { %7939 = vmatmul.bf16.gmra.mxu2 %v6030_v60  ;;  %v9706_v60 = vld [vmem:[#allocation2 + $0x58] sm:$0xf]  ;;  %v5238_v7 = vrot.slane %v5236_v63, 4  ;;  %v5241_v14 = vrot.slane %v5239_v44, 5  ;;  %v4831_v63 = vsel %vm9879_vm5, %v4826_v28, %v12276_v59  ;;  %v4097_v44 = vor.u32 %v4096_v16, %v4093_v27 }
 0x335   : > { %v4100_v51 = vshll.u32 %v9706_v60, 16  ;;  %v4104_v45 = vshrl.u32 %v9706_v60, 16  ;;  %v4856_v60 = vshrl.u32 %v4509_v18, 16  ;;  %v12314_v18 = vrot.slane %v4852_v47, 5  ;;  %v5102_v27 = vld [vmem:[#allocation2 + $0x58] sm:$0xf] }
 0x336   : > { %v5242_v62 = vor.u32 %v5241_v14, %v5238_v7  ;;  %v6011_v41 = vunpack.c.l.b16 %v4831_v63  ;;  %v4527_v7 = vld [vmem:[#allocation2 + $0xb0] sm:$0x1]  ;;  %v9612_v14 = vld [vmem:[%s13362_s3 + $0x158] sm:$0xff]  ;;  %v9637_v47 = vld [vmem:[%s13362_s3 + $0x220] sm:$0xff]  ;;  %v4098_v28 = vrot.slane %v4097_v44, 4  ;;  %v5269_v1 = vshll.u32 %v5102_v27, 16 }
 0x337   : > { %v12295_v55 = vpop.f32.mrf.mxu2  ;;  %v7599_v2 = vpop.f32.mrf.mxu3  ;;  %v12308_v9 = vrot.slane %v4100_v51, 5  ;;  %v4858_v21 = vrot.slane %v4856_v60, 4  ;;  %7969 = vmatpush.bf16.msra.mxu3 %v9612_v14  ;;  %8235 = vmatpush.bf16.msra.mxu2 %v9637_v47 }
 0x338   : > { %13460 = vst [vmem:[#allocation81_spill] sm:$0xff] %v12295_v55  ;;  %v12298_v53 = vadd.f32 %v7599_v2, %v12118_v61  ;;  %v12304_v55 = vpop.f32.mrf.mxu1  ;;  %v4106_v61 = vrot.slane %v4104_v45, 4  ;;  %v6012_v2 = vunpack.c.l.b16 %v4841_v13  ;;  %v5255_v45 = vshll.u32 %v5127_v0, 16 }
 0x339   : > { %13462 = vst [vmem:[#allocation83_spill] sm:$0xff] %v12304_v55  ;;  %v9707_v55 = vld [vmem:[#allocation2 + $0x5c] sm:$0x1]  ;;  %v5243_v13 = vrot.slane %v5242_v62, 4  ;;  %v9708_v62 = vld [vmem:[#allocation2 + $0x64] sm:$0xf] }
 0x33a   : > { %v4107_v20 = vor.u32 %v4106_v61, %v12308_v9  ;;  %v4110_v59 = vshll.u32 %v9707_v55, 16  ;;  %v6031_v60 = vpack.c.b16 %v6012_v2, %v6011_v41  ;;  %v4859_v55 = vor.u32 %v4858_v21, %v12314_v18  ;;  %v5101_v61 = vld [vmem:[#allocation2 + $0x54] sm:$0xf] }
 0x33b   : > { %8087 = vmatmul.bf16.gmra.mxu1 %v9558_v56  ;;  %v5252_v56 = vor.u32 %v5251_v40, %v12300_v46  ;;  %8166 = vmatmul.bf16.gmra.mxu0 %v6230_v52  ;;  %v5257_v0 = vrot.slane %v5255_v45, 5  ;;  %v4124_v21 = vshll.u32 %v9708_v62, 16  ;;  %v5260_v45 = vshrl.u32 %v5101_v61, 16 }
 0x33c   : > { %v4108_v52 = vrot.slane %v4107_v20, 4  ;;  %v4112_v63 = vrot.slane %v4110_v59, 5  ;;  %v4128_v20 = vshrl.u32 %v9708_v62, 16  ;;  %v5248_v30 = vsel %vm9879_vm5, %v5243_v13, %v12300_v46 }
 0x33d   : > { %v5253_v40 = vrot.slane %v5252_v56, 4  ;;  %v4862_v56 = vshll.u32 %v4527_v7, 16  ;;  %v4860_v41 = vrot.slane %v4859_v55, 4  ;;  %v5263_v59 = vshll.u32 %v5101_v61, 16  ;;  %v4511_v55 = vld [vmem:[#allocation2 + $0xb8] sm:$0xf] }
 0x33e   : > { %v4130_v46 = vrot.slane %v4128_v20, 4  ;;  %v5262_v13 = vrot.slane %v5260_v45, 4 }
 0x33f   : > { %v12316_v51 = vpop.f32.mrf.mxu2  ;;  %v7601_v54 = vpop.f32.mrf.mxu3  ;;  %v5258_v44 = vsel %vm9879_vm5, %v5253_v40, %v5257_v0  ;;  %v4113_v40 = vsel %vm9879_vm5, %v4108_v52, %v4112_v63  ;;  %v4864_v62 = vrot.slane %v4862_v56, 5  ;;  %v5128_v52 = vld [vmem:[#allocation2 + $0x5c] sm:$0x1] }
 0x340   : > { %13463 = vst [vmem:[#allocation84_spill] sm:$0xff] %v12316_v51  ;;  %v12320_v16 = vadd.f32 %v7601_v54, %v12138_v37  ;;  %v4845_v37 = vrot.slane %v4843_v48, 4  ;;  %v3890_v54 = vld [vmem:[#allocation2 + $0x60] sm:$0xf]  ;;  %v5273_v51 = vshrl.u32 %v5102_v27, 16  ;;  %v12331_v2 = vpop.f32.mrf.mxu1  ;;  %v4103_v48 = vsel %vm9879_vm5, %v4098_v28, %v12308_v9 }
 0x341   : > { %7647 = vmatmul.bf16.gmra.mxu3 %v5817_v31  ;;  %v12329_v31 = vpop.f32.mrf.mxu0  ;;  %13465 = vst [vmem:[#allocation86_spill] sm:$0xff] %v12331_v2  ;;  %v9559_v27 = vld [vmem:[#allocation2 + $0x60] sm:$0xff]  ;;  %v4115_v47 = vshrl.u32 %v3890_v54, 16  ;;  %v6204_v0 = vunpack.c.l.b16 %v5258_v44  ;;  %v12345_v2 = vrot.slane %v5269_v1, 5  ;;  %v6203_v28 = vunpack.c.l.b16 %v5248_v30  ;;  %v4510_v44 = vld [vmem:[#allocation2 + $0xb4] sm:$0xf] }
 0x342   : > { %13464 = vst [vmem:[#allocation85_spill] sm:$0xff] %v12329_v31  ;;  %v4849_v14 = vor.u32 %v4848_v19, %v4845_v37  ;;  %v5275_v9 = vrot.slane %v5273_v51, 4  ;;  %v12347_v31 = vrot.slane %v4124_v21, 5  ;;  %v5794_v61 = vunpack.c.l.b16 %v4113_v40 }
 0x343   : > { %v4876_v37 = vshll.u32 %v4511_v55, 16  ;;  %v4880_v19 = vshrl.u32 %v4511_v55, 16  ;;  %v5265_v1 = vrot.slane %v5263_v59, 5  ;;  %v5793_v51 = vunpack.c.l.b16 %v4103_v48 }
 0x344   : > { %7944 = vmatmul.bf16.gmra.mxu2 %v6031_v60  ;;  %v4118_v60 = vshll.u32 %v3890_v54, 16  ;;  %v4850_v63 = vrot.slane %v4849_v14, 4  ;;  %v4117_v54 = vrot.slane %v4115_v47, 4  ;;  %v5276_v21 = vor.u32 %v5275_v9, %v12345_v2 }
 0x345   : > { %v5279_v40 = vshll.u32 %v5128_v52, 16  ;;  %v4867_v14 = vshrl.u32 %v4510_v44, 16  ;;  %v4870_v59 = vshll.u32 %v4510_v44, 16  ;;  %v12360_v47 = vrot.slane %v4876_v37, 5 }
 0x346   : > { %v4120_v56 = vrot.slane %v4118_v60, 5  ;;  %v4855_v20 = vsel %vm9879_vm5, %v4850_v63, %v12314_v18  ;;  %v4882_v48 = vrot.slane %v4880_v19, 4  ;;  %v5818_v60 = vpack.c.b16 %v5794_v61, %v5793_v51  ;;  %v5103_v63 = vld [vmem:[#allocation2 + $0x60] sm:$0xf] }
 0x347   : > { %v12341_v7 = vpop.f32.mrf.mxu2  ;;  %v6013_v55 = vunpack.c.l.b16 %v4855_v20  ;;  %v4869_v44 = vrot.slane %v4867_v14, 4  ;;  %v4872_v37 = vrot.slane %v4870_v59, 5 }
 0x348   : > { %13466 = vst [vmem:[#allocation87_spill] sm:$0xff] %v12341_v7  ;;  %v4865_v7 = vsel %vm9879_vm5, %v4860_v41, %v4864_v62  ;;  %v12352_v30 = vpop.f32.mrf.mxu1  ;;  %v4131_v41 = vor.u32 %v4130_v46, %v12347_v31  ;;  %v4121_v9 = vor.u32 %v4120_v56, %v4117_v54  ;;  %v5104_v46 = vld [vmem:[#allocation2 + $0x64] sm:$0xf]  ;;  %v4883_v19 = vor.u32 %v4882_v48, %v12360_v47  ;;  %v9560_v48 = vld [vmem:[#allocation2 + $0x6c] sm:$0xff] }
 0x349   : > { %13467 = vst [vmem:[#allocation88_spill] sm:$0xff] %v12352_v30  ;;  %v6014_v45 = vunpack.c.l.b16 %v4865_v7  ;;  %v12358_v62 = vpop.f32.mrf.mxu0  ;;  %v9709_v30 = vld [vmem:[#allocation2 + $0x68] sm:$0x1]  ;;  %v5277_v7 = vrot.slane %v5276_v21, 4  ;;  %v5293_v54 = vshll.u32 %v5104_v46, 16  ;;  %v4873_v14 = vor.u32 %v4872_v37, %v4869_v44 }
 0x34a   : > { %13468 = vst [vmem:[#allocation89_spill] sm:$0xff] %v12358_v62  ;;  %v4134_v18 = vshll.u32 %v9709_v30, 16  ;;  %v4132_v52 = vrot.slane %v4131_v41, 4  ;;  %v5281_v62 = vrot.slane %v5279_v40, 5  ;;  %v4122_v61 = vrot.slane %v4121_v9, 4 }
 0x34b   : > { %8092 = vmatmul.bf16.gmra.mxu1 %v9559_v27  ;;  %v6231_v27 = vpack.c.b16 %v6204_v0, %v6203_v28  ;;  %v5266_v28 = vor.u32 %v5265_v1, %v5262_v13  ;;  %v6032_v10 = vpack.c.b16 %v6014_v45, %v6013_v55  ;;  %v5297_v30 = vshrl.u32 %v5104_v46, 16  ;;  %v3892_v9 = vld [vmem:[#allocation2 + $0x6c] sm:$0xf] }
 0x34c   : > { %v4136_v56 = vrot.slane %v4134_v18, 5  ;;  %v5282_v1 = vsel %vm9879_vm5, %v5277_v7, %v5281_v62  ;;  %v5287_v45 = vshll.u32 %v5103_v63, 16  ;;  %v4127_v41 = vsel %vm9879_vm5, %v4122_v61, %v12347_v31  ;;  %v9710_v31 = vld [vmem:[#allocation2 + $0x70] sm:$0xf]  ;;  %v4513_v61 = vld [vmem:[#allocation2 + $0xc4] sm:$0xf] }
 0x34d   : > { %8171 = vmatmul.bf16.gmra.mxu0 %v6231_v27  ;;  %v4528_v27 = vld [vmem:[#allocation2 + $0xbc] sm:$0x1]  ;;  %v5267_v51 = vrot.slane %v5266_v28, 4  ;;  %v4148_v7 = vshll.u32 %v9710_v31, 16  ;;  %v5299_v46 = vrot.slane %v5297_v30, 4 }
 0x34e   : > { %v4886_v21 = vshll.u32 %v4528_v27, 16  ;;  %v4137_v40 = vsel %vm9879_vm5, %v4132_v52, %v4136_v56  ;;  %v5795_v52 = vunpack.c.l.b16 %v4127_v41  ;;  %v5289_v37 = vrot.slane %v5287_v45, 5 }
 0x34f   : > { %v12362_v0 = vpop.f32.mrf.mxu2  ;;  %v5272_v20 = vsel %vm9879_vm5, %v5267_v51, %v12345_v2  ;;  %v12383_v2 = vrot.slane %v5293_v54, 5  ;;  %v5796_v27 = vunpack.c.l.b16 %v4137_v40  ;;  %v4874_v51 = vrot.slane %v4873_v14, 4 }
 0x350   : > { %13469 = vst [vmem:[#allocation90_spill] sm:$0xff] %v12362_v0  ;;  %v5284_v0 = vshrl.u32 %v5103_v63, 16  ;;  %v12377_v59 = vpop.f32.mrf.mxu1  ;;  %v4888_v18 = vrot.slane %v4886_v21, 5  ;;  %v4152_v63 = vshrl.u32 %v9710_v31, 16  ;;  %v6205_v44 = vunpack.c.l.b16 %v5272_v20  ;;  %v12392_v21 = vld [vmem:[%s13362_s3 + $0x218] sm:$0xff] }
 0x351   : > { %7652 = vmatmul.bf16.gmra.mxu3 %v5818_v60  ;;  %13471 = vst [vmem:[#allocation92_spill] sm:$0xff] %v12377_v59  ;;  %v6206_v60 = vunpack.c.l.b16 %v5282_v1  ;;  %v12385_v55 = vpop.f32.mrf.mxu0  ;;  %v4139_v54 = vshrl.u32 %v3892_v9, 16  ;;  %v4142_v56 = vshll.u32 %v3892_v9, 16  ;;  %v5129_v1 = vld [vmem:[#allocation2 + $0x68] sm:$0x1]  ;;  %v4900_v41 = vshll.u32 %v4513_v61, 16  ;;  %8236 = vmatpush.bf16.msra.mxu2 %v12392_v21 }
 0x352   : > { %v12381_v28 = vrot.slane %v5284_v0, 4  ;;  %13473 = vst [vmem:[#allocation94_spill] sm:$0xff] %v12385_v55  ;;  %v4904_v40 = vshrl.u32 %v4513_v61, 16  ;;  %v12396_v31 = vrot.slane %v4148_v7, 5  ;;  %v4154_v14 = vrot.slane %v4152_v63, 4 }
 0x353   : > { %v6232_v45 = vpack.c.b16 %v6206_v60, %v6205_v44  ;;  %v4879_v9 = vsel %vm9879_vm5, %v4874_v51, %v12360_v47  ;;  %v5819_v59 = vpack.c.b16 %v5796_v27, %v5795_v52  ;;  %v4141_v55 = vrot.slane %v4139_v54, 4  ;;  %v9611_v54 = vld [vmem:[%s13362_s3 + $0x150] sm:$0xff] }
 0x354   : > { %v12365_v13 = vpop.f32.mrf.mxu3  ;;  %7949 = vmatmul.bf16.gmra.mxu2 %v6032_v10  ;;  %v4884_v10 = vrot.slane %v4883_v19, 4  ;;  %v4512_v19 = vld [vmem:[#allocation2 + $0xc0] sm:$0xf]  ;;  %v4144_v61 = vrot.slane %v4142_v56, 5  ;;  %v12407_v44 = vrot.slane %v4900_v41, 5  ;;  %v6015_v47 = vunpack.c.l.b16 %v4879_v9  ;;  %v12423_v56 = vld [vmem:[%s13362_s3 + $0x208] sm:$0xff]  ;;  %7970 = vmatpush.bf16.msra.mxu3 %v9611_v54 }
 0x355   : > { %13470 = vst [vmem:[#allocation91_spill] sm:$0xff] %v12365_v13  ;;  %v4891_v30 = vshrl.u32 %v4512_v19, 16  ;;  %v4155_v52 = vor.u32 %v4154_v14, %v12396_v31  ;;  %v5290_v27 = vor.u32 %v5289_v37, %v12381_v28  ;;  %v9711_v37 = vld [vmem:[#allocation2 + $0x74] sm:$0x1] }
 0x356   : > { %v4889_v0 = vsel %vm9879_vm5, %v4884_v10, %v4888_v18  ;;  %v5300_v10 = vor.u32 %v5299_v46, %v12383_v2  ;;  %v5303_v18 = vshll.u32 %v5129_v1, 16  ;;  %v4906_v46 = vrot.slane %v4904_v40, 4  ;;  %v5105_v1 = vld [vmem:[#allocation2 + $0x6c] sm:$0xf]  ;;  %v5106_v40 = vld [vmem:[#allocation2 + $0x70] sm:$0xf] }
 0x357   : > { %v12379_v62 = vpop.f32.mrf.mxu2  ;;  %v4893_v7 = vrot.slane %v4891_v30, 4  ;;  %v7530_v30 = vadd.f32 %v11670_v39, %v10964_v34  ;;  %v5291_v13 = vrot.slane %v5290_v27, 4  ;;  %v5308_v39 = vshrl.u32 %v5105_v1, 16 }
 0x358   : > { %13472 = vst [vmem:[#allocation93_spill] sm:$0xff] %v12379_v62  ;;  %v12403_v62 = vpop.f32.mrf.mxu1  ;;  %v5301_v51 = vrot.slane %v5300_v10, 4  ;;  %v5305_v41 = vrot.slane %v5303_v18, 5  ;;  %v4907_v10 = vor.u32 %v4906_v46, %v12407_v44  ;;  %v5311_v18 = vshll.u32 %v5105_v1, 16  ;;  %v9561_v46 = vld [vmem:[#allocation2 + $0x78] sm:$0xff] }
 0x359   : > { %13475 = vst [vmem:[#allocation96_spill] sm:$0xff] %v12403_v62 }
 0x35a   : > { %v5306_v34 = vsel %vm9879_vm5, %v5301_v51, %v5305_v41  ;;  %v4908_v27 = vrot.slane %v4907_v10, 4 }
 0x35b   : > { %8097 = vmatmul.bf16.gmra.mxu1 %v9560_v48  ;;  %v4894_v48 = vshll.u32 %v4512_v19, 16  ;;  %v6016_v19 = vunpack.c.l.b16 %v4889_v0  ;;  %v4529_v0 = vld [vmem:[#allocation2 + $0xc8] sm:$0x1]  ;;  %v6208_v1 = vunpack.c.l.b16 %v5306_v34 }
 0x35c   : > { %v12394_v20 = vpop.f32.mrf.mxu3  ;;  %v4910_v9 = vshll.u32 %v4529_v0, 16 }
 0x35d   : > { %13474 = vst [vmem:[#allocation95_spill] sm:$0xff] %v12394_v20  ;;  %8176 = vmatmul.bf16.gmra.mxu0 %v6232_v45  ;;  %v4896_v63 = vrot.slane %v4894_v48, 5  ;;  %v12412_v20 = vld [vmem:[%s13362_s3 + $0x210] sm:$0xff]  ;;  %v12427_v48 = vpop.f32.mrf.mxu0  ;;  %v6033_v28 = vpack.c.b16 %v6016_v19, %v6015_v47  ;;  %v4145_v45 = vor.u32 %v4144_v61, %v4141_v55  ;;  %v5317_v19 = vshll.u32 %v5106_v40, 16 }
 0x35e   : > { %8237 = vmatpush.bf16.msra.mxu2 %v12412_v20  ;;  %13477 = vst [vmem:[#allocation98_spill] sm:$0xff] %v12427_v48  ;;  %v5321_v55 = vshrl.u32 %v5106_v40, 16  ;;  %v4912_v0 = vrot.slane %v4910_v9, 5 }
 0x35f   : > { %v12405_v60 = vpop.f32.mrf.mxu2  ;;  %v4897_v14 = vor.u32 %v4896_v63, %v4893_v7  ;;  %v5296_v7 = vsel %vm9879_vm5, %v5291_v13, %v12383_v2  ;;  %v3894_v63 = vld [vmem:[#allocation2 + $0x78] sm:$0xf]  ;;  %v4146_v47 = vrot.slane %v4145_v45, 4  ;;  %v12449_v41 = vrot.slane %v5317_v19, 5 }
 0x360   : > { %13476 = vst [vmem:[#allocation97_spill] sm:$0xff] %v12405_v60  ;;  %v4156_v60 = vrot.slane %v4155_v52, 4  ;;  %v12447_v2 = vpop.f32.mrf.mxu1  ;;  %v5323_v40 = vrot.slane %v5321_v55, 4  ;;  %v4166_v10 = vshll.u32 %v3894_v63, 16 }
 0x361   : > { %7657 = vmatmul.bf16.gmra.mxu3 %v5819_v59  ;;  %v4158_v59 = vshll.u32 %v9711_v37, 16  ;;  %v4898_v52 = vrot.slane %v4897_v14, 4  ;;  %13479 = vst [vmem:[#allocation100_spill] sm:$0xff] %v12447_v2  ;;  %v5310_v37 = vrot.slane %v5308_v39, 4  ;;  %v4151_v45 = vsel %vm9879_vm5, %v4146_v47, %v12396_v31  ;;  %v5130_v31 = vld [vmem:[#allocation2 + $0x74] sm:$0x1] }
 0x362   : > { %8238 = vmatpush.bf16.msra.mxu2 %v12423_v56  ;;  %v6207_v14 = vunpack.c.l.b16 %v5296_v7  ;;  %v4913_v39 = vsel %vm9879_vm5, %v4908_v27, %v4912_v0  ;;  %v5797_v7 = vunpack.c.l.b16 %v4151_v45  ;;  %v5327_v27 = vshll.u32 %v5130_v31, 16  ;;  %v9713_v45 = vld [vmem:[#allocation2 + $0x80] sm:$0x1] }
 0x363   : > { %v4160_v61 = vrot.slane %v4158_v59, 5  ;;  %v5313_v59 = vrot.slane %v5311_v18, 5  ;;  %v4903_v34 = vsel %vm9879_vm5, %v4898_v52, %v12407_v44  ;;  %v4168_v52 = vrot.slane %v4166_v10, 5 }
 0x364   : > { %v7618_v62 = vpop.f32.mrf.mxu3  ;;  %7954 = vmatmul.bf16.gmra.mxu2 %v6033_v28  ;;  %v6233_v55 = vpack.c.b16 %v6208_v1, %v6207_v14  ;;  %v7535_v1 = vadd.f32 %v11698_v33, %v11088_v49  ;;  %v4182_v14 = vshll.u32 %v9713_v45, 16  ;;  %v5329_v10 = vrot.slane %v5327_v27, 5  ;;  %v9562_v27 = vld [vmem:[#allocation2 + $0x84] sm:$0xff] }
 0x365   : > { %v12432_v48 = vadd.f32 %v7618_v62, %v7530_v30  ;;  %v12441_v62 = vld [vmem:[%s13362_s3 + $0x200] sm:$0xff]  ;;  %v4161_v54 = vsel %vm9879_vm5, %v4156_v60, %v4160_v61  ;;  %v9712_v30 = vld [vmem:[#allocation2 + $0x7c] sm:$0xf]  ;;  %v4163_v60 = vshrl.u32 %v3894_v63, 16  ;;  %v12460_v18 = vpop.f32.mrf.mxu0  ;;  %v5314_v47 = vor.u32 %v5313_v59, %v5310_v37 }
 0x366   : > { %v4172_v28 = vshll.u32 %v9712_v30, 16  ;;  %v4176_v13 = vshrl.u32 %v9712_v30, 16  ;;  %8239 = vmatpush.bf16.msra.mxu2 %v12441_v62  ;;  %v5798_v9 = vunpack.c.l.b16 %v4161_v54  ;;  %13480 = vst [vmem:[#allocation101_spill] sm:$0xff] %v12460_v18  ;;  %v5324_v63 = vor.u32 %v5323_v40, %v12449_v41  ;;  %v12468_v18 = vld [vmem:[#allocation2 + $0x7c] sm:$0xf] }
 0x367   : > { %v12443_v51 = vpop.f32.mrf.mxu2  ;;  %v6017_v54 = vunpack.c.l.b16 %v4903_v34  ;;  %v6018_v30 = vunpack.c.l.b16 %v4913_v39  ;;  %v4165_v44 = vrot.slane %v4163_v60, 4  ;;  %v5315_v60 = vrot.slane %v5314_v47, 4 }
 0x368   : > { %13478 = vst [vmem:[#allocation99_spill] sm:$0xff] %v12443_v51  ;;  %v12464_v61 = vrot.slane %v4172_v28, 5  ;;  %v5820_v2 = vpack.c.b16 %v5798_v9, %v5797_v7  ;;  %v12472_v28 = vpop.f32.mrf.mxu1  ;;  %v9714_v9 = vld [vmem:[#allocation2 + $0x1c] sm:$0xf]  ;;  %v5341_v39 = vshll.u32 %v12468_v18, 16 }
 0x369   : > { %13481 = vst [vmem:[#allocation102_spill] sm:$0xff] %v12472_v28  ;;  %v6034_v59 = vpack.c.b16 %v6018_v30, %v6017_v54  ;;  %v4169_v40 = vor.u32 %v4168_v52, %v4165_v44  ;;  %v5589_v34 = vrot.slane %v9714_v9, 5  ;;  %v5107_v7 = vld [vmem:[#allocation2 + $0x78] sm:$0xf]  ;;  %v4184_v54 = vrot.slane %v4182_v14, 5 }
 0x36a   : > { %v9715_v30 = vld [vmem:[#allocation2 + $0x88] sm:$0xf]  ;;  %v5523_v9 = vld [vmem:[#allocation2 + $0x18] sm:$0xe] }
 0x36b   : > { %8102 = vmatmul.bf16.gmra.mxu1 %v9561_v46  ;;  %v4178_v46 = vrot.slane %v4176_v13, 4  ;;  %v5325_v13 = vrot.slane %v5324_v63, 4  ;;  %v4170_v63 = vrot.slane %v4169_v40, 4  ;;  %v4196_v44 = vshll.u32 %v9715_v30, 16 }
 0x36c   : > { %v12462_v19 = vpop.f32.mrf.mxu3  ;;  %v4200_v52 = vshrl.u32 %v9715_v30, 16 }
 0x36d   : > { %8181 = vmatmul.bf16.gmra.mxu0 %v6233_v55  ;;  %v4179_v0 = vor.u32 %v4178_v46, %v12464_v61  ;;  %v5345_v55 = vshrl.u32 %v12468_v18, 16  ;;  %v5330_v31 = vsel %vm9879_vm5, %v5325_v13, %v5329_v10  ;;  %v12485_v47 = vpop.f32.mrf.mxu0  ;;  %v5332_v13 = vshrl.u32 %v5107_v7, 16 }
 0x36e   : > { %13484 = vst [vmem:[#allocation105_spill] sm:$0xff] %v12485_v47  ;;  %v5335_v10 = vshll.u32 %v5107_v7, 16  ;;  %v4175_v40 = vsel %vm9879_vm5, %v4170_v63, %v12464_v61 }
 0x36f   : > { %v12474_v37 = vpop.f32.mrf.mxu2  ;;  %v4180_v49 = vrot.slane %v4179_v0, 4  ;;  %v3896_v0 = vld [vmem:[#allocation2 + $0x84] sm:$0xf]  ;;  %v5347_v45 = vrot.slane %v5345_v55, 4  ;;  %v4202_v55 = vrot.slane %v4200_v52, 4 }
 0x370   : > { %13482 = vst [vmem:[#allocation103_spill] sm:$0xff] %v12474_v37  ;;  %v4187_v28 = vshrl.u32 %v3896_v0, 16  ;;  %v4190_v47 = vshll.u32 %v3896_v0, 16  ;;  %v12496_v37 = vld [vmem:[#allocation2 + $0x80] sm:$0x1]  ;;  %v5334_v0 = vrot.slane %v5332_v13, 4 }
 0x371   : > { %7662 = vmatmul.bf16.gmra.mxu3 %v5820_v2  ;;  %v5320_v2 = vsel %vm9879_vm5, %v5315_v60, %v12449_v41  ;;  %v4185_v41 = vsel %vm9879_vm5, %v4180_v49, %v4184_v54  ;;  %v6210_v60 = vunpack.c.l.b16 %v5330_v31  ;;  %v12498_v49 = vpop.f32.mrf.mxu1  ;;  %v8908_v54 = vrot.slane %v5523_v9, 9 }
 0x372   : > { %v6209_v14 = vunpack.c.l.b16 %v5320_v2  ;;  %13485 = vst [vmem:[#allocation106_spill] sm:$0xff] %v12498_v49  ;;  %v5800_v31 = vunpack.c.l.b16 %v4185_v41  ;;  %v5351_v49 = vshll.u32 %v12496_v37, 16  ;;  %v4189_v9 = vrot.slane %v4187_v28, 4  ;;  %v9610_v28 = vld [vmem:[%s13362_s3 + $0x148] sm:$0xff] }
 0x373   : > { %v5590_v52 = vsel %vm9849_vm4, %v8908_v54, %v5589_v34  ;;  %v4192_v51 = vrot.slane %v4190_v47, 5  ;;  %v12516_v47 = vld [vmem:[#allocation2 + $0x88] sm:$0xf]  ;;  %7971 = vmatpush.bf16.msra.mxu3 %v9610_v28  ;;  %v9720_v28 = vld [vmem:[#allocation2 + $0x94] sm:$0xf] }
 0x374   : > { %v7623_v46 = vpop.f32.mrf.mxu3  ;;  %7959 = vmatmul.bf16.gmra.mxu2 %v6034_v59  ;;  %v5591_v59 = vrot.slane %v5589_v34, 4  ;;  %v6234_v63 = vpack.c.b16 %v6210_v60, %v6209_v14  ;;  %v9717_v60 = vld [vmem:[#allocation2 + $0x8c] sm:$0x1]  ;;  %v5353_v14 = vrot.slane %v5351_v49, 5  ;;  %v9718_v34 = vld [vmem:[#allocation2 + $0x28] sm:$0xf] }
 0x375   : > { %v12478_v33 = vadd.f32 %v7623_v46, %v7535_v1  ;;  %v12487_v1 = vrot.slane %v5341_v39, 5  ;;  %v9716_v46 = vld [vmem:[#allocation2 + $0x20] sm:$0x1]  ;;  %v12494_v39 = vrot.slane %v4196_v44, 5  ;;  %v5337_v44 = vrot.slane %v5335_v10, 5 }
 0x376   : > { %v5592_v30 = vrot.slane %v9716_v46, 5  ;;  %v5799_v46 = vunpack.c.l.b16 %v4175_v40  ;;  %v4206_v13 = vshll.u32 %v9717_v60, 16  ;;  %v5109_v40 = vld [vmem:[#allocation2 + $0x84] sm:$0xf]  ;;  %v5596_v54 = vrot.slane %v9718_v34, 5  ;;  %v9563_v34 = vld [vmem:[#allocation2 + $0x90] sm:$0xff] }
 0x377   : > { %13483 = vst [vmem:[#allocation104_spill] sm:$0xff] %v12478_v33  ;;  %v12505_v2 = vpop.f32.mrf.mxu2  ;;  %v5338_v10 = vor.u32 %v5337_v44, %v5334_v0  ;;  %v5356_v49 = vshrl.u32 %v5109_v40, 16  ;;  %v5359_v44 = vshll.u32 %v5109_v40, 16  ;;  %v5365_v60 = vshll.u32 %v12516_v47, 16 }
 0x378   : > { %v5593_v7 = vsel %vm9849_vm4, %v5591_v59, %v5592_v30  ;;  %13487 = vst [vmem:[#allocation108_spill] sm:$0xff] %v12505_v2  ;;  %v4203_v59 = vor.u32 %v4202_v55, %v12494_v39  ;;  %v6259_v2 = vunpack.c.l.b16 %v5590_v52  ;;  %v4208_v52 = vrot.slane %v4206_v13, 5 }
 0x379   : > { %v6260_v41 = vunpack.c.l.b16 %v5593_v7 }
 0x37a   : > { %v4204_v7 = vrot.slane %v4203_v59, 4 }
 0x37b   : > { %8107 = vmatmul.bf16.gmra.mxu1 %v9562_v27  ;;  %v5348_v27 = vor.u32 %v5347_v45, %v12487_v1  ;;  %v5821_v45 = vpack.c.b16 %v5800_v31, %v5799_v46  ;;  %v6291_v55 = vpack.c.b16 %v6260_v41, %v6259_v2  ;;  %v4193_v31 = vor.u32 %v4192_v51, %v4189_v9  ;;  %v3898_v9 = vld [vmem:[#allocation2 + $0x90] sm:$0xf] }
 0x37c   : > { %v12503_v61 = vpop.f32.mrf.mxu3  ;;  %v5369_v51 = vshrl.u32 %v12516_v47, 16  ;;  %v5598_v41 = vrot.slane %v5596_v54, 4  ;;  %v4209_v40 = vsel %vm9879_vm5, %v4204_v7, %v4208_v52 }
 0x37d   : > { %13486 = vst [vmem:[#allocation107_spill] sm:$0xff] %v12503_v61  ;;  %8186 = vmatmul.bf16.gmra.mxu0 %v6234_v63  ;;  %v5349_v30 = vrot.slane %v5348_v27, 4  ;;  %v12511_v61 = vpop.f32.mrf.mxu0  ;;  %v7540_v27 = vadd.f32 %v11729_v35, %v11243_v32  ;;  %v12520_v63 = vpop.f32.mrf.mxu1  ;;  %v9719_v32 = vld [vmem:[#allocation2 + $0x2c] sm:$0x1] }
 0x37e   : > { %13488 = vst [vmem:[#allocation109_spill] sm:$0xff] %v12511_v61  ;;  %v5599_v35 = vrot.slane %v9719_v32, 5  ;;  %v4211_v32 = vshrl.u32 %v3898_v9, 16  ;;  %v4214_v61 = vshll.u32 %v3898_v9, 16 }
 0x37f   : > { %13489 = vst [vmem:[#allocation110_spill] sm:$0xff] %v12520_v63  ;;  %v5354_v0 = vsel %vm9879_vm5, %v5349_v30, %v5353_v14  ;;  %v12528_v59 = vpop.f32.mrf.mxu2  ;;  %v4194_v30 = vrot.slane %v4193_v31, 4  ;;  %v5524_v14 = vld [vmem:[#allocation2 + $0x24] sm:$0xe]  ;;  %v5361_v63 = vrot.slane %v5359_v44, 5  ;;  %v5371_v31 = vrot.slane %v5369_v51, 4 }
 0x380   : > { %13491 = vst [vmem:[#allocation112_spill] sm:$0xff] %v12528_v59  ;;  %v5600_v52 = vsel %vm9849_vm4, %v5598_v41, %v5599_v35 }
 0x381   : > { %7667 = vmatmul.bf16.gmra.mxu3 %v5821_v45  ;;  %v5339_v45 = vrot.slane %v5338_v10, 4  ;;  %v6212_v10 = vunpack.c.l.b16 %v5354_v0  ;;  %v8909_v0 = vrot.slane %v5524_v14, 9  ;;  %v6262_v35 = vunpack.c.l.b16 %v5600_v52  ;;  %v5111_v52 = vld [vmem:[#allocation2 + $0x90] sm:$0xf] }
 0x383   : > { %v5344_v13 = vsel %vm9879_vm5, %v5339_v45, %v12487_v1  ;;  %v4199_v1 = vsel %vm9879_vm5, %v4194_v30, %v12494_v39  ;;  %v5802_v45 = vunpack.c.l.b16 %v4209_v40  ;;  %v5597_v41 = vsel %vm9849_vm4, %v8909_v0, %v5596_v54 }
 0x384   : > { %v7628_v46 = vpop.f32.mrf.mxu3  ;;  %8240 = vmatmul.bf16.vlgmr.msra.gmra.mxu2 %v6291_v55  ;;  %v4220_v55 = vshll.u32 %v9720_v28, 16  ;;  %v6211_v59 = vunpack.c.l.b16 %v5344_v13  ;;  %v4213_v13 = vrot.slane %v4211_v32, 4  ;;  %v5801_v39 = vunpack.c.l.b16 %v4199_v1  ;;  %v9722_v1 = vld [vmem:[#allocation2 + $0x34] sm:$0xf] }
 0x385   : > { %v12526_v2 = vadd.f32 %v7628_v46, %v7540_v27  ;;  %v4224_v27 = vshrl.u32 %v9720_v28, 16  ;;  %v5358_v46 = vrot.slane %v5356_v49, 4  ;;  %v12537_v7 = vpop.f32.mrf.mxu0  ;;  %v12551_v33 = vpop.f32.mrf.mxu1  ;;  %v7545_v54 = vadd.f32 %v11775_v4, %v11309_v23 }
 0x386   : > { %13492 = vst [vmem:[#allocation113_spill] sm:$0xff] %v12537_v7  ;;  %v6235_v49 = vpack.c.b16 %v6212_v10, %v6211_v59  ;;  %v12544_v44 = vrot.slane %v4220_v55, 5  ;;  %v9721_v59 = vld [vmem:[#allocation2 + $0x98] sm:$0x1]  ;;  %v5531_v10 = vld [vmem:[#allocation2 + $0x78] sm:$0xe]  ;;  %v5822_v14 = vpack.c.b16 %v5802_v45, %v5801_v39 }
 0x387   : > { %13490 = vst [vmem:[#allocation111_spill] sm:$0xff] %v12526_v2  ;;  %v12535_v2 = vrot.slane %v5365_v60, 5  ;;  %v4226_v9 = vrot.slane %v4224_v27, 4  ;;  %v12546_v60 = vld [vmem:[#allocation2 + $0x8c] sm:$0x1]  ;;  %v5362_v28 = vor.u32 %v5361_v63, %v5358_v46  ;;  %v4230_v30 = vshll.u32 %v9721_v59, 16  ;;  %v12558_v63 = vpop.f32.mrf.mxu2 }
 0x388   : > { %13494 = vst [vmem:[#allocation115_spill] sm:$0xff] %v12551_v33  ;;  %v5375_v40 = vshll.u32 %v12546_v60, 16  ;;  %v6261_v27 = vunpack.c.l.b16 %v5597_v41  ;;  %v5603_v0 = vrot.slane %v9722_v1, 5  ;;  %v12565_v39 = vld [vmem:[#allocation2 + $0x94] sm:$0xf]  ;;  %v5648_v23 = vrot.slane %v12496_v37, 5 }
 0x389   : > { %v5372_v7 = vor.u32 %v5371_v31, %v12535_v2  ;;  %v4227_v55 = vor.u32 %v4226_v9, %v12544_v44  ;;  %13495 = vst [vmem:[#allocation116_spill] sm:$0xff] %v12558_v63  ;;  %v5363_v32 = vrot.slane %v5362_v28, 4  ;;  %v4232_v45 = vrot.slane %v4230_v30, 5  ;;  %v5525_v30 = vld [vmem:[#allocation2 + $0x30] sm:$0xe]  ;;  %v13608_v5 = vld [vmem:[#allocation112_spill] sm:$0xff] }
 0x38a   : > { %v6292_v59 = vpack.c.b16 %v6262_v35, %v6261_v27  ;;  %v5377_v9 = vrot.slane %v5375_v40, 5  ;;  %v5383_v40 = vshll.u32 %v5111_v52, 16  ;;  %v9723_v27 = vld [vmem:[#allocation2 + $0xa0] sm:$0xf] }
 0x38b   : > { %8112 = vmatmul.bf16.gmra.mxu1 %v9563_v34  ;;  %v4216_v34 = vrot.slane %v4214_v61, 5  ;;  %v5645_v61 = vrot.slane %v12468_v18, 5  ;;  %v5373_v31 = vrot.slane %v5372_v7, 4  ;;  %v5368_v18 = vsel %vm9879_vm5, %v5363_v32, %v12535_v2 }
 0x38c   : > { %v12548_v51 = vpop.f32.mrf.mxu3  ;;  %v5380_v2 = vshrl.u32 %v5111_v52, 16  ;;  %v4244_v32 = vshll.u32 %v9723_v27, 16  ;;  %v4248_v1 = vshrl.u32 %v9723_v27, 16  ;;  %v8910_v52 = vrot.slane %v5525_v30, 9 }
 0x38d   : > { %13493 = vst [vmem:[#allocation114_spill] sm:$0xff] %v12548_v51  ;;  %8191 = vmatmul.bf16.gmra.mxu0 %v6235_v49  ;;  %v4217_v46 = vor.u32 %v4216_v34, %v4213_v13  ;;  %v8916_v49 = vrot.slane %v5531_v10, 9  ;;  %v4228_v13 = vrot.slane %v4227_v55, 4  ;;  %v5647_v34 = vrot.slane %v5645_v61, 4  ;;  %v12570_v4 = vpop.f32.mrf.mxu0 }
 0x38e   : > { %13496 = vst [vmem:[#allocation117_spill] sm:$0xff] %v12570_v4  ;;  %v5378_v35 = vsel %vm9879_vm5, %v5373_v31, %v5377_v9  ;;  %v5393_v55 = vshrl.u32 %v12565_v39, 16  ;;  %v9564_v31 = vld [vmem:[#allocation2 + $0x9c] sm:$0xff]  ;;  %v6213_v9 = vunpack.c.l.b16 %v5368_v18  ;;  %v5382_v51 = vrot.slane %v5380_v2, 4 }
 0x38f   : > { %v5646_v7 = vsel %vm9849_vm4, %v8916_v49, %v5645_v61  ;;  %v4218_v41 = vrot.slane %v4217_v46, 4  ;;  %v5649_v37 = vsel %vm9849_vm4, %v5647_v34, %v5648_v23  ;;  %v3900_v61 = vld [vmem:[#allocation2 + $0x9c] sm:$0xf]  ;;  %v4233_v34 = vsel %vm9879_vm5, %v4228_v13, %v4232_v45  ;;  %v12591_v30 = vpop.f32.mrf.mxu2  ;;  %v12597_v13 = vld [vmem:[#allocation2 + $0x40] sm:$0xf] }
 0x390   : > { %v6275_v46 = vunpack.c.l.b16 %v5646_v7  ;;  %v6276_v49 = vunpack.c.l.b16 %v5649_v37  ;;  %v6214_v23 = vunpack.c.l.b16 %v5378_v35  ;;  %v4235_v7 = vshrl.u32 %v3900_v61, 16  ;;  %13499 = vst [vmem:[#allocation120_spill] sm:$0xff] %v12591_v30 }
 0x391   : > { %7672 = vmatmul.bf16.gmra.mxu3 %v5822_v14  ;;  %v5389_v14 = vshll.u32 %v12565_v39, 16  ;;  %v4223_v4 = vsel %vm9879_vm5, %v4218_v41, %v12544_v44  ;;  %v4238_v37 = vshll.u32 %v3900_v61, 16  ;;  %v5395_v18 = vrot.slane %v5393_v55, 4  ;;  %v12604_v61 = vld [vmem:[#allocation2 + $0x98] sm:$0x1] }
 0x392   : > { %v12587_v63 = vpack.c.b16 %v6276_v49, %v6275_v46  ;;  %v5804_v44 = vunpack.c.l.b16 %v4233_v34  ;;  %v13367_v41 = vrot.slane %v12597_v13, 5  ;;  %v5604_v55 = vsel %vm9849_vm4, %v8910_v52, %v5603_v0  ;;  %v9726_v34 = vld [vmem:[#allocation2 + $0xa4] sm:$0x1] }
 0x393   : > { %v12589_v27 = vrot.slane %v5389_v14, 5  ;;  %v6236_v14 = vpack.c.b16 %v6214_v23, %v6213_v9  ;;  %v4240_v2 = vrot.slane %v4238_v37, 5  ;;  %v5399_v9 = vshll.u32 %v12604_v61, 16  ;;  %v12613_v23 = vld [vmem:[#allocation2 + $0x3c] sm:$0xe] }
 0x394   : > { %v7633_v28 = vpop.f32.mrf.mxu3  ;;  %8245 = vmatmul.bf16.gmra.mxu2 %v6292_v59  ;;  %v12580_v59 = vpop.f32.mrf.mxu1  ;;  %v6263_v52 = vunpack.c.l.b16 %v5604_v55  ;;  %v7550_v55 = vadd.f32 %v11812_v50, %v11386_v3  ;;  %v9728_v3 = vld [vmem:[#allocation2 + $0xac] sm:$0xf] }
 0x395   : > { %v12574_v10 = vadd.f32 %v7633_v28, %v7545_v54  ;;  %13498 = vst [vmem:[#allocation119_spill] sm:$0xff] %v12580_v59  ;;  %v5605_v54 = vrot.slane %v5603_v0, 4  ;;  %v9724_v28 = vld [vmem:[#allocation2 + $0x38] sm:$0x1]  ;;  %v5385_v59 = vrot.slane %v5383_v40, 5  ;;  %v5396_v40 = vor.u32 %v5395_v18, %v12589_v27  ;;  %v12607_v46 = vpop.f32.mrf.mxu0 }
 0x396   : > { %v5606_v33 = vrot.slane %v9724_v28, 5  ;;  %v4250_v28 = vrot.slane %v4248_v1, 4  ;;  %v4237_v1 = vrot.slane %v4235_v7, 4  ;;  %13501 = vst [vmem:[#allocation122_spill] sm:$0xff] %v12607_v46  ;;  %v5612_v0 = vrot.slane %v13367_v41, 4  ;;  %v9565_v41 = vld [vmem:[#allocation2 + $0xa8] sm:$0xff] }
 0x397   : > { %13497 = vst [vmem:[#allocation118_spill] sm:$0xff] %v12574_v10  ;;  %v12593_v10 = vrot.slane %v4244_v32, 5  ;;  %v5803_v32 = vunpack.c.l.b16 %v4223_v4  ;;  %v4254_v4 = vshll.u32 %v9726_v34, 16  ;;  %v5397_v18 = vrot.slane %v5396_v40, 4  ;;  %v12627_v40 = vpop.f32.mrf.mxu2 }
 0x398   : > { %v5607_v45 = vsel %vm9849_vm4, %v5605_v54, %v5606_v33  ;;  %v4241_v37 = vor.u32 %v4240_v2, %v4237_v1  ;;  %v8911_v34 = vrot.slane %v12613_v23, 9  ;;  %v3902_v1 = vld [vmem:[#allocation2 + $0xa8] sm:$0xf]  ;;  %v5532_v2 = vld [vmem:[#allocation2 + $0x84] sm:$0xe]  ;;  %13502 = vst [vmem:[#allocation123_spill] sm:$0xff] %v12627_v40 }
 0x399   : > { %v6264_v33 = vunpack.c.l.b16 %v5607_v45  ;;  %v4251_v49 = vor.u32 %v4250_v28, %v12593_v10  ;;  %v5823_v54 = vpack.c.b16 %v5804_v44, %v5803_v32  ;;  %v9727_v45 = vld [vmem:[#allocation2 + $0x44] sm:$0x1]  ;;  %v5401_v32 = vrot.slane %v5399_v9, 5  ;;  %v5113_v9 = vld [vmem:[#allocation2 + $0x9c] sm:$0xf] }
 0x39a   : > { %v4268_v50 = vshll.u32 %v9728_v3, 16  ;;  %v4242_v23 = vrot.slane %v4241_v37, 4  ;;  %v5404_v46 = vshrl.u32 %v5113_v9, 16  ;;  %v5407_v40 = vshll.u32 %v5113_v9, 16 }
 0x39b   : > { %8117 = vmatmul.bf16.gmra.mxu1 %v9564_v31  ;;  %v5386_v31 = vor.u32 %v5385_v59, %v5382_v51  ;;  %v9609_v51 = vld [vmem:[%s13362_s3 + $0x140] sm:$0xff]  ;;  %v6293_v59 = vpack.c.b16 %v6264_v33, %v6263_v52  ;;  %v4252_v28 = vrot.slane %v4251_v49, 4  ;;  %v4256_v33 = vrot.slane %v4254_v4, 5 }
 0x39c   : > { %v12600_v35 = vpop.f32.mrf.mxu3  ;;  %v12615_v7 = vpop.f32.mrf.mxu1  ;;  %7972 = vmatpush.bf16.msra.mxu3 %v9609_v51  ;;  %v5652_v4 = vrot.slane %v12516_v47, 5  ;;  %v4259_v51 = vshrl.u32 %v3902_v1, 16 }
 0x39d   : > { %13500 = vst [vmem:[#allocation121_spill] sm:$0xff] %v12600_v35  ;;  %8196 = vmatmul.bf16.gmra.mxu0 %v6236_v14  ;;  %v5613_v14 = vrot.slane %v9727_v45, 5  ;;  %v5387_v44 = vrot.slane %v5386_v31, 4  ;;  %v4272_v31 = vshrl.u32 %v9728_v3, 16  ;;  %v8917_v3 = vrot.slane %v5532_v2, 9 }
 0x39f   : > { %v5392_v49 = vsel %vm9879_vm5, %v5387_v44, %v12589_v27  ;;  %v4257_v27 = vsel %vm9879_vm5, %v4252_v28, %v4256_v33  ;;  %v12642_v44 = vld [vmem:[#allocation2 + $0xa0] sm:$0xf]  ;;  %v4274_v47 = vrot.slane %v4272_v31, 4  ;;  %v9730_v28 = vld [vmem:[%s13362_s3 + $0x230] sm:$0xff]  ;;  %v5653_v9 = vsel %vm9849_vm4, %v8917_v3, %v5652_v4  ;;  %v12668_v3 = vld [vmem:[#allocation2 + $0xa4] sm:$0x1] }
 0x3a0   : > { %v5417_v37 = vshrl.u32 %v12642_v44, 16  ;;  %v5806_v31 = vunpack.c.l.b16 %v4257_v27  ;;  %v6277_v35 = vunpack.c.l.b16 %v5653_v9 }
 0x3a1   : > { %7677 = vmatmul.bf16.gmra.mxu3 %v5823_v54  ;;  %v12625_v54 = vsel %vm9849_vm4, %v5612_v0, %v5613_v14  ;;  %v9729_v0 = vld [vmem:[%s13362_s3 + $0x238] sm:$0xff]  ;;  %v5402_v14 = vsel %vm9879_vm5, %v5397_v18, %v5401_v32  ;;  %v12648_v32 = vrot.slane %v4268_v50, 5  ;;  %v4247_v50 = vsel %vm9879_vm5, %v4242_v23, %v12593_v10 }
 0x3a2   : > { %9653 = vmatpush.bf16.msrb.mxu3 %v9729_v0  ;;  %v6216_v18 = vunpack.c.l.b16 %v5402_v14  ;;  %v5419_v33 = vrot.slane %v5417_v37, 4  ;;  %v5654_v0 = vrot.slane %v5652_v4, 4  ;;  %v6215_v14 = vunpack.c.l.b16 %v5392_v49  ;;  %v9731_v49 = vld [vmem:[%s13362_s3 + $0x228] sm:$0xff] }
 0x3a3   : > { %v4275_v4 = vor.u32 %v4274_v47, %v12648_v32  ;;  %v5805_v23 = vunpack.c.l.b16 %v4247_v50 }
 0x3a4   : > { %v7638_v45 = vpop.f32.mrf.mxu3  ;;  %8250 = vmatmul.bf16.gmra.mxu2 %v6293_v59  ;;  %v4262_v59 = vshll.u32 %v3902_v1, 16  ;;  %v5655_v1 = vrot.slane %v12546_v60, 5  ;;  %v12661_v30 = vpop.f32.mrf.mxu1  ;;  %v5409_v60 = vrot.slane %v5407_v40, 5  ;;  %v6237_v37 = vpack.c.b16 %v6216_v18, %v6215_v14  ;;  %v9732_v18 = vld [vmem:[#allocation2 + $0xb0] sm:$0x1] }
 0x3a5   : > { %v12635_v52 = vadd.f32 %v7638_v45, %v7550_v55  ;;  %v5413_v55 = vshll.u32 %v12642_v44, 16  ;;  %v12646_v45 = vpop.f32.mrf.mxu0  ;;  %v4278_v47 = vshll.u32 %v9732_v18, 16  ;;  %v5824_v14 = vpack.c.b16 %v5806_v31, %v5805_v23  ;;  %v9735_v18 = vld [vmem:[#allocation2 + $0x50] sm:$0x1] }
 0x3a6   : > { %13504 = vst [vmem:[#allocation125_spill] sm:$0xff] %v12646_v45  ;;  %9654 = vmatpush.bf16.msrb.mxu3 %v9730_v28  ;;  %v4261_v45 = vrot.slane %v4259_v51, 4  ;;  %v4264_v28 = vrot.slane %v4262_v59, 5  ;;  %v12678_v51 = vpop.f32.mrf.mxu2  ;;  %v6266_v59 = vunpack.c.l.b16 %v12625_v54 }
 0x3a7   : > { %13503 = vst [vmem:[#allocation124_spill] sm:$0xff] %v12635_v52  ;;  %v12654_v2 = vrot.slane %v5413_v55, 5  ;;  %v5406_v52 = vrot.slane %v5404_v46, 4  ;;  %v13505_v46 = vrot.slane %v12597_v13, 5  ;;  %v5423_v13 = vshll.u32 %v12668_v3, 16 }
 0x3a8   : > { %13506 = vst [vmem:[#allocation126_spill] sm:$0xff] %v12678_v51  ;;  %v4265_v50 = vor.u32 %v4264_v28, %v4261_v45  ;;  %v4280_v45 = vrot.slane %v4278_v47, 5 }
 0x3a9   : > { %v5611_v40 = vsel %vm9849_vm4, %v8911_v34, %v13505_v46  ;;  %v5420_v27 = vor.u32 %v5419_v33, %v12654_v2  ;;  %v4276_v34 = vrot.slane %v4275_v4, 4  ;;  %v9734_v33 = vld [vmem:[%s13362_s3 + $0x220] sm:$0xff]  ;;  %v7555_v46 = vadd.f32 %v11847_v24, %v11466_v58 }
 0x3aa   : > { %9655 = vmatpush.bf16.msrb.mxu3 %v9731_v49  ;;  %v6265_v49 = vunpack.c.l.b16 %v5611_v40 }
 0x3ab   : > { %8122 = vmatmul.bf16.gmra.mxu1 %v9565_v41  ;;  %v5656_v41 = vsel %vm9849_vm4, %v5654_v0, %v5655_v1  ;;  %v9733_v1 = vld [vmem:[#allocation2 + $0x4c] sm:$0xf]  ;;  %v5421_v54 = vrot.slane %v5420_v27, 4  ;;  %v4281_v23 = vsel %vm9879_vm5, %v4276_v34, %v4280_v45  ;;  %v5620_v27 = vrot.slane %v9735_v18, 5 }
 0x3ac   : > { %v12665_v55 = vpop.f32.mrf.mxu3  ;;  %v6278_v10 = vunpack.c.l.b16 %v5656_v41  ;;  %v5617_v9 = vrot.slane %v9733_v1, 5  ;;  %v5410_v41 = vor.u32 %v5409_v60, %v5406_v52  ;;  %v6294_v31 = vpack.c.b16 %v6266_v59, %v6265_v49  ;;  %v12694_v1 = vpop.f32.mrf.mxu1  ;;  %v9736_v49 = vld [vmem:[#allocation2 + $0xb8] sm:$0xf] }
 0x3ad   : > { %8201 = vmatmul.bf16.gmra.mxu0 %v6237_v37  ;;  %v5527_v37 = vld [vmem:[#allocation2 + $0x48] sm:$0xe]  ;;  %v4266_v52 = vrot.slane %v4265_v50, 4  ;;  %v5425_v60 = vrot.slane %v5423_v13, 5  ;;  %v3904_v50 = vld [vmem:[#allocation2 + $0xb4] sm:$0xf] }
 0x3ae   : > { %v12681_v0 = vpack.c.b16 %v6278_v10, %v6277_v35  ;;  %9656 = vmatpush.bf16.msrb.mxu3 %v9734_v33  ;;  %v12689_v35 = vpop.f32.mrf.mxu0  ;;  %v5411_v28 = vrot.slane %v5410_v41, 4  ;;  %v5619_v10 = vrot.slane %v5617_v9, 4  ;;  %v8912_v40 = vrot.slane %v5527_v37, 9  ;;  %v5533_v41 = vld [vmem:[#allocation2 + $0x90] sm:$0xe] }
 0x3af   : > { %13507 = vst [vmem:[#allocation127_spill] sm:$0xff] %v12689_v35  ;;  %v4271_v24 = vsel %vm9879_vm5, %v4266_v52, %v12648_v32  ;;  %v5426_v47 = vsel %vm9879_vm5, %v5421_v54, %v5425_v60  ;;  %v4292_v34 = vshll.u32 %v9736_v49, 16  ;;  %v4296_v33 = vshrl.u32 %v9736_v49, 16  ;;  %v5115_v32 = vld [vmem:[#allocation2 + $0xa8] sm:$0xf] }
 0x3b0   : > { %v5416_v59 = vsel %vm9879_vm5, %v5411_v28, %v12654_v2  ;;  %v5621_v13 = vsel %vm9849_vm4, %v5619_v10, %v5620_v27  ;;  %v12710_v37 = vld [vmem:[#allocation2 + $0xac] sm:$0xf]  ;;  %v5807_v2 = vunpack.c.l.b16 %v4271_v24  ;;  %v6218_v45 = vunpack.c.l.b16 %v5426_v47 }
 0x3b1   : > { %7682 = vmatmul.bf16.gmra.mxu3 %v5824_v14  ;;  %v9566_v14 = vld [vmem:[#allocation2 + $0xb4] sm:$0xff]  ;;  %v6217_v54 = vunpack.c.l.b16 %v5416_v59  ;;  %v5428_v52 = vshrl.u32 %v5115_v32, 16  ;;  %v5437_v28 = vshll.u32 %v12710_v37, 16  ;;  %v5441_v60 = vshrl.u32 %v12710_v37, 16 }
 0x3b2   : > { %9657 = vmatpush.bf16.msrb.mxu3 %v12392_v21  ;;  %v5618_v21 = vsel %vm9849_vm4, %v8912_v40, %v5617_v9  ;;  %v5431_v9 = vshll.u32 %v5115_v32, 16  ;;  %v4283_v10 = vshrl.u32 %v3904_v50, 16  ;;  %v8918_v40 = vrot.slane %v5533_v41, 9 }
 0x3b3   : > { %v5659_v18 = vrot.slane %v12565_v39, 5  ;;  %v12718_v27 = vrot.slane %v4292_v34, 5  ;;  %v4298_v24 = vrot.slane %v4296_v33, 4  ;;  %v12722_v59 = vrot.slane %v5437_v28, 5 }
 0x3b4   : > { %v7643_v4 = vpop.f32.mrf.mxu3  ;;  %8255 = vmatmul.bf16.gmra.mxu2 %v6294_v31  ;;  %v5808_v31 = vunpack.c.l.b16 %v4281_v23  ;;  %v12720_v23 = vld [vmem:[#allocation2 + $0xb0] sm:$0x1]  ;;  %v6238_v49 = vpack.c.b16 %v6218_v45, %v6217_v54  ;;  %v5662_v41 = vrot.slane %v12604_v61, 5  ;;  %v6268_v39 = vunpack.c.l.b16 %v5621_v13  ;;  %v12736_v45 = vpop.f32.mrf.mxu1 }
 0x3b5   : > { %v12696_v58 = vadd.f32 %v7643_v4, %v7555_v46  ;;  %v12712_v46 = vpop.f32.mrf.mxu2  ;;  %v4286_v4 = vshll.u32 %v3904_v50, 16  ;;  %v5660_v32 = vsel %vm9849_vm4, %v8918_v40, %v5659_v18  ;;  %v5661_v50 = vrot.slane %v5659_v18, 4 }
 0x3b6   : > { %13508 = vst [vmem:[#allocation128_spill] sm:$0xff] %v12712_v46  ;;  %9658 = vmatpush.bf16.msrb.mxu3 %v12412_v20  ;;  %v5443_v20 = vrot.slane %v5441_v60, 4  ;;  %v12724_v47 = vpop.f32.mrf.mxu0  ;;  %v5430_v34 = vrot.slane %v5428_v52, 4  ;;  %v5433_v33 = vrot.slane %v5431_v9, 5  ;;  %v5825_v35 = vpack.c.b16 %v5808_v31, %v5807_v2  ;;  %v9737_v2 = vld [vmem:[#allocation2 + $0xbc] sm:$0x1] }
 0x3b7   : > { %v4285_v60 = vrot.slane %v4283_v10, 4  ;;  %v5447_v46 = vshll.u32 %v12720_v23, 16  ;;  %v5663_v54 = vsel %vm9849_vm4, %v5661_v50, %v5662_v41  ;;  %v4288_v40 = vrot.slane %v4286_v4, 5  ;;  %v9738_v41 = vld [vmem:[#allocation2 + $0x58] sm:$0xf] }
 0x3b8   : > { %v5444_v28 = vor.u32 %v5443_v20, %v12722_v59  ;;  %v4299_v61 = vor.u32 %v4298_v24, %v12718_v27  ;;  %v6279_v18 = vunpack.c.l.b16 %v5660_v32  ;;  %v6267_v13 = vunpack.c.l.b16 %v5618_v21 }
 0x3b9   : > { %v4302_v31 = vshll.u32 %v9737_v2, 16  ;;  %v5434_v9 = vor.u32 %v5433_v33, %v5430_v34  ;;  %v5449_v50 = vrot.slane %v5447_v46, 5  ;;  %v5624_v4 = vrot.slane %v9738_v41, 5 }
 0x3ba   : > { %9659 = vmatpush.bf16.msrb.mxu3 %v12423_v56  ;;  %v6280_v56 = vunpack.c.l.b16 %v5663_v54  ;;  %v5445_v52 = vrot.slane %v5444_v28, 4  ;;  %v7560_v24 = vadd.f32 %v11876_v57, %v11547_v8  ;;  %v4289_v32 = vor.u32 %v4288_v40, %v4285_v60  ;;  %v5117_v40 = vld [vmem:[#allocation2 + $0xb4] sm:$0xf] }
 0x3bb   : > { %8127 = vmatmul.bf16.gmra.mxu1 %v9566_v14  ;;  %v4300_v21 = vrot.slane %v4299_v61, 4  ;;  %v4304_v34 = vrot.slane %v4302_v31, 5  ;;  %v5435_v33 = vrot.slane %v5434_v9, 4  ;;  %v5626_v46 = vrot.slane %v5624_v4, 4  ;;  %v12757_v61 = vld [vmem:[#allocation2 + $0xb8] sm:$0xf] }
 0x3bc   : > { %v12726_v14 = vpop.f32.mrf.mxu3  ;;  %v12740_v10 = vpack.c.b16 %v6280_v56, %v6279_v18  ;;  %v9567_v18 = vld [vmem:[#allocation2 + $0xc0] sm:$0xff]  ;;  %v4290_v56 = vrot.slane %v4289_v32, 4  ;;  %v5461_v2 = vshll.u32 %v12757_v61, 16  ;;  %v5465_v31 = vshrl.u32 %v12757_v61, 16  ;;  %v12761_v9 = vpop.f32.mrf.mxu1 }
 0x3bd   : > { %8206 = vmatmul.bf16.gmra.mxu0 %v6238_v49  ;;  %v12742_v20 = vpop.f32.mrf.mxu2  ;;  %v6295_v49 = vpack.c.b16 %v6268_v39, %v6267_v13  ;;  %v5528_v39 = vld [vmem:[#allocation2 + $0x54] sm:$0xe]  ;;  %v4305_v8 = vsel %vm9879_vm5, %v4300_v21, %v4304_v34  ;;  %v5440_v57 = vsel %vm9879_vm5, %v5435_v33, %v12722_v59  ;;  %v5452_v13 = vshrl.u32 %v5117_v40, 16  ;;  %v12770_v34 = vld [vmem:[#allocation2 + $0xbc] sm:$0x1] }
 0x3be   : > { %9660 = vmatpush.bf16.msrb.mxu3 %v12441_v62  ;;  %13509 = vst [vmem:[#allocation129_spill] sm:$0xff] %v12742_v20  ;;  %v5450_v62 = vsel %vm9879_vm5, %v5445_v52, %v5449_v50  ;;  %v12750_v54 = vpop.f32.mrf.mxu0  ;;  %v5455_v52 = vshll.u32 %v5117_v40, 16  ;;  %v9739_v50 = vld [vmem:[#allocation2 + $0x5c] sm:$0x1]  ;;  %v4295_v59 = vsel %vm9879_vm5, %v4290_v56, %v12718_v27  ;;  %v12766_v32 = vrot.slane %v5461_v2, 5 }
 0x3bf   : > { %v6220_v60 = vunpack.c.l.b16 %v5450_v62  ;;  %v5627_v41 = vrot.slane %v9739_v50, 5  ;;  %v5467_v21 = vrot.slane %v5465_v31, 4  ;;  %v5454_v33 = vrot.slane %v5452_v13, 4 }
 0x3c0   : > { %v5457_v40 = vrot.slane %v5455_v52, 5  ;;  %v5666_v13 = vrot.slane %v12642_v44, 5 }
 0x3c1   : > { %7687 = vmatmul.bf16.gmra.mxu3 %v5825_v35  ;;  %v5628_v62 = vsel %vm9849_vm4, %v5626_v46, %v5627_v41  ;;  %v5468_v56 = vor.u32 %v5467_v21, %v12766_v32  ;;  %v5471_v46 = vshll.u32 %v12770_v34, 16  ;;  %v9740_v41 = vld [vmem:[#allocation2 + $0x10] sm:$0xf] }
 0x3c2   : > { %v5458_v51 = vor.u32 %v5457_v40, %v5454_v33 }
 0x3c3   : > { %v5473_v44 = vrot.slane %v5471_v46, 5 }
 0x3c4   : > { %v7648_v28 = vpop.f32.mrf.mxu3  ;;  %8260 = vmatmul.bf16.gmra.mxu2 %v6295_v49  ;;  %v8913_v49 = vrot.slane %v5528_v39, 9 }
 0x3c5   : > { %v12748_v35 = vadd.f32 %v7648_v28, %v7560_v24  ;;  %v6219_v24 = vunpack.c.l.b16 %v5440_v57  ;;  %v5810_v28 = vunpack.c.l.b16 %v4305_v8  ;;  %v12772_v39 = vpop.f32.mrf.mxu2  ;;  %v5809_v57 = vunpack.c.l.b16 %v4295_v59 }
 0x3c6   : > { %13511 = vst [vmem:[#allocation131_spill] sm:$0xff] %v12772_v39  ;;  %v5625_v27 = vsel %vm9849_vm4, %v8913_v49, %v5624_v4  ;;  %v6270_v8 = vunpack.c.l.b16 %v5628_v62  ;;  %v4980_v39 = vrot.slane %v9740_v41, 5  ;;  %v5668_v49 = vrot.slane %v5666_v13, 4  ;;  %v9741_v62 = vld [vmem:[#allocation2 + $0x64] sm:$0xf] }
 0x3c7   : > { %13510 = vst [vmem:[#allocation130_spill] sm:$0xff] %v12748_v35  ;;  %v6239_v20 = vpack.c.b16 %v6220_v60, %v6219_v24  ;;  %v5826_v52 = vpack.c.b16 %v5810_v28, %v5809_v57  ;;  %v6269_v31 = vunpack.c.l.b16 %v5625_v27  ;;  %v5469_v60 = vrot.slane %v5468_v56, 4  ;;  %v4914_v56 = vld [vmem:[#allocation2 + $0xc] sm:$0xe] }
 0x3c8   : > { %v7565_v59 = vadd.f32 %v11919_v38, %v11586_v11  ;;  %v4982_v28 = vrot.slane %v4980_v39, 4  ;;  %v5631_v33 = vrot.slane %v9741_v62, 5  ;;  %v5459_v57 = vrot.slane %v5458_v51, 4  ;;  %v9743_v62 = vld [vmem:[#allocation2 + $0x68] sm:$0x1] }
 0x3c9   : > { %v6296_v24 = vpack.c.b16 %v6270_v8, %v6269_v31 }
 0x3ca   : > { %v5464_v46 = vsel %vm9879_vm5, %v5459_v57, %v12766_v32  ;;  %v5633_v41 = vrot.slane %v5631_v33, 4 }
 0x3cb   : > { %8132 = vmatmul.bf16.gmra.mxu1 %v9567_v18  ;;  %v5534_v18 = vld [vmem:[#allocation2 + $0x9c] sm:$0xe]  ;;  %v6221_v32 = vunpack.c.l.b16 %v5464_v46 }
 0x3cc   : > { %v12774_v50 = vpop.f32.mrf.mxu3  ;;  %v8919_v2 = vrot.slane %v5534_v18, 9 }
 0x3cd   : > { %13512 = vst [vmem:[#allocation132_spill] sm:$0xff] %v12774_v50  ;;  %8211 = vmatmul.bf16.gmra.mxu0 %v6239_v20  ;;  %v12781_v50 = vpop.f32.mrf.mxu0  ;;  %v5669_v20 = vrot.slane %v12668_v3, 5  ;;  %v5474_v3 = vsel %vm9879_vm5, %v5469_v60, %v5473_v44  ;;  %v12796_v8 = vpop.f32.mrf.mxu2  ;;  %v12803_v60 = vld [vmem:[#allocation2 + $0xc4] sm:$0xf] }
 0x3ce   : > { %v5667_v4 = vsel %vm9849_vm4, %v8919_v2, %v5666_v13  ;;  %v9742_v2 = vld [vmem:[#allocation2 + $0x14] sm:$0x1]  ;;  %13514 = vst [vmem:[#allocation134_spill] sm:$0xff] %v12796_v8  ;;  %v6222_v51 = vunpack.c.l.b16 %v5474_v3  ;;  %v5489_v44 = vshrl.u32 %v12803_v60, 16 }
 0x3cf   : > { %v5670_v21 = vsel %vm9849_vm4, %v5668_v49, %v5669_v20  ;;  %v6281_v40 = vunpack.c.l.b16 %v5667_v4  ;;  %v4983_v13 = vrot.slane %v9742_v2, 5  ;;  %v5119_v4 = vld [vmem:[#allocation2 + $0xc0] sm:$0xf] }
 0x3d0   : > { %v6282_v18 = vunpack.c.l.b16 %v5670_v21  ;;  %v5529_v49 = vld [vmem:[#allocation2 + $0x60] sm:$0xe]  ;;  %v5476_v20 = vshrl.u32 %v5119_v4, 16  ;;  %v5491_v3 = vrot.slane %v5489_v44, 4 }
 0x3d1   : > { %7692 = vmatmul.bf16.gmra.mxu3 %v5826_v52  ;;  %v8892_v52 = vrot.slane %v4914_v56, 9  ;;  %v4984_v31 = vsel %vm9849_vm4, %v4982_v28, %v4983_v13  ;;  %v12811_v28 = vld [vmem:[#allocation2 + $0xc8] sm:$0x1]  ;;  %v8914_v13 = vrot.slane %v5529_v49, 9 }
 0x3d2   : > { %v12794_v38 = vpack.c.b16 %v6282_v18, %v6281_v40  ;;  %v5634_v40 = vrot.slane %v9743_v62, 5  ;;  %v6052_v2 = vunpack.c.l.b16 %v4984_v31  ;;  %v5495_v35 = vshll.u32 %v12811_v28, 16 }
 0x3d3   : > { %v4981_v21 = vsel %vm9849_vm4, %v8892_v52, %v4980_v39  ;;  %v6240_v39 = vpack.c.b16 %v6222_v51, %v6221_v32  ;;  %v5632_v46 = vsel %vm9849_vm4, %v8914_v13, %v5631_v33  ;;  %v7570_v33 = vadd.f32 %v11954_v29, %v11605_v17 }
 0x3d4   : > { %v7653_v27 = vpop.f32.mrf.mxu3  ;;  %8265 = vmatmul.bf16.gmra.mxu2 %v6296_v24  ;;  %v5485_v24 = vshll.u32 %v12803_v60, 16  ;;  %v6271_v44 = vunpack.c.l.b16 %v5632_v46 }
 0x3d5   : > { %v12792_v11 = vadd.f32 %v7653_v27, %v7565_v59  ;;  %v5479_v59 = vshll.u32 %v5119_v4, 16  ;;  %v12809_v18 = vpop.f32.mrf.mxu0  ;;  %v5478_v27 = vrot.slane %v5476_v20, 4  ;;  %v5635_v4 = vsel %vm9849_vm4, %v5633_v41, %v5634_v40  ;;  %v12820_v49 = vpop.f32.mrf.mxu2 }
 0x3d6   : > { %v5487_v57 = vrot.slane %v5485_v24, 5  ;;  %v6272_v20 = vunpack.c.l.b16 %v5635_v4  ;;  %v9744_v24 = vld [vmem:[#allocation2 + $0x1c] sm:$0xf]  ;;  %v9746_v4 = vld [vmem:[#allocation2 + $0x20] sm:$0x1] }
 0x3d7   : > { %13513 = vst [vmem:[#allocation133_spill] sm:$0xff] %v12792_v11  ;;  %v5481_v56 = vrot.slane %v5479_v59, 5  ;;  %v6051_v11 = vunpack.c.l.b16 %v4981_v21  ;;  %v4987_v31 = vrot.slane %v9744_v24, 5  ;;  %v5497_v21 = vrot.slane %v5495_v35, 5  ;;  %v5535_v24 = vld [vmem:[#allocation2 + $0xa8] sm:$0xe] }
 0x3d8   : > { %v5492_v62 = vor.u32 %v5491_v3, %v5487_v57  ;;  %v6297_v51 = vpack.c.b16 %v6272_v20, %v6271_v44 }
 0x3d9   : > { %v5482_v52 = vor.u32 %v5481_v56, %v5478_v27  ;;  %v6083_v59 = vpack.c.b16 %v6052_v2, %v6051_v11  ;;  %v4989_v32 = vrot.slane %v4987_v31, 4  ;;  %v9745_v27 = vld [vmem:[#allocation2 + $0x70] sm:$0xf]  ;;  %v4915_v11 = vld [vmem:[#allocation2 + $0x18] sm:$0xe] }
 0x3da   : > { %v5493_v40 = vrot.slane %v5492_v62, 4  ;;  %v5638_v56 = vrot.slane %v9745_v27, 5 }
 0x3db   : > { %v5483_v41 = vrot.slane %v5482_v52, 4  ;;  %v8893_v52 = vrot.slane %v4915_v11, 9 }
 0x3dc   : > { %v12815_v8 = vpop.f32.mrf.mxu3  ;;  %v5498_v35 = vsel %vm9879_vm5, %v5493_v40, %v5497_v21  ;;  %v5640_v29 = vrot.slane %v5638_v56, 4  ;;  %v8920_v21 = vrot.slane %v5535_v24, 9  ;;  %v9748_v24 = vld [vmem:[#allocation2 + $0x28] sm:$0xf] }
 0x3dd   : > { %8216 = vmatmul.bf16.gmra.mxu0 %v6240_v39  ;;  %v12824_v3 = vpop.f32.mrf.mxu0  ;;  %v4990_v39 = vrot.slane %v9746_v4, 5  ;;  %v5488_v46 = vsel %vm9879_vm5, %v5483_v41, %v5487_v57  ;;  %v6224_v20 = vunpack.c.l.b16 %v5498_v35  ;;  %v4988_v44 = vsel %vm9849_vm4, %v8893_v52, %v4987_v31  ;;  %v12836_v27 = vpop.f32.mrf.mxu2 }
 0x3de   : > { %v6223_v62 = vunpack.c.l.b16 %v5488_v46  ;;  %v6053_v11 = vunpack.c.l.b16 %v4988_v44  ;;  %v5676_v35 = vrot.slane %v12720_v23, 5  ;;  %v7575_v23 = vadd.f32 %v12007_v15, %v11640_v42 }
 0x3df   : > { %v4991_v17 = vsel %vm9849_vm4, %v4989_v32, %v4990_v39  ;;  %v5673_v32 = vrot.slane %v12710_v37, 5 }
 0x3e0   : > { %v6054_v57 = vunpack.c.l.b16 %v4991_v17  ;;  %v6241_v4 = vpack.c.b16 %v6224_v20, %v6223_v62  ;;  %v4994_v62 = vrot.slane %v9748_v24, 5 }
 0x3e1   : > { %7973 = vmatmul.bf16.vlgmr.msra.gmra.mxu3 %v6083_v59  ;;  %v5530_v59 = vld [vmem:[#allocation2 + $0x6c] sm:$0xe]  ;;  %v5674_v31 = vsel %vm9849_vm4, %v8920_v21, %v5673_v32  ;;  %v5675_v46 = vrot.slane %v5673_v32, 4  ;;  %v4916_v21 = vld [vmem:[#allocation2 + $0x24] sm:$0xe] }
 0x3e2   : > { %v8915_v41 = vrot.slane %v5530_v59, 9  ;;  %v6283_v20 = vunpack.c.l.b16 %v5674_v31  ;;  %v9749_v32 = vld [vmem:[#allocation2 + $0x2c] sm:$0x1] }
 0x3e3   : > { %v5677_v37 = vsel %vm9849_vm4, %v5675_v46, %v5676_v35  ;;  %v5536_v46 = vld [vmem:[#allocation2 + $0xb4] sm:$0xe] }
 0x3e4   : > { %v7658_v13 = vpop.f32.mrf.mxu3  ;;  %8270 = vmatmul.bf16.gmra.mxu2 %v6297_v51  ;;  %v9747_v51 = vld [vmem:[#allocation2 + $0x74] sm:$0x1]  ;;  %v5639_v39 = vsel %vm9849_vm4, %v8915_v41, %v5638_v56  ;;  %v6284_v44 = vunpack.c.l.b16 %v5677_v37 }
 0x3e5   : > { %v12826_v2 = vadd.f32 %v7658_v13, %v7570_v33  ;;  %v5641_v33 = vrot.slane %v9747_v51, 5  ;;  %v12848_v52 = vpop.f32.mrf.mxu0  ;;  %v6273_v59 = vunpack.c.l.b16 %v5639_v39 }
 0x3e6   : > { %v12852_v51 = vpack.c.b16 %v6284_v44, %v6283_v20  ;;  %v5683_v44 = vrot.slane %v12770_v34, 5  ;;  %v4917_v34 = vld [vmem:[#allocation2 + $0x30] sm:$0xe] }
 0x3e7   : > { %v5642_v40 = vsel %vm9849_vm4, %v5640_v29, %v5641_v33  ;;  %v6084_v29 = vpack.c.b16 %v6054_v57, %v6053_v11  ;;  %v12856_v33 = vpop.f32.mrf.mxu2  ;;  %v4996_v57 = vrot.slane %v4994_v62, 4  ;;  %v4997_v11 = vrot.slane %v9749_v32, 5 }
 0x3e8   : > { %v6274_v17 = vunpack.c.l.b16 %v5642_v40 }
 0x3e9   : > { %v4998_v39 = vsel %vm9849_vm4, %v4996_v57, %v4997_v11 }
 0x3ea   : > { %v6298_v56 = vpack.c.b16 %v6274_v17, %v6273_v59  ;;  %v6056_v35 = vunpack.c.l.b16 %v4998_v39  ;;  %v8921_v17 = vrot.slane %v5536_v46, 9  ;;  %v9751_v39 = vld [vmem:[#allocation2 + $0x38] sm:$0x1] }
 0x3ec   : > { %v12841_v13 = vpop.f32.mrf.mxu3 }
 0x3ed   : > { %8221 = vmatmul.bf16.gmra.mxu0 %v6241_v4  ;;  %v8894_v4 = vrot.slane %v4916_v21, 9 }
 0x3ef   : > { %v4995_v31 = vsel %vm9849_vm4, %v8894_v4, %v4994_v62  ;;  %v12867_v37 = vpop.f32.mrf.mxu2 }
 0x3f0   : > { %v6055_v15 = vunpack.c.l.b16 %v4995_v31  ;;  %13515 = vst [vmem:[#allocation135_spill] sm:$0xff] %v12867_v37  ;;  %v5004_v31 = vrot.slane %v9751_v39, 5  ;;  %v13538_v37 = vld [vmem:[#allocation62_spill] sm:$0xff] }
 0x3f1   : > { %7978 = vmatmul.bf16.gmra.mxu3 %v6084_v29  ;;  %v5680_v29 = vrot.slane %v12757_v61, 5  ;;  %v7580_v61 = vadd.f32 %v12076_v12, %v11675_v22  ;;  %v7582_v12 = vadd.f32 %v12108_v43, %v11692_v26  ;;  %v4918_v26 = vld [vmem:[#allocation2 + $0x3c] sm:$0xe]  ;;  %v9753_v43 = vld [vmem:[#allocation2 + $0x44] sm:$0x1] }
 0x3f2   : > { %v6085_v59 = vpack.c.b16 %v6056_v35, %v6055_v15  ;;  %v8895_v35 = vrot.slane %v4917_v34, 9  ;;  %v8896_v34 = vrot.slane %v4918_v26, 9 }
 0x3f3   : > { %v5681_v24 = vsel %vm9849_vm4, %v8921_v17, %v5680_v29  ;;  %v5682_v20 = vrot.slane %v5680_v29, 4 }
 0x3f4   : > { %v7663_v41 = vpop.f32.mrf.mxu3  ;;  %8275 = vmatmul.bf16.gmra.mxu2 %v6298_v56  ;;  %v9750_v56 = vld [vmem:[#allocation2 + $0x34] sm:$0xf] }
 0x3f5   : > { %v12858_v40 = vadd.f32 %v7663_v41, %v7575_v23  ;;  %v5001_v23 = vrot.slane %v9750_v56, 5  ;;  %v5684_v62 = vsel %vm9849_vm4, %v5682_v20, %v5683_v44  ;;  %v6285_v41 = vunpack.c.l.b16 %v5681_v24  ;;  %v9752_v20 = vld [vmem:[#allocation2 + $0x40] sm:$0xf] }
 0x3f6   : > { %v6286_v57 = vunpack.c.l.b16 %v5684_v62  ;;  %v5008_v44 = vrot.slane %v9752_v20, 5  ;;  %v13518_v62 = vld [vmem:[#allocation14_spill] sm:$0xff]  ;;  %v9754_v20 = vld [vmem:[#allocation2 + $0x4c] sm:$0xf] }
 0x3f7   : > { %v5003_v32 = vrot.slane %v5001_v23, 4  ;;  %v12881_v46 = vpop.f32.mrf.mxu2  ;;  %v5002_v22 = vsel %vm9849_vm4, %v8895_v35, %v5001_v23  ;;  %v13520_v35 = vld [vmem:[#allocation16_spill] sm:$0xff] }
 0x3f8   : > { %v12877_v11 = vpack.c.b16 %v6286_v57, %v6285_v41  ;;  %13516 = vst [vmem:[#allocation136_spill] sm:$0xff] %v12881_v46  ;;  %v13519_v41 = vld [vmem:[#allocation56_spill] sm:$0xff]  ;;  %v5010_v23 = vrot.slane %v5008_v44, 4 }
 0x3f9   : > { %v5005_v15 = vsel %vm9849_vm4, %v5003_v32, %v5004_v31  ;;  %v7585_v57 = vadd.f32 %v13519_v41, %v13518_v62  ;;  %v5011_v32 = vrot.slane %v9753_v43, 5  ;;  %v5009_v31 = vsel %vm9849_vm4, %v8896_v34, %v5008_v44  ;;  %v13523_v41 = vld [vmem:[#allocation17_spill] sm:$0xff]  ;;  %v9755_v34 = vld [vmem:[#allocation2 + $0x50] sm:$0x1] }
 0x3fa   : > { %v5015_v62 = vrot.slane %v9754_v20, 5  ;;  %v4919_v43 = vld [vmem:[#allocation2 + $0x48] sm:$0xe] }
 0x3fb   : > { %v5012_v39 = vsel %vm9849_vm4, %v5010_v23, %v5011_v32 }
 0x3fc   : > { %v12864_v42 = vpop.f32.mrf.mxu3  ;;  %v5017_v44 = vrot.slane %v5015_v62, 4 }
 0x3ff   : > { %v12891_v56 = vpop.f32.mrf.mxu2 }
 0x400   : > { %13517 = vst [vmem:[#allocation137_spill] sm:$0xff] %v12891_v56  ;;  %v13535_v56 = vld [vmem:[#allocation13_spill] sm:$0xff] }
 0x401   : > { %7983 = vmatmul.bf16.gmra.mxu3 %v6085_v59  ;;  %v6057_v59 = vunpack.c.l.b16 %v5002_v22 }
 0x404   : > { %v7668_v21 = vpop.f32.mrf.mxu3  ;;  %8280 = vmatmul.bf16.gmra.mxu2 %v12587_v63  ;;  %v6058_v63 = vunpack.c.l.b16 %v5005_v15  ;;  %v13521_v15 = vld [vmem:[#allocation59_spill] sm:$0xff] }
 0x405   : > { %v12879_v4 = vadd.f32 %v7668_v21, %v7580_v61  ;;  %v7587_v22 = vadd.f32 %v13521_v15, %v13520_v35  ;;  %v8897_v35 = vrot.slane %v4919_v43, 9 }
 0x406   : > { %v6086_v24 = vpack.c.b16 %v6058_v63, %v6057_v59  ;;  %v6059_v59 = vunpack.c.l.b16 %v5009_v31 }
 0x407   : > { %v12904_v63 = vpop.f32.mrf.mxu2  ;;  %v5016_v15 = vsel %vm9849_vm4, %v8897_v35, %v5015_v62 }
 0x408   : > { %13522 = vst [vmem:[#allocation14_spill] sm:$0xff] %v12904_v63 }
 0x40c   : > { %v7670_v17 = vpop.f32.mrf.mxu3 }
 0x40d   : > { %v12889_v29 = vadd.f32 %v7670_v17, %v7582_v12  ;;  %v6060_v12 = vunpack.c.l.b16 %v5012_v39  ;;  %v5018_v39 = vrot.slane %v9755_v34, 5 }
 0x40f   : > { %v12913_v32 = vpop.f32.mrf.mxu2  ;;  %v5019_v31 = vsel %vm9849_vm4, %v5017_v44, %v5018_v39  ;;  %v9757_v44 = vld [vmem:[#allocation2 + $0x5c] sm:$0x1] }
 0x410   : > { %13525 = vst [vmem:[#allocation56_spill] sm:$0xff] %v12913_v32  ;;  %v5025_v62 = vrot.slane %v9757_v44, 5 }
 0x411   : > { %7988 = vmatmul.bf16.gmra.mxu3 %v6086_v24  ;;  %v6087_v24 = vpack.c.b16 %v6060_v12, %v6059_v59 }
 0x414   : > { %v7673_v61 = vpop.f32.mrf.mxu3  ;;  %8285 = vmatmul.bf16.gmra.mxu2 %v12681_v0 }
 0x415   : > { %v12896_v21 = vadd.f32 %v7673_v61, %v7585_v57  ;;  %v13524_v57 = vld [vmem:[#allocation68_spill] sm:$0xff] }
 0x416   : > { %v7590_v61 = vadd.f32 %v13524_v57, %v13523_v41 }
 0x417   : > { %v12921_v59 = vpop.f32.mrf.mxu2 }
 0x41c   : > { %v7675_v0 = vpop.f32.mrf.mxu3 }
 0x41d   : > { %v12906_v17 = vadd.f32 %v7675_v0, %v7587_v22  ;;  %v6062_v22 = vunpack.c.l.b16 %v5019_v31  ;;  %v6061_v0 = vunpack.c.l.b16 %v5016_v15  ;;  %v13526_v31 = vld [vmem:[#allocation53_spill] sm:$0xff] }
 0x41e   : > { %v7597_v15 = vadd.f32 %v12280_v6, %v13526_v31  ;;  %v9759_v6 = vld [vmem:[#allocation2 + $0x68] sm:$0x1] }
 0x41f   : > { %v12929_v39 = vpop.f32.mrf.mxu2 }
 0x421   : > { %7993 = vmatmul.bf16.gmra.mxu3 %v6087_v24  ;;  %v9756_v24 = vld [vmem:[#allocation2 + $0x58] sm:$0xf] }
 0x422   : > { %v5022_v20 = vrot.slane %v9756_v24, 5  ;;  %v9758_v24 = vld [vmem:[#allocation2 + $0x64] sm:$0xf] }
 0x424   : > { %v7678_v23 = vpop.f32.mrf.mxu3  ;;  %8290 = vmatmul.bf16.gmra.mxu2 %v12740_v10  ;;  %v6088_v10 = vpack.c.b16 %v6062_v22, %v6061_v0  ;;  %v5024_v57 = vrot.slane %v5022_v20, 4 }
 0x425   : > { %v12911_v26 = vadd.f32 %v7678_v23, %v7590_v61  ;;  %v4920_v23 = vld [vmem:[#allocation2 + $0x54] sm:$0xe] }
 0x426   : > { %v8898_v43 = vrot.slane %v4920_v23, 9  ;;  %v5026_v34 = vsel %vm9849_vm4, %v5024_v57, %v5025_v62  ;;  %v4921_v62 = vld [vmem:[#allocation2 + $0x60] sm:$0xe] }
 0x427   : > { %v12937_v23 = vpop.f32.mrf.mxu2 }
 0x428   : > { %v5023_v35 = vsel %vm9849_vm4, %v8898_v43, %v5022_v20  ;;  %v5032_v43 = vrot.slane %v9759_v6, 5 }
 0x42c   : > { %v12919_v12 = vpop.f32.mrf.mxu3 }
 0x431   : > { %7998 = vmatmul.bf16.gmra.mxu3 %v6088_v10 }
 0x434   : > { %v7683_v41 = vpop.f32.mrf.mxu3  ;;  %8295 = vmatmul.bf16.gmra.mxu2 %v12794_v38  ;;  %v6064_v38 = vunpack.c.l.b16 %v5026_v34  ;;  %v8899_v34 = vrot.slane %v4921_v62, 9  ;;  %v13529_v62 = vld [vmem:[#allocation91_spill] sm:$0xff] }
 0x435   : > { %v12925_v61 = vadd.f32 %v7683_v41, %v12250_v25  ;;  %v6063_v25 = vunpack.c.l.b16 %v5023_v35  ;;  %v5029_v41 = vrot.slane %v9758_v24, 5 }
 0x437   : > { %v6089_v10 = vpack.c.b16 %v6064_v38, %v6063_v25  ;;  %v5031_v44 = vrot.slane %v5029_v41, 4  ;;  %v5030_v31 = vsel %vm9849_vm4, %v8899_v34, %v5029_v41  ;;  %v12950_v25 = vpop.f32.mrf.mxu2  ;;  %v5537_v34 = vld [vmem:[#allocation2 + $0xc0] sm:$0xe] }
 0x438   : > { %v8922_v32 = vrot.slane %v5537_v34, 9 }
 0x439   : > { %v5033_v35 = vsel %vm9849_vm4, %v5031_v44, %v5032_v43  ;;  %v5687_v44 = vrot.slane %v12803_v60, 5 }
 0x43b   : > { %v5688_v34 = vsel %vm9849_vm4, %v8922_v32, %v5687_v44 }
 0x43c   : > { %v7685_v22 = vpop.f32.mrf.mxu3 }
 0x43d   : > { %v12935_v0 = vadd.f32 %v7685_v22, %v7597_v15  ;;  %v6066_v15 = vunpack.c.l.b16 %v5033_v35 }
 0x441   : > { %8003 = vmatmul.bf16.gmra.mxu3 %v6089_v10  ;;  %v9760_v10 = vld [vmem:[#allocation2 + $0x70] sm:$0xf] }
 0x442   : > { %v5036_v24 = vrot.slane %v9760_v10, 5 }
 0x444   : > { %v7688_v57 = vpop.f32.mrf.mxu3  ;;  %8300 = vmatmul.bf16.gmra.mxu2 %v12852_v51  ;;  %v6065_v51 = vunpack.c.l.b16 %v5030_v31  ;;  %v5038_v41 = vrot.slane %v5036_v24, 4  ;;  %v9761_v31 = vld [vmem:[#allocation2 + $0x74] sm:$0x1] }
 0x445   : > { %v12941_v20 = vadd.f32 %v7688_v57, %v12298_v53  ;;  %v13528_v57 = vld [vmem:[#allocation60_spill] sm:$0xff] }
 0x446   : > { %v6090_v53 = vpack.c.b16 %v6066_v15, %v6065_v51  ;;  %v7605_v6 = vadd.f32 %v13529_v62, %v13528_v57  ;;  %v5689_v15 = vrot.slane %v5687_v44, 4  ;;  %v5690_v51 = vrot.slane %v12811_v28, 5  ;;  %v13531_v57 = vld [vmem:[#allocation64_spill] sm:$0xff]  ;;  %v13532_v62 = vld [vmem:[#allocation95_spill] sm:$0xff] }
 0x448   : > { %v5691_v28 = vsel %vm9849_vm4, %v5689_v15, %v5690_v51  ;;  %v13537_v15 = vld [vmem:[#allocation22_spill] sm:$0xff] }
 0x449   : > { %v6288_v46 = vunpack.c.l.b16 %v5691_v28  ;;  %v13539_v28 = vld [vmem:[#allocation119_spill] sm:$0xff] }
 0x44c   : > { %v7690_v38 = vpop.f32.mrf.mxu3 }
 0x44d   : > { %v12948_v22 = vadd.f32 %v7690_v38, %v12320_v16  ;;  %v4922_v16 = vld [vmem:[#allocation2 + $0x6c] sm:$0xe]  ;;  %v5039_v38 = vrot.slane %v9761_v31, 5 }
 0x44e   : > { %v8900_v10 = vrot.slane %v4922_v16, 9 }
 0x44f   : > { %13527 = vst [vmem:[#allocation16_spill] sm:$0xff] %v12948_v22  ;;  %v5040_v60 = vsel %vm9849_vm4, %v5038_v41, %v5039_v38 }
 0x450   : > { %v6068_v31 = vunpack.c.l.b16 %v5040_v60 }
 0x451   : > { %8008 = vmatmul.bf16.gmra.mxu3 %v6090_v53  ;;  %v12959_v53 = vpop.f32.mrf.mxu2 }
 0x454   : > { %v7693_v43 = vpop.f32.mrf.mxu3  ;;  %8305 = vmatmul.bf16.gmra.mxu2 %v12877_v11  ;;  %v7607_v11 = vadd.f32 %v13532_v62, %v13531_v57  ;;  %v6287_v62 = vunpack.c.l.b16 %v5688_v34  ;;  %v4923_v34 = vld [vmem:[#allocation2 + $0x78] sm:$0xe] }
 0x455   : > { %v12956_v35 = vadd.f32 %v7693_v43, %v7605_v6  ;;  %v5037_v6 = vsel %vm9849_vm4, %v8900_v10, %v5036_v24  ;;  %v13533_v43 = vld [vmem:[#allocation21_spill] sm:$0xff] }
 0x456   : > { %v7708_v63 = vadd.f32 %v13533_v43, %v12432_v48  ;;  %v6067_v57 = vunpack.c.l.b16 %v5037_v6  ;;  %v13536_v48 = vld [vmem:[#allocation24_spill] sm:$0xff]  ;;  %v9762_v43 = vld [vmem:[#allocation2 + $0x7c] sm:$0xf]  ;;  %v6305_v44 = vpack.c.b16 %v6288_v46, %v6287_v62 }
 0x457   : > { %13530 = vst [vmem:[#allocation59_spill] sm:$0xff] %v12956_v35  ;;  %v13534_v35 = vld [vmem:[#allocation3_spill] sm:$0xff]  ;;  %v5043_v22 = vrot.slane %v9762_v43, 5  ;;  %v12993_v62 = vld [vmem:[%s13364_s5] ss:$0 sm:$0xff]  ;;  %v13542_v43 = vld [vmem:[#allocation25_spill] sm:$0xff] }
 0x458   : > { %v7532_v41 = vadd.f32 %v13535_v56, %v13534_v35  ;;  %v6091_v10 = vpack.c.b16 %v6068_v31, %v6067_v57  ;;  %v7797_v60 = vadd.f32 %v13536_v48, %v7708_v63  ;;  %v12985_v57 = vpop.f32.mrf.mxu1 }
 0x459   : > { %v12979_v32 = vpop.f32.mrf.mxu2 }
 0x45a   : > { %v7621_v24 = vadd.f32 %v12462_v19, %v7532_v41  ;;  %v7886_v56 = vadd.f32 %v13538_v37, %v7797_v60  ;;  %v9763_v19 = vld [vmem:[#allocation2 + $0x80] sm:$0x1] }
 0x45b   : > { %v5046_v31 = vrot.slane %v9763_v19, 5  ;;  %v13541_v60 = vld [vmem:[#allocation104_spill] sm:$0xff] }
 0x45c   : > { %v7695_v16 = vpop.f32.mrf.mxu3  ;;  %v7710_v51 = vadd.f32 %v13537_v15, %v7621_v24  ;;  %v12995_v24 = vpop.f32.mrf.mxu0 }
 0x45d   : > { %v12975_v38 = vadd.f32 %v7695_v16, %v7607_v11  ;;  %v5045_v11 = vrot.slane %v5043_v22, 4  ;;  %v13540_v16 = vld [vmem:[#allocation26_spill] sm:$0xff] }
 0x45e   : > { %v7799_v41 = vadd.f32 %v13540_v16, %v7710_v51  ;;  %v13543_v51 = vld [vmem:[#allocation66_spill] sm:$0xff] }
 0x45f   : > { %v5047_v46 = vsel %vm9849_vm4, %v5045_v11, %v5046_v31  ;;  %v13545_v11 = vld [vmem:[#allocation15_spill] sm:$0xff] }
 0x461   : > { %8013 = vmatmul.bf16.gmra.mxu3 %v6091_v10  ;;  %v8901_v10 = vrot.slane %v4923_v34, 9  ;;  %v13006_v34 = vpop.f32.mrf.mxu2 }
 0x463   : > { %v5044_v48 = vsel %vm9849_vm4, %v8901_v10, %v5043_v22  ;;  %v13546_v22 = vld [vmem:[#allocation107_spill] sm:$0xff] }
 0x464   : > { %v7974_v35 = vpop.f32.mrf.mxu3  ;;  %8310 = vmatmul.bf16.gmra.mxu2 %v6305_v44  ;;  %v7713_v44 = vadd.f32 %v13542_v43, %v13541_v60  ;;  %v9764_v60 = vld [vmem:[#allocation2 + $0x88] sm:$0xf] }
 0x465   : > { %v7975_v6 = vadd.f32 %v7974_v35, %v7886_v56  ;;  %v7888_v56 = vadd.f32 %v13543_v51, %v7799_v41  ;;  %v6070_v35 = vunpack.c.l.b16 %v5047_v46  ;;  %v13547_v46 = vld [vmem:[#allocation28_spill] sm:$0xff]  ;;  %v5050_v43 = vrot.slane %v9764_v60, 5  ;;  %v13548_v51 = vld [vmem:[#allocation27_spill] sm:$0xff] }
 0x467   : > { %v8064_v63 = vadd.f32 %v13539_v28, %v7975_v6 }
 0x469   : > { %v8153_v37 = vadd.f32 %v12724_v47, %v8064_v63  ;;  %v13544_v47 = vld [vmem:[#allocation4_spill] sm:$0xff]  ;;  %v6069_v63 = vunpack.c.l.b16 %v5044_v48  ;;  %v13019_v48 = vpop.f32.mrf.mxu1 }
 0x46a   : > { %v7537_v6 = vadd.f32 %v13545_v11, %v13544_v47  ;;  %v13549_v11 = vld [vmem:[#allocation70_spill] sm:$0xff] }
 0x46b   : > { %v8242_v15 = vadd.f32 %v12921_v59, %v8153_v37  ;;  %v6092_v10 = vpack.c.b16 %v6070_v35, %v6069_v63  ;;  %v7802_v37 = vadd.f32 %v13547_v46, %v7713_v44  ;;  %v5052_v35 = vrot.slane %v5050_v43, 4  ;;  %v13027_v63 = vpop.f32.mrf.mxu2 }
 0x46c   : > { %v7976_v19 = vpop.f32.mrf.mxu3  ;;  %v7626_v16 = vadd.f32 %v13546_v22, %v7537_v6 }
 0x46d   : > { %v8325_v31 = vadd.f32 %v12993_v62, %v8242_v15  ;;  %v7977_v28 = vadd.f32 %v7976_v19, %v7888_v56  ;;  %v7891_v6 = vadd.f32 %v13549_v11, %v7802_v37  ;;  %v13024_v19 = vpop.f32.mrf.mxu0 }
 0x46e   : > { %v7715_v56 = vadd.f32 %v13548_v51, %v7626_v16  ;;  %v13552_v51 = vld [vmem:[#allocation30_spill] sm:$0xff] }
 0x46f   : > { %v8357_v59 = vmax.f32 %v8325_v31, 0.0  ;;  %v8066_v41 = vadd.f32 %v12615_v7, %v7977_v28  ;;  %v4924_v28 = vld [vmem:[#allocation2 + $0x84] sm:$0xe] }
 0x471   : > { %8389 = vst [vmem:[%s13013_s22] sm:$0xff] %v8357_v59  ;;  %v8155_v15 = vadd.f32 %v12750_v54, %v8066_v41  ;;  %8018 = vmatmul.bf16.gmra.mxu3 %v6092_v10  ;;  %v9765_v54 = vld [vmem:[#allocation2 + $0x8c] sm:$0x1]  ;;  %v13550_v41 = vld [vmem:[#allocation31_spill] sm:$0xff]  ;;  %v8902_v10 = vrot.slane %v4924_v28, 9  ;;  %v13043_v28 = vpop.f32.mrf.mxu1 }
 0x472   : > { %v5053_v22 = vrot.slane %v9765_v54, 5 }
 0x473   : > { %v8244_v47 = vadd.f32 %v12929_v39, %v8155_v15  ;;  %v7804_v39 = vadd.f32 %v13550_v41, %v7715_v56  ;;  %v5051_v60 = vsel %vm9849_vm4, %v8902_v10, %v5050_v43  ;;  %v13551_v15 = vld [vmem:[#allocation111_spill] sm:$0xff]  ;;  %v13555_v56 = vld [vmem:[#allocation18_spill] sm:$0xff]  ;;  %v13557_v10 = vld [vmem:[#allocation33_spill] sm:$0xff] }
 0x474   : > { %v7979_v7 = vpop.f32.mrf.mxu3  ;;  %v5054_v46 = vsel %vm9849_vm4, %v5052_v35, %v5053_v22  ;;  %v6071_v22 = vunpack.c.l.b16 %v5051_v60  ;;  %v13556_v43 = vld [vmem:[#allocation114_spill] sm:$0xff] }
 0x475   : > { %v8326_v44 = vadd.f32 %v12993_v62, %v8244_v47  ;;  %v7980_v31 = vadd.f32 %v7979_v7, %v7891_v6  ;;  %v7718_v47 = vadd.f32 %v13552_v51, %v13551_v15  ;;  %v13553_v6 = vld [vmem:[#allocation73_spill] sm:$0xff]  ;;  %v9766_v15 = vld [vmem:[#allocation2 + $0x94] sm:$0xf] }
 0x476   : > { %v7893_v7 = vadd.f32 %v13553_v6, %v7804_v39  ;;  %v5057_v51 = vrot.slane %v9766_v15, 5 }
 0x477   : > { %v8358_v59 = vmax.f32 %v8326_v44, 0.0  ;;  %v8069_v16 = vadd.f32 %v12661_v30, %v7980_v31  ;;  %v6072_v30 = vunpack.c.l.b16 %v5054_v46  ;;  %v13554_v44 = vld [vmem:[#allocation5_spill] sm:$0xff]  ;;  %v7807_v46 = vadd.f32 %v13557_v10, %v7718_v47 }
 0x478   : > { %v7542_v31 = vadd.f32 %v13555_v56, %v13554_v44  ;;  %v13559_v44 = vld [vmem:[#allocation76_spill] sm:$0xff] }
 0x479   : > { %8390 = vst [vmem:[%s13013_s22 + $0x8] sm:$0xff] %v8358_v59  ;;  %v8158_v37 = vadd.f32 %v12781_v50, %v8069_v16  ;;  %v13047_v16 = vpop.f32.mrf.mxu0  ;;  %v6093_v39 = vpack.c.b16 %v6072_v30, %v6071_v22  ;;  %v7896_v56 = vadd.f32 %v13559_v44, %v7807_v46 }
 0x47a   : > { %v7631_v59 = vadd.f32 %v13556_v43, %v7542_v31 }
 0x47b   : > { %v8247_v11 = vadd.f32 %v12937_v23, %v8158_v37  ;;  %v13051_v37 = vpop.f32.mrf.mxu2 }
 0x47c   : > { %v7981_v35 = vpop.f32.mrf.mxu3 }
 0x47d   : > { %v8327_v50 = vadd.f32 %v12993_v62, %v8247_v11  ;;  %v7982_v54 = vadd.f32 %v7981_v35, %v7893_v7  ;;  %v13558_v11 = vld [vmem:[#allocation32_spill] sm:$0xff]  ;;  %v4925_v35 = vld [vmem:[#allocation2 + $0x90] sm:$0xe] }
 0x47e   : > { %v7720_v60 = vadd.f32 %v13558_v11, %v7631_v59  ;;  %v13562_v11 = vld [vmem:[#allocation35_spill] sm:$0xff] }
 0x47f   : > { %v8359_v41 = vmax.f32 %v8327_v50, 0.0  ;;  %v8071_v23 = vadd.f32 %v12694_v1, %v7982_v54  ;;  %v5059_v1 = vrot.slane %v5057_v51, 4  ;;  %v13059_v50 = vpop.f32.mrf.mxu1  ;;  %v9767_v54 = vld [vmem:[#allocation2 + $0x98] sm:$0x1] }
 0x480   : > { %v5060_v22 = vrot.slane %v9767_v54, 5 }
 0x481   : > { %8391 = vst [vmem:[%s13013_s22 + $0x10] sm:$0xff] %v8359_v41  ;;  %v8160_v6 = vadd.f32 %v12809_v18, %v8071_v23  ;;  %8023 = vmatmul.bf16.gmra.mxu3 %v6093_v39  ;;  %v13560_v41 = vld [vmem:[#allocation36_spill] sm:$0xff]  ;;  %v13063_v23 = vpop.f32.mrf.mxu0 }
 0x482   : > { %v7809_v59 = vadd.f32 %v13560_v41, %v7720_v60  ;;  %v5061_v39 = vsel %vm9849_vm4, %v5059_v1, %v5060_v22  ;;  %v13563_v60 = vld [vmem:[#allocation78_spill] sm:$0xff]  ;;  %v13566_v22 = vld [vmem:[#allocation121_spill] sm:$0xff] }
 0x483   : > { %v8249_v7 = vadd.f32 %v12950_v25, %v8160_v6  ;;  %v8903_v25 = vrot.slane %v4925_v35, 9  ;;  %v13069_v46 = vpop.f32.mrf.mxu2  ;;  %v13561_v6 = vld [vmem:[#allocation118_spill] sm:$0xff] }
 0x484   : > { %v7984_v31 = vpop.f32.mrf.mxu3  ;;  %v7898_v44 = vadd.f32 %v13563_v60, %v7809_v59  ;;  %v9768_v59 = vld [vmem:[#allocation2 + $0xa0] sm:$0xf] }
 0x485   : > { %v8328_v30 = vadd.f32 %v12993_v62, %v8249_v7  ;;  %v7985_v47 = vadd.f32 %v7984_v31, %v7896_v56  ;;  %v5058_v15 = vsel %vm9849_vm4, %v8903_v25, %v5057_v51  ;;  %v7723_v7 = vadd.f32 %v13562_v11, %v13561_v6  ;;  %v13564_v31 = vld [vmem:[#allocation6_spill] sm:$0xff] }
 0x486   : > { %v6074_v56 = vunpack.c.l.b16 %v5061_v39  ;;  %v6073_v54 = vunpack.c.l.b16 %v5058_v15  ;;  %v13567_v25 = vld [vmem:[#allocation38_spill] sm:$0xff]  ;;  %v5064_v39 = vrot.slane %v9768_v59, 5  ;;  %v13572_v59 = vld [vmem:[#allocation40_spill] sm:$0xff] }
 0x487   : > { %v8360_v43 = vmax.f32 %v8328_v30, 0.0  ;;  %v8074_v18 = vadd.f32 %v12736_v45, %v7985_v47  ;;  %v13565_v30 = vld [vmem:[#allocation20_spill] sm:$0xff] }
 0x488   : > { %v7547_v1 = vadd.f32 %v13565_v30, %v13564_v31  ;;  %v6094_v41 = vpack.c.b16 %v6074_v56, %v6073_v54  ;;  %v5066_v31 = vrot.slane %v5064_v39, 4 }
 0x489   : > { %8392 = vst [vmem:[%s13013_s22 + $0x18] sm:$0xff] %v8360_v43  ;;  %v8163_v10 = vadd.f32 %v12824_v3, %v8074_v18  ;;  %v13087_v11 = vpop.f32.mrf.mxu0 }
 0x48a   : > { %v7636_v43 = vadd.f32 %v13566_v22, %v7547_v1  ;;  %v13570_v22 = vld [vmem:[#allocation41_spill] sm:$0xff] }
 0x48b   : > { %v8252_v45 = vadd.f32 %v12959_v53, %v8163_v10  ;;  %v7812_v53 = vadd.f32 %v13567_v25, %v7723_v7  ;;  %v13083_v10 = vpop.f32.mrf.mxu1  ;;  %v13092_v56 = vpop.f32.mrf.mxu2 }
 0x48c   : > { %v7986_v47 = vpop.f32.mrf.mxu3 }
 0x48d   : > { %v8329_v3 = vadd.f32 %v12993_v62, %v8252_v45  ;;  %v7987_v35 = vadd.f32 %v7986_v47, %v7898_v44  ;;  %v13568_v45 = vld [vmem:[#allocation37_spill] sm:$0xff]  ;;  %v4926_v47 = vld [vmem:[#allocation2 + $0x9c] sm:$0xe] }
 0x48e   : > { %v7725_v15 = vadd.f32 %v13568_v45, %v7636_v43  ;;  %v13569_v44 = vld [vmem:[#allocation81_spill] sm:$0xff] }
 0x48f   : > { %v8361_v51 = vmax.f32 %v8329_v3, 0.0  ;;  %v8076_v18 = vadd.f32 %v12761_v9, %v7987_v35  ;;  %v7901_v9 = vadd.f32 %v13569_v44, %v7812_v53  ;;  %v9769_v3 = vld [vmem:[#allocation2 + $0xa4] sm:$0x1]  ;;  %v13574_v44 = vld [vmem:[#allocation7_spill] sm:$0xff] }
 0x490   : > { %v7814_v43 = vadd.f32 %v13570_v22, %v7725_v15  ;;  %v13571_v53 = vld [vmem:[#allocation124_spill] sm:$0xff] }
 0x491   : > { %8393 = vst [vmem:[%s13013_s22 + $0x20] sm:$0xff] %v8361_v51  ;;  %v8165_v6 = vadd.f32 %v12848_v52, %v8076_v18  ;;  %8028 = vmatmul.bf16.gmra.mxu3 %v6094_v41  ;;  %v5067_v52 = vrot.slane %v9769_v3, 5  ;;  %v8904_v51 = vrot.slane %v4926_v47, 9 }
 0x493   : > { %v8254_v60 = vadd.f32 %v12979_v32, %v8165_v6  ;;  %v5068_v32 = vsel %vm9849_vm4, %v5066_v31, %v5067_v52  ;;  %v13101_v41 = vpop.f32.mrf.mxu1  ;;  %v5065_v25 = vsel %vm9849_vm4, %v8904_v51, %v5064_v39  ;;  %v7728_v6 = vadd.f32 %v13572_v59, %v13571_v53  ;;  %v13111_v31 = vpop.f32.mrf.mxu0  ;;  %v13578_v59 = vld [vmem:[#allocation87_spill] sm:$0xff] }
 0x494   : > { %v7989_v7 = vpop.f32.mrf.mxu3  ;;  %v6076_v15 = vunpack.c.l.b16 %v5068_v32  ;;  %v6075_v47 = vunpack.c.l.b16 %v5065_v25  ;;  %v13115_v3 = vpop.f32.mrf.mxu2 }
 0x495   : > { %v8330_v30 = vadd.f32 %v12993_v62, %v8254_v60  ;;  %v7990_v1 = vadd.f32 %v7989_v7, %v7901_v9  ;;  %v13575_v9 = vld [vmem:[#allocation23_spill] sm:$0xff] }
 0x496   : > { %v7552_v7 = vadd.f32 %v13575_v9, %v13574_v44  ;;  %v9771_v9 = vld [vmem:[#allocation2 + $0xb0] sm:$0x1] }
 0x497   : > { %v8362_v35 = vmax.f32 %v8330_v30, 0.0  ;;  %v8079_v54 = vadd.f32 %v12985_v57, %v7990_v1  ;;  %v13573_v57 = vld [vmem:[#allocation84_spill] sm:$0xff] }
 0x498   : > { %v7903_v60 = vadd.f32 %v13573_v57, %v7814_v43  ;;  %v7641_v39 = vadd.f32 %v12665_v55, %v7552_v7  ;;  %v9770_v43 = vld [vmem:[#allocation2 + $0xac] sm:$0xf] }
 0x499   : > { %8394 = vst [vmem:[%s13013_s22 + $0x28] sm:$0xff] %v8362_v35  ;;  %v8168_v18 = vadd.f32 %v12995_v24, %v8079_v54  ;;  %v6095_v35 = vpack.c.b16 %v6076_v15, %v6075_v47  ;;  %v13576_v54 = vld [vmem:[#allocation44_spill] sm:$0xff]  ;;  %v5071_v51 = vrot.slane %v9770_v43, 5  ;;  %v4927_v15 = vld [vmem:[#allocation2 + $0xa8] sm:$0xe] }
 0x49a   : > { %v7817_v22 = vadd.f32 %v13576_v54, %v7728_v6  ;;  %v8905_v47 = vrot.slane %v4927_v15, 9 }
 0x49b   : > { %v8257_v45 = vadd.f32 %v13006_v34, %v8168_v18  ;;  %v13577_v18 = vld [vmem:[#allocation42_spill] sm:$0xff]  ;;  %v13127_v44 = vpop.f32.mrf.mxu0 }
 0x49c   : > { %v7991_v24 = vpop.f32.mrf.mxu3  ;;  %v7730_v53 = vadd.f32 %v13577_v18, %v7641_v39  ;;  %v7906_v55 = vadd.f32 %v13578_v59, %v7817_v22  ;;  %v13582_v18 = vld [vmem:[#allocation8_spill] sm:$0xff] }
 0x49d   : > { %v8331_v30 = vadd.f32 %v12993_v62, %v8257_v45  ;;  %v7992_v1 = vadd.f32 %v7991_v24, %v7903_v60  ;;  %v13124_v45 = vpop.f32.mrf.mxu1 }
 0x49f   : > { %v8363_v52 = vmax.f32 %v8331_v30, 0.0  ;;  %v8081_v34 = vadd.f32 %v13019_v48, %v7992_v1  ;;  %v5073_v48 = vrot.slane %v5071_v51, 4  ;;  %v13579_v30 = vld [vmem:[#allocation46_spill] sm:$0xff]  ;;  %v13131_v1 = vpop.f32.mrf.mxu2 }
 0x4a1   : > { %8395 = vst [vmem:[%s13013_s22 + $0x30] sm:$0xff] %v8363_v52  ;;  %v8170_v32 = vadd.f32 %v13024_v19, %v8081_v34  ;;  %8033 = vmatmul.bf16.gmra.mxu3 %v6095_v35  ;;  %v5074_v19 = vrot.slane %v9771_v9, 5  ;;  %v5072_v34 = vsel %vm9849_vm4, %v8905_v47, %v5071_v51  ;;  %v13580_v35 = vld [vmem:[#allocation45_spill] sm:$0xff] }
 0x4a2   : > { %v7733_v54 = vadd.f32 %v13580_v35, %v12696_v58 }
 0x4a3   : > { %v8259_v25 = vadd.f32 %v13027_v63, %v8170_v32  ;;  %v7819_v63 = vadd.f32 %v13579_v30, %v7730_v53  ;;  %v5075_v39 = vsel %vm9849_vm4, %v5073_v48, %v5074_v19  ;;  %v13583_v53 = vld [vmem:[#allocation29_spill] sm:$0xff]  ;;  %v13151_v9 = vpop.f32.mrf.mxu0  ;;  %v9772_v19 = vld [vmem:[#allocation2 + $0xb8] sm:$0xf] }
 0x4a4   : > { %v7994_v57 = vpop.f32.mrf.mxu3  ;;  %v6078_v32 = vunpack.c.l.b16 %v5075_v39  ;;  %v13586_v39 = vld [vmem:[#allocation93_spill] sm:$0xff] }
 0x4a5   : > { %v8332_v60 = vadd.f32 %v12993_v62, %v8259_v25  ;;  %v7995_v6 = vadd.f32 %v7994_v57, %v7906_v55  ;;  %v7557_v25 = vadd.f32 %v13583_v53, %v13582_v18  ;;  %v13147_v51 = vpop.f32.mrf.mxu1  ;;  %v13587_v18 = vld [vmem:[#allocation51_spill] sm:$0xff] }
 0x4a7   : > { %v8364_v7 = vmax.f32 %v8332_v60, 0.0  ;;  %v8084_v24 = vadd.f32 %v13043_v28, %v7995_v6  ;;  %v13581_v28 = vld [vmem:[#allocation90_spill] sm:$0xff]  ;;  %v7646_v48 = vadd.f32 %v12726_v14, %v7557_v25  ;;  %v13584_v6 = vld [vmem:[#allocation49_spill] sm:$0xff]  ;;  %v13155_v30 = vpop.f32.mrf.mxu2 }
 0x4a8   : > { %v7908_v43 = vadd.f32 %v13581_v28, %v7819_v63  ;;  %v7822_v15 = vadd.f32 %v13584_v6, %v7733_v54  ;;  %v13585_v63 = vld [vmem:[#allocation47_spill] sm:$0xff] }
 0x4a9   : > { %8396 = vst [vmem:[%s13013_s22 + $0x38] sm:$0xff] %v8364_v7  ;;  %v8173_v52 = vadd.f32 %v13047_v16, %v8084_v24  ;;  %v6077_v16 = vunpack.c.l.b16 %v5072_v34  ;;  %v5078_v7 = vrot.slane %v9772_v19, 5  ;;  %v7735_v14 = vadd.f32 %v13585_v63, %v7646_v48  ;;  %v9773_v28 = vld [vmem:[#allocation2 + $0xbc] sm:$0x1]  ;;  %v13592_v19 = vld [vmem:[#allocation97_spill] sm:$0xff] }
 0x4ab   : > { %v8262_v22 = vadd.f32 %v13051_v37, %v8173_v52  ;;  %v6096_v37 = vpack.c.b16 %v6078_v32, %v6077_v16  ;;  %v5080_v34 = vrot.slane %v5078_v7, 4  ;;  %v7824_v53 = vadd.f32 %v13587_v18, %v7735_v14  ;;  %v13589_v16 = vld [vmem:[#allocation34_spill] sm:$0xff] }
 0x4ac   : > { %v7996_v59 = vpop.f32.mrf.mxu3 }
 0x4ad   : > { %v8333_v55 = vadd.f32 %v12993_v62, %v8262_v22  ;;  %v7997_v57 = vadd.f32 %v7996_v59, %v7908_v43  ;;  %v4928_v22 = vld [vmem:[#allocation2 + $0xb4] sm:$0xe]  ;;  %v5081_v43 = vrot.slane %v9773_v28, 5  ;;  %v13163_v25 = vpop.f32.mrf.mxu1 }
 0x4ae   : > { %v8906_v59 = vrot.slane %v4928_v22, 9 }
 0x4af   : > { %v8365_v60 = vmax.f32 %v8333_v55, 0.0  ;;  %v8086_v58 = vadd.f32 %v13059_v50, %v7997_v57  ;;  %v7911_v50 = vadd.f32 %v13586_v39, %v7822_v15  ;;  %v13588_v57 = vld [vmem:[#allocation9_spill] sm:$0xff]  ;;  %v13179_v14 = vpop.f32.mrf.mxu2 }
 0x4b0   : > { %v7562_v48 = vadd.f32 %v13589_v16, %v13588_v57  ;;  %v5121_v57 = vld [vmem:[#allocation2 + $0xcc] sm:$0xf]  ;;  %v13188_v16 = vld [vmem:[#allocation2 + $0xd0] sm:$0xf] }
 0x4b1   : > { %8397 = vst [vmem:[%s13013_s22 + $0x40] sm:$0xff] %v8365_v60  ;;  %v8175_v24 = vadd.f32 %v13063_v23, %v8086_v58  ;;  %8038 = vmatmul.bf16.gmra.mxu3 %v6096_v37  ;;  %v13171_v60 = vpop.f32.mrf.mxu0  ;;  %v5079_v58 = vsel %vm9849_vm4, %v8906_v59, %v5078_v7  ;;  %v13591_v37 = vld [vmem:[#allocation50_spill] sm:$0xff] }
 0x4b2   : > { %v6079_v7 = vunpack.c.l.b16 %v5079_v58  ;;  %v13192_v58 = vld [vmem:[#allocation2 + $0xd4] sm:$0x1] }
 0x4b3   : > { %v8264_v47 = vadd.f32 %v13069_v46, %v8175_v24  ;;  %v5082_v46 = vsel %vm9849_vm4, %v5080_v34, %v5081_v43  ;;  %v7913_v24 = vadd.f32 %v13592_v19, %v7824_v53  ;;  %v13594_v43 = vld [vmem:[#allocation55_spill] sm:$0xff]  ;;  %v13595_v53 = vld [vmem:[#allocation52_spill] sm:$0xff] }
 0x4b4   : > { %v7999_v52 = vpop.f32.mrf.mxu3  ;;  %v6080_v63 = vunpack.c.l.b16 %v5082_v46  ;;  %v13596_v19 = vld [vmem:[#allocation99_spill] sm:$0xff] }
 0x4b5   : > { %v8334_v35 = vadd.f32 %v12993_v62, %v8264_v47  ;;  %v8000_v54 = vadd.f32 %v7999_v52, %v7911_v50  ;;  %v9774_v47 = vld [vmem:[#allocation2 + $0xc4] sm:$0xf] }
 0x4b6   : > { %v5085_v39 = vrot.slane %v9774_v47, 5  ;;  %v13593_v50 = vld [vmem:[#allocation132_spill] sm:$0xff] }
 0x4b7   : > { %v8366_v32 = vmax.f32 %v8334_v35, 0.0  ;;  %v8089_v23 = vadd.f32 %v13083_v10, %v8000_v54  ;;  %v13590_v10 = vld [vmem:[#allocation130_spill] sm:$0xff]  ;;  %v7651_v52 = vadd.f32 %v13593_v50, %v7562_v48  ;;  %v4929_v54 = vld [vmem:[#allocation2 + $0xc0] sm:$0xe]  ;;  %v13190_v48 = vpop.f32.mrf.mxu1 }
 0x4b8   : > { %v7738_v6 = vadd.f32 %v13591_v37, %v13590_v10  ;;  %v5087_v18 = vrot.slane %v5085_v39, 4  ;;  %v5503_v10 = vshll.u32 %v5121_v57, 16  ;;  %v5509_v37 = vshll.u32 %v13188_v16, 16 }
 0x4b9   : > { %8398 = vst [vmem:[%s13013_s22 + $0x48] sm:$0xff] %v8366_v32  ;;  %v8178_v55 = vadd.f32 %v13087_v11, %v8089_v23  ;;  %v8907_v23 = vrot.slane %v4929_v54, 9  ;;  %v7740_v59 = vadd.f32 %v13595_v53, %v7651_v52  ;;  %v13199_v47 = vpop.f32.mrf.mxu0 }
 0x4ba   : > { %v7827_v32 = vadd.f32 %v13594_v43, %v7738_v6  ;;  %v5513_v6 = vshrl.u32 %v13188_v16, 16 }
 0x4bb   : > { %v8267_v15 = vadd.f32 %v13092_v56, %v8178_v55  ;;  %v6097_v56 = vpack.c.b16 %v6080_v63, %v6079_v7  ;;  %v9568_v55 = vld [vmem:[#allocation2 + $0xcc] sm:$0xff] }
 0x4bc   : > { %v8001_v11 = vpop.f32.mrf.mxu3  ;;  %8137 = vmatmul.bf16.gmra.mxu1 %v9568_v55  ;;  %v5515_v7 = vrot.slane %v5513_v6, 4  ;;  %v13597_v55 = vld [vmem:[#allocation58_spill] sm:$0xff]  ;;  %v13598_v6 = vld [vmem:[#allocation133_spill] sm:$0xff] }
 0x4bd   : > { %v8335_v34 = vadd.f32 %v12993_v62, %v8267_v15  ;;  %v8002_v35 = vadd.f32 %v8001_v11, %v7913_v24  ;;  %v7916_v24 = vadd.f32 %v13596_v19, %v7827_v32  ;;  %v5519_v11 = vshll.u32 %v13192_v58, 16 }
 0x4bf   : > { %v8367_v22 = vmax.f32 %v8335_v34, 0.0  ;;  %v8091_v28 = vadd.f32 %v13101_v41, %v8002_v35  ;;  %v5500_v41 = vshrl.u32 %v5121_v57, 16  ;;  %v5505_v34 = vrot.slane %v5503_v10, 5 }
 0x4c0   : > { %v5511_v35 = vrot.slane %v5509_v37, 5  ;;  %v5521_v32 = vrot.slane %v5519_v11, 5  ;;  %v7829_v57 = vadd.f32 %v13597_v55, %v7740_v59  ;;  %v13600_v11 = vld [vmem:[#allocation103_spill] sm:$0xff] }
 0x4c1   : > { %8399 = vst [vmem:[%s13013_s22 + $0x50] sm:$0xff] %v8367_v22  ;;  %v8180_v46 = vadd.f32 %v13111_v31, %v8091_v28  ;;  %8043 = vmatmul.bf16.gmra.mxu3 %v6097_v56  ;;  %v9775_v31 = vld [vmem:[#allocation2 + $0xc8] sm:$0x1]  ;;  %v5502_v52 = vrot.slane %v5500_v41, 4  ;;  %v13202_v28 = vpop.f32.mrf.mxu2 }
 0x4c2   : > { %v5088_v63 = vrot.slane %v9775_v31, 5  ;;  %v5516_v43 = vor.u32 %v5515_v7, %v5511_v35 }
 0x4c3   : > { %v8269_v15 = vadd.f32 %v13115_v3, %v8180_v46  ;;  %v5086_v3 = vsel %vm9849_vm4, %v8907_v23, %v5085_v39  ;;  %v5506_v56 = vor.u32 %v5505_v34, %v5502_v52  ;;  %v13601_v52 = vld [vmem:[#allocation10_spill] sm:$0xff]  ;;  %v13602_v34 = vld [vmem:[#allocation39_spill] sm:$0xff] }
 0x4c4   : > { %v8004_v50 = vpop.f32.mrf.mxu3  ;;  %v5089_v41 = vsel %vm9849_vm4, %v5087_v18, %v5088_v63  ;;  %v5517_v37 = vrot.slane %v5516_v43, 4  ;;  %v6081_v39 = vunpack.c.l.b16 %v5086_v3  ;;  %v7918_v18 = vadd.f32 %v13600_v11, %v7829_v57  ;;  %v5538_v57 = vld [vmem:[#allocation2 + $0xcc] sm:$0xe] }
 0x4c5   : > { %v8336_v54 = vadd.f32 %v12993_v62, %v8269_v15  ;;  %v8005_v22 = vadd.f32 %v8004_v50, %v7916_v24  ;;  %v5507_v10 = vrot.slane %v5506_v56, 4  ;;  %v13599_v15 = vld [vmem:[#allocation54_spill] sm:$0xff]  ;;  %v6082_v23 = vunpack.c.l.b16 %v5089_v41  ;;  %v8192_v56 = vpop.f32.mrf.mxu0 }
 0x4c6   : > { %v7743_v19 = vadd.f32 %v13599_v15, %v13598_v6  ;;  %v7567_v7 = vadd.f32 %v13602_v34, %v13601_v52  ;;  %v8923_v6 = vrot.slane %v5538_v57, 9  ;;  %v13604_v15 = vld [vmem:[#allocation57_spill] sm:$0xff] }
 0x4c7   : > { %v8368_v53 = vmax.f32 %v8336_v54, 0.0  ;;  %v8094_v46 = vadd.f32 %v13124_v45, %v8005_v22  ;;  %v5512_v31 = vsel %vm9879_vm5, %v5507_v10, %v5511_v35  ;;  %v5522_v45 = vsel %vm9879_vm5, %v5517_v37, %v5521_v32  ;;  %v13222_v54 = vpop.f32.mrf.mxu1 }
 0x4c8   : > { %v6225_v63 = vunpack.c.l.b16 %v5512_v31  ;;  %v6226_v50 = vunpack.c.l.b16 %v5522_v45  ;;  %v7656_v36 = vadd.f32 %v12815_v8, %v7567_v7  ;;  %v5697_v8 = vrot.slane %v13192_v58, 5 }
 0x4c9   : > { %8400 = vst [vmem:[%s13013_s22 + $0x58] sm:$0xff] %v8368_v53  ;;  %v8183_v24 = vadd.f32 %v13127_v44, %v8094_v46  ;;  %v6098_v53 = vpack.c.b16 %v6082_v23, %v6081_v39  ;;  %v13603_v46 = vld [vmem:[#allocation63_spill] sm:$0xff]  ;;  %v8281_v41 = vpop.f32.mrf.mxu2 }
 0x4ca   : > { %v6242_v35 = vpack.c.b16 %v6226_v50, %v6225_v63  ;;  %v7832_v55 = vadd.f32 %v13603_v46, %v7743_v19 }
 0x4cb   : > { %v8272_v59 = vadd.f32 %v13131_v1, %v8183_v24  ;;  %v5694_v1 = vrot.slane %v13188_v16, 5  ;;  %v7745_v16 = vadd.f32 %v13604_v15, %v7656_v36 }
 0x4cc   : > { %v8006_v44 = vpop.f32.mrf.mxu3  ;;  %8226 = vmatmul.bf16.gmra.mxu0 %v6242_v35 }
 0x4cd   : > { %v8337_v22 = vadd.f32 %v12993_v62, %v8272_v59  ;;  %v8007_v3 = vadd.f32 %v8006_v44, %v7918_v18  ;;  %v5696_v37 = vrot.slane %v5694_v1, 4  ;;  %v13606_v18 = vld [vmem:[#allocation67_spill] sm:$0xff]  ;;  %v8194_v50 = vpop.f32.mrf.mxu0  ;;  %v13607_v44 = vld [vmem:[#allocation61_spill] sm:$0xff] }
 0x4ce   : > { %v7834_v63 = vadd.f32 %v13606_v18, %v7745_v16 }
 0x4cf   : > { %v8369_v43 = vmax.f32 %v8337_v22, 0.0  ;;  %v8096_v32 = vadd.f32 %v13147_v51, %v8007_v3  ;;  %v13605_v51 = vld [vmem:[#allocation108_spill] sm:$0xff]  ;;  %v8105_v45 = vpop.f32.mrf.mxu1  ;;  %v5698_v59 = vsel %vm9849_vm4, %v5696_v37, %v5697_v8  ;;  %v7748_v22 = vadd.f32 %v13607_v44, %v12826_v2 }
 0x4d0   : > { %v7921_v39 = vadd.f32 %v13605_v51, %v7832_v55  ;;  %v6290_v34 = vunpack.c.l.b16 %v5698_v59  ;;  %v7923_v35 = vadd.f32 %v13608_v5, %v7834_v63  ;;  %v13616_v63 = vld [vmem:[#allocation120_spill] sm:$0xff] }
 0x4d1   : > { %8401 = vst [vmem:[%s13013_s22 + $0x60] sm:$0xff] %v8369_v43  ;;  %v8185_v10 = vadd.f32 %v13151_v9, %v8096_v32  ;;  %8048 = vmatmul.bf16.gmra.mxu3 %v6098_v53  ;;  %v5695_v9 = vsel %vm9849_vm4, %v8923_v6, %v5694_v1  ;;  %v8283_v7 = vpop.f32.mrf.mxu2  ;;  %v13609_v1 = vld [vmem:[#allocation11_spill] sm:$0xff]  ;;  %v13612_v6 = vld [vmem:[#allocation65_spill] sm:$0xff]  ;;  %v13617_v44 = vld [vmem:[#allocation12_spill] sm:$0xff] }
 0x4d2   : > { %v6289_v52 = vunpack.c.l.b16 %v5695_v9  ;;  %v13614_v9 = vld [vmem:[#allocation75_spill] sm:$0xff] }
 0x4d3   : > { %v8274_v24 = vadd.f32 %v13155_v30, %v8185_v10  ;;  %v13611_v10 = vld [vmem:[#allocation71_spill] sm:$0xff] }
 0x4d4   : > { %v8009_v23 = vpop.f32.mrf.mxu3  ;;  %v6306_v46 = vpack.c.b16 %v6290_v34, %v6289_v52  ;;  %v7837_v37 = vadd.f32 %v13611_v10, %v7748_v22  ;;  %v13618_v22 = vld [vmem:[#allocation48_spill] sm:$0xff] }
 0x4d5   : > { %v8338_v19 = vadd.f32 %v12993_v62, %v8274_v24  ;;  %v8010_v31 = vadd.f32 %v8009_v23, %v7921_v39  ;;  %v8197_v8 = vpop.f32.mrf.mxu0  ;;  %v13613_v24 = vld [vmem:[#allocation116_spill] sm:$0xff] }
 0x4d6   : > { %v7926_v51 = vadd.f32 %v13613_v24, %v7837_v37 }
 0x4d7   : > { %v8370_v11 = vmax.f32 %v8338_v19, 0.0  ;;  %v8099_v58 = vadd.f32 %v13163_v25, %v8010_v31  ;;  %v13610_v25 = vld [vmem:[#allocation43_spill] sm:$0xff]  ;;  %v8108_v2 = vpop.f32.mrf.mxu1 }
 0x4d8   : > { %v7572_v43 = vadd.f32 %v13610_v25, %v13609_v1  ;;  %v13619_v25 = vld [vmem:[#allocation79_spill] sm:$0xff] }
 0x4d9   : > { %8402 = vst [vmem:[%s13013_s22 + $0x68] sm:$0xff] %v8370_v11  ;;  %v8188_v30 = vadd.f32 %v13171_v60, %v8099_v58  ;;  %v8286_v39 = vpop.f32.mrf.mxu2  ;;  %v13615_v58 = vld [vmem:[#allocation69_spill] sm:$0xff] }
 0x4da   : > { %v7661_v60 = vadd.f32 %v12841_v13, %v7572_v43  ;;  %v7753_v18 = vadd.f32 %v13615_v58, %v12858_v40 }
 0x4db   : > { %v8277_v3 = vadd.f32 %v13179_v14, %v8188_v30 }
 0x4dc   : > { %v8011_v36 = vpop.f32.mrf.mxu3  ;;  %v7750_v15 = vadd.f32 %v13612_v6, %v7661_v60  ;;  %v7842_v43 = vadd.f32 %v13619_v25, %v7753_v18  ;;  %v13629_v25 = vld [vmem:[#allocation83_spill] sm:$0xff] }
 0x4dd   : > { %v8339_v32 = vadd.f32 %v12993_v62, %v8277_v3  ;;  %v8012_v53 = vadd.f32 %v8011_v36, %v7923_v35  ;;  %v8199_v52 = vpop.f32.mrf.mxu0  ;;  %v7577_v3 = vadd.f32 %v13618_v22, %v13617_v44 }
 0x4de   : > { %v7839_v59 = vadd.f32 %v13614_v9, %v7750_v15  ;;  %v13622_v15 = vld [vmem:[#allocation82_spill] sm:$0xff] }
 0x4df   : > { %v8371_v55 = vmax.f32 %v8339_v32, 0.0  ;;  %v8101_v57 = vadd.f32 %v13190_v48, %v8012_v53  ;;  %v8110_v11 = vpop.f32.mrf.mxu1  ;;  %v7666_v36 = vadd.f32 %v12864_v42, %v7577_v3 }
 0x4e0   : > { %v7928_v30 = vadd.f32 %v13616_v63, %v7839_v59  ;;  %v13626_v63 = vld [vmem:[#allocation80_spill] sm:$0xff] }
 0x4e1   : > { %8403 = vst [vmem:[%s13013_s22 + $0x70] sm:$0xff] %v8371_v55  ;;  %v8190_v14 = vadd.f32 %v13199_v47, %v8101_v57  ;;  %8315 = vmatmul.bf16.vlgmr.msrb.gmra.mxu3 %v6306_v46  ;;  %v8288_v35 = vpop.f32.mrf.mxu2  ;;  %v13621_v46 = vld [vmem:[#allocation123_spill] sm:$0xff] }
 0x4e2   : > { %v7931_v60 = vadd.f32 %v13621_v46, %v7842_v43  ;;  %v7763_v43 = vadd.f32 %v13629_v25, %v12896_v21 }
 0x4e3   : > { %v8279_v16 = vadd.f32 %v13202_v28, %v8190_v14 }
 0x4e4   : > { %v8014_v13 = vpop.f32.mrf.mxu3 }
 0x4e5   : > { %v8340_v23 = vadd.f32 %v12993_v62, %v8279_v16  ;;  %v8015_v48 = vadd.f32 %v8014_v13, %v7926_v51  ;;  %v8202_v14 = vpop.f32.mrf.mxu0  ;;  %v13624_v13 = vld [vmem:[#allocation126_spill] sm:$0xff] }
 0x4e7   : > { %v8372_v19 = vmax.f32 %v8340_v23, 0.0  ;;  %v8104_v31 = vadd.f32 %v13222_v54, %v8015_v48  ;;  %v8113_v55 = vpop.f32.mrf.mxu1 }
 0x4e9   : > { %8404 = vst [vmem:[%s13013_s22 + $0x78] sm:$0xff] %v8372_v19  ;;  %v8193_v47 = vadd.f32 %v8192_v56, %v8104_v31  ;;  %v8291_v16 = vpop.f32.mrf.mxu2 }
 0x4eb   : > { %v8282_v28 = vadd.f32 %v8281_v41, %v8193_v47  ;;  %v13620_v41 = vld [vmem:[#allocation74_spill] sm:$0xff] }
 0x4ec   : > { %v8016_v34 = vpop.f32.mrf.mxu3  ;;  %v7755_v32 = vadd.f32 %v13620_v41, %v7666_v36 }
 0x4ed   : > { %v8341_v5 = vadd.f32 %v12993_v62, %v8282_v28  ;;  %v8017_v54 = vadd.f32 %v8016_v34, %v7928_v30  ;;  %v8204_v18 = vpop.f32.mrf.mxu0  ;;  %v13627_v30 = vld [vmem:[#allocation128_spill] sm:$0xff] }
 0x4ef   : > { %v8373_v1 = vmax.f32 %v8341_v5, 0.0  ;;  %v8106_v56 = vadd.f32 %v8105_v45, %v8017_v54  ;;  %v7844_v45 = vadd.f32 %v13622_v15, %v7755_v32  ;;  %v8115_v9 = vpop.f32.mrf.mxu1  ;;  %v13633_v15 = vld [vmem:[#allocation131_spill] sm:$0xff] }
 0x4f1   : > { %8405 = vst [vmem:[%s13013_s22 + $0x80] sm:$0xff] %v8373_v1  ;;  %v8195_v40 = vadd.f32 %v8194_v50, %v8106_v56  ;;  %v13623_v50 = vld [vmem:[#allocation77_spill] sm:$0xff]  ;;  %v7933_v23 = vadd.f32 %v13624_v13, %v7844_v45 }
 0x4f2   : > { %v7758_v51 = vadd.f32 %v13623_v50, %v12879_v4  ;;  %v7760_v4 = vadd.f32 %v13626_v63, %v12889_v29 }
 0x4f3   : > { %v8284_v53 = vadd.f32 %v8283_v7, %v8195_v40 }
 0x4f4   : > { %v8019_v57 = vpop.f32.mrf.mxu3 }
 0x4f5   : > { %v8342_v10 = vadd.f32 %v12993_v62, %v8284_v53  ;;  %v8020_v37 = vadd.f32 %v8019_v57, %v7931_v60  ;;  %v13631_v57 = vld [vmem:[#allocation94_spill] sm:$0xff] }
 0x4f7   : > { %v8374_v6 = vmax.f32 %v8342_v10, 0.0  ;;  %v8109_v42 = vadd.f32 %v8108_v2, %v8020_v37  ;;  %v13625_v2 = vld [vmem:[#allocation85_spill] sm:$0xff]  ;;  %v8118_v1 = vpop.f32.mrf.mxu1  ;;  %v7852_v10 = vadd.f32 %v13631_v57, %v7763_v43 }
 0x4f8   : > { %v7847_v58 = vadd.f32 %v13625_v2, %v7758_v51 }
 0x4f9   : > { %8406 = vst [vmem:[%s13013_s22 + $0x88] sm:$0xff] %v8374_v6  ;;  %v8198_v24 = vadd.f32 %v8197_v8, %v8109_v42  ;;  %v8293_v8 = vpop.f32.mrf.mxu2  ;;  %v13632_v6 = vld [vmem:[#allocation86_spill] sm:$0xff]  ;;  %v7941_v45 = vadd.f32 %v13633_v15, %v7852_v10 }
 0x4fa   : > { %v7936_v34 = vadd.f32 %v13627_v30, %v7847_v58  ;;  %v7765_v42 = vadd.f32 %v13632_v6, %v12906_v17 }
 0x4fb   : > { %v8287_v7 = vadd.f32 %v8286_v39, %v8198_v24 }
 0x4fc   : > { %v8021_v48 = vpop.f32.mrf.mxu3 }
 0x4fd   : > { %v8343_v19 = vadd.f32 %v12993_v62, %v8287_v7  ;;  %v8022_v31 = vadd.f32 %v8021_v48, %v7933_v23  ;;  %v13634_v48 = vld [vmem:[#allocation98_spill] sm:$0xff] }
 0x4ff   : > { %v8375_v59 = vmax.f32 %v8343_v19, 0.0  ;;  %v8111_v47 = vadd.f32 %v8110_v11, %v8022_v31  ;;  %v13628_v11 = vld [vmem:[#allocation89_spill] sm:$0xff]  ;;  %v7854_v19 = vadd.f32 %v13634_v48, %v7765_v42 }
 0x500   : > { %v7849_v36 = vadd.f32 %v13628_v11, %v7760_v4  ;;  %v13640_v11 = vld [vmem:[#allocation92_spill] sm:$0xff] }
 0x501   : > { %8407 = vst [vmem:[%s13013_s22 + $0x90] sm:$0xff] %v8375_v59  ;;  %v8200_v28 = vadd.f32 %v8199_v52, %v8111_v47  ;;  %v8207_v52 = vpop.f32.mrf.mxu0  ;;  %v8296_v41 = vpop.f32.mrf.mxu2  ;;  %v13636_v47 = vld [vmem:[#allocation134_spill] sm:$0xff] }
 0x502   : > { %v7943_v2 = vadd.f32 %v13636_v47, %v7854_v19 }
 0x503   : > { %v8289_v39 = vadd.f32 %v8288_v35, %v8200_v28  ;;  %v13630_v35 = vld [vmem:[#allocation129_spill] sm:$0xff]  ;;  %v13637_v28 = vld [vmem:[#allocation19_spill] sm:$0xff] }
 0x504   : > { %v8024_v44 = vpop.f32.mrf.mxu3  ;;  %v7938_v40 = vadd.f32 %v13630_v35, %v7849_v36 }
 0x505   : > { %v8344_v22 = vadd.f32 %v12993_v62, %v8289_v39  ;;  %v8025_v3 = vadd.f32 %v8024_v44, %v7936_v34 }
 0x507   : > { %v8376_v5 = vmax.f32 %v8344_v22, 0.0  ;;  %v8114_v54 = vadd.f32 %v8113_v55, %v8025_v3  ;;  %v13639_v3 = vld [vmem:[#allocation101_spill] sm:$0xff] }
 0x509   : > { %8408 = vst [vmem:[%s13013_s22 + $0x98] sm:$0xff] %v8376_v5  ;;  %v8203_v56 = vadd.f32 %v8202_v14, %v8114_v54  ;;  %v8120_v14 = vpop.f32.mrf.mxu1  ;;  %v8298_v7 = vpop.f32.mrf.mxu2 }
 0x50b   : > { %v8292_v29 = vadd.f32 %v8291_v16, %v8203_v56  ;;  %v8209_v16 = vpop.f32.mrf.mxu0 }
 0x50c   : > { %v8026_v32 = vpop.f32.mrf.mxu3 }
 0x50d   : > { %v8345_v53 = vadd.f32 %v12993_v62, %v8292_v29  ;;  %v8027_v46 = vadd.f32 %v8026_v32, %v7938_v40  ;;  %v13641_v40 = vld [vmem:[#allocation105_spill] sm:$0xff] }
 0x50f   : > { %v8377_v60 = vmax.f32 %v8345_v53, 0.0  ;;  %v8116_v55 = vadd.f32 %v8115_v9, %v8027_v46  ;;  %v13635_v9 = vld [vmem:[#allocation88_spill] sm:$0xff] }
 0x510   : > { %v7768_v59 = vadd.f32 %v13635_v9, %v12911_v26  ;;  %v13645_v9 = vld [vmem:[#allocation113_spill] sm:$0xff] }
 0x511   : > { %8409 = vst [vmem:[%s13013_s22 + $0xa0] sm:$0xff] %v8377_v60  ;;  %v8205_v37 = vadd.f32 %v8204_v18, %v8116_v55  ;;  %v8123_v58 = vpop.f32.mrf.mxu1  ;;  %v8301_v26 = vpop.f32.mrf.mxu2  ;;  %v13642_v60 = vld [vmem:[#allocation96_spill] sm:$0xff] }
 0x512   : > { %v7857_v5 = vadd.f32 %v13639_v3, %v7768_v59  ;;  %v7773_v55 = vadd.f32 %v13642_v60, %v12925_v61 }
 0x513   : > { %v8294_v21 = vadd.f32 %v8293_v8, %v8205_v37  ;;  %v13638_v8 = vld [vmem:[#allocation72_spill] sm:$0xff]  ;;  %v8212_v30 = vpop.f32.mrf.mxu0 }
 0x514   : > { %v8029_v24 = vpop.f32.mrf.mxu3  ;;  %v7592_v63 = vadd.f32 %v13638_v8, %v13637_v28  ;;  %v7946_v56 = vadd.f32 %v12820_v49, %v7857_v5  ;;  %v13649_v5 = vld [vmem:[#allocation16_spill] sm:$0xff] }
 0x515   : > { %v8346_v50 = vadd.f32 %v12993_v62, %v8294_v21  ;;  %v8030_v51 = vadd.f32 %v8029_v24, %v7941_v45  ;;  %v13643_v21 = vld [vmem:[#allocation109_spill] sm:$0xff] }
 0x516   : > { %v7681_v34 = vadd.f32 %v12919_v12, %v7592_v63  ;;  %v7862_v15 = vadd.f32 %v13643_v21, %v7773_v55  ;;  %v13655_v21 = vld [vmem:[#allocation110_spill] sm:$0xff] }
 0x517   : > { %v8378_v13 = vmax.f32 %v8346_v50, 0.0  ;;  %v8119_v23 = vadd.f32 %v8118_v1, %v8030_v51  ;;  %v13644_v50 = vld [vmem:[#allocation100_spill] sm:$0xff] }
 0x518   : > { %v7770_v36 = vadd.f32 %v13640_v11, %v7681_v34  ;;  %v7775_v51 = vadd.f32 %v13644_v50, %v12935_v0  ;;  %v13651_v11 = vld [vmem:[#allocation136_spill] sm:$0xff] }
 0x519   : > { %8410 = vst [vmem:[%s13013_s22 + $0xa8] sm:$0xff] %v8378_v13  ;;  %v8208_v31 = vadd.f32 %v8207_v52, %v8119_v23  ;;  %v8125_v29 = vpop.f32.mrf.mxu1  ;;  %v8303_v46 = vpop.f32.mrf.mxu2 }
 0x51a   : > { %v7864_v59 = vadd.f32 %v13645_v9, %v7775_v51  ;;  %v9776_v51 = vld [vmem:[%s13364_s5] ss:$0 sm:$0xff] }
 0x51b   : > { %v8297_v17 = vadd.f32 %v8296_v41, %v8208_v31  ;;  %v7859_v41 = vadd.f32 %v13641_v40, %v7770_v36  ;;  %v8214_v32 = vpop.f32.mrf.mxu0 }
 0x51c   : > { %v8031_v18 = vpop.f32.mrf.mxu3 }
 0x51d   : > { %v8347_v4 = vadd.f32 %v12993_v62, %v8297_v17  ;;  %v8032_v39 = vadd.f32 %v8031_v18, %v7943_v2  ;;  %v7948_v49 = vadd.f32 %v12836_v27, %v7859_v41  ;;  %v13646_v2 = vld [vmem:[#allocation102_spill] sm:$0xff]  ;;  %v13647_v18 = vld [vmem:[#allocation135_spill] sm:$0xff] }
 0x51e   : > { %v7953_v28 = vadd.f32 %v13647_v18, %v7864_v59 }
 0x51f   : > { %v8379_v44 = vmax.f32 %v8347_v4, 0.0  ;;  %v8121_v22 = vadd.f32 %v8120_v14, %v8032_v39 }
 0x521   : > { %8411 = vst [vmem:[%s13013_s22 + $0xb0] sm:$0xff] %v8379_v44  ;;  %v8210_v54 = vadd.f32 %v8209_v16, %v8121_v22  ;;  %v8128_v45 = vpop.f32.mrf.mxu1  ;;  %v8306_v27 = vpop.f32.mrf.mxu2  ;;  %v13648_v44 = vld [vmem:[#allocation117_spill] sm:$0xff] }
 0x523   : > { %v8299_v1 = vadd.f32 %v8298_v7, %v8210_v54  ;;  %v8217_v24 = vpop.f32.mrf.mxu0  ;;  %v7951_v7 = vadd.f32 %v12856_v33, %v7862_v15 }
 0x524   : > { %v8034_v52 = vpop.f32.mrf.mxu3 }
 0x525   : > { %v8348_v25 = vadd.f32 %v12993_v62, %v8299_v1  ;;  %v8035_v43 = vadd.f32 %v8034_v52, %v7946_v56 }
 0x527   : > { %v8380_v35 = vmax.f32 %v8348_v25, 0.0  ;;  %v8124_v12 = vadd.f32 %v8123_v58, %v8035_v43  ;;  %v7778_v58 = vadd.f32 %v13646_v2, %v12941_v20 }
 0x529   : > { %8412 = vst [vmem:[%s13013_s22 + $0xb8] sm:$0xff] %v8380_v35  ;;  %v8213_v53 = vadd.f32 %v8212_v30, %v8124_v12  ;;  %v8130_v47 = vpop.f32.mrf.mxu1  ;;  %v8308_v39 = vpop.f32.mrf.mxu2  ;;  %v7867_v22 = vadd.f32 %v13648_v44, %v7778_v58  ;;  %v13652_v12 = vld [vmem:[#allocation122_spill] sm:$0xff] }
 0x52b   : > { %v8302_v57 = vadd.f32 %v8301_v26, %v8213_v53  ;;  %v8219_v33 = vpop.f32.mrf.mxu0  ;;  %v13650_v26 = vld [vmem:[#allocation106_spill] sm:$0xff]  ;;  %v7956_v36 = vadd.f32 %v13651_v11, %v7867_v22 }
 0x52c   : > { %v8036_v10 = vpop.f32.mrf.mxu3  ;;  %v7780_v54 = vadd.f32 %v13650_v26, %v13649_v5 }
 0x52d   : > { %v8349_v37 = vadd.f32 %v12993_v62, %v8302_v57  ;;  %v8037_v14 = vadd.f32 %v8036_v10, %v7948_v49 }
 0x52e   : > { %v7869_v40 = vadd.f32 %v13652_v12, %v7780_v54 }
 0x52f   : > { %v8381_v6 = vmax.f32 %v8349_v37, 0.0  ;;  %v8126_v42 = vadd.f32 %v8125_v29, %v8037_v14 }
 0x531   : > { %8413 = vst [vmem:[%s13013_s22 + $0xc0] sm:$0xff] %v8381_v6  ;;  %v8215_v16 = vadd.f32 %v8214_v32, %v8126_v42  ;;  %v8133_v1 = vpop.f32.mrf.mxu1  ;;  %v8311_v41 = vpop.f32.mrf.mxu2  ;;  %v13654_v42 = vld [vmem:[#allocation59_spill] sm:$0xff] }
 0x532   : > { %v7783_v15 = vadd.f32 %v13655_v21, %v13654_v42 }
 0x533   : > { %v8304_v61 = vadd.f32 %v8303_v46, %v8215_v16  ;;  %v8222_v43 = vpop.f32.mrf.mxu0  ;;  %v13653_v46 = vld [vmem:[#allocation137_spill] sm:$0xff] }
 0x534   : > { %v8039_v13 = vpop.f32.mrf.mxu3  ;;  %v7958_v60 = vadd.f32 %v13653_v46, %v7869_v40 }
 0x535   : > { %v8350_v23 = vadd.f32 %v12993_v62, %v8304_v61  ;;  %v8040_v48 = vadd.f32 %v8039_v13, %v7951_v7  ;;  %v13657_v13 = vld [vmem:[#allocation115_spill] sm:$0xff] }
 0x537   : > { %v8382_v19 = vmax.f32 %v8350_v23, 0.0  ;;  %v8129_v31 = vadd.f32 %v8128_v45, %v8040_v48  ;;  %v7785_v23 = vadd.f32 %v13657_v13, %v12975_v38  ;;  %v13658_v48 = vld [vmem:[#allocation14_spill] sm:$0xff] }
 0x539   : > { %8414 = vst [vmem:[%s13013_s22 + $0xc8] sm:$0xff] %v8382_v19  ;;  %v8218_v17 = vadd.f32 %v8217_v24, %v8129_v31  ;;  %v8135_v10 = vpop.f32.mrf.mxu1  ;;  %v8313_v16 = vpop.f32.mrf.mxu2 }
 0x53b   : > { %v8307_v0 = vadd.f32 %v8306_v27, %v8218_v17  ;;  %v8224_v6 = vpop.f32.mrf.mxu0  ;;  %v13659_v17 = vld [vmem:[#allocation127_spill] sm:$0xff] }
 0x53c   : > { %v8041_v8 = vpop.f32.mrf.mxu3 }
 0x53d   : > { %v8351_v63 = vadd.f32 %v12993_v62, %v8307_v0  ;;  %v8042_v4 = vadd.f32 %v8041_v8, %v7953_v28  ;;  %v13660_v0 = vld [vmem:[#allocation56_spill] sm:$0xff] }
 0x53f   : > { %v8383_v30 = vmax.f32 %v8351_v63, 0.0  ;;  %v8131_v34 = vadd.f32 %v8130_v47, %v8042_v4  ;;  %v7874_v47 = vadd.f32 %v13659_v17, %v7785_v23 }
 0x541   : > { %8415 = vst [vmem:[%s13013_s22 + $0xd0] sm:$0xff] %v8383_v30  ;;  %v8220_v3 = vadd.f32 %v8219_v33, %v8131_v34  ;;  %v8138_v31 = vpop.f32.mrf.mxu1  ;;  %v7963_v18 = vadd.f32 %v13660_v0, %v7874_v47 }
 0x543   : > { %v8309_v20 = vadd.f32 %v8308_v39, %v8220_v3 }
 0x544   : > { %v8044_v56 = vpop.f32.mrf.mxu3 }
 0x545   : > { %v8352_v52 = vadd.f32 %v12993_v62, %v8309_v20  ;;  %v8045_v25 = vadd.f32 %v8044_v56, %v7956_v36 }
 0x547   : > { %v8384_v29 = vmax.f32 %v8352_v52, 0.0  ;;  %v8134_v35 = vadd.f32 %v8133_v1, %v8045_v25 }
 0x549   : > { %8416 = vst [vmem:[%s13013_s22 + $0xd8] sm:$0xff] %v8384_v29  ;;  %v8223_v32 = vadd.f32 %v8222_v43, %v8134_v35  ;;  %v8227_v2 = vpop.f32.mrf.mxu0  ;;  %v8140_v8 = vpop.f32.mrf.mxu1 }
 0x54b   : > { %v8312_v53 = vadd.f32 %v8311_v41, %v8223_v32 }
 0x54c   : > { %v8046_v55 = vpop.f32.mrf.mxu3 }
 0x54d   : > { %v8353_v57 = vadd.f32 %v12993_v62, %v8312_v53  ;;  %v8047_v49 = vadd.f32 %v8046_v55, %v7958_v60  ;;  %v13656_v62 = vld [vmem:[#allocation125_spill] sm:$0xff] }
 0x54e   : > { %v7872_v7 = vadd.f32 %v13656_v62, %v7783_v15 }
 0x54f   : > { %v8385_v37 = vmax.f32 %v8353_v57, 0.0  ;;  %v8136_v14 = vadd.f32 %v8135_v10, %v8047_v49 }
 0x550   : > { %v7961_v19 = vadd.f32 %v13658_v48, %v7872_v7 }
 0x551   : > { %8417 = vst [vmem:[%s13013_s22 + $0xe0] sm:$0xff] %v8385_v37  ;;  %v8225_v45 = vadd.f32 %v8224_v6, %v8136_v14  ;;  %v8229_v30 = vpop.f32.mrf.mxu0 }
 0x553   : > { %v8314_v24 = vadd.f32 %v8313_v16, %v8225_v45 }
 0x554   : > { %v8049_v50 = vpop.f32.mrf.mxu3 }
 0x555   : > { %v8354_v61 = vadd.f32 %v9776_v51, %v8314_v24  ;;  %v8050_v9 = vadd.f32 %v8049_v50, %v7961_v19 }
 0x557   : > { %v8386_v27 = vmax.f32 %v8354_v61, 0.0  ;;  %v8139_v58 = vadd.f32 %v8138_v31, %v8050_v9 }
 0x559   : > { %8418 = vst [vmem:[%s13013_s22 + $0xe8] sm:$0xff] %v8386_v27  ;;  %v8228_v28 = vadd.f32 %v8227_v2, %v8139_v58 }
 0x55c   : > { %v8051_v59 = vpop.f32.mrf.mxu3 }
 0x55d   : > { %v8052_v33 = vadd.f32 %v8051_v59, %v7963_v18 }
 0x55f   : > { %v8141_v38 = vadd.f32 %v8140_v8, %v8052_v33 }
 0x561   : > { %v8230_v44 = vadd.f32 %v8229_v30, %v8141_v38 }
 0x564   : > { %v8316_v63 = vpop.f32.mrf.mxu3 }
 0x565   : > { %v8317_v4 = vadd.f32 %v8316_v63, %v8228_v28 }
 0x567   : > { %v8355_v39 = vadd.f32 %v9776_v51, %v8317_v4 }
 0x569   : > { %v8387_v34 = vmax.f32 %v8355_v39, 0.0 }
 0x56b   : > { %8419 = vst [vmem:[%s13013_s22 + $0xf0] sm:$0xff] %v8387_v34 }
 0x56c   : > { %v8318_v22 = vpop.f32.mrf.mxu3 }
 0x56d   : > { %v8319_v3 = vadd.f32 %v8318_v22, %v8230_v44 }
 0x56f   : > { %v8356_v5 = vadd.f32 %v9776_v51, %v8319_v3 }
 0x571   : > { %v8388_v26 = vmax.f32 %v8356_v5, 0.0 }
 0x573   : > { %8420 = vst [vmem:[%s13013_s22 + $0xf8] sm:$0xff] %v8388_v26 }
 0x574 PF: > { %s16_s21 = sadd.s32 1, %s9783_s21  }
 0x575   : > { %p13_p4 = scmp.ge.s32.totalorder %s16_s21, 4  }
 0x577   :  { %15 = sbr.rel (!%p13_p4) target bundleno = 1 (0x1), region = 78 }

</bundles_post_ra>
